<compile_context>
chip_gen: v6e
topology: v6e:2x2x1
jax: 0.10.0
libtpu: 0.0.40
codegen_flags: <defaults>
</compile_context>

<pallas_src>
import math
from functools import partial

import jax
import jax.numpy as jnp
from jax import lax
from jax.experimental import pallas as pl
from jax.experimental.pallas import tpu as pltpu


def _layernorm(v, gamma, beta, eps):
  mean = jnp.mean(v, axis=-1, keepdims=True)
  var = jnp.mean((v - mean) ** 2, axis=-1, keepdims=True)   # biased variance
  return gamma * (v - mean) * lax.rsqrt(var + eps) + beta


def _transformer_layer_kernel(
    x_ref, wq_ref, wk_ref, wv_ref, wo_ref, bo_ref,
    g1_ref, be1_ref, g2_ref, be2_ref,
    w1_ref, b1_ref, w2_ref, b2_ref,
    o_ref,
    n1_ref, k_ref, v_ref, m_sc, l_sc, acc_sc,
    *, num_heads, head_dim, block_q, eps):
  H, hd, TQ = num_heads, head_dim, block_q
  TK = TQ
  S, D = x_ref.shape
  bf = jnp.bfloat16

  qi = pl.program_id(1)
  q_start = pl.multiple_of(qi * TQ, TQ)

  # ---- once per batch row: full-seq prenorm-1 + K/V projections -------------
  # Scratch persists across the q grid axis (marked "arbitrary"), so this runs
  # once instead of once per query block.
  @pl.when(qi == 0)
  def _prep_kv():
    g1, be1 = g1_ref[...], be1_ref[...]
    n1 = _layernorm(x_ref[...], g1, be1, eps).astype(bf)      # (S, D) bf16
    n1_ref[...] = n1
    # Head-major weights -> direct (S, hd) tiles; no (S, D) f32 intermediates
    # and no strided lane-slice repack of a big matmul result. (Per-head dots
    # also avoid an (S,H,hd)->(H,S,hd) relayout; amortized once per batch.)
    for h in range(H):
      k_ref[h] = jnp.dot(n1, wk_ref[h],
                         preferred_element_type=jnp.float32).astype(bf)
      v_ref[h] = jnp.dot(n1, wv_ref[h],
                         preferred_element_type=jnp.float32).astype(bf)

  # ---- per query block -------------------------------------------------------
  n1_q = n1_ref[pl.ds(q_start, TQ), :]                        # (TQ, D) bf16, persisted LN
  scale = 1.0 / math.sqrt(float(hd))
  # One full-width Q projection (full MXU N fill); 1/sqrt(hd) folded into Q.
  q2 = jnp.dot(n1_q, wq_ref[...], preferred_element_type=jnp.float32) * scale
  q3 = jnp.stack([q2[:, h * hd:(h + 1) * hd] for h in range(H)],
                 axis=0).astype(bf)                           # (H, TQ, hd)

  # Flash-style causal attention: only key blocks <= qi are visited; online
  # softmax; no (H, TQ, S) score tensor is materialized.
  m_sc[...] = jnp.full((H, TQ, 1), -1e30, jnp.float32)
  l_sc[...] = jnp.zeros((H, TQ, 1), jnp.float32)
  acc_sc[...] = jnp.zeros((H, TQ, hd), jnp.float32)

  row = q_start + lax.broadcasted_iota(jnp.int32, (TQ, TK), 0)

  def kv_block(k_start, masked):
    k_blk = k_ref[:, pl.ds(k_start, TK), :]                   # (H, TK, hd) bf16
    v_blk = v_ref[:, pl.ds(k_start, TK), :]
    s = jnp.einsum("hqd,hkd->hqk", q3, k_blk,
                   preferred_element_type=jnp.float32)        # (H, TQ, TK)
    if masked:                                                # diagonal block only
      col = k_start + lax.broadcasted_iota(jnp.int32, (TQ, TK), 1)
      s = jnp.where((col > row)[None, :, :], -1e30, s)        # finite fill: no inf-inf
    m_prev = m_sc[...]
    m_new = jnp.maximum(m_prev, jnp.max(s, axis=-1, keepdims=True))
    alpha = jnp.exp(m_prev - m_new)
    p = jnp.exp(s - m_new)
    l_sc[...] = alpha * l_sc[...] + jnp.sum(p, axis=-1, keepdims=True)
    acc_sc[...] = alpha * acc_sc[...] + jnp.einsum(
        "hqk,hkd->hqd", p.astype(bf), v_blk,
        preferred_element_type=jnp.float32)
    m_sc[...] = m_new

  @pl.loop(0, qi)                       # fully-unmasked off-diagonal key blocks
  def _off_diag(j):
    kv_block(pl.multiple_of(j * TK, TK), masked=False)

  kv_block(q_start, masked=True)        # diagonal block with causal mask

  # Normalize + output projection: concat heads along 128-aligned lanes and run
  # ONE (TQ, D) x (D, D) matmul -> full MXU K/N fill (no per-head loop).
  o3 = (acc_sc[...] * pl.reciprocal(l_sc[...], approx=True)).astype(bf)
  o_cat = jnp.concatenate([o3[h] for h in range(H)], axis=-1)  # (TQ, D) bf16
  attn = jnp.dot(o_cat, wo_ref[...],
                 preferred_element_type=jnp.float32) + bo_ref[...]

  x_q = x_ref[pl.ds(q_start, TQ), :]
  x1 = x_q + attn                                              # residual 1

  # ---- prenorm 2 + feed-forward (exact erf GELU) ----
  # TODO(synk): tile W1/W2 over F for very large F on v7x.
  n2 = _layernorm(x1, g2_ref[...], be2_ref[...], eps)
  h1 = jnp.dot(n2.astype(bf), w1_ref[...],
               preferred_element_type=jnp.float32) + b1_ref[...]
  h1 = 0.5 * h1 * (1.0 + lax.erf(h1 * (1.0 / math.sqrt(2.0))))
  h2 = jnp.dot(h1.astype(bf), w2_ref[...],
               preferred_element_type=jnp.float32) + b2_ref[...]

  o_ref[...] = x1 + h2                                         # residual 2


def _vmem_limit_bytes(S, D, F, H, hd, TQ):
  """Computed resident footprint with headroom (instead of a blanket 48 MiB)."""
  bfB, f32B = 2, 4
  weights = (2 * D * D + 2 * H * D * hd + 2 * D * F) * bfB     # wq, wo, wk, wv, w1, w2 (1-buffered)
  x_blk = 2 * S * D * f32B                                     # double-buffered x block
  out_blk = 2 * TQ * D * f32B
  scratch = (S * D + 2 * H * S * hd) * bfB + H * TQ * (hd + 2) * f32B
  working = (H * TQ * TQ + TQ * F + 6 * TQ * D) * f32B         # scores, ff hidden, temps
  need = weights + x_blk + out_blk + scratch + working
  return int(min(112 * 1024 * 1024, max(32 * 1024 * 1024, 2 * need)))


def transformer_layer(x, params, num_heads, *, block_q=None, eps=1e-5):
  B, S, D = x.shape
  assert D % num_heads == 0, "token_dim must be divisible by num_heads"
  hd = D // num_heads
  F = params["w1"].shape[1]

  if block_q is None:
    # 256 fills the 256-deep MXU on v6e/v7x; on v5e (4x128^2 MXU) pass 128.
    if S % 256 == 0:
      block_q = 256
    elif S % 128 == 0:
      block_q = 128
    else:
      block_q = S
  assert S % block_q == 0 and block_q % 16 == 0, "block_q must be a multiple of 16"
  nq = S // block_q

  bf = jnp.bfloat16
  head_major = lambda w: w.reshape(D, num_heads, hd).transpose(1, 0, 2).astype(bf)
  wq = params["wq"].astype(bf)                     # (D, D): one full-width Q matmul
  wk = head_major(params["wk"])                    # (H, D, hd)
  wv = head_major(params["wv"])
  wo = params["wo"].astype(bf)                     # (D, D): heads concat'd on lanes
  w1 = params["w1"].astype(bf)                     # (D, F)
  w2 = params["w2"].astype(bf)                     # (F, D)

  as_row = lambda v: jnp.asarray(v, jnp.float32).reshape(1, -1)
  bo = as_row(params["bo"])
  g1, be1 = as_row(params["g1"]), as_row(params["be1"])
  g2, be2 = as_row(params["g2"]), as_row(params["be2"])
  b1, b2 = as_row(params["b1"]), as_row(params["b2"])

  kernel = partial(_transformer_layer_kernel, num_heads=num_heads,
                   head_dim=hd, block_q=block_q, eps=eps)
  vmem_limit = _vmem_limit_bytes(S, D, F, num_heads, hd, block_q)

  def build(single_buffer_consts):
    def const_spec(shape):
      index_map = lambda b, q: (0,) * len(shape)
      if single_buffer_consts:
        # Weights/biases never change across grid steps -> one VMEM buffer.
        return pl.BlockSpec(shape, index_map, pipeline_mode=pl.Buffered(1))
      return pl.BlockSpec(shape, index_map)

    return pl.pallas_call(
        kernel,
        out_shape=jax.ShapeDtypeStruct((B, S, D), jnp.float32),
        grid=(B, nq),
        in_specs=[
            pl.BlockSpec((None, S, D), lambda b, q: (b, 0, 0)),  # x (full sequence)
            const_spec((D, D)),                                  # Wq
            const_spec((num_heads, D, hd)),                      # Wk head-major
            const_spec((num_heads, D, hd)),                      # Wv head-major
            const_spec((D, D)),                                  # Wo
            const_spec((1, D)),                                  # bo
            const_spec((1, D)), const_spec((1, D)),              # gamma1, beta1
            const_spec((1, D)), const_spec((1, D)),              # gamma2, beta2
            const_spec((D, F)), const_spec((1, F)),              # W1, b1
            const_spec((F, D)), const_spec((1, D)),              # W2, b2
        ],
        out_specs=pl.BlockSpec((None, block_q, D), lambda b, q: (b, q, 0)),
        scratch_shapes=[
            pltpu.VMEM((S, D), jnp.bfloat16),                    # prenorm-1 of x (persisted)
            pltpu.VMEM((num_heads, S, hd), jnp.bfloat16),        # K head-major (persisted)
            pltpu.VMEM((num_heads, S, hd), jnp.bfloat16),        # V head-major (persisted)
            pltpu.VMEM((num_heads, block_q, 1), jnp.float32),    # running max
            pltpu.VMEM((num_heads, block_q, 1), jnp.float32),    # running denom
            pltpu.VMEM((num_heads, block_q, hd), jnp.float32),   # running PV accumulator
        ],
        compiler_params=pltpu.CompilerParams(
            # q axis must be 'arbitrary': K/V scratch computed at q==0 is reused
            # by later q blocks of the same batch row; batch stays 'parallel'.
            dimension_semantics=("parallel", "arbitrary"),
            vmem_limit_bytes=vmem_limit),
    )

  args = (x.astype(jnp.float32), wq, wk, wv, wo, bo,
          g1, be1, g2, be2, w1, b1, w2, b2)
  try:
    return build(True)(*args)
  except Exception:
    # pipeline_mode=pl.Buffered(1) is a pure VMEM optimization; fall back to
    # default double-buffering if this JAX build rejects it.
    return build(False)(*args)


def _reference(x, params, num_heads, eps=1e-5):
  """Pure-JAX f32 reference mirroring the PyTorch forward (eval mode)."""
  def ln(v, g, b):
    m = jnp.mean(v, -1, keepdims=True)
    var = jnp.mean((v - m) ** 2, -1, keepdims=True)
    return g * (v - m) / jnp.sqrt(var + eps) + b

  B, S, D = x.shape
  hd = D // num_heads
  n1 = ln(x, params["g1"], params["be1"])
  Q = n1 @ params["wq"]; K = n1 @ params["wk"]; V = n1 @ params["wv"]
  mask = jnp.triu(jnp.ones((S, S)), k=1) == 1
  outs = []
  for h in range(num_heads):
    qs, ks, vs = (t[..., h * hd:(h + 1) * hd] for t in (Q, K, V))
    sc = jnp.einsum("bqd,bkd->bqk", qs, ks) / math.sqrt(hd)
    sc = jnp.where(mask, -jnp.inf, sc)
    p = jax.nn.softmax(sc, axis=-1)
    outs.append(jnp.einsum("bqk,bkd->bqd", p, vs))
  attn = jnp.concatenate(outs, -1) @ params["wo"] + params["bo"]
  x1 = x + attn
  n2 = ln(x1, params["g2"], params["be2"])
  h1 = n2 @ params["w1"] + params["b1"]
  h1 = 0.5 * h1 * (1.0 + jax.lax.erf(h1 / math.sqrt(2.0)))
  return x1 + h1 @ params["w2"] + params["b2"]


if __name__ == "__main__":
  # Small but lane-dense shapes: D multiple of 128, head_dim = 128, block_q mult of 16.
  # nq = 2 so the hoisted K/V scratch reuse and the dynamic causal KV loop are exercised.
  B, S, D, H = 2, 64, 256, 2
  F = 4 * D
  key = jax.random.PRNGKey(0)
  ks = jax.random.split(key, 12)

  params = {
      "wq": jax.random.normal(ks[0], (D, D), jnp.float32) * 0.1,
      "wk": jax.random.normal(ks[1], (D, D), jnp.float32) * 0.1,
      "wv": jax.random.normal(ks[2], (D, D), jnp.float32) * 0.1,
      "wo": jax.random.normal(ks[3], (D, D), jnp.float32) * 0.1,
      "bo": jax.random.normal(ks[4], (D,), jnp.float32) * 0.1,
      "g1": 1.0 + 0.1 * jax.random.normal(ks[5], (D,), jnp.float32),
      "be1": 0.1 * jax.random.normal(ks[6], (D,), jnp.float32),
      "g2": 1.0 + 0.1 * jax.random.normal(ks[7], (D,), jnp.float32),
      "be2": 0.1 * jax.random.normal(ks[8], (D,), jnp.float32),
      "w1": jax.random.normal(ks[9], (D, F), jnp.float32) * 0.1,
      "b1": 0.1 * jax.random.normal(ks[10], (F,), jnp.float32),
      "w2": jax.random.normal(ks[11], (F, D), jnp.float32) * 0.1,
      "b2": jnp.zeros((D,), jnp.float32),
  }
  x = jax.random.normal(jax.random.PRNGKey(1), (B, S, D), jnp.float32)

  out = transformer_layer(x, params, num_heads=H, block_q=32)
  out = jax.block_until_ready(out)
  assert out.shape == (B, S, D)
  assert bool(jnp.all(jnp.isfinite(out))), "non-finite output"

  ref = _reference(x, params, num_heads=H)
  err = float(jnp.max(jnp.abs(out - ref)))
  scale = float(jnp.max(jnp.abs(ref)))
  # bf16 matmul operands with f32 accumulation + approx reciprocal => small relative deviation.
  assert err <= 3e-2 * scale + 1e-3, f"mismatch vs reference: err={err:.3e} scale={scale:.3e}"

  print("KERNEL_OK")
</pallas_src>

<mosaic_0001>
module attributes {stable_mosaic.version = 11 : i64} {
  func.func @_transformer_layer_kernel(%arg0: i32, %arg1: i32, %arg2: memref<1x64x256xf32, #tpu.memory_space<vmem>>, %arg3: memref<256x256xbf16, #tpu.memory_space<vmem>>, %arg4: memref<2x256x128xbf16, #tpu.memory_space<vmem>>, %arg5: memref<2x256x128xbf16, #tpu.memory_space<vmem>>, %arg6: memref<256x256xbf16, #tpu.memory_space<vmem>>, %arg7: memref<1x256xf32, #tpu.memory_space<vmem>>, %arg8: memref<1x256xf32, #tpu.memory_space<vmem>>, %arg9: memref<1x256xf32, #tpu.memory_space<vmem>>, %arg10: memref<1x256xf32, #tpu.memory_space<vmem>>, %arg11: memref<1x256xf32, #tpu.memory_space<vmem>>, %arg12: memref<256x1024xbf16, #tpu.memory_space<vmem>>, %arg13: memref<1x1024xf32, #tpu.memory_space<vmem>>, %arg14: memref<1024x256xbf16, #tpu.memory_space<vmem>>, %arg15: memref<1x256xf32, #tpu.memory_space<vmem>>, %arg16: memref<1x32x256xf32, #tpu.memory_space<vmem>>, %arg17: memref<64x256xbf16, #tpu.memory_space<vmem>>, %arg18: memref<2x64x128xbf16, #tpu.memory_space<vmem>>, %arg19: memref<2x64x128xbf16, #tpu.memory_space<vmem>>, %arg20: memref<2x32x1xf32, #tpu.memory_space<vmem>>, %arg21: memref<2x32x1xf32, #tpu.memory_space<vmem>>, %arg22: memref<2x32x128xf32, #tpu.memory_space<vmem>>) attributes {dimension_semantics = [#tpu.dimension_semantics<parallel>, #tpu.dimension_semantics<arbitrary>], iteration_bounds = array<i64: 2, 2>, scalar_prefetch = 0 : i64, scratch_operands = 6 : i64, tpu.core_type = #tpu.core_type<tc>, window_params = [{transform_indices = @transform_0, window_bounds = array<i64: 1, 64, 256>}, {pipeline_mode = #tpu.pipeline_mode<synchronous>, transform_indices = @transform_1, window_bounds = array<i64: 256, 256>}, {pipeline_mode = #tpu.pipeline_mode<synchronous>, transform_indices = @transform_2, window_bounds = array<i64: 2, 256, 128>}, {pipeline_mode = #tpu.pipeline_mode<synchronous>, transform_indices = @transform_3, window_bounds = array<i64: 2, 256, 128>}, {pipeline_mode = #tpu.pipeline_mode<synchronous>, transform_indices = @transform_4, window_bounds = array<i64: 256, 256>}, {pipeline_mode = #tpu.pipeline_mode<synchronous>, transform_indices = @transform_5, window_bounds = array<i64: 1, 256>}, {pipeline_mode = #tpu.pipeline_mode<synchronous>, transform_indices = @transform_6, window_bounds = array<i64: 1, 256>}, {pipeline_mode = #tpu.pipeline_mode<synchronous>, transform_indices = @transform_7, window_bounds = array<i64: 1, 256>}, {pipeline_mode = #tpu.pipeline_mode<synchronous>, transform_indices = @transform_8, window_bounds = array<i64: 1, 256>}, {pipeline_mode = #tpu.pipeline_mode<synchronous>, transform_indices = @transform_9, window_bounds = array<i64: 1, 256>}, {pipeline_mode = #tpu.pipeline_mode<synchronous>, transform_indices = @transform_10, window_bounds = array<i64: 256, 1024>}, {pipeline_mode = #tpu.pipeline_mode<synchronous>, transform_indices = @transform_11, window_bounds = array<i64: 1, 1024>}, {pipeline_mode = #tpu.pipeline_mode<synchronous>, transform_indices = @transform_12, window_bounds = array<i64: 1024, 256>}, {pipeline_mode = #tpu.pipeline_mode<synchronous>, transform_indices = @transform_13, window_bounds = array<i64: 1, 256>}, {transform_indices = @transform_14, window_bounds = array<i64: 1, 32, 256>}]} {
    %c32_i32 = arith.constant 32 : i32
    %0 = arith.muli %arg1, %c32_i32 : i32
    %1 = tpu.assume_multiple %0, 32 : i32
    %c0_i32 = arith.constant 0 : i32
    %2 = arith.cmpi eq, %arg1, %c0_i32 : i32
    %3 = arith.extui %2 : i1 to i32
    %c0_i32_0 = arith.constant 0 : i32
    %4 = arith.cmpi ne, %3, %c0_i32_0 : i32
    scf.if %4 {
      %c0_88 = arith.constant 0 : index
      %c0_89 = arith.constant 0 : index
      %137 = vector.load %arg8[%c0_88, %c0_89] : memref<1x256xf32, #tpu.memory_space<vmem>>, vector<1x256xf32>
      %c0_90 = arith.constant 0 : index
      %c0_91 = arith.constant 0 : index
      %138 = vector.load %arg9[%c0_90, %c0_91] : memref<1x256xf32, #tpu.memory_space<vmem>>, vector<1x256xf32>
      %c0_92 = arith.constant 0 : index
      %c0_93 = arith.constant 0 : index
      %c0_94 = arith.constant 0 : index
      %139 = vector.load %arg2[%c0_92, %c0_93, %c0_94] : memref<1x64x256xf32, #tpu.memory_space<vmem>>, vector<1x64x256xf32>
      %140 = vector.shape_cast %139 : vector<1x64x256xf32> to vector<64x256xf32>
      %cst_95 = arith.constant dense<0.000000e+00> : vector<64xf32>
      %141 = vector.multi_reduction <add>, %140, %cst_95 [1] : vector<64x256xf32> to vector<64xf32>
      %142 = vector.shape_cast %141 : vector<64xf32> to vector<64x1xf32>
      %cst_96 = arith.constant 2.560000e+02 : f32
      %143 = vector.broadcast %cst_96 : f32 to vector<64x1xf32>
      %144 = arith.divf %142, %143 : vector<64x1xf32>
      %145 = vector.broadcast %144 : vector<64x1xf32> to vector<64x256xf32>
      %146 = arith.subf %140, %145 : vector<64x256xf32>
      %147 = arith.mulf %146, %146 : vector<64x256xf32>
      %cst_97 = arith.constant dense<0.000000e+00> : vector<64xf32>
      %148 = vector.multi_reduction <add>, %147, %cst_97 [1] : vector<64x256xf32> to vector<64xf32>
      %149 = vector.shape_cast %148 : vector<64xf32> to vector<64x1xf32>
      %cst_98 = arith.constant 2.560000e+02 : f32
      %150 = vector.broadcast %cst_98 : f32 to vector<64x1xf32>
      %151 = arith.divf %149, %150 : vector<64x1xf32>
      %152 = vector.broadcast %144 : vector<64x1xf32> to vector<64x256xf32>
      %153 = arith.subf %140, %152 : vector<64x256xf32>
      %154 = vector.broadcast %137 : vector<1x256xf32> to vector<64x256xf32>
      %155 = arith.mulf %154, %153 : vector<64x256xf32>
      %cst_99 = arith.constant 9.99999974E-6 : f32
      %156 = vector.broadcast %cst_99 : f32 to vector<64x1xf32>
      %157 = arith.addf %151, %156 : vector<64x1xf32>
      %158 = math.rsqrt %157 : vector<64x1xf32>
      %159 = vector.broadcast %158 : vector<64x1xf32> to vector<64x256xf32>
      %160 = arith.mulf %155, %159 : vector<64x256xf32>
      %161 = vector.broadcast %138 : vector<1x256xf32> to vector<64x256xf32>
      %162 = arith.addf %160, %161 : vector<64x256xf32>
      %163 = arith.truncf %162 : vector<64x256xf32> to vector<64x256xbf16>
      %c0_100 = arith.constant 0 : index
      %c0_101 = arith.constant 0 : index
      %164 = vector.load %arg17[%c0_100, %c0_101] : memref<64x256xbf16, #tpu.memory_space<vmem>>, vector<64x256xbf16>
      tpu.vector_store %arg17[%c0_100, %c0_101], %163 {strides = array<i32>} : memref<64x256xbf16, #tpu.memory_space<vmem>>, vector<64x256xbf16>,
      %c0_102 = arith.constant 0 : index
      %c0_103 = arith.constant 0 : index
      %c0_104 = arith.constant 0 : index
      %165 = vector.load %arg4[%c0_102, %c0_103, %c0_104] : memref<2x256x128xbf16, #tpu.memory_space<vmem>>, vector<1x256x128xbf16>
      %166 = vector.shape_cast %165 : vector<1x256x128xbf16> to vector<256x128xbf16>
      %cst_105 = arith.constant dense<0.000000e+00> : vector<64x128xf32>
      %167 = tpu.matmul %163, %166, %cst_105 {dimension_numbers = #tpu.dot_dimension_numbers<[1], [0], [0], [1], [0, 0, 1, 1], [], []>} : vector<64x256xbf16>, vector<256x128xbf16>, vector<64x128xf32> -> vector<64x128xf32>
      %168 = arith.truncf %167 : vector<64x128xf32> to vector<64x128xbf16>
      %c0_106 = arith.constant 0 : index
      %c0_107 = arith.constant 0 : index
      %c0_108 = arith.constant 0 : index
      %169 = vector.load %arg18[%c0_106, %c0_107, %c0_108] : memref<2x64x128xbf16, #tpu.memory_space<vmem>>, vector<1x64x128xbf16>
      %170 = vector.shape_cast %169 : vector<1x64x128xbf16> to vector<64x128xbf16>
      %171 = vector.shape_cast %168 : vector<64x128xbf16> to vector<1x64x128xbf16>
      tpu.vector_store %arg18[%c0_106, %c0_107, %c0_108], %171 {strides = array<i32>} : memref<2x64x128xbf16, #tpu.memory_space<vmem>>, vector<1x64x128xbf16>,
      %c0_109 = arith.constant 0 : index
      %c0_110 = arith.constant 0 : index
      %c0_111 = arith.constant 0 : index
      %172 = vector.load %arg5[%c0_109, %c0_110, %c0_111] : memref<2x256x128xbf16, #tpu.memory_space<vmem>>, vector<1x256x128xbf16>
      %173 = vector.shape_cast %172 : vector<1x256x128xbf16> to vector<256x128xbf16>
      %cst_112 = arith.constant dense<0.000000e+00> : vector<64x128xf32>
      %174 = tpu.matmul %163, %173, %cst_112 {dimension_numbers = #tpu.dot_dimension_numbers<[1], [0], [0], [1], [0, 0, 1, 1], [], []>} : vector<64x256xbf16>, vector<256x128xbf16>, vector<64x128xf32> -> vector<64x128xf32>
      %175 = arith.truncf %174 : vector<64x128xf32> to vector<64x128xbf16>
      %c0_113 = arith.constant 0 : index
      %c0_114 = arith.constant 0 : index
      %c0_115 = arith.constant 0 : index
      %176 = vector.load %arg19[%c0_113, %c0_114, %c0_115] : memref<2x64x128xbf16, #tpu.memory_space<vmem>>, vector<1x64x128xbf16>
      %177 = vector.shape_cast %176 : vector<1x64x128xbf16> to vector<64x128xbf16>
      %178 = vector.shape_cast %175 : vector<64x128xbf16> to vector<1x64x128xbf16>
      tpu.vector_store %arg19[%c0_113, %c0_114, %c0_115], %178 {strides = array<i32>} : memref<2x64x128xbf16, #tpu.memory_space<vmem>>, vector<1x64x128xbf16>,
      %c1 = arith.constant 1 : index
      %c0_116 = arith.constant 0 : index
      %c0_117 = arith.constant 0 : index
      %179 = vector.load %arg4[%c1, %c0_116, %c0_117] : memref<2x256x128xbf16, #tpu.memory_space<vmem>>, vector<1x256x128xbf16>
      %180 = vector.shape_cast %179 : vector<1x256x128xbf16> to vector<256x128xbf16>
      %cst_118 = arith.constant dense<0.000000e+00> : vector<64x128xf32>
      %181 = tpu.matmul %163, %180, %cst_118 {dimension_numbers = #tpu.dot_dimension_numbers<[1], [0], [0], [1], [0, 0, 1, 1], [], []>} : vector<64x256xbf16>, vector<256x128xbf16>, vector<64x128xf32> -> vector<64x128xf32>
      %182 = arith.truncf %181 : vector<64x128xf32> to vector<64x128xbf16>
      %c1_119 = arith.constant 1 : index
      %c0_120 = arith.constant 0 : index
      %c0_121 = arith.constant 0 : index
      %183 = vector.load %arg18[%c1_119, %c0_120, %c0_121] : memref<2x64x128xbf16, #tpu.memory_space<vmem>>, vector<1x64x128xbf16>
      %184 = vector.shape_cast %183 : vector<1x64x128xbf16> to vector<64x128xbf16>
      %185 = vector.shape_cast %182 : vector<64x128xbf16> to vector<1x64x128xbf16>
      tpu.vector_store %arg18[%c1_119, %c0_120, %c0_121], %185 {strides = array<i32>} : memref<2x64x128xbf16, #tpu.memory_space<vmem>>, vector<1x64x128xbf16>,
      %c1_122 = arith.constant 1 : index
      %c0_123 = arith.constant 0 : index
      %c0_124 = arith.constant 0 : index
      %186 = vector.load %arg5[%c1_122, %c0_123, %c0_124] : memref<2x256x128xbf16, #tpu.memory_space<vmem>>, vector<1x256x128xbf16>
      %187 = vector.shape_cast %186 : vector<1x256x128xbf16> to vector<256x128xbf16>
      %cst_125 = arith.constant dense<0.000000e+00> : vector<64x128xf32>
      %188 = tpu.matmul %163, %187, %cst_125 {dimension_numbers = #tpu.dot_dimension_numbers<[1], [0], [0], [1], [0, 0, 1, 1], [], []>} : vector<64x256xbf16>, vector<256x128xbf16>, vector<64x128xf32> -> vector<64x128xf32>
      %189 = arith.truncf %188 : vector<64x128xf32> to vector<64x128xbf16>
      %c1_126 = arith.constant 1 : index
      %c0_127 = arith.constant 0 : index
      %c0_128 = arith.constant 0 : index
      %190 = vector.load %arg19[%c1_126, %c0_127, %c0_128] : memref<2x64x128xbf16, #tpu.memory_space<vmem>>, vector<1x64x128xbf16>
      %191 = vector.shape_cast %190 : vector<1x64x128xbf16> to vector<64x128xbf16>
      %192 = vector.shape_cast %189 : vector<64x128xbf16> to vector<1x64x128xbf16>
      tpu.vector_store %arg19[%c1_126, %c0_127, %c0_128], %192 {strides = array<i32>} : memref<2x64x128xbf16, #tpu.memory_space<vmem>>, vector<1x64x128xbf16>,
    } else {
    }
    %5 = arith.index_cast %1 : i32 to index
    %c0 = arith.constant 0 : index
    %6 = vector.load %arg17[%5, %c0] : memref<64x256xbf16, #tpu.memory_space<vmem>>, vector<32x256xbf16>
    %c0_1 = arith.constant 0 : index
    %c0_2 = arith.constant 0 : index
    %7 = vector.load %arg3[%c0_1, %c0_2] : memref<256x256xbf16, #tpu.memory_space<vmem>>, vector<256x256xbf16>
    %cst = arith.constant dense<0.000000e+00> : vector<32x256xf32>
    %8 = tpu.matmul %6, %7, %cst {dimension_numbers = #tpu.dot_dimension_numbers<[1], [0], [0], [1], [0, 0, 1, 1], [], []>} : vector<32x256xbf16>, vector<256x256xbf16>, vector<32x256xf32> -> vector<32x256xf32>
    %cst_3 = arith.constant 0.0883883461 : f32
    %9 = vector.broadcast %cst_3 : f32 to vector<32x256xf32>
    %10 = arith.mulf %8, %9 : vector<32x256xf32>
    %11 = vector.extract_strided_slice %10 {offsets = [0, 0], sizes = [32, 128], strides = [1, 1]} : vector<32x256xf32> to vector<32x128xf32>
    %12 = vector.extract_strided_slice %10 {offsets = [0, 128], sizes = [32, 128], strides = [1, 1]} : vector<32x256xf32> to vector<32x128xf32>
    %13 = vector.shape_cast %11 : vector<32x128xf32> to vector<1x32x128xf32>
    %14 = vector.shape_cast %12 : vector<32x128xf32> to vector<1x32x128xf32>
    %15 = tpu.concatenate %13, %14 in 0 : vector<1x32x128xf32>, vector<1x32x128xf32> -> vector<2x32x128xf32>
    %16 = arith.truncf %15 : vector<2x32x128xf32> to vector<2x32x128xbf16>
    %cst_4 = arith.constant -1.000000e+30 : f32
    %17 = vector.broadcast %cst_4 : f32 to vector<2x32x1xf32>
    %c0_5 = arith.constant 0 : index
    %c0_6 = arith.constant 0 : index
    %c0_7 = arith.constant 0 : index
    %18 = vector.load %arg20[%c0_5, %c0_6, %c0_7] : memref<2x32x1xf32, #tpu.memory_space<vmem>>, vector<2x32x1xf32>
    tpu.vector_store %arg20[%c0_5, %c0_6, %c0_7], %17 {strides = array<i32>} : memref<2x32x1xf32, #tpu.memory_space<vmem>>, vector<2x32x1xf32>,
    %cst_8 = arith.constant 0.000000e+00 : f32
    %19 = vector.broadcast %cst_8 : f32 to vector<2x32x1xf32>
    %c0_9 = arith.constant 0 : index
    %c0_10 = arith.constant 0 : index
    %c0_11 = arith.constant 0 : index
    %20 = vector.load %arg21[%c0_9, %c0_10, %c0_11] : memref<2x32x1xf32, #tpu.memory_space<vmem>>, vector<2x32x1xf32>
    tpu.vector_store %arg21[%c0_9, %c0_10, %c0_11], %19 {strides = array<i32>} : memref<2x32x1xf32, #tpu.memory_space<vmem>>, vector<2x32x1xf32>,
    %cst_12 = arith.constant 0.000000e+00 : f32
    %21 = vector.broadcast %cst_12 : f32 to vector<2x32x128xf32>
    %c0_13 = arith.constant 0 : index
    %c0_14 = arith.constant 0 : index
    %c0_15 = arith.constant 0 : index
    %22 = vector.load %arg22[%c0_13, %c0_14, %c0_15] : memref<2x32x128xf32, #tpu.memory_space<vmem>>, vector<2x32x128xf32>
    tpu.vector_store %arg22[%c0_13, %c0_14, %c0_15], %21 {strides = array<i32>} : memref<2x32x128xf32, #tpu.memory_space<vmem>>, vector<2x32x128xf32>,
    %23 = tpu.iota {dimensions = array<i32: 0>} : vector<32x32xi32>
    %24 = vector.broadcast %1 : i32 to vector<32x32xi32>
    %25 = arith.addi %24, %23 : vector<32x32xi32>
    %c0_i32_16 = arith.constant 0 : i32
    %26 = arith.subi %arg1, %c0_i32_16 : i32
    %c1_i32 = arith.constant 1 : i32
    %c1_i32_17 = arith.constant 1 : i32
    %27 = arith.subi %c1_i32, %c1_i32_17 : i32
    %28 = arith.addi %26, %27 : i32
    %c1_i32_18 = arith.constant 1 : i32
    %29 = arith.divsi %28, %c1_i32_18 : i32
    %c1_i32_19 = arith.constant 1 : i32
    %c0_i32_20 = arith.constant 0 : i32
    %c0_i32_21 = arith.constant 0 : i32
    %30 = arith.subi %29, %c0_i32_21 : i32
    %31 = arith.addi %c0_i32_21, %30 : i32
    %c1_i32_22 = arith.constant 1 : i32
    scf.for %arg23 = %c0_i32_21 to %31 step %c1_i32_22  : i32 {
      %137 = arith.muli %arg23, %c1_i32_19 : i32
      %138 = arith.addi %c0_i32_20, %137 : i32
      %c32_i32_88 = arith.constant 32 : i32
      %139 = arith.muli %138, %c32_i32_88 : i32
      %140 = tpu.assume_multiple %139, 32 : i32
      %c0_89 = arith.constant 0 : index
      %141 = arith.index_cast %140 : i32 to index
      %c0_90 = arith.constant 0 : index
      %142 = vector.load %arg18[%c0_89, %141, %c0_90] : memref<2x64x128xbf16, #tpu.memory_space<vmem>>, vector<2x32x128xbf16>
      %c0_91 = arith.constant 0 : index
      %143 = arith.index_cast %140 : i32 to index
      %c0_92 = arith.constant 0 : index
      %144 = vector.load %arg19[%c0_91, %143, %c0_92] : memref<2x64x128xbf16, #tpu.memory_space<vmem>>, vector<2x32x128xbf16>
      "tpu.trace_start"() <{level = 10 : i32, message = "hqd,hkd->hqk"}> : () -> ()
      %cst_93 = arith.constant dense<0.000000e+00> : vector<2x32x32xf32>
      %145 = tpu.matmul %16, %142, %cst_93 {dimension_numbers = #tpu.dot_dimension_numbers<[2], [2], [1], [1], [0, 0, 0, 1, 1, 1], [0], [0]>} : vector<2x32x128xbf16>, vector<2x32x128xbf16>, vector<2x32x32xf32> -> vector<2x32x32xf32>
      "tpu.trace_stop"() : () -> ()
      %c0_94 = arith.constant 0 : index
      %c0_95 = arith.constant 0 : index
      %c0_96 = arith.constant 0 : index
      %146 = vector.load %arg20[%c0_94, %c0_95, %c0_96] : memref<2x32x1xf32, #tpu.memory_space<vmem>>, vector<2x32x1xf32>
      %cst_97 = arith.constant dense<0xFF800000> : vector<2x32xf32>
      %147 = vector.multi_reduction <maximumf>, %145, %cst_97 [2] : vector<2x32x32xf32> to vector<2x32xf32>
      %148 = vector.shape_cast %147 : vector<2x32xf32> to vector<2x32x1xf32>
      %149 = arith.maximumf %146, %148 : vector<2x32x1xf32>
      %150 = arith.subf %146, %149 : vector<2x32x1xf32>
      %151 = math.exp %150 : vector<2x32x1xf32>
      %152 = vector.broadcast %149 : vector<2x32x1xf32> to vector<2x32x32xf32>
      %153 = arith.subf %145, %152 : vector<2x32x32xf32>
      %154 = math.exp %153 : vector<2x32x32xf32>
      %c0_98 = arith.constant 0 : index
      %c0_99 = arith.constant 0 : index
      %c0_100 = arith.constant 0 : index
      %155 = vector.load %arg21[%c0_98, %c0_99, %c0_100] : memref<2x32x1xf32, #tpu.memory_space<vmem>>, vector<2x32x1xf32>
      %156 = arith.mulf %151, %155 : vector<2x32x1xf32>
      %cst_101 = arith.constant dense<0.000000e+00> : vector<2x32xf32>
      %157 = vector.multi_reduction <add>, %154, %cst_101 [2] : vector<2x32x32xf32> to vector<2x32xf32>
      %158 = vector.shape_cast %157 : vector<2x32xf32> to vector<2x32x1xf32>
      %159 = arith.addf %156, %158 : vector<2x32x1xf32>
      %c0_102 = arith.constant 0 : index
      %c0_103 = arith.constant 0 : index
      %c0_104 = arith.constant 0 : index
      %160 = vector.load %arg21[%c0_102, %c0_103, %c0_104] : memref<2x32x1xf32, #tpu.memory_space<vmem>>, vector<2x32x1xf32>
      tpu.vector_store %arg21[%c0_102, %c0_103, %c0_104], %159 {strides = array<i32>} : memref<2x32x1xf32, #tpu.memory_space<vmem>>, vector<2x32x1xf32>,
      %c0_105 = arith.constant 0 : index
      %c0_106 = arith.constant 0 : index
      %c0_107 = arith.constant 0 : index
      %161 = vector.load %arg22[%c0_105, %c0_106, %c0_107] : memref<2x32x128xf32, #tpu.memory_space<vmem>>, vector<2x32x128xf32>
      %162 = vector.broadcast %151 : vector<2x32x1xf32> to vector<2x32x128xf32>
      %163 = arith.mulf %162, %161 : vector<2x32x128xf32>
      %164 = arith.truncf %154 : vector<2x32x32xf32> to vector<2x32x32xbf16>
      "tpu.trace_start"() <{level = 10 : i32, message = "hqk,hkd->hqd"}> : () -> ()
      %cst_108 = arith.constant dense<0.000000e+00> : vector<2x32x128xf32>
      %165 = tpu.matmul %164, %144, %cst_108 {dimension_numbers = #tpu.dot_dimension_numbers<[2], [1], [1], [2], [0, 0, 0, 1, 1, 2], [0], [0]>} : vector<2x32x32xbf16>, vector<2x32x128xbf16>, vector<2x32x128xf32> -> vector<2x32x128xf32>
      "tpu.trace_stop"() : () -> ()
      %166 = arith.addf %163, %165 : vector<2x32x128xf32>
      %c0_109 = arith.constant 0 : index
      %c0_110 = arith.constant 0 : index
      %c0_111 = arith.constant 0 : index
      %167 = vector.load %arg22[%c0_109, %c0_110, %c0_111] : memref<2x32x128xf32, #tpu.memory_space<vmem>>, vector<2x32x128xf32>
      tpu.vector_store %arg22[%c0_109, %c0_110, %c0_111], %166 {strides = array<i32>} : memref<2x32x128xf32, #tpu.memory_space<vmem>>, vector<2x32x128xf32>,
      %c0_112 = arith.constant 0 : index
      %c0_113 = arith.constant 0 : index
      %c0_114 = arith.constant 0 : index
      %168 = vector.load %arg20[%c0_112, %c0_113, %c0_114] : memref<2x32x1xf32, #tpu.memory_space<vmem>>, vector<2x32x1xf32>
      tpu.vector_store %arg20[%c0_112, %c0_113, %c0_114], %149 {strides = array<i32>} : memref<2x32x1xf32, #tpu.memory_space<vmem>>, vector<2x32x1xf32>,
    }
    %c0_23 = arith.constant 0 : index
    %32 = arith.index_cast %1 : i32 to index
    %c0_24 = arith.constant 0 : index
    %33 = vector.load %arg18[%c0_23, %32, %c0_24] : memref<2x64x128xbf16, #tpu.memory_space<vmem>>, vector<2x32x128xbf16>
    %c0_25 = arith.constant 0 : index
    %34 = arith.index_cast %1 : i32 to index
    %c0_26 = arith.constant 0 : index
    %35 = vector.load %arg19[%c0_25, %34, %c0_26] : memref<2x64x128xbf16, #tpu.memory_space<vmem>>, vector<2x32x128xbf16>
    "tpu.trace_start"() <{level = 10 : i32, message = "hqd,hkd->hqk"}> : () -> ()
    %cst_27 = arith.constant dense<0.000000e+00> : vector<2x32x32xf32>
    %36 = tpu.matmul %16, %33, %cst_27 {dimension_numbers = #tpu.dot_dimension_numbers<[2], [2], [1], [1], [0, 0, 0, 1, 1, 1], [0], [0]>} : vector<2x32x128xbf16>, vector<2x32x128xbf16>, vector<2x32x32xf32> -> vector<2x32x32xf32>
    "tpu.trace_stop"() : () -> ()
    %37 = tpu.iota {dimensions = array<i32: 1>} : vector<32x32xi32>
    %38 = vector.broadcast %1 : i32 to vector<32x32xi32>
    %39 = arith.addi %38, %37 : vector<32x32xi32>
    %40 = arith.cmpi sgt, %39, %25 : vector<32x32xi32>
    %41 = vector.shape_cast %40 : vector<32x32xi1> to vector<1x32x32xi1>
    %cst_28 = arith.constant -1.000000e+30 : f32
    %42 = vector.shape_cast %41 : vector<1x32x32xi1> to vector<1x32x32xi1>
    %43 = vector.broadcast %42 : vector<1x32x32xi1> to vector<2x32x32xi1>
    %44 = vector.broadcast %cst_28 : f32 to vector<2x32x32xf32>
    %45 = arith.select %43, %44, %36 : vector<2x32x32xi1>, vector<2x32x32xf32>
    %c0_29 = arith.constant 0 : index
    %c0_30 = arith.constant 0 : index
    %c0_31 = arith.constant 0 : index
    %46 = vector.load %arg20[%c0_29, %c0_30, %c0_31] : memref<2x32x1xf32, #tpu.memory_space<vmem>>, vector<2x32x1xf32>
    %cst_32 = arith.constant dense<0xFF800000> : vector<2x32xf32>
    %47 = vector.multi_reduction <maximumf>, %45, %cst_32 [2] : vector<2x32x32xf32> to vector<2x32xf32>
    %48 = vector.shape_cast %47 : vector<2x32xf32> to vector<2x32x1xf32>
    %49 = arith.maximumf %46, %48 : vector<2x32x1xf32>
    %50 = arith.subf %46, %49 : vector<2x32x1xf32>
    %51 = math.exp %50 : vector<2x32x1xf32>
    %52 = vector.broadcast %49 : vector<2x32x1xf32> to vector<2x32x32xf32>
    %53 = arith.subf %45, %52 : vector<2x32x32xf32>
    %54 = math.exp %53 : vector<2x32x32xf32>
    %c0_33 = arith.constant 0 : index
    %c0_34 = arith.constant 0 : index
    %c0_35 = arith.constant 0 : index
    %55 = vector.load %arg21[%c0_33, %c0_34, %c0_35] : memref<2x32x1xf32, #tpu.memory_space<vmem>>, vector<2x32x1xf32>
    %56 = arith.mulf %51, %55 : vector<2x32x1xf32>
    %cst_36 = arith.constant dense<0.000000e+00> : vector<2x32xf32>
    %57 = vector.multi_reduction <add>, %54, %cst_36 [2] : vector<2x32x32xf32> to vector<2x32xf32>
    %58 = vector.shape_cast %57 : vector<2x32xf32> to vector<2x32x1xf32>
    %59 = arith.addf %56, %58 : vector<2x32x1xf32>
    %c0_37 = arith.constant 0 : index
    %c0_38 = arith.constant 0 : index
    %c0_39 = arith.constant 0 : index
    %60 = vector.load %arg21[%c0_37, %c0_38, %c0_39] : memref<2x32x1xf32, #tpu.memory_space<vmem>>, vector<2x32x1xf32>
    tpu.vector_store %arg21[%c0_37, %c0_38, %c0_39], %59 {strides = array<i32>} : memref<2x32x1xf32, #tpu.memory_space<vmem>>, vector<2x32x1xf32>,
    %c0_40 = arith.constant 0 : index
    %c0_41 = arith.constant 0 : index
    %c0_42 = arith.constant 0 : index
    %61 = vector.load %arg22[%c0_40, %c0_41, %c0_42] : memref<2x32x128xf32, #tpu.memory_space<vmem>>, vector<2x32x128xf32>
    %62 = vector.broadcast %51 : vector<2x32x1xf32> to vector<2x32x128xf32>
    %63 = arith.mulf %62, %61 : vector<2x32x128xf32>
    %64 = arith.truncf %54 : vector<2x32x32xf32> to vector<2x32x32xbf16>
    "tpu.trace_start"() <{level = 10 : i32, message = "hqk,hkd->hqd"}> : () -> ()
    %cst_43 = arith.constant dense<0.000000e+00> : vector<2x32x128xf32>
    %65 = tpu.matmul %64, %35, %cst_43 {dimension_numbers = #tpu.dot_dimension_numbers<[2], [1], [1], [2], [0, 0, 0, 1, 1, 2], [0], [0]>} : vector<2x32x32xbf16>, vector<2x32x128xbf16>, vector<2x32x128xf32> -> vector<2x32x128xf32>
    "tpu.trace_stop"() : () -> ()
    %66 = arith.addf %63, %65 : vector<2x32x128xf32>
    %c0_44 = arith.constant 0 : index
    %c0_45 = arith.constant 0 : index
    %c0_46 = arith.constant 0 : index
    %67 = vector.load %arg22[%c0_44, %c0_45, %c0_46] : memref<2x32x128xf32, #tpu.memory_space<vmem>>, vector<2x32x128xf32>
    tpu.vector_store %arg22[%c0_44, %c0_45, %c0_46], %66 {strides = array<i32>} : memref<2x32x128xf32, #tpu.memory_space<vmem>>, vector<2x32x128xf32>,
    %c0_47 = arith.constant 0 : index
    %c0_48 = arith.constant 0 : index
    %c0_49 = arith.constant 0 : index
    %68 = vector.load %arg20[%c0_47, %c0_48, %c0_49] : memref<2x32x1xf32, #tpu.memory_space<vmem>>, vector<2x32x1xf32>
    tpu.vector_store %arg20[%c0_47, %c0_48, %c0_49], %49 {strides = array<i32>} : memref<2x32x1xf32, #tpu.memory_space<vmem>>, vector<2x32x1xf32>,
    %c0_50 = arith.constant 0 : index
    %c0_51 = arith.constant 0 : index
    %c0_52 = arith.constant 0 : index
    %69 = vector.load %arg22[%c0_50, %c0_51, %c0_52] : memref<2x32x128xf32, #tpu.memory_space<vmem>>, vector<2x32x128xf32>
    %c0_53 = arith.constant 0 : index
    %c0_54 = arith.constant 0 : index
    %c0_55 = arith.constant 0 : index
    %70 = vector.load %arg21[%c0_53, %c0_54, %c0_55] : memref<2x32x1xf32, #tpu.memory_space<vmem>>, vector<2x32x1xf32>
    %71 = tpu.reciprocal %70 {approx = true} : vector<2x32x1xf32> -> vector<2x32x1xf32>
    %72 = vector.broadcast %71 : vector<2x32x1xf32> to vector<2x32x128xf32>
    %73 = arith.mulf %69, %72 : vector<2x32x128xf32>
    %74 = arith.truncf %73 : vector<2x32x128xf32> to vector<2x32x128xbf16>
    %75 = vector.extract_strided_slice %74 {offsets = [0, 0, 0], sizes = [1, 32, 128], strides = [1, 1, 1]} : vector<2x32x128xbf16> to vector<1x32x128xbf16>
    %76 = vector.shape_cast %75 : vector<1x32x128xbf16> to vector<32x128xbf16>
    %77 = vector.extract_strided_slice %74 {offsets = [1, 0, 0], sizes = [1, 32, 128], strides = [1, 1, 1]} : vector<2x32x128xbf16> to vector<1x32x128xbf16>
    %78 = vector.shape_cast %77 : vector<1x32x128xbf16> to vector<32x128xbf16>
    %79 = tpu.concatenate %76, %78 in 1 : vector<32x128xbf16>, vector<32x128xbf16> -> vector<32x256xbf16>
    %c0_56 = arith.constant 0 : index
    %c0_57 = arith.constant 0 : index
    %80 = vector.load %arg6[%c0_56, %c0_57] : memref<256x256xbf16, #tpu.memory_space<vmem>>, vector<256x256xbf16>
    %cst_58 = arith.constant dense<0.000000e+00> : vector<32x256xf32>
    %81 = tpu.matmul %79, %80, %cst_58 {dimension_numbers = #tpu.dot_dimension_numbers<[1], [0], [0], [1], [0, 0, 1, 1], [], []>} : vector<32x256xbf16>, vector<256x256xbf16>, vector<32x256xf32> -> vector<32x256xf32>
    %c0_59 = arith.constant 0 : index
    %c0_60 = arith.constant 0 : index
    %82 = vector.load %arg7[%c0_59, %c0_60] : memref<1x256xf32, #tpu.memory_space<vmem>>, vector<1x256xf32>
    %83 = vector.broadcast %82 : vector<1x256xf32> to vector<32x256xf32>
    %84 = arith.addf %81, %83 : vector<32x256xf32>
    %c0_61 = arith.constant 0 : index
    %85 = arith.index_cast %1 : i32 to index
    %c0_62 = arith.constant 0 : index
    %86 = vector.load %arg2[%c0_61, %85, %c0_62] : memref<1x64x256xf32, #tpu.memory_space<vmem>>, vector<1x32x256xf32>
    %87 = vector.shape_cast %86 : vector<1x32x256xf32> to vector<32x256xf32>
    %88 = arith.addf %87, %84 : vector<32x256xf32>
    %c0_63 = arith.constant 0 : index
    %c0_64 = arith.constant 0 : index
    %89 = vector.load %arg10[%c0_63, %c0_64] : memref<1x256xf32, #tpu.memory_space<vmem>>, vector<1x256xf32>
    %c0_65 = arith.constant 0 : index
    %c0_66 = arith.constant 0 : index
    %90 = vector.load %arg11[%c0_65, %c0_66] : memref<1x256xf32, #tpu.memory_space<vmem>>, vector<1x256xf32>
    %cst_67 = arith.constant dense<0.000000e+00> : vector<32xf32>
    %91 = vector.multi_reduction <add>, %88, %cst_67 [1] : vector<32x256xf32> to vector<32xf32>
    %92 = vector.shape_cast %91 : vector<32xf32> to vector<32x1xf32>
    %cst_68 = arith.constant 2.560000e+02 : f32
    %93 = vector.broadcast %cst_68 : f32 to vector<32x1xf32>
    %94 = arith.divf %92, %93 : vector<32x1xf32>
    %95 = vector.broadcast %94 : vector<32x1xf32> to vector<32x256xf32>
    %96 = arith.subf %88, %95 : vector<32x256xf32>
    %97 = arith.mulf %96, %96 : vector<32x256xf32>
    %cst_69 = arith.constant dense<0.000000e+00> : vector<32xf32>
    %98 = vector.multi_reduction <add>, %97, %cst_69 [1] : vector<32x256xf32> to vector<32xf32>
    %99 = vector.shape_cast %98 : vector<32xf32> to vector<32x1xf32>
    %cst_70 = arith.constant 2.560000e+02 : f32
    %100 = vector.broadcast %cst_70 : f32 to vector<32x1xf32>
    %101 = arith.divf %99, %100 : vector<32x1xf32>
    %102 = vector.broadcast %94 : vector<32x1xf32> to vector<32x256xf32>
    %103 = arith.subf %88, %102 : vector<32x256xf32>
    %104 = vector.broadcast %89 : vector<1x256xf32> to vector<32x256xf32>
    %105 = arith.mulf %104, %103 : vector<32x256xf32>
    %cst_71 = arith.constant 9.99999974E-6 : f32
    %106 = vector.broadcast %cst_71 : f32 to vector<32x1xf32>
    %107 = arith.addf %101, %106 : vector<32x1xf32>
    %108 = math.rsqrt %107 : vector<32x1xf32>
    %109 = vector.broadcast %108 : vector<32x1xf32> to vector<32x256xf32>
    %110 = arith.mulf %105, %109 : vector<32x256xf32>
    %111 = vector.broadcast %90 : vector<1x256xf32> to vector<32x256xf32>
    %112 = arith.addf %110, %111 : vector<32x256xf32>
    %113 = arith.truncf %112 : vector<32x256xf32> to vector<32x256xbf16>
    %c0_72 = arith.constant 0 : index
    %c0_73 = arith.constant 0 : index
    %114 = vector.load %arg12[%c0_72, %c0_73] : memref<256x1024xbf16, #tpu.memory_space<vmem>>, vector<256x1024xbf16>
    %cst_74 = arith.constant dense<0.000000e+00> : vector<32x1024xf32>
    %115 = tpu.matmul %113, %114, %cst_74 {dimension_numbers = #tpu.dot_dimension_numbers<[1], [0], [0], [1], [0, 0, 1, 1], [], []>} : vector<32x256xbf16>, vector<256x1024xbf16>, vector<32x1024xf32> -> vector<32x1024xf32>
    %c0_75 = arith.constant 0 : index
    %c0_76 = arith.constant 0 : index
    %116 = vector.load %arg13[%c0_75, %c0_76] : memref<1x1024xf32, #tpu.memory_space<vmem>>, vector<1x1024xf32>
    %117 = vector.broadcast %116 : vector<1x1024xf32> to vector<32x1024xf32>
    %118 = arith.addf %115, %117 : vector<32x1024xf32>
    %cst_77 = arith.constant 5.000000e-01 : f32
    %119 = vector.broadcast %cst_77 : f32 to vector<32x1024xf32>
    %120 = arith.mulf %119, %118 : vector<32x1024xf32>
    %cst_78 = arith.constant 0.707106769 : f32
    %121 = vector.broadcast %cst_78 : f32 to vector<32x1024xf32>
    %122 = arith.mulf %118, %121 : vector<32x1024xf32>
    %123 = math.erf %122 : vector<32x1024xf32>
    %cst_79 = arith.constant 1.000000e+00 : f32
    %124 = vector.broadcast %cst_79 : f32 to vector<32x1024xf32>
    %125 = arith.addf %124, %123 : vector<32x1024xf32>
    %126 = arith.mulf %120, %125 : vector<32x1024xf32>
    %127 = arith.truncf %126 : vector<32x1024xf32> to vector<32x1024xbf16>
    %c0_80 = arith.constant 0 : index
    %c0_81 = arith.constant 0 : index
    %128 = vector.load %arg14[%c0_80, %c0_81] : memref<1024x256xbf16, #tpu.memory_space<vmem>>, vector<1024x256xbf16>
    %cst_82 = arith.constant dense<0.000000e+00> : vector<32x256xf32>
    %129 = tpu.matmul %127, %128, %cst_82 {dimension_numbers = #tpu.dot_dimension_numbers<[1], [0], [0], [1], [0, 0, 1, 1], [], []>} : vector<32x1024xbf16>, vector<1024x256xbf16>, vector<32x256xf32> -> vector<32x256xf32>
    %c0_83 = arith.constant 0 : index
    %c0_84 = arith.constant 0 : index
    %130 = vector.load %arg15[%c0_83, %c0_84] : memref<1x256xf32, #tpu.memory_space<vmem>>, vector<1x256xf32>
    %131 = vector.broadcast %130 : vector<1x256xf32> to vector<32x256xf32>
    %132 = arith.addf %129, %131 : vector<32x256xf32>
    %133 = arith.addf %88, %132 : vector<32x256xf32>
    %c0_85 = arith.constant 0 : index
    %c0_86 = arith.constant 0 : index
    %c0_87 = arith.constant 0 : index
    %134 = vector.load %arg16[%c0_85, %c0_86, %c0_87] : memref<1x32x256xf32, #tpu.memory_space<vmem>>, vector<1x32x256xf32>
    %135 = vector.shape_cast %134 : vector<1x32x256xf32> to vector<32x256xf32>
    %136 = vector.shape_cast %133 : vector<32x256xf32> to vector<1x32x256xf32>
    tpu.vector_store %arg16[%c0_85, %c0_86, %c0_87], %136 {strides = array<i32>} : memref<1x32x256xf32, #tpu.memory_space<vmem>>, vector<1x32x256xf32>,
    return
  }
  func.func @transform_0(%arg0: i32, %arg1: i32) -> (i32, i32, i32) {
    %c0_i32 = arith.constant 0 : i32
    %c0_i32_0 = arith.constant 0 : i32
    %c0_i32_1 = arith.constant 0 : i32
    return %arg0, %c0_i32, %c0_i32_0 : i32, i32, i32
  }
  func.func @transform_1(%arg0: i32, %arg1: i32) -> (i32, i32) {
    %c0_i32 = arith.constant 0 : i32
    %c0_i32_0 = arith.constant 0 : i32
    %c0_i32_1 = arith.constant 0 : i32
    return %c0_i32, %c0_i32_0 : i32, i32
  }
  func.func @transform_2(%arg0: i32, %arg1: i32) -> (i32, i32, i32) {
    %c0_i32 = arith.constant 0 : i32
    %c0_i32_0 = arith.constant 0 : i32
    %c0_i32_1 = arith.constant 0 : i32
    %c0_i32_2 = arith.constant 0 : i32
    return %c0_i32, %c0_i32_0, %c0_i32_1 : i32, i32, i32
  }
  func.func @transform_3(%arg0: i32, %arg1: i32) -> (i32, i32, i32) {
    %c0_i32 = arith.constant 0 : i32
    %c0_i32_0 = arith.constant 0 : i32
    %c0_i32_1 = arith.constant 0 : i32
    %c0_i32_2 = arith.constant 0 : i32
    return %c0_i32, %c0_i32_0, %c0_i32_1 : i32, i32, i32
  }
  func.func @transform_4(%arg0: i32, %arg1: i32) -> (i32, i32) {
    %c0_i32 = arith.constant 0 : i32
    %c0_i32_0 = arith.constant 0 : i32
    %c0_i32_1 = arith.constant 0 : i32
    return %c0_i32, %c0_i32_0 : i32, i32
  }
  func.func @transform_5(%arg0: i32, %arg1: i32) -> (i32, i32) {
    %c0_i32 = arith.constant 0 : i32
    %c0_i32_0 = arith.constant 0 : i32
    %c0_i32_1 = arith.constant 0 : i32
    return %c0_i32, %c0_i32_0 : i32, i32
  }
  func.func @transform_6(%arg0: i32, %arg1: i32) -> (i32, i32) {
    %c0_i32 = arith.constant 0 : i32
    %c0_i32_0 = arith.constant 0 : i32
    %c0_i32_1 = arith.constant 0 : i32
    return %c0_i32, %c0_i32_0 : i32, i32
  }
  func.func @transform_7(%arg0: i32, %arg1: i32) -> (i32, i32) {
    %c0_i32 = arith.constant 0 : i32
    %c0_i32_0 = arith.constant 0 : i32
    %c0_i32_1 = arith.constant 0 : i32
    return %c0_i32, %c0_i32_0 : i32, i32
  }
  func.func @transform_8(%arg0: i32, %arg1: i32) -> (i32, i32) {
    %c0_i32 = arith.constant 0 : i32
    %c0_i32_0 = arith.constant 0 : i32
    %c0_i32_1 = arith.constant 0 : i32
    return %c0_i32, %c0_i32_0 : i32, i32
  }
  func.func @transform_9(%arg0: i32, %arg1: i32) -> (i32, i32) {
    %c0_i32 = arith.constant 0 : i32
    %c0_i32_0 = arith.constant 0 : i32
    %c0_i32_1 = arith.constant 0 : i32
    return %c0_i32, %c0_i32_0 : i32, i32
  }
  func.func @transform_10(%arg0: i32, %arg1: i32) -> (i32, i32) {
    %c0_i32 = arith.constant 0 : i32
    %c0_i32_0 = arith.constant 0 : i32
    %c0_i32_1 = arith.constant 0 : i32
    return %c0_i32, %c0_i32_0 : i32, i32
  }
  func.func @transform_11(%arg0: i32, %arg1: i32) -> (i32, i32) {
    %c0_i32 = arith.constant 0 : i32
    %c0_i32_0 = arith.constant 0 : i32
    %c0_i32_1 = arith.constant 0 : i32
    return %c0_i32, %c0_i32_0 : i32, i32
  }
  func.func @transform_12(%arg0: i32, %arg1: i32) -> (i32, i32) {
    %c0_i32 = arith.constant 0 : i32
    %c0_i32_0 = arith.constant 0 : i32
    %c0_i32_1 = arith.constant 0 : i32
    return %c0_i32, %c0_i32_0 : i32, i32
  }
  func.func @transform_13(%arg0: i32, %arg1: i32) -> (i32, i32) {
    %c0_i32 = arith.constant 0 : i32
    %c0_i32_0 = arith.constant 0 : i32
    %c0_i32_1 = arith.constant 0 : i32
    return %c0_i32, %c0_i32_0 : i32, i32
  }
  func.func @transform_14(%arg0: i32, %arg1: i32) -> (i32, i32, i32) {
    %c0_i32 = arith.constant 0 : i32
    %c0_i32_0 = arith.constant 0 : i32
    return %arg0, %arg1, %c0_i32 : i32, i32, i32
  }
}

module attributes {stable_mosaic.version = 11 : i64} {
  func.func @_transformer_layer_kernel(%arg0: i32, %arg1: i32, %arg2: memref<1x64x256xf32, #tpu.memory_space<vmem>>, %arg3: memref<256x256xbf16, #tpu.memory_space<vmem>>, %arg4: memref<2x256x128xbf16, #tpu.memory_space<vmem>>, %arg5: memref<2x256x128xbf16, #tpu.memory_space<vmem>>, %arg6: memref<256x256xbf16, #tpu.memory_space<vmem>>, %arg7: memref<1x256xf32, #tpu.memory_space<vmem>>, %arg8: memref<1x256xf32, #tpu.memory_space<vmem>>, %arg9: memref<1x256xf32, #tpu.memory_space<vmem>>, %arg10: memref<1x256xf32, #tpu.memory_space<vmem>>, %arg11: memref<1x256xf32, #tpu.memory_space<vmem>>, %arg12: memref<256x1024xbf16, #tpu.memory_space<vmem>>, %arg13: memref<1x1024xf32, #tpu.memory_space<vmem>>, %arg14: memref<1024x256xbf16, #tpu.memory_space<vmem>>, %arg15: memref<1x256xf32, #tpu.memory_space<vmem>>, %arg16: memref<1x32x256xf32, #tpu.memory_space<vmem>>, %arg17: memref<64x256xbf16, #tpu.memory_space<vmem>>, %arg18: memref<2x64x128xbf16, #tpu.memory_space<vmem>>, %arg19: memref<2x64x128xbf16, #tpu.memory_space<vmem>>, %arg20: memref<2x32x1xf32, #tpu.memory_space<vmem>>, %arg21: memref<2x32x1xf32, #tpu.memory_space<vmem>>, %arg22: memref<2x32x128xf32, #tpu.memory_space<vmem>>) attributes {dimension_semantics = [#tpu.dimension_semantics<parallel>, #tpu.dimension_semantics<arbitrary>], iteration_bounds = array<i64: 2, 2>, scalar_prefetch = 0 : i64, scratch_operands = 6 : i64, tpu.core_type = #tpu.core_type<tc>, window_params = [{transform_indices = @transform_0, window_bounds = array<i64: 1, 64, 256>}, {pipeline_mode = #tpu.pipeline_mode<synchronous>, transform_indices = @transform_1, window_bounds = array<i64: 256, 256>}, {pipeline_mode = #tpu.pipeline_mode<synchronous>, transform_indices = @transform_2, window_bounds = array<i64: 2, 256, 128>}, {pipeline_mode = #tpu.pipeline_mode<synchronous>, transform_indices = @transform_3, window_bounds = array<i64: 2, 256, 128>}, {pipeline_mode = #tpu.pipeline_mode<synchronous>, transform_indices = @transform_4, window_bounds = array<i64: 256, 256>}, {pipeline_mode = #tpu.pipeline_mode<synchronous>, transform_indices = @transform_5, window_bounds = array<i64: 1, 256>}, {pipeline_mode = #tpu.pipeline_mode<synchronous>, transform_indices = @transform_6, window_bounds = array<i64: 1, 256>}, {pipeline_mode = #tpu.pipeline_mode<synchronous>, transform_indices = @transform_7, window_bounds = array<i64: 1, 256>}, {pipeline_mode = #tpu.pipeline_mode<synchronous>, transform_indices = @transform_8, window_bounds = array<i64: 1, 256>}, {pipeline_mode = #tpu.pipeline_mode<synchronous>, transform_indices = @transform_9, window_bounds = array<i64: 1, 256>}, {pipeline_mode = #tpu.pipeline_mode<synchronous>, transform_indices = @transform_10, window_bounds = array<i64: 256, 1024>}, {pipeline_mode = #tpu.pipeline_mode<synchronous>, transform_indices = @transform_11, window_bounds = array<i64: 1, 1024>}, {pipeline_mode = #tpu.pipeline_mode<synchronous>, transform_indices = @transform_12, window_bounds = array<i64: 1024, 256>}, {pipeline_mode = #tpu.pipeline_mode<synchronous>, transform_indices = @transform_13, window_bounds = array<i64: 1, 256>}, {transform_indices = @transform_14, window_bounds = array<i64: 1, 32, 256>}]} {
    %c32_i32 = arith.constant 32 : i32
    %0 = arith.muli %arg1, %c32_i32 : i32
    %1 = tpu.assume_multiple %0, 32 : i32
    %c0_i32 = arith.constant 0 : i32
    %2 = arith.cmpi eq, %arg1, %c0_i32 : i32
    %3 = arith.extui %2 : i1 to i32
    %c0_i32_0 = arith.constant 0 : i32
    %4 = arith.cmpi ne, %3, %c0_i32_0 : i32
    scf.if %4 {
      %c0_88 = arith.constant 0 : index
      %c0_89 = arith.constant 0 : index
      %137 = vector.load %arg8[%c0_88, %c0_89] : memref<1x256xf32, #tpu.memory_space<vmem>>, vector<1x256xf32>
      %c0_90 = arith.constant 0 : index
      %c0_91 = arith.constant 0 : index
      %138 = vector.load %arg9[%c0_90, %c0_91] : memref<1x256xf32, #tpu.memory_space<vmem>>, vector<1x256xf32>
      %c0_92 = arith.constant 0 : index
      %c0_93 = arith.constant 0 : index
      %c0_94 = arith.constant 0 : index
      %139 = vector.load %arg2[%c0_92, %c0_93, %c0_94] : memref<1x64x256xf32, #tpu.memory_space<vmem>>, vector<1x64x256xf32>
      %140 = vector.shape_cast %139 : vector<1x64x256xf32> to vector<64x256xf32>
      %cst_95 = arith.constant dense<0.000000e+00> : vector<64xf32>
      %141 = vector.multi_reduction <add>, %140, %cst_95 [1] : vector<64x256xf32> to vector<64xf32>
      %142 = vector.shape_cast %141 : vector<64xf32> to vector<64x1xf32>
      %cst_96 = arith.constant 2.560000e+02 : f32
      %143 = vector.broadcast %cst_96 : f32 to vector<64x1xf32>
      %144 = arith.divf %142, %143 : vector<64x1xf32>
      %145 = vector.broadcast %144 : vector<64x1xf32> to vector<64x256xf32>
      %146 = arith.subf %140, %145 : vector<64x256xf32>
      %147 = arith.mulf %146, %146 : vector<64x256xf32>
      %cst_97 = arith.constant dense<0.000000e+00> : vector<64xf32>
      %148 = vector.multi_reduction <add>, %147, %cst_97 [1] : vector<64x256xf32> to vector<64xf32>
      %149 = vector.shape_cast %148 : vector<64xf32> to vector<64x1xf32>
      %cst_98 = arith.constant 2.560000e+02 : f32
      %150 = vector.broadcast %cst_98 : f32 to vector<64x1xf32>
      %151 = arith.divf %149, %150 : vector<64x1xf32>
      %152 = vector.broadcast %144 : vector<64x1xf32> to vector<64x256xf32>
      %153 = arith.subf %140, %152 : vector<64x256xf32>
      %154 = vector.broadcast %137 : vector<1x256xf32> to vector<64x256xf32>
      %155 = arith.mulf %154, %153 : vector<64x256xf32>
      %cst_99 = arith.constant 9.99999974E-6 : f32
      %156 = vector.broadcast %cst_99 : f32 to vector<64x1xf32>
      %157 = arith.addf %151, %156 : vector<64x1xf32>
      %158 = math.rsqrt %157 : vector<64x1xf32>
      %159 = vector.broadcast %158 : vector<64x1xf32> to vector<64x256xf32>
      %160 = arith.mulf %155, %159 : vector<64x256xf32>
      %161 = vector.broadcast %138 : vector<1x256xf32> to vector<64x256xf32>
      %162 = arith.addf %160, %161 : vector<64x256xf32>
      %163 = arith.truncf %162 : vector<64x256xf32> to vector<64x256xbf16>
      %c0_100 = arith.constant 0 : index
      %c0_101 = arith.constant 0 : index
      %164 = vector.load %arg17[%c0_100, %c0_101] : memref<64x256xbf16, #tpu.memory_space<vmem>>, vector<64x256xbf16>
      tpu.vector_store %arg17[%c0_100, %c0_101], %163 {strides = array<i32>} : memref<64x256xbf16, #tpu.memory_space<vmem>>, vector<64x256xbf16>,
      %c0_102 = arith.constant 0 : index
      %c0_103 = arith.constant 0 : index
      %c0_104 = arith.constant 0 : index
      %165 = vector.load %arg4[%c0_102, %c0_103, %c0_104] : memref<2x256x128xbf16, #tpu.memory_space<vmem>>, vector<1x256x128xbf16>
      %166 = vector.shape_cast %165 : vector<1x256x128xbf16> to vector<256x128xbf16>
      %cst_105 = arith.constant dense<0.000000e+00> : vector<64x128xf32>
      %167 = tpu.matmul %163, %166, %cst_105 {dimension_numbers = #tpu.dot_dimension_numbers<[1], [0], [0], [1], [0, 0, 1, 1], [], []>} : vector<64x256xbf16>, vector<256x128xbf16>, vector<64x128xf32> -> vector<64x128xf32>
      %168 = arith.truncf %167 : vector<64x128xf32> to vector<64x128xbf16>
      %c0_106 = arith.constant 0 : index
      %c0_107 = arith.constant 0 : index
      %c0_108 = arith.constant 0 : index
      %169 = vector.load %arg18[%c0_106, %c0_107, %c0_108] : memref<2x64x128xbf16, #tpu.memory_space<vmem>>, vector<1x64x128xbf16>
      %170 = vector.shape_cast %169 : vector<1x64x128xbf16> to vector<64x128xbf16>
      %171 = vector.shape_cast %168 : vector<64x128xbf16> to vector<1x64x128xbf16>
      tpu.vector_store %arg18[%c0_106, %c0_107, %c0_108], %171 {strides = array<i32>} : memref<2x64x128xbf16, #tpu.memory_space<vmem>>, vector<1x64x128xbf16>,
      %c0_109 = arith.constant 0 : index
      %c0_110 = arith.constant 0 : index
      %c0_111 = arith.constant 0 : index
      %172 = vector.load %arg5[%c0_109, %c0_110, %c0_111] : memref<2x256x128xbf16, #tpu.memory_space<vmem>>, vector<1x256x128xbf16>
      %173 = vector.shape_cast %172 : vector<1x256x128xbf16> to vector<256x128xbf16>
      %cst_112 = arith.constant dense<0.000000e+00> : vector<64x128xf32>
      %174 = tpu.matmul %163, %173, %cst_112 {dimension_numbers = #tpu.dot_dimension_numbers<[1], [0], [0], [1], [0, 0, 1, 1], [], []>} : vector<64x256xbf16>, vector<256x128xbf16>, vector<64x128xf32> -> vector<64x128xf32>
      %175 = arith.truncf %174 : vector<64x128xf32> to vector<64x128xbf16>
      %c0_113 = arith.constant 0 : index
      %c0_114 = arith.constant 0 : index
      %c0_115 = arith.constant 0 : index
      %176 = vector.load %arg19[%c0_113, %c0_114, %c0_115] : memref<2x64x128xbf16, #tpu.memory_space<vmem>>, vector<1x64x128xbf16>
      %177 = vector.shape_cast %176 : vector<1x64x128xbf16> to vector<64x128xbf16>
      %178 = vector.shape_cast %175 : vector<64x128xbf16> to vector<1x64x128xbf16>
      tpu.vector_store %arg19[%c0_113, %c0_114, %c0_115], %178 {strides = array<i32>} : memref<2x64x128xbf16, #tpu.memory_space<vmem>>, vector<1x64x128xbf16>,
      %c1 = arith.constant 1 : index
      %c0_116 = arith.constant 0 : index
      %c0_117 = arith.constant 0 : index
      %179 = vector.load %arg4[%c1, %c0_116, %c0_117] : memref<2x256x128xbf16, #tpu.memory_space<vmem>>, vector<1x256x128xbf16>
      %180 = vector.shape_cast %179 : vector<1x256x128xbf16> to vector<256x128xbf16>
      %cst_118 = arith.constant dense<0.000000e+00> : vector<64x128xf32>
      %181 = tpu.matmul %163, %180, %cst_118 {dimension_numbers = #tpu.dot_dimension_numbers<[1], [0], [0], [1], [0, 0, 1, 1], [], []>} : vector<64x256xbf16>, vector<256x128xbf16>, vector<64x128xf32> -> vector<64x128xf32>
      %182 = arith.truncf %181 : vector<64x128xf32> to vector<64x128xbf16>
      %c1_119 = arith.constant 1 : index
      %c0_120 = arith.constant 0 : index
      %c0_121 = arith.constant 0 : index
      %183 = vector.load %arg18[%c1_119, %c0_120, %c0_121] : memref<2x64x128xbf16, #tpu.memory_space<vmem>>, vector<1x64x128xbf16>
      %184 = vector.shape_cast %183 : vector<1x64x128xbf16> to vector<64x128xbf16>
      %185 = vector.shape_cast %182 : vector<64x128xbf16> to vector<1x64x128xbf16>
      tpu.vector_store %arg18[%c1_119, %c0_120, %c0_121], %185 {strides = array<i32>} : memref<2x64x128xbf16, #tpu.memory_space<vmem>>, vector<1x64x128xbf16>,
      %c1_122 = arith.constant 1 : index
      %c0_123 = arith.constant 0 : index
      %c0_124 = arith.constant 0 : index
      %186 = vector.load %arg5[%c1_122, %c0_123, %c0_124] : memref<2x256x128xbf16, #tpu.memory_space<vmem>>, vector<1x256x128xbf16>
      %187 = vector.shape_cast %186 : vector<1x256x128xbf16> to vector<256x128xbf16>
      %cst_125 = arith.constant dense<0.000000e+00> : vector<64x128xf32>
      %188 = tpu.matmul %163, %187, %cst_125 {dimension_numbers = #tpu.dot_dimension_numbers<[1], [0], [0], [1], [0, 0, 1, 1], [], []>} : vector<64x256xbf16>, vector<256x128xbf16>, vector<64x128xf32> -> vector<64x128xf32>
      %189 = arith.truncf %188 : vector<64x128xf32> to vector<64x128xbf16>
      %c1_126 = arith.constant 1 : index
      %c0_127 = arith.constant 0 : index
      %c0_128 = arith.constant 0 : index
      %190 = vector.load %arg19[%c1_126, %c0_127, %c0_128] : memref<2x64x128xbf16, #tpu.memory_space<vmem>>, vector<1x64x128xbf16>
      %191 = vector.shape_cast %190 : vector<1x64x128xbf16> to vector<64x128xbf16>
      %192 = vector.shape_cast %189 : vector<64x128xbf16> to vector<1x64x128xbf16>
      tpu.vector_store %arg19[%c1_126, %c0_127, %c0_128], %192 {strides = array<i32>} : memref<2x64x128xbf16, #tpu.memory_space<vmem>>, vector<1x64x128xbf16>,
    } else {
    }
    %5 = arith.index_cast %1 : i32 to index
    %c0 = arith.constant 0 : index
    %6 = vector.load %arg17[%5, %c0] : memref<64x256xbf16, #tpu.memory_space<vmem>>, vector<32x256xbf16>
    %c0_1 = arith.constant 0 : index
    %c0_2 = arith.constant 0 : index
    %7 = vector.load %arg3[%c0_1, %c0_2] : memref<256x256xbf16, #tpu.memory_space<vmem>>, vector<256x256xbf16>
    %cst = arith.constant dense<0.000000e+00> : vector<32x256xf32>
    %8 = tpu.matmul %6, %7, %cst {dimension_numbers = #tpu.dot_dimension_numbers<[1], [0], [0], [1], [0, 0, 1, 1], [], []>} : vector<32x256xbf16>, vector<256x256xbf16>, vector<32x256xf32> -> vector<32x256xf32>
    %cst_3 = arith.constant 0.0883883461 : f32
    %9 = vector.broadcast %cst_3 : f32 to vector<32x256xf32>
    %10 = arith.mulf %8, %9 : vector<32x256xf32>
    %11 = vector.extract_strided_slice %10 {offsets = [0, 0], sizes = [32, 128], strides = [1, 1]} : vector<32x256xf32> to vector<32x128xf32>
    %12 = vector.extract_strided_slice %10 {offsets = [0, 128], sizes = [32, 128], strides = [1, 1]} : vector<32x256xf32> to vector<32x128xf32>
    %13 = vector.shape_cast %11 : vector<32x128xf32> to vector<1x32x128xf32>
    %14 = vector.shape_cast %12 : vector<32x128xf32> to vector<1x32x128xf32>
    %15 = tpu.concatenate %13, %14 in 0 : vector<1x32x128xf32>, vector<1x32x128xf32> -> vector<2x32x128xf32>
    %16 = arith.truncf %15 : vector<2x32x128xf32> to vector<2x32x128xbf16>
    %cst_4 = arith.constant -1.000000e+30 : f32
    %17 = vector.broadcast %cst_4 : f32 to vector<2x32x1xf32>
    %c0_5 = arith.constant 0 : index
    %c0_6 = arith.constant 0 : index
    %c0_7 = arith.constant 0 : index
    %18 = vector.load %arg20[%c0_5, %c0_6, %c0_7] : memref<2x32x1xf32, #tpu.memory_space<vmem>>, vector<2x32x1xf32>
    tpu.vector_store %arg20[%c0_5, %c0_6, %c0_7], %17 {strides = array<i32>} : memref<2x32x1xf32, #tpu.memory_space<vmem>>, vector<2x32x1xf32>,
    %cst_8 = arith.constant 0.000000e+00 : f32
    %19 = vector.broadcast %cst_8 : f32 to vector<2x32x1xf32>
    %c0_9 = arith.constant 0 : index
    %c0_10 = arith.constant 0 : index
    %c0_11 = arith.constant 0 : index
    %20 = vector.load %arg21[%c0_9, %c0_10, %c0_11] : memref<2x32x1xf32, #tpu.memory_space<vmem>>, vector<2x32x1xf32>
    tpu.vector_store %arg21[%c0_9, %c0_10, %c0_11], %19 {strides = array<i32>} : memref<2x32x1xf32, #tpu.memory_space<vmem>>, vector<2x32x1xf32>,
    %cst_12 = arith.constant 0.000000e+00 : f32
    %21 = vector.broadcast %cst_12 : f32 to vector<2x32x128xf32>
    %c0_13 = arith.constant 0 : index
    %c0_14 = arith.constant 0 : index
    %c0_15 = arith.constant 0 : index
    %22 = vector.load %arg22[%c0_13, %c0_14, %c0_15] : memref<2x32x128xf32, #tpu.memory_space<vmem>>, vector<2x32x128xf32>
    tpu.vector_store %arg22[%c0_13, %c0_14, %c0_15], %21 {strides = array<i32>} : memref<2x32x128xf32, #tpu.memory_space<vmem>>, vector<2x32x128xf32>,
    %23 = tpu.iota {dimensions = array<i32: 0>} : vector<32x32xi32>
    %24 = vector.broadcast %1 : i32 to vector<32x32xi32>
    %25 = arith.addi %24, %23 : vector<32x32xi32>
    %c0_i32_16 = arith.constant 0 : i32
    %26 = arith.subi %arg1, %c0_i32_16 : i32
    %c1_i32 = arith.constant 1 : i32
    %c1_i32_17 = arith.constant 1 : i32
    %27 = arith.subi %c1_i32, %c1_i32_17 : i32
    %28 = arith.addi %26, %27 : i32
    %c1_i32_18 = arith.constant 1 : i32
    %29 = arith.divsi %28, %c1_i32_18 : i32
    %c1_i32_19 = arith.constant 1 : i32
    %c0_i32_20 = arith.constant 0 : i32
    %c0_i32_21 = arith.constant 0 : i32
    %30 = arith.subi %29, %c0_i32_21 : i32
    %31 = arith.addi %c0_i32_21, %30 : i32
    %c1_i32_22 = arith.constant 1 : i32
    scf.for %arg23 = %c0_i32_21 to %31 step %c1_i32_22  : i32 {
      %137 = arith.muli %arg23, %c1_i32_19 : i32
      %138 = arith.addi %c0_i32_20, %137 : i32
      %c32_i32_88 = arith.constant 32 : i32
      %139 = arith.muli %138, %c32_i32_88 : i32
      %140 = tpu.assume_multiple %139, 32 : i32
      %c0_89 = arith.constant 0 : index
      %141 = arith.index_cast %140 : i32 to index
      %c0_90 = arith.constant 0 : index
      %142 = vector.load %arg18[%c0_89, %141, %c0_90] : memref<2x64x128xbf16, #tpu.memory_space<vmem>>, vector<2x32x128xbf16>
      %c0_91 = arith.constant 0 : index
      %143 = arith.index_cast %140 : i32 to index
      %c0_92 = arith.constant 0 : index
      %144 = vector.load %arg19[%c0_91, %143, %c0_92] : memref<2x64x128xbf16, #tpu.memory_space<vmem>>, vector<2x32x128xbf16>
      "tpu.trace_start"() <{level = 10 : i32, message = "hqd,hkd->hqk"}> : () -> ()
      %cst_93 = arith.constant dense<0.000000e+00> : vector<2x32x32xf32>
      %145 = tpu.matmul %16, %142, %cst_93 {dimension_numbers = #tpu.dot_dimension_numbers<[2], [2], [1], [1], [0, 0, 0, 1, 1, 1], [0], [0]>} : vector<2x32x128xbf16>, vector<2x32x128xbf16>, vector<2x32x32xf32> -> vector<2x32x32xf32>
      "tpu.trace_stop"() : () -> ()
      %c0_94 = arith.constant 0 : index
      %c0_95 = arith.constant 0 : index
      %c0_96 = arith.constant 0 : index
      %146 = vector.load %arg20[%c0_94, %c0_95, %c0_96] : memref<2x32x1xf32, #tpu.memory_space<vmem>>, vector<2x32x1xf32>
      %cst_97 = arith.constant dense<0xFF800000> : vector<2x32xf32>
      %147 = vector.multi_reduction <maximumf>, %145, %cst_97 [2] : vector<2x32x32xf32> to vector<2x32xf32>
      %148 = vector.shape_cast %147 : vector<2x32xf32> to vector<2x32x1xf32>
      %149 = arith.maximumf %146, %148 : vector<2x32x1xf32>
      %150 = arith.subf %146, %149 : vector<2x32x1xf32>
      %151 = math.exp %150 : vector<2x32x1xf32>
      %152 = vector.broadcast %149 : vector<2x32x1xf32> to vector<2x32x32xf32>
      %153 = arith.subf %145, %152 : vector<2x32x32xf32>
      %154 = math.exp %153 : vector<2x32x32xf32>
      %c0_98 = arith.constant 0 : index
      %c0_99 = arith.constant 0 : index
      %c0_100 = arith.constant 0 : index
      %155 = vector.load %arg21[%c0_98, %c0_99, %c0_100] : memref<2x32x1xf32, #tpu.memory_space<vmem>>, vector<2x32x1xf32>
      %156 = arith.mulf %151, %155 : vector<2x32x1xf32>
      %cst_101 = arith.constant dense<0.000000e+00> : vector<2x32xf32>
      %157 = vector.multi_reduction <add>, %154, %cst_101 [2] : vector<2x32x32xf32> to vector<2x32xf32>
      %158 = vector.shape_cast %157 : vector<2x32xf32> to vector<2x32x1xf32>
      %159 = arith.addf %156, %158 : vector<2x32x1xf32>
      %c0_102 = arith.constant 0 : index
      %c0_103 = arith.constant 0 : index
      %c0_104 = arith.constant 0 : index
      %160 = vector.load %arg21[%c0_102, %c0_103, %c0_104] : memref<2x32x1xf32, #tpu.memory_space<vmem>>, vector<2x32x1xf32>
      tpu.vector_store %arg21[%c0_102, %c0_103, %c0_104], %159 {strides = array<i32>} : memref<2x32x1xf32, #tpu.memory_space<vmem>>, vector<2x32x1xf32>,
      %c0_105 = arith.constant 0 : index
      %c0_106 = arith.constant 0 : index
      %c0_107 = arith.constant 0 : index
      %161 = vector.load %arg22[%c0_105, %c0_106, %c0_107] : memref<2x32x128xf32, #tpu.memory_space<vmem>>, vector<2x32x128xf32>
      %162 = vector.broadcast %151 : vector<2x32x1xf32> to vector<2x32x128xf32>
      %163 = arith.mulf %162, %161 : vector<2x32x128xf32>
      %164 = arith.truncf %154 : vector<2x32x32xf32> to vector<2x32x32xbf16>
      "tpu.trace_start"() <{level = 10 : i32, message = "hqk,hkd->hqd"}> : () -> ()
      %cst_108 = arith.constant dense<0.000000e+00> : vector<2x32x128xf32>
      %165 = tpu.matmul %164, %144, %cst_108 {dimension_numbers = #tpu.dot_dimension_numbers<[2], [1], [1], [2], [0, 0, 0, 1, 1, 2], [0], [0]>} : vector<2x32x32xbf16>, vector<2x32x128xbf16>, vector<2x32x128xf32> -> vector<2x32x128xf32>
      "tpu.trace_stop"() : () -> ()
      %166 = arith.addf %163, %165 : vector<2x32x128xf32>
      %c0_109 = arith.constant 0 : index
      %c0_110 = arith.constant 0 : index
      %c0_111 = arith.constant 0 : index
      %167 = vector.load %arg22[%c0_109, %c0_110, %c0_111] : memref<2x32x128xf32, #tpu.memory_space<vmem>>, vector<2x32x128xf32>
      tpu.vector_store %arg22[%c0_109, %c0_110, %c0_111], %166 {strides = array<i32>} : memref<2x32x128xf32, #tpu.memory_space<vmem>>, vector<2x32x128xf32>,
      %c0_112 = arith.constant 0 : index
      %c0_113 = arith.constant 0 : index
      %c0_114 = arith.constant 0 : index
      %168 = vector.load %arg20[%c0_112, %c0_113, %c0_114] : memref<2x32x1xf32, #tpu.memory_space<vmem>>, vector<2x32x1xf32>
      tpu.vector_store %arg20[%c0_112, %c0_113, %c0_114], %149 {strides = array<i32>} : memref<2x32x1xf32, #tpu.memory_space<vmem>>, vector<2x32x1xf32>,
    }
    %c0_23 = arith.constant 0 : index
    %32 = arith.index_cast %1 : i32 to index
    %c0_24 = arith.constant 0 : index
    %33 = vector.load %arg18[%c0_23, %32, %c0_24] : memref<2x64x128xbf16, #tpu.memory_space<vmem>>, vector<2x32x128xbf16>
    %c0_25 = arith.constant 0 : index
    %34 = arith.index_cast %1 : i32 to index
    %c0_26 = arith.constant 0 : index
    %35 = vector.load %arg19[%c0_25, %34, %c0_26] : memref<2x64x128xbf16, #tpu.memory_space<vmem>>, vector<2x32x128xbf16>
    "tpu.trace_start"() <{level = 10 : i32, message = "hqd,hkd->hqk"}> : () -> ()
    %cst_27 = arith.constant dense<0.000000e+00> : vector<2x32x32xf32>
    %36 = tpu.matmul %16, %33, %cst_27 {dimension_numbers = #tpu.dot_dimension_numbers<[2], [2], [1], [1], [0, 0, 0, 1, 1, 1], [0], [0]>} : vector<2x32x128xbf16>, vector<2x32x128xbf16>, vector<2x32x32xf32> -> vector<2x32x32xf32>
    "tpu.trace_stop"() : () -> ()
    %37 = tpu.iota {dimensions = array<i32: 1>} : vector<32x32xi32>
    %38 = vector.broadcast %1 : i32 to vector<32x32xi32>
    %39 = arith.addi %38, %37 : vector<32x32xi32>
    %40 = arith.cmpi sgt, %39, %25 : vector<32x32xi32>
    %41 = vector.shape_cast %40 : vector<32x32xi1> to vector<1x32x32xi1>
    %cst_28 = arith.constant -1.000000e+30 : f32
    %42 = vector.shape_cast %41 : vector<1x32x32xi1> to vector<1x32x32xi1>
    %43 = vector.broadcast %42 : vector<1x32x32xi1> to vector<2x32x32xi1>
    %44 = vector.broadcast %cst_28 : f32 to vector<2x32x32xf32>
    %45 = arith.select %43, %44, %36 : vector<2x32x32xi1>, vector<2x32x32xf32>
    %c0_29 = arith.constant 0 : index
    %c0_30 = arith.constant 0 : index
    %c0_31 = arith.constant 0 : index
    %46 = vector.load %arg20[%c0_29, %c0_30, %c0_31] : memref<2x32x1xf32, #tpu.memory_space<vmem>>, vector<2x32x1xf32>
    %cst_32 = arith.constant dense<0xFF800000> : vector<2x32xf32>
    %47 = vector.multi_reduction <maximumf>, %45, %cst_32 [2] : vector<2x32x32xf32> to vector<2x32xf32>
    %48 = vector.shape_cast %47 : vector<2x32xf32> to vector<2x32x1xf32>
    %49 = arith.maximumf %46, %48 : vector<2x32x1xf32>
    %50 = arith.subf %46, %49 : vector<2x32x1xf32>
    %51 = math.exp %50 : vector<2x32x1xf32>
    %52 = vector.broadcast %49 : vector<2x32x1xf32> to vector<2x32x32xf32>
    %53 = arith.subf %45, %52 : vector<2x32x32xf32>
    %54 = math.exp %53 : vector<2x32x32xf32>
    %c0_33 = arith.constant 0 : index
    %c0_34 = arith.constant 0 : index
    %c0_35 = arith.constant 0 : index
    %55 = vector.load %arg21[%c0_33, %c0_34, %c0_35] : memref<2x32x1xf32, #tpu.memory_space<vmem>>, vector<2x32x1xf32>
    %56 = arith.mulf %51, %55 : vector<2x32x1xf32>
    %cst_36 = arith.constant dense<0.000000e+00> : vector<2x32xf32>
    %57 = vector.multi_reduction <add>, %54, %cst_36 [2] : vector<2x32x32xf32> to vector<2x32xf32>
    %58 = vector.shape_cast %57 : vector<2x32xf32> to vector<2x32x1xf32>
    %59 = arith.addf %56, %58 : vector<2x32x1xf32>
    %c0_37 = arith.constant 0 : index
    %c0_38 = arith.constant 0 : index
    %c0_39 = arith.constant 0 : index
    %60 = vector.load %arg21[%c0_37, %c0_38, %c0_39] : memref<2x32x1xf32, #tpu.memory_space<vmem>>, vector<2x32x1xf32>
    tpu.vector_store %arg21[%c0_37, %c0_38, %c0_39], %59 {strides = array<i32>} : memref<2x32x1xf32, #tpu.memory_space<vmem>>, vector<2x32x1xf32>,
    %c0_40 = arith.constant 0 : index
    %c0_41 = arith.constant 0 : index
    %c0_42 = arith.constant 0 : index
    %61 = vector.load %arg22[%c0_40, %c0_41, %c0_42] : memref<2x32x128xf32, #tpu.memory_space<vmem>>, vector<2x32x128xf32>
    %62 = vector.broadcast %51 : vector<2x32x1xf32> to vector<2x32x128xf32>
    %63 = arith.mulf %62, %61 : vector<2x32x128xf32>
    %64 = arith.truncf %54 : vector<2x32x32xf32> to vector<2x32x32xbf16>
    "tpu.trace_start"() <{level = 10 : i32, message = "hqk,hkd->hqd"}> : () -> ()
    %cst_43 = arith.constant dense<0.000000e+00> : vector<2x32x128xf32>
    %65 = tpu.matmul %64, %35, %cst_43 {dimension_numbers = #tpu.dot_dimension_numbers<[2], [1], [1], [2], [0, 0, 0, 1, 1, 2], [0], [0]>} : vector<2x32x32xbf16>, vector<2x32x128xbf16>, vector<2x32x128xf32> -> vector<2x32x128xf32>
    "tpu.trace_stop"() : () -> ()
    %66 = arith.addf %63, %65 : vector<2x32x128xf32>
    %c0_44 = arith.constant 0 : index
    %c0_45 = arith.constant 0 : index
    %c0_46 = arith.constant 0 : index
    %67 = vector.load %arg22[%c0_44, %c0_45, %c0_46] : memref<2x32x128xf32, #tpu.memory_space<vmem>>, vector<2x32x128xf32>
    tpu.vector_store %arg22[%c0_44, %c0_45, %c0_46], %66 {strides = array<i32>} : memref<2x32x128xf32, #tpu.memory_space<vmem>>, vector<2x32x128xf32>,
    %c0_47 = arith.constant 0 : index
    %c0_48 = arith.constant 0 : index
    %c0_49 = arith.constant 0 : index
    %68 = vector.load %arg20[%c0_47, %c0_48, %c0_49] : memref<2x32x1xf32, #tpu.memory_space<vmem>>, vector<2x32x1xf32>
    tpu.vector_store %arg20[%c0_47, %c0_48, %c0_49], %49 {strides = array<i32>} : memref<2x32x1xf32, #tpu.memory_space<vmem>>, vector<2x32x1xf32>,
    %c0_50 = arith.constant 0 : index
    %c0_51 = arith.constant 0 : index
    %c0_52 = arith.constant 0 : index
    %69 = vector.load %arg22[%c0_50, %c0_51, %c0_52] : memref<2x32x128xf32, #tpu.memory_space<vmem>>, vector<2x32x128xf32>
    %c0_53 = arith.constant 0 : index
    %c0_54 = arith.constant 0 : index
    %c0_55 = arith.constant 0 : index
    %70 = vector.load %arg21[%c0_53, %c0_54, %c0_55] : memref<2x32x1xf32, #tpu.memory_space<vmem>>, vector<2x32x1xf32>
    %71 = tpu.reciprocal %70 {approx = true} : vector<2x32x1xf32> -> vector<2x32x1xf32>
    %72 = vector.broadcast %71 : vector<2x32x1xf32> to vector<2x32x128xf32>
    %73 = arith.mulf %69, %72 : vector<2x32x128xf32>
    %74 = arith.truncf %73 : vector<2x32x128xf32> to vector<2x32x128xbf16>
    %75 = vector.extract_strided_slice %74 {offsets = [0, 0, 0], sizes = [1, 32, 128], strides = [1, 1, 1]} : vector<2x32x128xbf16> to vector<1x32x128xbf16>
    %76 = vector.shape_cast %75 : vector<1x32x128xbf16> to vector<32x128xbf16>
    %77 = vector.extract_strided_slice %74 {offsets = [1, 0, 0], sizes = [1, 32, 128], strides = [1, 1, 1]} : vector<2x32x128xbf16> to vector<1x32x128xbf16>
    %78 = vector.shape_cast %77 : vector<1x32x128xbf16> to vector<32x128xbf16>
    %79 = tpu.concatenate %76, %78 in 1 : vector<32x128xbf16>, vector<32x128xbf16> -> vector<32x256xbf16>
    %c0_56 = arith.constant 0 : index
    %c0_57 = arith.constant 0 : index
    %80 = vector.load %arg6[%c0_56, %c0_57] : memref<256x256xbf16, #tpu.memory_space<vmem>>, vector<256x256xbf16>
    %cst_58 = arith.constant dense<0.000000e+00> : vector<32x256xf32>
    %81 = tpu.matmul %79, %80, %cst_58 {dimension_numbers = #tpu.dot_dimension_numbers<[1], [0], [0], [1], [0, 0, 1, 1], [], []>} : vector<32x256xbf16>, vector<256x256xbf16>, vector<32x256xf32> -> vector<32x256xf32>
    %c0_59 = arith.constant 0 : index
    %c0_60 = arith.constant 0 : index
    %82 = vector.load %arg7[%c0_59, %c0_60] : memref<1x256xf32, #tpu.memory_space<vmem>>, vector<1x256xf32>
    %83 = vector.broadcast %82 : vector<1x256xf32> to vector<32x256xf32>
    %84 = arith.addf %81, %83 : vector<32x256xf32>
    %c0_61 = arith.constant 0 : index
    %85 = arith.index_cast %1 : i32 to index
    %c0_62 = arith.constant 0 : index
    %86 = vector.load %arg2[%c0_61, %85, %c0_62] : memref<1x64x256xf32, #tpu.memory_space<vmem>>, vector<1x32x256xf32>
    %87 = vector.shape_cast %86 : vector<1x32x256xf32> to vector<32x256xf32>
    %88 = arith.addf %87, %84 : vector<32x256xf32>
    %c0_63 = arith.constant 0 : index
    %c0_64 = arith.constant 0 : index
    %89 = vector.load %arg10[%c0_63, %c0_64] : memref<1x256xf32, #tpu.memory_space<vmem>>, vector<1x256xf32>
    %c0_65 = arith.constant 0 : index
    %c0_66 = arith.constant 0 : index
    %90 = vector.load %arg11[%c0_65, %c0_66] : memref<1x256xf32, #tpu.memory_space<vmem>>, vector<1x256xf32>
    %cst_67 = arith.constant dense<0.000000e+00> : vector<32xf32>
    %91 = vector.multi_reduction <add>, %88, %cst_67 [1] : vector<32x256xf32> to vector<32xf32>
    %92 = vector.shape_cast %91 : vector<32xf32> to vector<32x1xf32>
    %cst_68 = arith.constant 2.560000e+02 : f32
    %93 = vector.broadcast %cst_68 : f32 to vector<32x1xf32>
    %94 = arith.divf %92, %93 : vector<32x1xf32>
    %95 = vector.broadcast %94 : vector<32x1xf32> to vector<32x256xf32>
    %96 = arith.subf %88, %95 : vector<32x256xf32>
    %97 = arith.mulf %96, %96 : vector<32x256xf32>
    %cst_69 = arith.constant dense<0.000000e+00> : vector<32xf32>
    %98 = vector.multi_reduction <add>, %97, %cst_69 [1] : vector<32x256xf32> to vector<32xf32>
    %99 = vector.shape_cast %98 : vector<32xf32> to vector<32x1xf32>
    %cst_70 = arith.constant 2.560000e+02 : f32
    %100 = vector.broadcast %cst_70 : f32 to vector<32x1xf32>
    %101 = arith.divf %99, %100 : vector<32x1xf32>
    %102 = vector.broadcast %94 : vector<32x1xf32> to vector<32x256xf32>
    %103 = arith.subf %88, %102 : vector<32x256xf32>
    %104 = vector.broadcast %89 : vector<1x256xf32> to vector<32x256xf32>
    %105 = arith.mulf %104, %103 : vector<32x256xf32>
    %cst_71 = arith.constant 9.99999974E-6 : f32
    %106 = vector.broadcast %cst_71 : f32 to vector<32x1xf32>
    %107 = arith.addf %101, %106 : vector<32x1xf32>
    %108 = math.rsqrt %107 : vector<32x1xf32>
    %109 = vector.broadcast %108 : vector<32x1xf32> to vector<32x256xf32>
    %110 = arith.mulf %105, %109 : vector<32x256xf32>
    %111 = vector.broadcast %90 : vector<1x256xf32> to vector<32x256xf32>
    %112 = arith.addf %110, %111 : vector<32x256xf32>
    %113 = arith.truncf %112 : vector<32x256xf32> to vector<32x256xbf16>
    %c0_72 = arith.constant 0 : index
    %c0_73 = arith.constant 0 : index
    %114 = vector.load %arg12[%c0_72, %c0_73] : memref<256x1024xbf16, #tpu.memory_space<vmem>>, vector<256x1024xbf16>
    %cst_74 = arith.constant dense<0.000000e+00> : vector<32x1024xf32>
    %115 = tpu.matmul %113, %114, %cst_74 {dimension_numbers = #tpu.dot_dimension_numbers<[1], [0], [0], [1], [0, 0, 1, 1], [], []>} : vector<32x256xbf16>, vector<256x1024xbf16>, vector<32x1024xf32> -> vector<32x1024xf32>
    %c0_75 = arith.constant 0 : index
    %c0_76 = arith.constant 0 : index
    %116 = vector.load %arg13[%c0_75, %c0_76] : memref<1x1024xf32, #tpu.memory_space<vmem>>, vector<1x1024xf32>
    %117 = vector.broadcast %116 : vector<1x1024xf32> to vector<32x1024xf32>
    %118 = arith.addf %115, %117 : vector<32x1024xf32>
    %cst_77 = arith.constant 5.000000e-01 : f32
    %119 = vector.broadcast %cst_77 : f32 to vector<32x1024xf32>
    %120 = arith.mulf %119, %118 : vector<32x1024xf32>
    %cst_78 = arith.constant 0.707106769 : f32
    %121 = vector.broadcast %cst_78 : f32 to vector<32x1024xf32>
    %122 = arith.mulf %118, %121 : vector<32x1024xf32>
    %123 = math.erf %122 : vector<32x1024xf32>
    %cst_79 = arith.constant 1.000000e+00 : f32
    %124 = vector.broadcast %cst_79 : f32 to vector<32x1024xf32>
    %125 = arith.addf %124, %123 : vector<32x1024xf32>
    %126 = arith.mulf %120, %125 : vector<32x1024xf32>
    %127 = arith.truncf %126 : vector<32x1024xf32> to vector<32x1024xbf16>
    %c0_80 = arith.constant 0 : index
    %c0_81 = arith.constant 0 : index
    %128 = vector.load %arg14[%c0_80, %c0_81] : memref<1024x256xbf16, #tpu.memory_space<vmem>>, vector<1024x256xbf16>
    %cst_82 = arith.constant dense<0.000000e+00> : vector<32x256xf32>
    %129 = tpu.matmul %127, %128, %cst_82 {dimension_numbers = #tpu.dot_dimension_numbers<[1], [0], [0], [1], [0, 0, 1, 1], [], []>} : vector<32x1024xbf16>, vector<1024x256xbf16>, vector<32x256xf32> -> vector<32x256xf32>
    %c0_83 = arith.constant 0 : index
    %c0_84 = arith.constant 0 : index
    %130 = vector.load %arg15[%c0_83, %c0_84] : memref<1x256xf32, #tpu.memory_space<vmem>>, vector<1x256xf32>
    %131 = vector.broadcast %130 : vector<1x256xf32> to vector<32x256xf32>
    %132 = arith.addf %129, %131 : vector<32x256xf32>
    %133 = arith.addf %88, %132 : vector<32x256xf32>
    %c0_85 = arith.constant 0 : index
    %c0_86 = arith.constant 0 : index
    %c0_87 = arith.constant 0 : index
    %134 = vector.load %arg16[%c0_85, %c0_86, %c0_87] : memref<1x32x256xf32, #tpu.memory_space<vmem>>, vector<1x32x256xf32>
    %135 = vector.shape_cast %134 : vector<1x32x256xf32> to vector<32x256xf32>
    %136 = vector.shape_cast %133 : vector<32x256xf32> to vector<1x32x256xf32>
    tpu.vector_store %arg16[%c0_85, %c0_86, %c0_87], %136 {strides = array<i32>} : memref<1x32x256xf32, #tpu.memory_space<vmem>>, vector<1x32x256xf32>,
    return
  }
  func.func @transform_0(%arg0: i32, %arg1: i32) -> (i32, i32, i32) {
    %c0_i32 = arith.constant 0 : i32
    %c0_i32_0 = arith.constant 0 : i32
    %c0_i32_1 = arith.constant 0 : i32
    return %arg0, %c0_i32, %c0_i32_0 : i32, i32, i32
  }
  func.func @transform_1(%arg0: i32, %arg1: i32) -> (i32, i32) {
    %c0_i32 = arith.constant 0 : i32
    %c0_i32_0 = arith.constant 0 : i32
    %c0_i32_1 = arith.constant 0 : i32
    return %c0_i32, %c0_i32_0 : i32, i32
  }
  func.func @transform_2(%arg0: i32, %arg1: i32) -> (i32, i32, i32) {
    %c0_i32 = arith.constant 0 : i32
    %c0_i32_0 = arith.constant 0 : i32
    %c0_i32_1 = arith.constant 0 : i32
    %c0_i32_2 = arith.constant 0 : i32
    return %c0_i32, %c0_i32_0, %c0_i32_1 : i32, i32, i32
  }
  func.func @transform_3(%arg0: i32, %arg1: i32) -> (i32, i32, i32) {
    %c0_i32 = arith.constant 0 : i32
    %c0_i32_0 = arith.constant 0 : i32
    %c0_i32_1 = arith.constant 0 : i32
    %c0_i32_2 = arith.constant 0 : i32
    return %c0_i32, %c0_i32_0, %c0_i32_1 : i32, i32, i32
  }
  func.func @transform_4(%arg0: i32, %arg1: i32) -> (i32, i32) {
    %c0_i32 = arith.constant 0 : i32
    %c0_i32_0 = arith.constant 0 : i32
    %c0_i32_1 = arith.constant 0 : i32
    return %c0_i32, %c0_i32_0 : i32, i32
  }
  func.func @transform_5(%arg0: i32, %arg1: i32) -> (i32, i32) {
    %c0_i32 = arith.constant 0 : i32
    %c0_i32_0 = arith.constant 0 : i32
    %c0_i32_1 = arith.constant 0 : i32
    return %c0_i32, %c0_i32_0 : i32, i32
  }
  func.func @transform_6(%arg0: i32, %arg1: i32) -> (i32, i32) {
    %c0_i32 = arith.constant 0 : i32
    %c0_i32_0 = arith.constant 0 : i32
    %c0_i32_1 = arith.constant 0 : i32
    return %c0_i32, %c0_i32_0 : i32, i32
  }
  func.func @transform_7(%arg0: i32, %arg1: i32) -> (i32, i32) {
    %c0_i32 = arith.constant 0 : i32
    %c0_i32_0 = arith.constant 0 : i32
    %c0_i32_1 = arith.constant 0 : i32
    return %c0_i32, %c0_i32_0 : i32, i32
  }
  func.func @transform_8(%arg0: i32, %arg1: i32) -> (i32, i32) {
    %c0_i32 = arith.constant 0 : i32
    %c0_i32_0 = arith.constant 0 : i32
    %c0_i32_1 = arith.constant 0 : i32
    return %c0_i32, %c0_i32_0 : i32, i32
  }
  func.func @transform_9(%arg0: i32, %arg1: i32) -> (i32, i32) {
    %c0_i32 = arith.constant 0 : i32
    %c0_i32_0 = arith.constant 0 : i32
    %c0_i32_1 = arith.constant 0 : i32
    return %c0_i32, %c0_i32_0 : i32, i32
  }
  func.func @transform_10(%arg0: i32, %arg1: i32) -> (i32, i32) {
    %c0_i32 = arith.constant 0 : i32
    %c0_i32_0 = arith.constant 0 : i32
    %c0_i32_1 = arith.constant 0 : i32
    return %c0_i32, %c0_i32_0 : i32, i32
  }
  func.func @transform_11(%arg0: i32, %arg1: i32) -> (i32, i32) {
    %c0_i32 = arith.constant 0 : i32
    %c0_i32_0 = arith.constant 0 : i32
    %c0_i32_1 = arith.constant 0 : i32
    return %c0_i32, %c0_i32_0 : i32, i32
  }
  func.func @transform_12(%arg0: i32, %arg1: i32) -> (i32, i32) {
    %c0_i32 = arith.constant 0 : i32
    %c0_i32_0 = arith.constant 0 : i32
    %c0_i32_1 = arith.constant 0 : i32
    return %c0_i32, %c0_i32_0 : i32, i32
  }
  func.func @transform_13(%arg0: i32, %arg1: i32) -> (i32, i32) {
    %c0_i32 = arith.constant 0 : i32
    %c0_i32_0 = arith.constant 0 : i32
    %c0_i32_1 = arith.constant 0 : i32
    return %c0_i32, %c0_i32_0 : i32, i32
  }
  func.func @transform_14(%arg0: i32, %arg1: i32) -> (i32, i32, i32) {
    %c0_i32 = arith.constant 0 : i32
    %c0_i32_0 = arith.constant 0 : i32
    return %arg0, %arg1, %c0_i32 : i32, i32, i32
  }
}

</mosaic_0001>

<bundles_post_ra>
// kernel: tpu_custom_call.1
= control target key start
LH: loop header
LB: loop body
LE: loop exit
PB: predicated region body
PF: predicated region fallthrough
CT: control target
= control target key end

     0   :  { %s9480_s0 = inlined_call_operand.hbm [shape: f32[2,64,256], index: 0, kind: input, shape index: {}]   ;;  %s9481_s1 = inlined_call_operand.hbm [shape: bf16[256,256], index: 1, kind: input, shape index: {}]   ;;  %s9482_s2 = inlined_call_operand.hbm [shape: bf16[2,256,128], index: 2, kind: input, shape index: {}]   ;;  %s9483_s3 = inlined_call_operand.hbm [shape: bf16[2,256,128], index: 3, kind: input, shape index: {}]   ;;  %s9484_s4 = inlined_call_operand.hbm [shape: bf16[256,256], index: 4, kind: input, shape index: {}]   ;;  %s9485_s5 = inlined_call_operand.vmem [shape: f32[1,256], index: 5, kind: input, shape index: {}]   ;;  %s9486_s6 = inlined_call_operand.vmem [shape: f32[1,256], index: 6, kind: input, shape index: {}]   ;;  %s9487_s7 = inlined_call_operand.vmem [shape: f32[1,256], index: 7, kind: input, shape index: {}]   ;;  %s9488_s8 = inlined_call_operand.vmem [shape: f32[1,256], index: 8, kind: input, shape index: {}]   ;;  %s9489_s9 = inlined_call_operand.hbm [shape: f32[1,256], index: 9, kind: input, shape index: {}]   ;;  %s9490_s10 = inlined_call_operand.hbm [shape: bf16[256,1024], index: 10, kind: input, shape index: {}]   ;;  %s9491_s11 = inlined_call_operand.vmem [shape: f32[1,1024], index: 11, kind: input, shape index: {}]   ;;  %s9492_s12 = inlined_call_operand.hbm [shape: bf16[1024,256], index: 12, kind: input, shape index: {}]   ;;  %s9493_s13 = inlined_call_operand.vmem [shape: f32[1,256], index: 13, kind: input, shape index: {}]   ;;  %s9494_s14 = inlined_call_operand.hbm [shape: f32[2,64,256], index: 14, kind: output, shape index: {}]  }
   0x1   :  { %9503 = sst [smem:[#allocation32_spill]] %s9481_s1 }
   0x2   :  { %9504 = sst [smem:[#allocation33_spill]] %s9482_s2 }
   0x3   :  { %9505 = sst [smem:[#allocation34_spill]] %s9483_s3 }
   0x4   :  { %9506 = sst [smem:[#allocation35_spill]] %s9484_s4 }
   0x5   :  { %9507 = sst [smem:[#allocation36_spill]] %s9485_s5 }
   0x6   :  { %9508 = sst [smem:[#allocation37_spill]] %s9486_s6 }
   0x7   :  { %9509 = sst [smem:[#allocation38_spill]] %s9487_s7 }
   0x8   :  { %9510 = sst [smem:[#allocation39_spill]] %s9488_s8 }
   0x9   :  { %9511 = sst [smem:[#allocation40_spill]] %s9489_s9 }
   0xa   :  { %9512 = sst [smem:[#allocation41_spill]] %s9490_s10 }
   0xb   :  { %9513 = sst [smem:[#allocation42_spill]] %s9491_s11 }
   0xc   :  { %9514 = sst [smem:[#allocation43_spill]] %s9492_s12 }
   0xd   :  { %9515 = sst [smem:[#allocation44_spill]] %s9493_s13 }
   0xe   :  { %9516 = sst [smem:[#allocation45_spill]] %s9494_s14 }
   0xf   :  { %19 = vsyncpa [#allocation9], 0 }
  0x10   :  { %21 = vsyncpa [#allocation9 + $0x1], 0 }
  0x11   :  { %22 = vsyncpa [#allocation12], 0 }
  0x12   :  { %23 = vsyncpa [#allocation15], 0 }
  0x13   :  { %24 = vsyncpa [#allocation18], 0 }
  0x14   :  { %25 = vsyncpa [#allocation21], 0 }
  0x15   :  { %26 = vsyncpa [#allocation10], 0 }
  0x16   :  { %28 = vsyncpa [#allocation10 + $0x1], 0  ;;  %s8210_s29 = smov 0   ;;  %s8212_s30 = smov 0  }
  0x17   :  { %s8214_s15 = smov 0   ;;  %s8216_s16 = smov 0  }
  0x18   :  { %s8218_s17 = smov 0   ;;  %s8220_s18 = smov 0  }
  0x19   :  { %s8222_s19 = smov 0   ;;  %s8224_s20 = smov 0  }
  0x1a   :  { %s8226_s21 = smov 0   ;;  %s8228_s22 = smov 0  }
  0x1b   :  { %s8230_s23 = smov 0  }
  0x1c LB: > { %9517 = sst [smem:[#allocation29_spill]] %s8090_s19  ;;  %s9496_s24 = sadd.s32 4294967295, %s8106_s23   ;;  %s8106_s23 = sphi %s8230_s23, %s34_s23   ;;  %s8102_s22 = sphi %s8228_s22, %s9561_s22   ;;  %s8098_s21 = sphi %s8226_s21, %s9560_s21   ;;  %s8094_s20 = sphi %s8224_s20, %s9559_s20   ;;  %s8090_s19 = sphi %s8222_s19, %s9558_s19   ;;  %s8086_s18 = sphi %s8220_s18, %s9557_s18   ;;  %s8082_s17 = sphi %s8218_s17, %s9556_s17   ;;  %s8078_s16 = sphi %s8216_s16, %s9555_s16   ;;  %s8074_s15 = sphi %s8214_s15, %s9554_s15   ;;  %s8070_s30 = sphi %s8212_s30, %s9553_s30   ;;  %s8066_s29 = sphi %s8210_s29, %s9552_s29  }
  0x1d   : > { %9518 = sst [smem:[#allocation30_spill]] %s8094_s20  ;;  %p6099_p0 = scmp.ge.s32.totalorder %s8106_s23, 1 }
  0x1e   : > { %p8269_p1 = scmp.eq.s32.totalorder %s9496_s24, 0  ;;  %p378_p2 = scmp.lt.s32.totalorder %s8106_s23, 5 }
  0x1f   : > { %s8112_s27 = smov [#allocation11]   ;;  %s8113_s24 = smov [#allocation14]  }
  0x20   : > { %p8274_p3 = pnand %p6099_p0, %p378_p2  ;;  %s390_s28 = sshll.u32 %s8112_s27, 4  ;;  %s391_s28 = int_to_ptr.vmem [resolvable:$true] %s390_s28 }
  0x21   : > { %s416_s20 = sshll.u32 %s8113_s24, 4  ;;  %s7767_s11 = scalar_lea.vmem %s391_s28, 4096  ;;  %s417_s20 = int_to_ptr.vmem [resolvable:$true] %s416_s20 }
  0x22   : > { %s9520_s26 = scalar_select %p8274_p3, 1, 0 }
  0x23   : > { %p7047_p4 = pneg %p8274_p3  ;;  %p7768_p7 = scmp.ne.s32.totalorder %s391_s28, %s7767_s11 }
  0x24   : > { %9521 = sst [smem:[#allocation31_spill]] %s9520_s26  ;;  %p7775_p10 = scmp.lt.s32.totalorder %s391_s28, %s391_s28 }
  0x25   : > { %p8282_p5 = pnand %p7047_p4, %p8269_p1  ;;  %p7776_p11 = scmp.lt.s32.totalorder %s7767_s11, %s7767_s11 }
  0x27   : > { %p8288_p6 = pneg %p8282_p5  ;;  %p7777_p12 = por %p7776_p11, %p7775_p10 }
  0x29   : > { %p7770_p8 = pnand %p7768_p7, %p8288_p6 }
  0x2b   : > { %p7771_p9 = pneg %p7770_p8 }
  0x2d   : > { %p7778_p13 = pnand %p7777_p12, %p7771_p9 }
  0x2f   : > { %7781 = shalt.err (!%p7778_p13)
}
  0x30   : > { %s9499_s27 = smov 128   ;;  %s9501_s24 = smov 8  }
  0x31   : > { %s9524_s1 = sld [smem:[#allocation32_spill]]  ;;  %s8116_s7 = smov [#allocation17]  }
  0x32   : > { %s455_s6 = sshll.u32 %s8116_s7, 4  ;;  %s7793_s19 = scalar_lea.vmem %s417_s20, 4096  ;;  %s456_s6 = int_to_ptr.vmem [resolvable:$true] %s455_s6 }
  0x33   : > { %p7794_p0 = scmp.ne.s32.totalorder %s417_s20, %s7793_s19  ;;  %p7801_p7 = scmp.lt.s32.totalorder %s417_s20, %s417_s20 }
  0x34   : > { %p7802_p8 = scmp.lt.s32.totalorder %s7793_s19, %s7793_s19 }
  0x35   : > { %p7796_p2 = pnand %p7794_p0, %p8288_p6 }
  0x36   : > { %p7803_p9 = por %p7802_p8, %p7801_p7 }
  0x37   : > { %7050 = dma.hbm_to_vmem [thread:$0]  (!%p8282_p5), %s9524_s1, 4096, %s391_s28, [#allocation12], %s9499_s27, %s9499_s27, %s9501_s24  }
  0x38   : > { %p7797_p4 = pneg %p7796_p2 }
  0x3a   : > { %p7804_p10 = pnand %p7803_p9, %p7797_p4 }
  0x3c   : > { %7807 = shalt.err (!%p7804_p10)
}
  0x3d   : > { %s8117_s11 = smov 64   ;;  %s8118_s26 = smov 4  }
  0x3e   : > { %s9525_s3 = sld [smem:[#allocation34_spill]]  ;;  %s7819_s8 = scalar_lea.vmem %s456_s6, 32 }
  0x3f   : > { %p7820_p11 = scmp.ne.s32.totalorder %s456_s6, %s7819_s8  ;;  %p7827_p0 = scmp.lt.s32.totalorder %s456_s6, %s456_s6 }
  0x40   : > { %p7828_p2 = scmp.lt.s32.totalorder %s7819_s8, %s7819_s8 }
  0x41   : > { %p7822_p12 = pnand %p7820_p11, %p8288_p6 }
  0x42   : > { %p7829_p4 = por %p7828_p2, %p7827_p0 }
  0x43   : > { %p7823_p13 = pneg %p7822_p12 }
  0x44   : > { %7056 = dma.hbm_to_vmem [thread:$0]  (!%p8282_p5), %s9525_s3, 4096, %s417_s20, [#allocation15], %s8117_s11, %s8117_s11, %s8118_s26  }
  0x45   : > { %p7830_p7 = pnand %p7829_p4, %p7823_p13 }
  0x47   : > { %7833 = shalt.err (!%p7830_p7)
}
  0x48   : > { %s9526_s9 = sld [smem:[#allocation40_spill]]  ;;  %s8119_s5 = smov [#allocation13]  }
  0x49   : > { %s403_s20 = sshll.u32 %s8119_s5, 4  ;;  %s8120_s7 = smov [#allocation16]   ;;  %s404_s20 = int_to_ptr.vmem [resolvable:$true] %s403_s20 }
  0x4a   : > { %s429_s27 = sshll.u32 %s8120_s7, 4  ;;  %s7845_s24 = scalar_lea.vmem %s404_s20, 4096  ;;  %s430_s27 = int_to_ptr.vmem [resolvable:$true] %s429_s27 }
  0x4b   : > { %p7846_p8 = scmp.ne.s32.totalorder %s404_s20, %s7845_s24  ;;  %p7853_p11 = scmp.lt.s32.totalorder %s404_s20, %s404_s20 }
  0x4c   : > { %p7854_p12 = scmp.lt.s32.totalorder %s7845_s24, %s7845_s24 }
  0x4d   : > { %p7848_p9 = pnand %p7846_p8, %p8288_p6 }
  0x4e   : > { %7062 = dma.hbm_to_vmem [thread:$0]  (!%p8282_p5), %s9526_s9, 32, %s456_s6, [#allocation18]  }
  0x4f   : > { %p7849_p10 = pneg %p7848_p9  ;;  %p7855_p13 = por %p7854_p12, %p7853_p11 }
  0x51   : > { %p7856_p0 = pnand %p7855_p13, %p7849_p10 }
  0x53   : > { %7859 = shalt.err (!%p7856_p0)
}
  0x54   : > { %s9527_s2 = sld [smem:[#allocation33_spill]]  ;;  %s7871_s19 = scalar_lea.vmem %s430_s27, 4096 }
  0x55   : > { %p7872_p2 = scmp.ne.s32.totalorder %s430_s27, %s7871_s19  ;;  %p7879_p8 = scmp.lt.s32.totalorder %s430_s27, %s430_s27 }
  0x56   : > { %p7880_p9 = scmp.lt.s32.totalorder %s7871_s19, %s7871_s19 }
  0x57   : > { %p7874_p4 = pnand %p7872_p2, %p8288_p6 }
  0x58   : > { %p7881_p10 = por %p7880_p9, %p7879_p8 }
  0x59   : > { %p7875_p7 = pneg %p7874_p4 }
  0x5a   : > { %7053 = dma.hbm_to_vmem [thread:$0]  (!%p8282_p5), %s9527_s2, 4096, %s404_s20, [#allocation12], %s8117_s11, %s8117_s11, %s8118_s26  }
  0x5b   : > { %p7882_p11 = pnand %p7881_p10, %p7875_p7 }
  0x5d   : > { %7885 = shalt.err (!%p7882_p11)
}
  0x5e   : > { %s9528_s24 = smov 8   ;;  %s9529_s28 = smov 128  }
  0x5f   : > { %s9530_s4 = sld [smem:[#allocation35_spill]]  ;;  %s8121_s26 = smov [#allocation19]  }
  0x60   : > { %s465_s11 = sshll.u32 %s8121_s26, 4  ;;  %s466_s11 = int_to_ptr.vmem [resolvable:$true] %s465_s11 }
  0x61   : > { %s7897_s20 = scalar_lea.vmem %s466_s11, 16384  ;;  %p7905_p2 = scmp.lt.s32.totalorder %s466_s11, %s466_s11 }
  0x62   : > { %p7898_p12 = scmp.ne.s32.totalorder %s466_s11, %s7897_s20  ;;  %p7906_p4 = scmp.lt.s32.totalorder %s7897_s20, %s7897_s20 }
  0x64   : > { %p7900_p13 = pnand %p7898_p12, %p8288_p6  ;;  %p7907_p7 = por %p7906_p4, %p7905_p2 }
  0x65   : > { %7059 = dma.hbm_to_vmem [thread:$0]  (!%p8282_p5), %s9530_s4, 4096, %s430_s27, [#allocation15], %s9529_s28, %s9529_s28, %s9528_s24  }
  0x66   : > { %p7901_p0 = pneg %p7900_p13 }
  0x68   : > { %p7908_p8 = pnand %p7907_p7, %p7901_p0 }
  0x6a   : > { %7911 = shalt.err (!%p7908_p8)
}
  0x6b   : > { %s8122_s6 = smov 512   ;;  %s8123_s8 = smov 32  }
  0x6c   : > { %s9531_s10 = sld [smem:[#allocation41_spill]]  ;;  %s8124_s5 = smov [#allocation20]  }
  0x6d   : > { %s481_s7 = sshll.u32 %s8124_s5, 4  ;;  %s482_s7 = int_to_ptr.vmem [resolvable:$true] %s481_s7 }
  0x6e   : > { %s7923_s26 = scalar_lea.vmem %s482_s7, 16384  ;;  %p7931_p12 = scmp.lt.s32.totalorder %s482_s7, %s482_s7 }
  0x6f   : > { %p7924_p9 = scmp.ne.s32.totalorder %s482_s7, %s7923_s26  ;;  %p7932_p13 = scmp.lt.s32.totalorder %s7923_s26, %s7923_s26 }
  0x71   : > { %p7926_p10 = pnand %p7924_p9, %p8288_p6  ;;  %p7933_p0 = por %p7932_p13, %p7931_p12 }
  0x72   : > { %7065 = dma.hbm_to_vmem [thread:$0]  (!%p8282_p5), %s9531_s10, 16384, %s466_s11, [#allocation18], %s8122_s6, %s8122_s6, %s8123_s8  }
  0x73   : > { %p7927_p11 = pneg %p7926_p10 }
  0x75   : > { %p7934_p2 = pnand %p7933_p0, %p7927_p11 }
  0x77   : > { %7937 = shalt.err (!%p7934_p2)
}
  0x78   : > { %s9532_s12 = sld [smem:[#allocation43_spill]]  ;;  %s6098_s13 = sadd.s32 4294967294, %s8106_s23  }
  0x79   : > { %s43_s14 = sadd.s32 1, %s8098_s21  ;;  %s46_s6 = sadd.s32 1, %s8102_s22 }
  0x7a   : > { %p44_p6 = scmp.ge.s32.totalorder %s43_s14, 2  ;;  %s53_s8 = sadd.s32 1, %s8086_s18 }
  0x7b   : > { %p60_p4 = scmp.ne.s32.totalorder %s8086_s18, %s8082_s17  ;;  %p61_p7 = scmp.eq.s32.totalorder %s8106_s23, 0 }
  0x7c   : > { %s9563_s14 = smov (%p44_p6, %s43_s14), 0  ;;  %s9565_s6 = smov (!%p44_p6, %s46_s6), %s8102_s22 }
  0x7d   : > { %p8366_p8 = por %p61_p7, %p60_p4  ;;  %p48_p9 = scmp.ge.s32.totalorder %s9565_s6, 2 }
  0x7e   : > { %7068 = dma.hbm_to_vmem [thread:$0]  (!%p8282_p5), %s9532_s12, 16384, %s482_s7, [#allocation21], %s9529_s28, %s9529_s28, %s9528_s24  }
  0x7f   : > { %p66_p5 = scmp.ne.s32.totalorder %s8082_s17, %s8078_s16  ;;  %s350_s28 = ssub.s32 %s8098_s21, %s9563_s14 }
  0x80   : > { %s354_s27 = sadd.s32 1, %s8074_s15  ;;  %s9567_s6 = smov (%p48_p9, %s9565_s6), 0 }
  0x81   : > { %p8376_p10 = por %p8269_p1, %p66_p5  ;;  %p364_p11 = scmp.ne.s32.totalorder %s8074_s15, %s8070_s30 }
  0x82   : > { %s9535_s5 = sadd.s32 4294967295, %s8106_s23   ;;  %s50_s7 = ssub.s32 %s8102_s22, %s9567_s6 }
  0x83   : > { %p365_p12 = scmp.eq.s32.totalorder %s9535_s5, 3  ;;  %p370_p13 = scmp.ne.s32.totalorder %s8070_s30, %s8066_s29 }
  0x84   : > { %p51_p0 = scmp.eq.s32.totalorder %s50_s7, 0  ;;  %s351_s16 = sor.u32 %s350_s28, %s50_s7 }
  0x85   : > { %p352_p2 = scmp.eq.s32.totalorder %s351_s16, 0  ;;  %p8391_p6 = por %p365_p12, %p364_p11 }
  0x86   : > { %s8396_s20 = scalar_select %p51_p0, %s8086_s18, %s53_s8  }
  0x87   : > { %s8399_s11 = scalar_select %p352_p2, %s8074_s15, %s354_s27  }
  0x88   : > { %p371_p4 = scmp.eq.s32.totalorder %s6098_s13, 3  ;;  %p7084_p7 = scmp.lt.s32.totalorder %s8106_s23, 4 }
  0x89   : > { %s498_s1 = sand.u32 1, %s8086_s18   ;;  %s6591_s2 = sshll.u32 %s8102_s22, 11 }
  0x8a   : > { %p8404_p5 = por %p371_p4, %p370_p13  ;;  %s6108_s3 = sshll.u32 %s498_s1, 7 }
  0x8b   : > { %s508_s7 = scalar_lea.hbm %s9480_s0, %s6591_s2  ;;  %p8413_p9 = pnand %p7084_p7, %p8366_p8 }
  0x8c   : > { %s502_s8 = scalar_lea.vmem [#allocation8], %s6108_s3  ;;  %s499_s27 = scalar_lea.sflag [#allocation9], %s498_s1 }
  0x8d   : > { %s509_s13 = sshll.u32 %s502_s8, 4  ;;  %p7940_p11 = pneg %p8413_p9  ;;  %s510_s13 = int_to_ptr.vmem [resolvable:$true] %s509_s13 }
  0x8e   : > { %s7951_s9 = scalar_lea.vmem %s510_s13, 2048  ;;  %s8125_s10 = smov [#allocation8]  }
  0x8f   : > { %p7952_p12 = scmp.ne.s32.totalorder %s510_s13, %s7951_s9  ;;  %s7956_s12 = sshll.u32 %s8125_s10, 4  ;;  %s7957_s12 = int_to_ptr.vmem [resolvable:$false] %s7956_s12 }
  0x90   : > { %s7958_s2 = scalar_lea.vmem %s7957_s12, 4096  ;;  %p7959_p2 = scmp.lt.s32.totalorder %s510_s13, %s7957_s12 }
  0x91   : > { %p7954_p13 = pnand %p7952_p12, %p7940_p11  ;;  %p7960_p8 = scmp.lt.s32.totalorder %s7958_s2, %s7951_s9 }
  0x93   : > { %p7955_p0 = pneg %p7954_p13  ;;  %p7961_p4 = por %p7960_p8, %p7959_p2 }
  0x95   : > { %p7962_p7 = pnand %p7961_p4, %p7955_p0 }
  0x97   : > { %7965 = shalt.err (!%p7962_p7)
}
  0x98   : > { %s8126_s4 = smov 256   ;;  %s8127_s3 = smov 16  }
  0x99   : > { %7072 = dma.hbm_to_vmem [thread:$0]  (!%p8413_p9), %s508_s7, 2048, %s510_s13, %s499_s27, %s8126_s4, %s8126_s4, %s8127_s3  }
  0x9a   : > { %521 = sbr.rel (%p8274_p3) target bundleno = 3608 (0xe18), region = 76  ;;  %s523_s24 = sand.u32 (!%p8274_p3), 1, %s8082_s17  }
  0x9b   : > { %s6112_s28 = sshll.u32 (!%p8274_p3), %s523_s24, 7  ;;  %s524_s10 = scalar_lea.sflag (!%p8274_p3), [#allocation9], %s523_s24 }
  0x9c   : > { %s8424_s8 = scalar_lea.vmem (!%p8274_p3), [#allocation8], %s6112_s28 }
  0x9f   : > { %8041 = dma.done.wait (%p8376_p10), %s524_s10, 2048  }
  0xa0   : > { %8043 = vsyncadd (%p8376_p10), %s524_s10, 4294965248 }
  0xa1   : > { %8045 = dma.done.wait (%p8269_p1), [#allocation12], 8192  }
  0xa2   : > { %8047 = vsyncadd (%p8269_p1), [#allocation12], 4294959104 }
  0xa3   : > { %8049 = dma.done.wait (%p8269_p1), [#allocation15], 8192  }
  0xa4   : > { %8051 = vsyncadd (%p8269_p1), [#allocation15], 4294959104 }
  0xa5   : > { %8053 = dma.done.wait (%p8269_p1), [#allocation18], 16416  }
  0xa6   : > { %8055 = vsyncadd (%p8269_p1), [#allocation18], 4294950880 }
  0xa7   : > { %8057 = dma.done.wait (%p8269_p1), [#allocation21], 16384  }
  0xa8   : > { %8059 = vsyncadd (%p8269_p1), [#allocation21], 4294950912  ;;  %s9540_s9 = sld [smem:[#allocation29_spill]]  ;;  %s597_s12 = sand.u32 1, %s8070_s30  }
  0xa9   : > { %s6120_s7 = sshll.u32 %s597_s12, 6 }
  0xaa   : > { %s8452_s16 = scalar_lea.vmem [#allocation22], %s6120_s7 }
  0xae   : > { %s8448_s19 = sshll.u32 %s9540_s9, 5  ;;  %p6122_p3 = scmp.ne.s32.totalorder %s9540_s9, 0 }
  0xaf   : > { %s9541_s27 = sld [smem:[#allocation37_spill]] (!%p6122_p3) }
  0xb0   : > { %606 = sbr.rel (%p6122_p3) target bundleno = 758 (0x2f6), region = 112  ;;  %s9542_s3 = sld [smem:[#allocation38_spill]] (!%p6122_p3) }
  0xb5   : > { %v609_v0 = vld [vmem:[%s8424_s8] sm:$0xff]  ;;  %v610_v1 = vld [vmem:[%s8424_s8 + $0x8] sm:$0xff]  ;;  %v611_v5 = vld [vmem:[%s8424_s8 + $0x10] sm:$0xff] }
  0xb6   : > { %v613_v2 = vld [vmem:[%s8424_s8 + $0x20] sm:$0xff]  ;;  %v625_v3 = vadd.f32 %v610_v1, %v609_v0  ;;  %v614_v4 = vld [vmem:[%s8424_s8 + $0x28] sm:$0xff]  ;;  %v612_v6 = vld [vmem:[%s8424_s8 + $0x18] sm:$0xff] }
  0xb7   : > { %v631_v7 = vadd.f32 %v614_v4, %v613_v2  ;;  %v615_v8 = vld [vmem:[%s8424_s8 + $0x30] sm:$0xff]  ;;  %v616_v9 = vld [vmem:[%s8424_s8 + $0x38] sm:$0xff]  ;;  %v628_v10 = vadd.f32 %v612_v6, %v611_v5  ;;  %v617_v12 = vld [vmem:[%s8424_s8 + $0x40] sm:$0xff] }
  0xb8   : > { %626 = vadd.xlane.f32.xlu0 %v625_v3  ;;  %v634_v11 = vadd.f32 %v616_v9, %v615_v8  ;;  %v618_v13 = vld [vmem:[%s8424_s8 + $0x48] sm:$0xff]  ;;  %v619_v14 = vld [vmem:[%s8424_s8 + $0x50] sm:$0xff]  ;;  %v620_v15 = vld [vmem:[%s8424_s8 + $0x58] sm:$0xff] }
  0xb9   : > { %632 = vadd.xlane.f32.xlu1 %v631_v7  ;;  %v8468_v16 = vld [vmem:[%s8424_s8 + $0x60] sm:$0xff]  ;;  %v8471_v17 = vld [vmem:[%s8424_s8 + $0x68] sm:$0xff]  ;;  %v637_v18 = vadd.f32 %v618_v13, %v617_v12  ;;  %v8474_v19 = vld [vmem:[%s8424_s8 + $0x70] sm:$0xff]  ;;  %v640_v21 = vadd.f32 %v620_v15, %v619_v14 }
  0xba   : > { %v8477_v20 = vld [vmem:[%s8424_s8 + $0x78] sm:$0xff]  ;;  %v643_v22 = vadd.f32 %v8471_v17, %v8468_v16 }
  0xbb   : > { %v646_v23 = vadd.f32 %v8477_v20, %v8474_v19  ;;  %v7210_v24 = vld [vmem:[#allocation13 + $0x78] sm:$0xff]  }
  0xbc   : > { %629 = vadd.xlane.f32.xlu0 %v628_v10  ;;  %v7211_v25 = vld [vmem:[#allocation14 + $0x78] sm:$0xff]   ;;  %6727 = vmatprep.subr.bf16.mxu0 %v7210_v24  ;;  %v7218_v24 = vld [vmem:[#allocation13 + $0x68] sm:$0xff]  }
  0xbd   : > { %635 = vadd.xlane.f32.xlu1 %v634_v11  ;;  %v7212_v26 = vld [vmem:[#allocation13 + $0x38] sm:$0xff]   ;;  %6767 = vmatprep.subr.bf16.mxu1 %v7211_v25  ;;  %v7219_v25 = vld [vmem:[#allocation14 + $0x68] sm:$0xff]  }
  0xbe   : > { %v7213_v27 = vld [vmem:[#allocation14 + $0x38] sm:$0xff]   ;;  %6728 = vmatpush3.bf16.msra.mxu0 %v7212_v26  ;;  %v7220_v26 = vld [vmem:[#allocation13 + $0x28] sm:$0xff]  }
  0xbf   : > { %6768 = vmatpush3.bf16.msra.mxu1 %v7213_v27  ;;  %v7221_v27 = vld [vmem:[#allocation14 + $0x28] sm:$0xff]  }
  0xc0   : > { %638 = vadd.xlane.f32.xlu0 %v637_v18 }
  0xc1   : > { %641 = vadd.xlane.f32.xlu1 %v640_v21  ;;  %v7216_v21 = vld [vmem:[#allocation13 + $0x30] sm:$0xff]  }
  0xc4   : > { %644 = vadd.xlane.f32.xlu0 %v643_v22  ;;  %v7217_v22 = vld [vmem:[#allocation14 + $0x30] sm:$0xff]  }
  0xc5   : > { %647 = vadd.xlane.f32.xlu1 %v646_v23 }
 0x141   : > { %v627_v28 = vpop.xlane.xlu0 %626 }
 0x142   : > { %v650_v29 = vmul.f32 0.00390625, %v627_v28  ;;  %v633_v30 = vpop.xlane.xlu1 %632  ;;  %v7222_v28 = vld [vmem:[#allocation13 + $0x60] sm:$0xff]  }
 0x143   : > { %v652_v31 = vmul.f32 0.00390625, %v633_v30  ;;  %v7224_v30 = vld [vmem:[#allocation13 + $0x20] sm:$0xff]  }
 0x144   : > { %v8483_v32 = vsub.f32 %v609_v0, %v650_v29  ;;  %v8485_v33 = vsub.f32 %v610_v1, %v650_v29  ;;  %v7223_v29 = vld [vmem:[#allocation14 + $0x60] sm:$0xff]  }
 0x145   : > { %v8487_v34 = vsub.f32 %v613_v2, %v652_v31  ;;  %v8489_v35 = vsub.f32 %v614_v4, %v652_v31  ;;  %v630_v36 = vpop.xlane.xlu0 %629  ;;  %v7225_v31 = vld [vmem:[#allocation14 + $0x20] sm:$0xff]  }
 0x146   : > { %v651_v37 = vmul.f32 0.00390625, %v630_v36  ;;  %v636_v38 = vpop.xlane.xlu1 %635  ;;  %v674_v39 = vmul.f32 %v8483_v32, %v8483_v32  ;;  %v675_v41 = vmul.f32 %v8485_v33, %v8485_v33  ;;  %v7226_v36 = vld [vmem:[#allocation13 + $0x58] sm:$0xff]  }
 0x147   : > { %v653_v40 = vmul.f32 0.00390625, %v636_v38  ;;  %v678_v44 = vmul.f32 %v8487_v34, %v8487_v34  ;;  %v679_v45 = vmul.f32 %v8489_v35, %v8489_v35  ;;  %v7228_v38 = vld [vmem:[#allocation13 + $0x18] sm:$0xff]  }
 0x148   : > { %v8495_v42 = vsub.f32 %v611_v5, %v651_v37  ;;  %v8497_v43 = vsub.f32 %v612_v6, %v651_v37  ;;  %v690_v49 = vadd.f32 %v675_v41, %v674_v39  ;;  %v7227_v37 = vld [vmem:[#allocation14 + $0x58] sm:$0xff]   ;;  %v7231_v41 = vld [vmem:[#allocation14 + $0x50] sm:$0xff]  }
 0x149   : > { %v8503_v46 = vsub.f32 %v615_v8, %v653_v40  ;;  %v8505_v47 = vsub.f32 %v616_v9, %v653_v40  ;;  %v639_v48 = vpop.xlane.xlu0 %638  ;;  %v696_v53 = vadd.f32 %v679_v45, %v678_v44  ;;  %v7229_v39 = vld [vmem:[#allocation14 + $0x18] sm:$0xff]   ;;  %v7230_v40 = vld [vmem:[#allocation13 + $0x50] sm:$0xff]  }
 0x14a   : > { %v654_v50 = vmul.f32 0.00390625, %v639_v48  ;;  %v642_v51 = vpop.xlane.xlu1 %641  ;;  %691 = vadd.xlane.f32.xlu0 %v690_v49  ;;  %v676_v54 = vmul.f32 %v8495_v42, %v8495_v42  ;;  %v677_v57 = vmul.f32 %v8497_v43, %v8497_v43  ;;  %v7232_v44 = vld [vmem:[#allocation13 + $0x10] sm:$0xff]   ;;  %v7234_v48 = vld [vmem:[#allocation13 + $0x48] sm:$0xff]  }
 0x14b   : > { %v655_v52 = vmul.f32 0.00390625, %v642_v51  ;;  %v680_v58 = vmul.f32 %v8503_v46, %v8503_v46  ;;  %v681_v62 = vmul.f32 %v8505_v47, %v8505_v47  ;;  %v7233_v45 = vld [vmem:[#allocation14 + $0x10] sm:$0xff]   ;;  %v7235_v49 = vld [vmem:[#allocation14 + $0x48] sm:$0xff]  }
 0x14c   : > { %v8509_v55 = vsub.f32 %v617_v12, %v654_v50  ;;  %v8511_v56 = vsub.f32 %v618_v13, %v654_v50  ;;  %v693_v0 = vadd.f32 %v677_v57, %v676_v54  ;;  %v7236_v50 = vld [vmem:[#allocation13 + $0x8] sm:$0xff]   ;;  %v7240_v54 = vld [vmem:[#allocation13] sm:$0xff]  }
 0x14d   : > { %v8517_v59 = vsub.f32 %v619_v14, %v655_v52  ;;  %v8519_v60 = vsub.f32 %v620_v15, %v655_v52  ;;  %v645_v61 = vpop.xlane.xlu0 %644  ;;  %v699_v3 = vadd.f32 %v681_v62, %v680_v58  ;;  %v7237_v51 = vld [vmem:[#allocation14 + $0x8] sm:$0xff]   ;;  %v7238_v52 = vld [vmem:[#allocation13 + $0x40] sm:$0xff]   ;;  %v7242_v58 = vld [vmem:[#allocation13 + $0xf8] sm:$0xff]  }
 0x14e   : > { %v656_v63 = vmul.f32 0.00390625, %v645_v61  ;;  %v648_v1 = vpop.xlane.xlu1 %647  ;;  %697 = vadd.xlane.f32.xlu0 %v696_v53  ;;  %694 = vadd.xlane.f32.xlu1 %v693_v0  ;;  %v682_v6 = vmul.f32 %v8509_v55, %v8509_v55  ;;  %v683_v7 = vmul.f32 %v8511_v56, %v8511_v56  ;;  %v7239_v53 = vld [vmem:[#allocation14 + $0x40] sm:$0xff]   ;;  %v7243_v61 = vld [vmem:[#allocation14 + $0xf8] sm:$0xff]  }
 0x14f   : > { %v657_v2 = vmul.f32 0.00390625, %v648_v1  ;;  %v684_v10 = vmul.f32 %v8517_v59, %v8517_v59  ;;  %v685_v11 = vmul.f32 %v8519_v60, %v8519_v60  ;;  %v7241_v57 = vld [vmem:[#allocation14] sm:$0xff]  }
 0x150   : > { %v8524_v4 = vsub.f32 %v8468_v16, %v656_v63  ;;  %v8527_v5 = vsub.f32 %v8471_v17, %v656_v63  ;;  %v702_v12 = vadd.f32 %v683_v7, %v682_v6  ;;  %v723_v63 = vlaneseq }
 0x151   : > { %v8534_v8 = vsub.f32 %v8474_v19, %v657_v2  ;;  %v8537_v9 = vsub.f32 %v8477_v20, %v657_v2  ;;  %v705_v15 = vadd.f32 %v685_v11, %v684_v10  ;;  %v7214_v19 = vld [vmem:[#allocation13 + $0x70] sm:$0xff]  }
 0x152   : > { %v686_v13 = vmul.f32 %v8524_v4, %v8524_v4  ;;  %v687_v14 = vmul.f32 %v8527_v5, %v8527_v5  ;;  %700 = vadd.xlane.f32.xlu1 %v699_v3  ;;  %703 = vadd.xlane.f32.xlu0 %v702_v12  ;;  %v7215_v20 = vld [vmem:[#allocation14 + $0x70] sm:$0xff]   ;;  %v724_v3 = vshrl.u32 %v723_v63, 7 }
 0x153   : > { %v688_v16 = vmul.f32 %v8534_v8, %v8534_v8  ;;  %v689_v17 = vmul.f32 %v8537_v9, %v8537_v9  ;;  %6729 = vmatprep.subr.bf16.mxu0 %v7214_v19  ;;  %6769 = vmatprep.subr.bf16.mxu1 %v7215_v20 }
 0x154   : > { %v708_v18 = vadd.f32 %v687_v14, %v686_v13  ;;  %6730 = vmatpush3.bf16.msra.mxu0 %v7216_v21  ;;  %6770 = vmatpush3.bf16.msra.mxu1 %v7217_v22  ;;  %v725_v13 = vsub.s32 0, %v724_v3  ;;  %v729_v14 = vsub.s32 1, %v724_v3 }
 0x155   : > { %v711_v23 = vadd.f32 %v689_v17, %v688_v16  ;;  %6731 = vmatprep.subr.bf16.mxu0 %v7218_v24  ;;  %6771 = vmatprep.subr.bf16.mxu1 %v7219_v25  ;;  %v607_v17 = vld [vmem:[%s9541_s27] sm:$0x3] }
 0x156   : > { %706 = vadd.xlane.f32.xlu1 %v705_v15  ;;  %709 = vadd.xlane.f32.xlu0 %v708_v18  ;;  %v8554_v22 = vrot.slane %v607_v17, %v725_v13 }
 0x158   : > { %6732 = vmatpush3.bf16.msra.mxu0 %v7220_v26  ;;  %6772 = vmatpush3.bf16.msra.mxu1 %v7221_v27  ;;  %v608_v26 = vld [vmem:[%s9542_s3] sm:$0x3]  ;;  %v741_v3 = vmul.f32 %v8554_v22, %v8509_v55  ;;  %v7246_v55 = vld [vmem:[#allocation13 + $0xf0] sm:$0xff]  }
 0x159   : > { %6733 = vmatprep.subr.bf16.mxu0 %v7222_v28  ;;  %6773 = vmatprep.subr.bf16.mxu1 %v7223_v29 }
 0x15a   : > { %712 = vadd.xlane.f32.xlu1 %v711_v23  ;;  %v8556_v23 = vrot.slane %v607_v17, %v729_v14  ;;  %v7247_v17 = vld [vmem:[#allocation14 + $0xf0] sm:$0xff]  }
 0x15c   : > { %6734 = vmatpush3.bf16.msra.mxu0 %v7224_v30  ;;  %6774 = vmatpush3.bf16.msra.mxu1 %v7225_v31  ;;  %v733_v31 = vmul.f32 %v8554_v22, %v8483_v32  ;;  %v738_v32 = vmul.f32 %v8556_v23, %v8489_v35 }
 0x15d   : > { %6735 = vmatprep.subr.bf16.mxu0 %v7226_v36  ;;  %6775 = vmatprep.subr.bf16.mxu1 %v7227_v37  ;;  %v734_v36 = vmul.f32 %v8556_v23, %v8485_v33  ;;  %v8565_v37 = vrot.slane %v608_v26, %v725_v13  ;;  %v7244_v13 = vld [vmem:[#allocation13 + $0xb8] sm:$0xff]  }
 0x160   : > { %6736 = vmatpush3.bf16.msra.mxu0 %v7228_v38  ;;  %6776 = vmatpush3.bf16.msra.mxu1 %v7229_v39  ;;  %v8567_v38 = vrot.slane %v608_v26, %v729_v14  ;;  %v7245_v14 = vld [vmem:[#allocation14 + $0xb8] sm:$0xff]  }
 0x161   : > { %6737 = vmatprep.subr.bf16.mxu0 %v7230_v40  ;;  %6777 = vmatprep.subr.bf16.mxu1 %v7231_v41 }
 0x164   : > { %6738 = vmatpush3.bf16.msra.mxu0 %v7232_v44  ;;  %6778 = vmatpush3.bf16.msra.mxu1 %v7233_v45 }
 0x165   : > { %6739 = vmatprep.subr.bf16.mxu0 %v7234_v48  ;;  %6779 = vmatprep.subr.bf16.mxu1 %v7235_v49  ;;  %v737_v49 = vmul.f32 %v8554_v22, %v8487_v34 }
 0x168   : > { %6740 = vmatpush3.bf16.msra.mxu0 %v7236_v50  ;;  %6780 = vmatpush3.bf16.msra.mxu1 %v7237_v51 }
 0x169   : > { %6741 = vmatprep.subr.bf16.mxu0 %v7238_v52  ;;  %6781 = vmatprep.subr.bf16.mxu1 %v7239_v53  ;;  %v735_v52 = vmul.f32 %v8554_v22, %v8495_v42  ;;  %v736_v53 = vmul.f32 %v8556_v23, %v8497_v43  ;;  %v740_v42 = vmul.f32 %v8556_v23, %v8505_v47 }
 0x16c   : > { %6742 = vmatpush3.bf16.msra.mxu0 %v7240_v54  ;;  %6782 = vmatpush3.bf16.msra.mxu1 %v7241_v57 }
 0x16d   : > { %6807 = vmatprep.subr.bf16.mxu0 %v7242_v58  ;;  %6847 = vmatprep.subr.bf16.mxu1 %v7243_v61 }
 0x1d3   : > { %v692_v62 = vpop.xlane.xlu0 %691 }
 0x1d4   : > { %v714_v0 = vmul.f32 0.00390625, %v692_v62 }
 0x1d6   : > { %v749_v1 = vadd.f32 1e-05, %v714_v0  ;;  %v739_v0 = vmul.f32 %v8554_v22, %v8503_v46 }
 0x1d7   : > { %v698_v2 = vpop.xlane.xlu0 %697  ;;  %v695_v6 = vpop.xlane.xlu1 %694 }
 0x1d8   : > { %7274 = vrsqrt.f32 %v749_v1  ;;  %v716_v7 = vmul.f32 0.00390625, %v698_v2  ;;  %v715_v10 = vmul.f32 0.00390625, %v695_v6  ;;  %v742_v6 = vmul.f32 %v8556_v23, %v8511_v56 }
 0x1da   : > { %v751_v11 = vadd.f32 1e-05, %v716_v7  ;;  %v750_v12 = vadd.f32 1e-05, %v715_v10  ;;  %v743_v7 = vmul.f32 %v8554_v22, %v8517_v59  ;;  %v745_v59 = vmul.f32 %v8554_v22, %v8524_v4 }
 0x1db   : > { %v701_v15 = vpop.xlane.xlu1 %700  ;;  %v704_v16 = vpop.xlane.xlu0 %703 }
 0x1dc   : > { %7276 = vrsqrt.f32 %v751_v11  ;;  %v717_v18 = vmul.f32 0.00390625, %v701_v15  ;;  %v718_v19 = vmul.f32 0.00390625, %v704_v16  ;;  %v744_v16 = vmul.f32 %v8556_v23, %v8519_v60 }
 0x1dd   : > { %7278 = vrsqrt.f32 %v750_v12 }
 0x1de   : > { %v752_v20 = vadd.f32 1e-05, %v717_v18  ;;  %v753_v21 = vadd.f32 1e-05, %v718_v19 }
 0x1df   : > { %v707_v24 = vpop.xlane.xlu1 %706  ;;  %v710_v25 = vpop.xlane.xlu0 %709 }
 0x1e0   : > { %7280 = vrsqrt.f32 %v752_v20  ;;  %v719_v27 = vmul.f32 0.00390625, %v707_v24  ;;  %v720_v28 = vmul.f32 0.00390625, %v710_v25  ;;  %v746_v20 = vmul.f32 %v8556_v23, %v8527_v5 }
 0x1e1   : > { %7282 = vrsqrt.f32 %v753_v21 }
 0x1e2   : > { %v754_v29 = vadd.f32 1e-05, %v719_v27  ;;  %v755_v30 = vadd.f32 1e-05, %v720_v28  ;;  %v7248_v27 = vld [vmem:[#allocation13 + $0xb0] sm:$0xff]  }
 0x1e3   : > { %v713_v39 = vpop.xlane.xlu1 %712  ;;  %v7249_v28 = vld [vmem:[#allocation14 + $0xb0] sm:$0xff]  }
 0x1e4   : > { %7284 = vrsqrt.f32 %v754_v29  ;;  %v721_v41 = vmul.f32 0.00390625, %v713_v39 }
 0x1e5   : > { %v7275_v40 = vpop.eup %7274  ;;  %7286 = vrsqrt.f32 %v755_v30 }
 0x1e6   : > { %v766_v44 = vmul.f32 %v7275_v40, %v734_v36  ;;  %v765_v45 = vmul.f32 %v7275_v40, %v733_v31  ;;  %v756_v48 = vadd.f32 1e-05, %v721_v41  ;;  %v7250_v31 = vld [vmem:[#allocation13 + $0xe8] sm:$0xff]  }
 0x1e7   : > { %v7251_v36 = vld [vmem:[#allocation14 + $0xe8] sm:$0xff]  }
 0x1e8   : > { %v793_v33 = vadd.f32 %v8567_v38, %v766_v44  ;;  %v792_v50 = vadd.f32 %v8565_v37, %v765_v45  ;;  %7288 = vrsqrt.f32 %v756_v48 }
 0x1e9   : > { %v7277_v51 = vpop.eup %7276 }
 0x1ea   : > { %v7279_v54 = vpop.eup %7278  ;;  %v6592_v57 = vpack.c.bf16 %v793_v33, %v792_v50  ;;  %v770_v58 = vmul.f32 %v7277_v51, %v738_v32  ;;  %v769_v61 = vmul.f32 %v7277_v51, %v737_v49  ;;  %v747_v32 = vmul.f32 %v8554_v22, %v8534_v8  ;;  %v7252_v51 = vld [vmem:[#allocation13 + $0xa8] sm:$0xff]  }
 0x1eb   : > { %v768_v34 = vmul.f32 %v7279_v54, %v736_v53  ;;  %v767_v62 = vmul.f32 %v7279_v54, %v735_v52  ;;  %v7253_v52 = vld [vmem:[#allocation14 + $0xa8] sm:$0xff]  }
 0x1ec   : > { %856 = vst [vmem:[#allocation2] sm:$0xff] %v6592_v57  ;;  %v797_v35 = vadd.f32 %v8567_v38, %v770_v58  ;;  %v796_v63 = vadd.f32 %v8565_v37, %v769_v61  ;;  %v7254_v61 = vld [vmem:[#allocation13 + $0xe0] sm:$0xff]  }
 0x1ed   : > { %v795_v43 = vadd.f32 %v8567_v38, %v768_v34  ;;  %v794_v1 = vadd.f32 %v8565_v37, %v767_v62  ;;  %v7281_v2 = vpop.eup %7280 }
 0x1ee   : > { %v6594_v10 = vpack.c.bf16 %v797_v35, %v796_v63  ;;  %v7283_v11 = vpop.eup %7282  ;;  %v772_v15 = vmul.f32 %v7281_v2, %v740_v42  ;;  %v771_v18 = vmul.f32 %v7281_v2, %v739_v0  ;;  %v7258_v42 = vld [vmem:[#allocation13 + $0xd8] sm:$0xff]  }
 0x1ef   : > { %v8593_v46 = vpack.c.bf16 %v795_v43, %v793_v33  ;;  %v8595_v12 = vpack.c.bf16 %v794_v1, %v792_v50  ;;  %v6593_v47 = vpack.c.bf16 %v795_v43, %v794_v1  ;;  %v774_v56 = vmul.f32 %v7283_v11, %v742_v6  ;;  %v7259_v43 = vld [vmem:[#allocation14 + $0xd8] sm:$0xff]   ;;  %v7262_v6 = vld [vmem:[#allocation13 + $0xd0] sm:$0xff]  }
 0x1f0   : > { %858 = vst [vmem:[#allocation2 + $0x10] sm:$0xff] %v6594_v10  ;;  %v773_v19 = vmul.f32 %v7283_v11, %v741_v3  ;;  %v799_v21 = vadd.f32 %v8567_v38, %v772_v15  ;;  %v798_v24 = vadd.f32 %v8565_v37, %v771_v18  ;;  %v748_v33 = vmul.f32 %v8556_v23, %v8537_v9  ;;  %v7255_v9 = vld [vmem:[#allocation14 + $0xe0] sm:$0xff]   ;;  %v7264_v10 = vld [vmem:[#allocation13 + $0x90] sm:$0xff]   ;;  %v7269_v15 = vld [vmem:[#allocation14 + $0x88] sm:$0xff]  }
 0x1f1   : > { %1024 = vmatprep.mubr.bf16.mxu0 %v8593_v46  ;;  %1257 = vmatprep.mubr.bf16.mxu1 %v8593_v46  ;;  %857 = vst [vmem:[#allocation2 + $0x8] sm:$0xff] %v6593_v47  ;;  %v7285_v60 = vpop.eup %7284  ;;  %v801_v25 = vadd.f32 %v8567_v38, %v774_v56  ;;  %v7265_v11 = vld [vmem:[#allocation14 + $0x90] sm:$0xff]   ;;  %v7266_v47 = vld [vmem:[#allocation13 + $0xc8] sm:$0xff]   ;;  %v7273_v18 = vld [vmem:[#allocation14 + $0x80] sm:$0xff]  }
 0x1f2   : > { %1025 = vmatmul.mubr.bf16.vlgmr.msra.gmra.mxu0 %v8595_v12  ;;  %1258 = vmatmul.mubr.bf16.vlgmr.msra.gmra.mxu1 %v8595_v12  ;;  %v800_v4 = vadd.f32 %v8565_v37, %v773_v19  ;;  %v7287_v26 = vpop.eup %7286  ;;  %v8611_v5 = vpack.c.bf16 %v799_v21, %v797_v35  ;;  %v776_v29 = vmul.f32 %v7285_v60, %v744_v16  ;;  %v7256_v35 = vld [vmem:[#allocation13 + $0xa0] sm:$0xff]  }
 0x1f3   : > { %6808 = vmatpush3.bf16.msra.mxu0 %v7244_v13  ;;  %6848 = vmatpush3.bf16.msra.mxu1 %v7245_v14  ;;  %v775_v30 = vmul.f32 %v7285_v60, %v743_v7  ;;  %v8613_v39 = vpack.c.bf16 %v798_v24, %v796_v63  ;;  %v6595_v40 = vpack.c.bf16 %v799_v21, %v798_v24  ;;  %v7257_v63 = vld [vmem:[#allocation14 + $0xa0] sm:$0xff]   ;;  %v7263_v7 = vld [vmem:[#allocation14 + $0xd0] sm:$0xff]   ;;  %v7267_v13 = vld [vmem:[#allocation14 + $0xc8] sm:$0xff]  }
 0x1f4   : > { %6809 = vmatprep.subr.bf16.mxu0 %v7246_v55  ;;  %6849 = vmatprep.subr.bf16.mxu1 %v7247_v17  ;;  %v6596_v41 = vpack.c.bf16 %v801_v25, %v800_v4  ;;  %v803_v44 = vadd.f32 %v8567_v38, %v776_v29  ;;  %v778_v48 = vmul.f32 %v7287_v26, %v746_v20  ;;  %v7268_v14 = vld [vmem:[#allocation13 + $0x88] sm:$0xff]   ;;  %v7270_v16 = vld [vmem:[#allocation13 + $0xc0] sm:$0xff]  }
 0x1f5   : > { %1032 = vmatprep.mubr.bf16.mxu0 %v8611_v5  ;;  %1265 = vmatprep.mubr.bf16.mxu1 %v8611_v5  ;;  %v802_v45 = vadd.f32 %v8565_v37, %v775_v30  ;;  %v7289_v49 = vpop.eup %7288  ;;  %859 = vst [vmem:[#allocation2 + $0x18] sm:$0xff] %v6595_v40  ;;  %v777_v50 = vmul.f32 %v7287_v26, %v745_v59  ;;  %v7271_v55 = vld [vmem:[#allocation14 + $0xc0] sm:$0xff]  }
 0x1f6   : > { %860 = vst [vmem:[#allocation2 + $0x20] sm:$0xff] %v6596_v41  ;;  %v8623_v53 = vpack.c.bf16 %v803_v44, %v801_v25  ;;  %v780_v58 = vmul.f32 %v7289_v49, %v748_v33  ;;  %v805_v8 = vadd.f32 %v8567_v38, %v778_v48  ;;  %v779_v22 = vmul.f32 %v7289_v49, %v747_v32  ;;  %v7272_v17 = vld [vmem:[#allocation13 + $0x80] sm:$0xff]  }
 0x1f7   : > { %6810 = vmatpush3.bf16.msra.mxu0 %v7248_v27  ;;  %6850 = vmatpush3.bf16.msra.mxu1 %v7249_v28  ;;  %v8625_v54 = vpack.c.bf16 %v802_v45, %v800_v4  ;;  %v6597_v57 = vpack.c.bf16 %v803_v44, %v802_v45  ;;  %v804_v23 = vadd.f32 %v8565_v37, %v777_v50 }
 0x1f8   : > { %6811 = vmatprep.subr.bf16.mxu0 %v7250_v31  ;;  %6851 = vmatprep.subr.bf16.mxu1 %v7251_v36  ;;  %v807_v34 = vadd.f32 %v8567_v38, %v780_v58  ;;  %v806_v62 = vadd.f32 %v8565_v37, %v779_v22  ;;  %v7260_v37 = vld [vmem:[#allocation13 + $0x98] sm:$0xff]  }
 0x1f9   : > { %861 = vst [vmem:[#allocation2 + $0x28] sm:$0xff] %v6597_v57  ;;  %v6598_v0 = vpack.c.bf16 %v805_v8, %v804_v23  ;;  %v7261_v38 = vld [vmem:[#allocation14 + $0x98] sm:$0xff]  }
 0x1fa   : > { %1033 = vmatmul.mubr.bf16.gmra.mxu0 %v8613_v39  ;;  %1266 = vmatmul.mubr.bf16.gmra.mxu1 %v8613_v39  ;;  %v815_v1 = vpack.c.bf16 %v807_v34, %v805_v8  ;;  %v814_v2 = vpack.c.bf16 %v806_v62, %v804_v23  ;;  %v6599_v3 = vpack.c.bf16 %v807_v34, %v806_v62 }
 0x1fb   : > { %6812 = vmatpush3.bf16.msra.mxu0 %v7252_v51  ;;  %6852 = vmatpush3.bf16.msra.mxu1 %v7253_v52  ;;  %862 = vst [vmem:[#allocation2 + $0x30] sm:$0xff] %v6598_v0 }
 0x1fc   : > { %1040 = vmatprep.mubr.bf16.mxu0 %v8623_v53  ;;  %1273 = vmatprep.mubr.bf16.mxu1 %v8623_v53  ;;  %863 = vst [vmem:[#allocation2 + $0x38] sm:$0xff] %v6599_v3 }
 0x1fd   : > { %6813 = vmatprep.subr.bf16.mxu0 %v7254_v61  ;;  %6853 = vmatprep.subr.bf16.mxu1 %v7255_v9 }
 0x1ff   : > { %6814 = vmatpush3.bf16.msra.mxu0 %v7256_v35  ;;  %6854 = vmatpush3.bf16.msra.mxu1 %v7257_v63 }
 0x200   : > { %6815 = vmatprep.subr.bf16.mxu0 %v7258_v42  ;;  %6855 = vmatprep.subr.bf16.mxu1 %v7259_v43 }
 0x202   : > { %1041 = vmatmul.mubr.bf16.gmra.mxu0 %v8625_v54  ;;  %1274 = vmatmul.mubr.bf16.gmra.mxu1 %v8625_v54 }
 0x203   : > { %6816 = vmatpush3.bf16.msra.mxu0 %v7260_v37  ;;  %6856 = vmatpush3.bf16.msra.mxu1 %v7261_v38 }
 0x204   : > { %1048 = vmatprep.mubr.bf16.mxu0 %v815_v1  ;;  %1281 = vmatprep.mubr.bf16.mxu1 %v815_v1 }
 0x205   : > { %6817 = vmatprep.subr.bf16.mxu0 %v7262_v6  ;;  %6857 = vmatprep.subr.bf16.mxu1 %v7263_v7 }
 0x207   : > { %6818 = vmatpush3.bf16.msra.mxu0 %v7264_v10  ;;  %6858 = vmatpush3.bf16.msra.mxu1 %v7265_v11 }
 0x208   : > { %6819 = vmatprep.subr.bf16.mxu0 %v7266_v47  ;;  %6859 = vmatprep.subr.bf16.mxu1 %v7267_v13 }
 0x20a   : > { %1049 = vmatmul.mubr.bf16.gmra.mxu0 %v814_v2  ;;  %1282 = vmatmul.mubr.bf16.gmra.mxu1 %v814_v2 }
 0x20b   : > { %6820 = vmatpush3.bf16.msra.mxu0 %v7268_v14  ;;  %6860 = vmatpush3.bf16.msra.mxu1 %v7269_v15 }
 0x20c   : > { %1491 = vmatprep.mubr.bf16.mxu0 %v8593_v46  ;;  %1726 = vmatprep.mubr.bf16.mxu1 %v8593_v46 }
 0x20d   : > { %6821 = vmatprep.subr.bf16.mxu0 %v7270_v16  ;;  %6861 = vmatprep.subr.bf16.mxu1 %v7271_v55 }
 0x20f   : > { %6822 = vmatpush3.bf16.msra.mxu0 %v7272_v17  ;;  %6862 = vmatpush3.bf16.msra.mxu1 %v7273_v18 }
 0x212   : > { %1492 = vmatmul.mubr.bf16.vlgmr.msra.gmra.mxu0 %v8595_v12  ;;  %1727 = vmatmul.mubr.bf16.vlgmr.msra.gmra.mxu1 %v8595_v12 }
 0x213   : > { %1499 = vmatprep.mubr.bf16.mxu0 %v8611_v5  ;;  %1734 = vmatprep.mubr.bf16.mxu1 %v8611_v5 }
 0x21a   : > { %1500 = vmatmul.mubr.bf16.gmra.mxu0 %v8613_v39  ;;  %1735 = vmatmul.mubr.bf16.gmra.mxu1 %v8613_v39 }
 0x21b   : > { %1507 = vmatprep.mubr.bf16.mxu0 %v8623_v53  ;;  %1742 = vmatprep.mubr.bf16.mxu1 %v8623_v53 }
 0x222   : > { %1508 = vmatmul.mubr.bf16.gmra.mxu0 %v8625_v54  ;;  %1743 = vmatmul.mubr.bf16.gmra.mxu1 %v8625_v54 }
 0x223   : > { %1515 = vmatprep.mubr.bf16.mxu0 %v815_v1  ;;  %1750 = vmatprep.mubr.bf16.mxu1 %v815_v1 }
 0x22a   : > { %1516 = vmatmul.mubr.bf16.gmra.mxu0 %v814_v2  ;;  %1751 = vmatmul.mubr.bf16.gmra.mxu1 %v814_v2 }
 0x2b2   : > { %v6743_v46 = vpop.f32.mrf.mxu0  ;;  %v6783_v12 = vpop.f32.mrf.mxu1 }
 0x2b4   : > { %v6744_v56 = vpop.f32.mrf.mxu0  ;;  %v6784_v19 = vpop.f32.mrf.mxu1 }
 0x2b5   : > { %v6745_v24 = vadd.f32 %v6744_v56, %v6743_v46  ;;  %v6785_v25 = vadd.f32 %v6784_v19, %v6783_v12 }
 0x2b6   : > { %v6746_v59 = vpop.f32.mrf.mxu0  ;;  %v6786_v20 = vpop.f32.mrf.mxu1 }
 0x2b8   : > { %v6747_v21 = vpop.f32.mrf.mxu0  ;;  %v6787_v60 = vpop.f32.mrf.mxu1 }
 0x2b9   : > { %v6748_v4 = vadd.f32 %v6747_v21, %v6746_v59  ;;  %v6788_v26 = vadd.f32 %v6787_v60, %v6786_v20 }
 0x2ba   : > { %v6749_v5 = vpop.f32.mrf.mxu0  ;;  %v6789_v27 = vpop.f32.mrf.mxu1 }
 0x2bb   : > { %v6638_v28 = vpack.c.bf16 %v6748_v4, %v6745_v24  ;;  %v6658_v29 = vpack.c.bf16 %v6788_v26, %v6785_v25 }
 0x2bc   : > { %v6750_v30 = vpop.f32.mrf.mxu0  ;;  %v6790_v31 = vpop.f32.mrf.mxu1 }
 0x2bd   : > { %6639 = vst [vmem:[#allocation3] sm:$0xff] %v6638_v28   ;;  %6659 = vst [vmem:[#allocation4] sm:$0xff] %v6658_v29   ;;  %v6751_v44 = vadd.f32 %v6750_v30, %v6749_v5  ;;  %v6791_v45 = vadd.f32 %v6790_v31, %v6789_v27 }
 0x2be   : > { %v6752_v36 = vpop.f32.mrf.mxu0  ;;  %v6792_v39 = vpop.f32.mrf.mxu1 }
 0x2c0   : > { %v6753_v40 = vpop.f32.mrf.mxu0  ;;  %v6793_v41 = vpop.f32.mrf.mxu1 }
 0x2c1   : > { %v6754_v48 = vadd.f32 %v6753_v40, %v6752_v36  ;;  %v6794_v49 = vadd.f32 %v6793_v41, %v6792_v39 }
 0x2c2   : > { %v6755_v32 = vpop.f32.mrf.mxu0  ;;  %v6795_v33 = vpop.f32.mrf.mxu1 }
 0x2c3   : > { %v6643_v50 = vpack.c.bf16 %v6754_v48, %v6751_v44  ;;  %v6663_v51 = vpack.c.bf16 %v6794_v49, %v6791_v45 }
 0x2c4   : > { %v6756_v52 = vpop.f32.mrf.mxu0  ;;  %v6796_v53 = vpop.f32.mrf.mxu1 }
 0x2c5   : > { %6715 = vst [vmem:[#allocation3 + $0x8] sm:$0xff] %v6643_v50   ;;  %6718 = vst [vmem:[#allocation4 + $0x8] sm:$0xff] %v6663_v51   ;;  %v6757_v22 = vadd.f32 %v6756_v52, %v6755_v32  ;;  %v6797_v61 = vadd.f32 %v6796_v53, %v6795_v33 }
 0x2c6   : > { %v6758_v54 = vpop.f32.mrf.mxu0  ;;  %v6798_v57 = vpop.f32.mrf.mxu1 }
 0x2c8   : > { %v6759_v58 = vpop.f32.mrf.mxu0  ;;  %v6799_v8 = vpop.f32.mrf.mxu1 }
 0x2c9   : > { %v6760_v9 = vadd.f32 %v6759_v58, %v6758_v54  ;;  %v6800_v23 = vadd.f32 %v6799_v8, %v6798_v57 }
 0x2ca   : > { %v6761_v34 = vpop.f32.mrf.mxu0  ;;  %v6801_v62 = vpop.f32.mrf.mxu1 }
 0x2cb   : > { %v6648_v35 = vpack.c.bf16 %v6760_v9, %v6757_v22  ;;  %v6668_v63 = vpack.c.bf16 %v6800_v23, %v6797_v61 }
 0x2cc   : > { %v6762_v0 = vpop.f32.mrf.mxu0  ;;  %v6802_v42 = vpop.f32.mrf.mxu1 }
 0x2cd   : > { %6716 = vst [vmem:[#allocation3 + $0x10] sm:$0xff] %v6648_v35   ;;  %6719 = vst [vmem:[#allocation4 + $0x10] sm:$0xff] %v6668_v63   ;;  %v6763_v37 = vadd.f32 %v6762_v0, %v6761_v34  ;;  %v6803_v38 = vadd.f32 %v6802_v42, %v6801_v62 }
 0x2ce   : > { %v6764_v43 = vpop.f32.mrf.mxu0  ;;  %v6804_v1 = vpop.f32.mrf.mxu1 }
 0x2d0   : > { %v6765_v2 = vpop.f32.mrf.mxu0  ;;  %v6805_v3 = vpop.f32.mrf.mxu1 }
 0x2d1   : > { %v6766_v6 = vadd.f32 %v6765_v2, %v6764_v43  ;;  %v6806_v7 = vadd.f32 %v6805_v3, %v6804_v1 }
 0x2d2   : > { %v6823_v10 = vpop.f32.mrf.mxu0  ;;  %v6863_v11 = vpop.f32.mrf.mxu1 }
 0x2d3   : > { %v6653_v47 = vpack.c.bf16 %v6766_v6, %v6763_v37  ;;  %v6673_v13 = vpack.c.bf16 %v6806_v7, %v6803_v38 }
 0x2d4   : > { %v6824_v14 = vpop.f32.mrf.mxu0  ;;  %v6864_v15 = vpop.f32.mrf.mxu1 }
 0x2d5   : > { %6717 = vst [vmem:[#allocation3 + $0x18] sm:$0xff] %v6653_v47   ;;  %6720 = vst [vmem:[#allocation4 + $0x18] sm:$0xff] %v6673_v13   ;;  %v6825_v46 = vadd.f32 %v6824_v14, %v6823_v10  ;;  %v6865_v12 = vadd.f32 %v6864_v15, %v6863_v11 }
 0x2d6   : > { %v6826_v16 = vpop.f32.mrf.mxu0  ;;  %v6866_v55 = vpop.f32.mrf.mxu1 }
 0x2d8   : > { %v6827_v17 = vpop.f32.mrf.mxu0  ;;  %v6867_v18 = vpop.f32.mrf.mxu1 }
 0x2d9   : > { %v6828_v56 = vadd.f32 %v6827_v17, %v6826_v16  ;;  %v6868_v19 = vadd.f32 %v6867_v18, %v6866_v55 }
 0x2da   : > { %v6829_v59 = vpop.f32.mrf.mxu0  ;;  %v6869_v20 = vpop.f32.mrf.mxu1 }
 0x2db   : > { %v6678_v21 = vpack.c.bf16 %v6828_v56, %v6825_v46  ;;  %v6698_v60 = vpack.c.bf16 %v6868_v19, %v6865_v12 }
 0x2dc   : > { %v6830_v24 = vpop.f32.mrf.mxu0  ;;  %v6870_v25 = vpop.f32.mrf.mxu1 }
 0x2dd   : > { %6679 = vst [vmem:[#allocation3 + $0x20] sm:$0xff] %v6678_v21   ;;  %6699 = vst [vmem:[#allocation4 + $0x20] sm:$0xff] %v6698_v60   ;;  %v6831_v28 = vadd.f32 %v6830_v24, %v6829_v59  ;;  %v6871_v29 = vadd.f32 %v6870_v25, %v6869_v20 }
 0x2de   : > { %v6832_v4 = vpop.f32.mrf.mxu0  ;;  %v6872_v26 = vpop.f32.mrf.mxu1 }
 0x2e0   : > { %v6833_v5 = vpop.f32.mrf.mxu0  ;;  %v6873_v27 = vpop.f32.mrf.mxu1 }
 0x2e1   : > { %v6834_v30 = vadd.f32 %v6833_v5, %v6832_v4  ;;  %v6874_v31 = vadd.f32 %v6873_v27, %v6872_v26 }
 0x2e2   : > { %v6835_v36 = vpop.f32.mrf.mxu0  ;;  %v6875_v39 = vpop.f32.mrf.mxu1 }
 0x2e3   : > { %v6683_v40 = vpack.c.bf16 %v6834_v30, %v6831_v28  ;;  %v6703_v41 = vpack.c.bf16 %v6874_v31, %v6871_v29 }
 0x2e4   : > { %v6836_v44 = vpop.f32.mrf.mxu0  ;;  %v6876_v45 = vpop.f32.mrf.mxu1 }
 0x2e5   : > { %6721 = vst [vmem:[#allocation3 + $0x28] sm:$0xff] %v6683_v40   ;;  %6724 = vst [vmem:[#allocation4 + $0x28] sm:$0xff] %v6703_v41   ;;  %v6837_v50 = vadd.f32 %v6836_v44, %v6835_v36  ;;  %v6877_v51 = vadd.f32 %v6876_v45, %v6875_v39 }
 0x2e6   : > { %v6838_v48 = vpop.f32.mrf.mxu0  ;;  %v6878_v49 = vpop.f32.mrf.mxu1 }
 0x2e8   : > { %v6839_v32 = vpop.f32.mrf.mxu0  ;;  %v6879_v33 = vpop.f32.mrf.mxu1 }
 0x2e9   : > { %v6840_v52 = vadd.f32 %v6839_v32, %v6838_v48  ;;  %v6880_v53 = vadd.f32 %v6879_v33, %v6878_v49 }
 0x2ea   : > { %v6841_v54 = vpop.f32.mrf.mxu0  ;;  %v6881_v57 = vpop.f32.mrf.mxu1 }
 0x2eb   : > { %v6688_v58 = vpack.c.bf16 %v6840_v52, %v6837_v50  ;;  %v6708_v8 = vpack.c.bf16 %v6880_v53, %v6877_v51 }
 0x2ec   : > { %v6842_v22 = vpop.f32.mrf.mxu0  ;;  %v6882_v61 = vpop.f32.mrf.mxu1 }
 0x2ed   : > { %6722 = vst [vmem:[#allocation3 + $0x30] sm:$0xff] %v6688_v58   ;;  %6725 = vst [vmem:[#allocation4 + $0x30] sm:$0xff] %v6708_v8   ;;  %v6843_v35 = vadd.f32 %v6842_v22, %v6841_v54  ;;  %v6883_v63 = vadd.f32 %v6882_v61, %v6881_v57 }
 0x2ee   : > { %v6844_v9 = vpop.f32.mrf.mxu0  ;;  %v6884_v23 = vpop.f32.mrf.mxu1 }
 0x2f0   : > { %v6845_v34 = vpop.f32.mrf.mxu0  ;;  %v6885_v62 = vpop.f32.mrf.mxu1 }
 0x2f1   : > { %v6846_v0 = vadd.f32 %v6845_v34, %v6844_v9  ;;  %v6886_v42 = vadd.f32 %v6885_v62, %v6884_v23 }
 0x2f3   : > { %v6693_v43 = vpack.c.bf16 %v6846_v0, %v6843_v35  ;;  %v6713_v1 = vpack.c.bf16 %v6886_v42, %v6883_v63 }
 0x2f5   : > { %6723 = vst [vmem:[#allocation3 + $0x38] sm:$0xff] %v6693_v43   ;;  %6726 = vst [vmem:[#allocation4 + $0x38] sm:$0xff] %v6713_v1  }
 0x2f6 PF: > { %s1800_s1 = sshra.s32 %s8448_s19, 3  ;;  %v7290_v2 = vld [vmem:[#allocation11 + $0x74] ss:$8 sps:$4 sm:$0xff]   ;;  %v7292_v3 = vld [vmem:[#allocation11 + $0x70] ss:$8 sps:$4 sm:$0xff]   ;;  %s8651_s24 = scalar_lea.vmem [#allocation2], %s8448_s19  ;;  %v2111_v40 = vlaneseq  ;;  %v8664_v49 = vstv %s8448_s19 }
 0x2f7   : > { %2021 = vmatprep.subr.bf16.mxu0 %v7290_v2  ;;  %6983 = vmatprep.subr.bf16.mxu1 %v7290_v2  ;;  %v7293_v37 = vld [vmem:[#allocation11 + $0x64] ss:$8 sps:$4 sm:$0xff]   ;;  %v7295_v38 = vld [vmem:[#allocation11 + $0x60] ss:$8 sps:$4 sm:$0xff]   ;;  %v7296_v6 = vld [vmem:[#allocation11 + $0x54] ss:$8 sps:$4 sm:$0xff]  }
 0x2f8   : > { %2022 = vmatpush1.bf16.msra.mxu0 %v7292_v3  ;;  %6999 = vmatpush1.bf16.msra.mxu1 %v7292_v3  ;;  %v7298_v7 = vld [vmem:[#allocation11 + $0x50] ss:$8 sps:$4 sm:$0xff]   ;;  %v7299_v10 = vld [vmem:[#allocation11 + $0x44] ss:$8 sps:$4 sm:$0xff]   ;;  %v7301_v11 = vld [vmem:[#allocation11 + $0x40] ss:$8 sps:$4 sm:$0xff]  }
 0x2f9   : > { %2023 = vmatprep.subr.bf16.mxu0 %v7293_v37  ;;  %6984 = vmatprep.subr.bf16.mxu1 %v7293_v37  ;;  %v7302_v47 = vld [vmem:[#allocation11 + $0x34] ss:$8 sps:$4 sm:$0xff]   ;;  %v7304_v13 = vld [vmem:[#allocation11 + $0x30] ss:$8 sps:$4 sm:$0xff]   ;;  %v7305_v14 = vld [vmem:[#allocation11 + $0x24] ss:$8 sps:$4 sm:$0xff]  }
 0x2fa   : > { %v7307_v15 = vld [vmem:[#allocation11 + $0x20] ss:$8 sps:$4 sm:$0xff]   ;;  %v7308_v16 = vld [vmem:[#allocation11 + $0x14] ss:$8 sps:$4 sm:$0xff]   ;;  %v7340_v55 = vld [vmem:[%s8651_s24 + $0x4] ss:$8 sps:$4 sm:$0xff]  }
 0x2fb   : > { %v7310_v17 = vld [vmem:[#allocation11 + $0x10] ss:$8 sps:$4 sm:$0xff]   ;;  %v7343_v18 = vld [vmem:[%s8651_s24 + $0x14] ss:$8 sps:$4 sm:$0xff]   ;;  %v7311_v46 = vld [vmem:[#allocation11 + $0x4] ss:$8 sps:$4 sm:$0xff]   ;;  %2053 = vmatprep.mubr.bf16.mxu0 %v7340_v55 }
 0x2fc   : > { %2024 = vmatpush1.bf16.msra.mxu0 %v7295_v38  ;;  %7000 = vmatpush1.bf16.msra.mxu1 %v7295_v38  ;;  %v7313_v12 = vld [vmem:[#allocation11] ss:$8 sps:$4 sm:$0xff]   ;;  %v7314_v56 = vld [vmem:[#allocation11 + $0xf4] ss:$8 sps:$4 sm:$0xff]   ;;  %v7316_v19 = vld [vmem:[#allocation11 + $0xf0] ss:$8 sps:$4 sm:$0xff]  }
 0x2fd   : > { %2025 = vmatprep.subr.bf16.mxu0 %v7296_v6  ;;  %6985 = vmatprep.subr.bf16.mxu1 %v7296_v6  ;;  %v7317_v59 = vld [vmem:[#allocation11 + $0xe4] ss:$8 sps:$4 sm:$0xff]   ;;  %v7319_v20 = vld [vmem:[#allocation11 + $0xe0] ss:$8 sps:$4 sm:$0xff]   ;;  %v7320_v21 = vld [vmem:[#allocation11 + $0xd4] ss:$8 sps:$4 sm:$0xff]  }
 0x2fe   : > { %2063 = vmatprep.mubr.bf16.mxu1 %v7343_v18  ;;  %v7322_v60 = vld [vmem:[#allocation11 + $0xd0] ss:$8 sps:$4 sm:$0xff]   ;;  %v7323_v24 = vld [vmem:[#allocation11 + $0xc4] ss:$8 sps:$4 sm:$0xff]   ;;  %v7325_v25 = vld [vmem:[#allocation11 + $0xc0] ss:$8 sps:$4 sm:$0xff]  }
 0x2ff   : > { %v7326_v4 = vld [vmem:[#allocation11 + $0xb4] ss:$8 sps:$4 sm:$0xff]   ;;  %v7328_v26 = vld [vmem:[#allocation11 + $0xb0] ss:$8 sps:$4 sm:$0xff]   ;;  %v7329_v5 = vld [vmem:[#allocation11 + $0xa4] ss:$8 sps:$4 sm:$0xff]  }
 0x300   : > { %2026 = vmatpush1.bf16.msra.mxu0 %v7298_v7  ;;  %7001 = vmatpush1.bf16.msra.mxu1 %v7298_v7  ;;  %v7331_v27 = vld [vmem:[#allocation11 + $0xa0] ss:$8 sps:$4 sm:$0xff]   ;;  %v7332_v28 = vld [vmem:[#allocation11 + $0x94] ss:$8 sps:$4 sm:$0xff]   ;;  %v7334_v29 = vld [vmem:[#allocation11 + $0x90] ss:$8 sps:$4 sm:$0xff]  }
 0x301   : > { %2027 = vmatprep.subr.bf16.mxu0 %v7299_v10  ;;  %6986 = vmatprep.subr.bf16.mxu1 %v7299_v10  ;;  %v7335_v30 = vld [vmem:[#allocation11 + $0x84] ss:$8 sps:$4 sm:$0xff]   ;;  %v7337_v31 = vld [vmem:[#allocation11 + $0x80] ss:$8 sps:$4 sm:$0xff]   ;;  %v7341_v39 = vld [vmem:[%s8651_s24 + $0x10] ss:$8 sps:$4 sm:$0xff]  }
 0x302   : > { %v7338_v36 = vld [vmem:[%s8651_s24] ss:$8 sps:$4 sm:$0xff]   ;;  %v8658_v41 = vshrl.u32 %v2111_v40, 7  ;;  %vm2086_vm0 = vcmask 7168   ;;  %v8128_v32 = vmov -1e+30  }
 0x303   : > { %2087 = vst.msk [vmem:[#allocation5] sm:$0xff] %vm2086_vm0, %v8128_v32  ;;  %2088 = vst.msk [vmem:[#allocation5 + $0x8] sm:$0xff] %vm2086_vm0, %v8128_v32  ;;  %v8129_v33 = vmov 0.0   ;;  %s9543_s28 = sld [smem:[#allocation29_spill]] }
 0x304   : > { %2028 = vmatpush1.bf16.msra.mxu0 %v7301_v11  ;;  %7002 = vmatpush1.bf16.msra.mxu1 %v7301_v11  ;;  %v2113_v44 = vadd.s32 8, %v8658_v41  ;;  %v2114_v45 = vadd.s32 16, %v8658_v41  ;;  %v2115_v48 = vadd.s32 24, %v8658_v41  ;;  %2089 = vst.msk [vmem:[#allocation5 + $0x10] sm:$0xff] %vm2086_vm0, %v8128_v32  ;;  %2090 = vst.msk [vmem:[#allocation5 + $0x18] sm:$0xff] %vm2086_vm0, %v8128_v32  ;;  %v8684_v50 = vadd.s32 %v8664_v49, %v8658_v41 }
 0x305   : > { %2029 = vmatprep.subr.bf16.mxu0 %v7302_v47  ;;  %6987 = vmatprep.subr.bf16.mxu1 %v7302_v47  ;;  %2091 = vst.msk [vmem:[#allocation5 + $0x20] sm:$0xff] %vm2086_vm0, %v8128_v32  ;;  %2092 = vst.msk [vmem:[#allocation5 + $0x28] sm:$0xff] %vm2086_vm0, %v8128_v32 }
 0x306   : > { %2093 = vst.msk [vmem:[#allocation5 + $0x30] sm:$0xff] %vm2086_vm0, %v8128_v32  ;;  %2094 = vst.msk [vmem:[#allocation5 + $0x38] sm:$0xff] %vm2086_vm0, %v8128_v32  ;;  %v8687_v51 = vadd.s32 %v8664_v49, %v2113_v44  ;;  %v8690_v52 = vadd.s32 %v8664_v49, %v2114_v45  ;;  %v8693_v53 = vadd.s32 %v8664_v49, %v2115_v48 }
 0x307   : > { %2095 = vst.msk [vmem:[#allocation6] sm:$0xff] %vm2086_vm0, %v8129_v33  ;;  %2096 = vst.msk [vmem:[#allocation6 + $0x8] sm:$0xff] %vm2086_vm0, %v8129_v33 }
 0x308   : > { %2030 = vmatpush1.bf16.msra.mxu0 %v7304_v13  ;;  %7003 = vmatpush1.bf16.msra.mxu1 %v7304_v13  ;;  %2097 = vst.msk [vmem:[#allocation6 + $0x10] sm:$0xff] %vm2086_vm0, %v8129_v33  ;;  %2098 = vst.msk [vmem:[#allocation6 + $0x18] sm:$0xff] %vm2086_vm0, %v8129_v33 }
 0x309   : > { %2031 = vmatprep.subr.bf16.mxu0 %v7305_v14  ;;  %6988 = vmatprep.subr.bf16.mxu1 %v7305_v14  ;;  %2099 = vst.msk [vmem:[#allocation6 + $0x20] sm:$0xff] %vm2086_vm0, %v8129_v33  ;;  %2100 = vst.msk [vmem:[#allocation6 + $0x28] sm:$0xff] %vm2086_vm0, %v8129_v33  ;;  %p6265_p1 = scmp.le.s32.totalorder %s9543_s28, 0 }
 0x30a   : > { %2101 = vst.msk [vmem:[#allocation6 + $0x30] sm:$0xff] %vm2086_vm0, %v8129_v33  ;;  %2102 = vst.msk [vmem:[#allocation6 + $0x38] sm:$0xff] %vm2086_vm0, %v8129_v33  ;;  %s8704_s10 = smov (!%p6265_p1), 0  }
 0x30b   : > { %2103 = vst [vmem:[#allocation7 + $0x30] sm:$0xff] %v8129_v33  ;;  %2104 = vst [vmem:[#allocation7] sm:$0xff] %v8129_v33 }
 0x30c   : > { %2032 = vmatpush1.bf16.msra.mxu0 %v7307_v15  ;;  %7004 = vmatpush1.bf16.msra.mxu1 %v7307_v15  ;;  %2105 = vst [vmem:[#allocation7 + $0x18] sm:$0xff] %v8129_v33  ;;  %2106 = vst [vmem:[#allocation7 + $0x10] sm:$0xff] %v8129_v33 }
 0x30d   : > { %2033 = vmatprep.subr.bf16.mxu0 %v7308_v16  ;;  %6989 = vmatprep.subr.bf16.mxu1 %v7308_v16  ;;  %2107 = vst [vmem:[#allocation7 + $0x8] sm:$0xff] %v8129_v33  ;;  %2108 = vst [vmem:[#allocation7 + $0x20] sm:$0xff] %v8129_v33 }
 0x30e   : > { %2109 = vst [vmem:[#allocation7 + $0x28] sm:$0xff] %v8129_v33  ;;  %2110 = vst [vmem:[#allocation7 + $0x38] sm:$0xff] %v8129_v33 }
 0x310   : > { %2034 = vmatpush1.bf16.msra.mxu0 %v7310_v17  ;;  %7005 = vmatpush1.bf16.msra.mxu1 %v7310_v17 }
 0x311   : > { %2035 = vmatprep.subr.bf16.mxu0 %v7311_v46  ;;  %6990 = vmatprep.subr.bf16.mxu1 %v7311_v46 }
 0x314   : > { %2036 = vmatpush1.bf16.msra.mxu0 %v7313_v12  ;;  %7006 = vmatpush1.bf16.msra.mxu1 %v7313_v12 }
 0x315   : > { %2037 = vmatprep.subr.bf16.mxu0 %v7314_v56  ;;  %6991 = vmatprep.subr.bf16.mxu1 %v7314_v56 }
 0x318   : > { %2038 = vmatpush2.bf16.msra.mxu0 %v7316_v19  ;;  %7007 = vmatpush2.bf16.msra.mxu1 %v7316_v19 }
 0x319   : > { %2039 = vmatprep.subr.bf16.mxu0 %v7317_v59  ;;  %6992 = vmatprep.subr.bf16.mxu1 %v7317_v59 }
 0x31c   : > { %2040 = vmatpush2.bf16.msra.mxu0 %v7319_v20  ;;  %7008 = vmatpush2.bf16.msra.mxu1 %v7319_v20 }
 0x31d   : > { %2041 = vmatprep.subr.bf16.mxu0 %v7320_v21  ;;  %6993 = vmatprep.subr.bf16.mxu1 %v7320_v21 }
 0x320   : > { %2042 = vmatpush2.bf16.msra.mxu0 %v7322_v60  ;;  %7009 = vmatpush2.bf16.msra.mxu1 %v7322_v60 }
 0x321   : > { %2043 = vmatprep.subr.bf16.mxu0 %v7323_v24  ;;  %6994 = vmatprep.subr.bf16.mxu1 %v7323_v24 }
 0x324   : > { %2044 = vmatpush2.bf16.msra.mxu0 %v7325_v25  ;;  %7010 = vmatpush2.bf16.msra.mxu1 %v7325_v25 }
 0x325   : > { %2045 = vmatprep.subr.bf16.mxu0 %v7326_v4  ;;  %6995 = vmatprep.subr.bf16.mxu1 %v7326_v4 }
 0x328   : > { %2046 = vmatpush2.bf16.msra.mxu0 %v7328_v26  ;;  %7011 = vmatpush2.bf16.msra.mxu1 %v7328_v26 }
 0x329   : > { %2047 = vmatprep.subr.bf16.mxu0 %v7329_v5  ;;  %6996 = vmatprep.subr.bf16.mxu1 %v7329_v5 }
 0x32c   : > { %2048 = vmatpush2.bf16.msra.mxu0 %v7331_v27  ;;  %7012 = vmatpush2.bf16.msra.mxu1 %v7331_v27 }
 0x32d   : > { %2049 = vmatprep.subr.bf16.mxu0 %v7332_v28  ;;  %6997 = vmatprep.subr.bf16.mxu1 %v7332_v28 }
 0x330   : > { %2050 = vmatpush2.bf16.msra.mxu0 %v7334_v29  ;;  %7013 = vmatpush2.bf16.msra.mxu1 %v7334_v29 }
 0x331   : > { %2051 = vmatprep.subr.bf16.mxu0 %v7335_v30  ;;  %6998 = vmatprep.subr.bf16.mxu1 %v7335_v30 }
 0x334   : > { %2052 = vmatpush2.bf16.msra.mxu0 %v7337_v31  ;;  %7014 = vmatpush2.bf16.msra.mxu1 %v7337_v31 }
 0x337   : > { %2054 = vmatmul.mubr.bf16.vlgmr.msra.gmra.mxu0 %v7338_v36  ;;  %2064 = vmatmul.mubr.bf16.vlgmr.msra.gmra.mxu1 %v7341_v39 }
 0x3f7   : > { %v2055_v54 = vpop.f32.mrf.mxu0  ;;  %v2065_v57 = vpop.f32.mrf.mxu1 }
 0x3f8   : > { %v2074_v22 = vmul.f32 0.088388346, %v2055_v54  ;;  %v2078_v23 = vmul.f32 0.088388346, %v2065_v57 }
 0x3f9   : > { %v2057_v58 = vpop.f32.mrf.mxu0  ;;  %v2067_v8 = vpop.f32.mrf.mxu1 }
 0x3fa   : > { %v2075_v35 = vmul.f32 0.088388346, %v2057_v58  ;;  %v2079_v63 = vmul.f32 0.088388346, %v2067_v8 }
 0x3fb   : > { %v2059_v61 = vpop.f32.mrf.mxu0  ;;  %v2069_v9 = vpop.f32.mrf.mxu1 }
 0x3fc   : > { %v2076_v34 = vmul.f32 0.088388346, %v2059_v61  ;;  %v2080_v62 = vmul.f32 0.088388346, %v2069_v9  ;;  %5996 = sbr.rel (%p6265_p1) target bundleno = 1758 (0x6de), region = 164 }
 0x3fd   : > { %v2061_v0 = vpop.f32.mrf.mxu0  ;;  %v2071_v42 = vpop.f32.mrf.mxu1 }
 0x3fe   : > { %v8695_v43 = vpack.c.bf16 %v2076_v34, %v2074_v22  ;;  %v8697_v1 = vpack.c.bf16 %v2080_v62, %v2078_v23  ;;  %v2077_v2 = vmul.f32 0.088388346, %v2061_v0  ;;  %v2081_v3 = vmul.f32 0.088388346, %v2071_v42 }
 0x400   : > { %v8699_v37 = vpack.c.bf16 %v2077_v2, %v2075_v35  ;;  %v8701_v38 = vpack.c.bf16 %v2081_v3, %v2079_v63 }
 0x401 LB: >> { %6923 = vmatprep.mubr.bf16.mxu0 %v8695_v43  ;;  %s6266_s9 = sshll.u32 %s8110_s10, 5  ;;  %vm2280_vm1 = vcmask 261120   ;;  %v8130_v60 = vmov 0   ;;  %v2274_v25 = vld [vmem:[#allocation5 + $0x10] sm:$0xff]  ;;  %v2276_v5 = vld [vmem:[#allocation5 + $0x20] sm:$0xff]  ;;  %v2275_v36 = vld [vmem:[#allocation5 + $0x18] sm:$0xff]  ;;  %s8110_s10 = sphi %s8704_s10, %s2124_s10  }
 0x402   : >> { %6931 = vmatprep.mubr.bf16.mxu1 %v8699_v37  ;;  %s2128_s7 = sshra.s32 %s6266_s9, 3  ;;  %7345 = vset.pattern.permute.xlu1 %v8130_v60  ;;  %v2272_v27 = vld [vmem:[#allocation5] sm:$0xff]  ;;  %v2273_v39 = vld [vmem:[#allocation5 + $0x8] sm:$0xff]  ;;  %v8752_v8 = vld [vmem:[#allocation5 + $0x30] sm:$0xff]  ;;  %s2124_s10 = sadd.s32 1, %s8110_s10  }
 0x403   : >> { %s6267_s25 = sshll.u32 %s2128_s7, 2  ;;  %7344 = vset.pattern.permute.xlu0 %v8130_v60  ;;  %v2277_v57 = vld [vmem:[#allocation5 + $0x28] sm:$0xff]  ;;  %v8758_v62 = vld [vmem:[#allocation5 + $0x38] sm:$0xff]  ;;  %s9544_s2 = sld [smem:[#allocation29_spill]] }
 0x404   : >> { %s2131_s13 = scalar_lea.vmem [#allocation3], %s6267_s25  ;;  %s8712_s27 = scalar_lea.vmem [#allocation4], %s6267_s25 }
 0x405   : >> { %v7346_v6 = vld [vmem:[%s2131_s13 + $0x8] sm:$0xff]   ;;  %v7348_v10 = vld [vmem:[%s2131_s13] sm:$0xff]  }
 0x406   : >> { %v7347_v7 = vld [vmem:[%s2131_s13 + $0x28] sm:$0xff]   ;;  %6919 = vmatprep.subr.bf16.mxu0 %v7346_v6  ;;  %v7349_v11 = vld [vmem:[%s2131_s13 + $0x20] sm:$0xff]  }
 0x407   : >> { %6927 = vmatprep.subr.bf16.mxu1 %v7347_v7  ;;  %6920 = vmatpush3.bf16.xpose.msra.mxu0 %v7346_v6  ;;  %v7351_v60 = vld [vmem:[%s8712_s27] sm:$0xff]  }
 0x408   : >> { %6928 = vmatpush3.bf16.xpose.msra.mxu1 %v7347_v7  ;;  %6921 = vmatprep.subr.bf16.mxu0 %v7348_v10 }
 0x409   : >> { %6929 = vmatprep.subr.bf16.mxu1 %v7349_v11  ;;  %p2123_p10 = scmp.ge.s32.totalorder %s2124_s10, %s9544_s2 }
 0x40f   : >> { %6922 = vmatpush3.bf16.xpose.msra.mxu0 %v7348_v10 }
 0x410   : >> { %6930 = vmatpush3.bf16.xpose.msra.mxu1 %v7349_v11 }
 0x416   : >> { %6924 = vmatmul.mubr.bf16.vlgmr.msra.gmra.mxu0 %v8697_v1 }
 0x417   : >> { %6932 = vmatmul.mubr.bf16.vlgmr.msra.gmra.mxu1 %v8701_v38 }
 0x4d6   : >> { %v8716_v47 = vpop.f32.mrf.mxu0 }
 0x4d7   : >> { %v8718_v13 = vpop.f32.mrf.mxu1  ;;  %v2287_v14 = vsel %vm2280_vm1, %v8716_v47, -inf }
 0x4d8   : >> { %2288 = vmax.xlane.f32.xlu0 %v2287_v14  ;;  %v8722_v15 = vpop.f32.mrf.mxu0  ;;  %v2299_v21 = vsel %vm2280_vm1, %v8718_v13, -inf }
 0x4d9   : >> { %v8724_v16 = vpop.f32.mrf.mxu1  ;;  %v2281_v18 = vsel %vm2280_vm1, %v8722_v15, -inf }
 0x4da   : >> { %v2293_v55 = vsel %vm2280_vm1, %v8724_v16, -inf  ;;  %v8728_v17 = vpop.f32.mrf.mxu0 }
 0x4db   : >> { %2294 = vmax.xlane.f32.xlu1 %v2293_v55  ;;  %v8732_v46 = vpop.f32.mrf.mxu1  ;;  %v2290_v19 = vsel %vm2280_vm1, %v8728_v17, -inf }
 0x4dc   : >> { %2282 = vmax.xlane.f32.xlu0 %v2281_v18  ;;  %v8734_v12 = vpop.f32.mrf.mxu0  ;;  %v2302_v24 = vsel %vm2280_vm1, %v8732_v46, -inf }
 0x4dd   : >> { %v8736_v56 = vpop.f32.mrf.mxu1  ;;  %v2284_v59 = vsel %vm2280_vm1, %v8734_v12, -inf }
 0x4de   : >> { %v2296_v20 = vsel %vm2280_vm1, %v8736_v56, -inf }
 0x4df   : >> { %2291 = vmax.xlane.f32.xlu1 %v2290_v19 }
 0x4e0   : >> { %2285 = vmax.xlane.f32.xlu0 %v2284_v59 }
 0x4e3   : >> { %2297 = vmax.xlane.f32.xlu1 %v2296_v20  ;;  %v7350_v20 = vld [vmem:[%s8712_s27 + $0x8] sm:$0xff]  }
 0x4e4   : >> { %2300 = vmax.xlane.f32.xlu0 %v2299_v21  ;;  %6935 = vmatprep.subr.bf16.mxu0 %v7350_v20 }
 0x4e5   : >> { %6936 = vmatpush3.bf16.msra.mxu0 %v7350_v20 }
 0x4e6   : >> { %6937 = vmatprep.subr.bf16.mxu0 %v7351_v60 }
 0x4e7   : >> { %2303 = vmax.xlane.f32.xlu1 %v2302_v24  ;;  %v7352_v24 = vld [vmem:[%s8712_s27 + $0x28] sm:$0xff]  }
 0x4e8   : >> { %6943 = vmatprep.subr.bf16.mxu1 %v7352_v24 }
 0x4e9   : >> { %6938 = vmatpush3.bf16.msra.mxu0 %v7351_v60  ;;  %6944 = vmatpush3.bf16.msra.mxu1 %v7352_v24 }
 0x561   : >> { %v2289_v4 = vpop.xlane.xlu0 %2288 }
 0x562   : >> { %v2307_v26 = vmax.f32 %v2274_v25, %v2289_v4  ;;  %v7353_v4 = vld [vmem:[%s8712_s27 + $0x20] sm:$0xff]  }
 0x563   : >> { %6945 = vmatprep.subr.bf16.mxu1 %v7353_v4 }
 0x564   : >> { %2669 = vst.msk [vmem:[#allocation5 + $0x10] sm:$0xff] %vm2086_vm0, %v2307_v26  ;;  %v2295_v28 = vpop.xlane.xlu1 %2294  ;;  %2349 = vperm.xlu1 %7345, %v2307_v26   ;;  %v2315_v3 = vsub.f32 %v2274_v25, %v2307_v26  ;;  %6946 = vmatpush3.bf16.msra.mxu1 %v7353_v4 }
 0x565   : >> { %v2309_v29 = vmax.f32 %v2276_v5, %v2295_v28  ;;  %v2283_v30 = vpop.xlane.xlu0 %2282 }
 0x566   : >> { %v2305_v31 = vmax.f32 %v2272_v27, %v2283_v30  ;;  %v2325_v7 = vmul.f32 1.442695, %v2315_v3 }
 0x567   : >> { %2671 = vst.msk [vmem:[#allocation5 + $0x20] sm:$0xff] %vm2086_vm0, %v2309_v29  ;;  %v2317_v10 = vsub.f32 %v2276_v5, %v2309_v29 }
 0x568   : >> { %v2313_v44 = vsub.f32 %v2272_v27, %v2305_v31  ;;  %2667 = vst.msk [vmem:[#allocation5] sm:$0xff] %vm2086_vm0, %v2305_v31  ;;  %v2292_v45 = vpop.xlane.xlu1 %2291  ;;  %2339 = vperm.xlu0 %7344, %v2305_v31  }
 0x569   : >> { %v2308_v48 = vmax.f32 %v2275_v36, %v2292_v45  ;;  %v2286_v32 = vpop.xlane.xlu0 %2285  ;;  %v2329_v14 = vmul.f32 1.442695, %v2317_v10 }
 0x56a   : >> { %v2321_v33 = vmul.f32 1.442695, %v2313_v44  ;;  %v2306_v54 = vmax.f32 %v2273_v39, %v2286_v32 }
 0x56b   : >> { %v2316_v58 = vsub.f32 %v2275_v36, %v2308_v48  ;;  %2670 = vst.msk [vmem:[#allocation5 + $0x18] sm:$0xff] %vm2086_vm0, %v2308_v48 }
 0x56c   : >> { %7354 = vpow2.f32 %v2321_v33  ;;  %2668 = vst.msk [vmem:[#allocation5 + $0x8] sm:$0xff] %vm2086_vm0, %v2306_v54  ;;  %v2298_v22 = vpop.xlane.xlu1 %2297  ;;  %v2314_v55 = vsub.f32 %v2273_v39, %v2306_v54 }
 0x56d   : >> { %v2327_v61 = vmul.f32 1.442695, %v2316_v58  ;;  %v2310_v9 = vmax.f32 %v2277_v57, %v2298_v22  ;;  %v2301_v23 = vpop.xlane.xlu0 %2300 }
 0x56e   : >> { %v8756_v34 = vmax.f32 %v8752_v8, %v2301_v23  ;;  %v2323_v19 = vmul.f32 1.442695, %v2314_v55 }
 0x56f   : >> { %v2318_v35 = vsub.f32 %v2277_v57, %v2310_v9  ;;  %2672 = vst.msk [vmem:[#allocation5 + $0x28] sm:$0xff] %vm2086_vm0, %v2310_v9  ;;  %7356 = vpow2.f32 %v2327_v61 }
 0x570   : >> { %v2319_v63 = vsub.f32 %v8752_v8, %v8756_v34  ;;  %2673 = vst.msk [vmem:[#allocation5 + $0x30] sm:$0xff] %vm2086_vm0, %v8756_v34  ;;  %v2304_v0 = vpop.xlane.xlu1 %2303  ;;  %2369 = vperm.xlu1 %7345, %v8756_v34  }
 0x571   : >> { %v2331_v42 = vmul.f32 1.442695, %v2318_v35  ;;  %v8767_v2 = vmax.f32 %v8758_v62, %v2304_v0 }
 0x573   : >> { %7358 = vpow2.f32 %v2331_v42  ;;  %v2320_v6 = vsub.f32 %v8758_v62, %v8767_v2  ;;  %2674 = vst.msk [vmem:[#allocation5 + $0x38] sm:$0xff] %vm2086_vm0, %v8767_v2 }
 0x574   : >> { %2359 = vperm.xlu1 %7345, %v2309_v29   ;;  %7360 = vpow2.f32 %v2325_v7 }
 0x575   : >> { %7362 = vpow2.f32 %v2329_v14  ;;  %v2335_v4 = vmul.f32 1.442695, %v2320_v6 }
 0x576   : >> { %7364 = vpow2.f32 %v2323_v19 }
 0x578   : >> { %2354 = vperm.xlu1 %7345, %v2308_v48  }
 0x579   : >> { %v8773_v11 = vpop.eup %7354 }
 0x57a   : >> { %2467 = vperm.xlu0 %7344, %v8773_v11  }
 0x57c   : >> { %2344 = vperm.xlu1 %7345, %v2306_v54   ;;  %v8776_v18 = vpop.eup %7356 }
 0x57e   : >> { %2482 = vperm.xlu0 %7344, %v8776_v18  }
 0x580   : >> { %v8779_v59 = vpop.eup %7358  ;;  %2364 = vperm.xlu1 %7345, %v2310_v9  }
 0x581   : >> { %v8784_v21 = vpop.eup %7360 }
 0x582   : >> { %2492 = vperm.xlu0 %7344, %v8779_v59   ;;  %v8789_v25 = vpop.eup %7362 }
 0x583   : >> { %v8793_v26 = vpop.eup %7364 }
 0x584   : >> { %2374 = vperm.xlu1 %7345, %v8767_v2  }
 0x588   : >> { %2477 = vperm.xlu1 %7345, %v8784_v21  }
 0x58c   : >> { %2487 = vperm.xlu1 %7345, %v8789_v25  }
 0x590   : >> { %2472 = vperm.xlu1 %7345, %v8793_v26  }
 0x5df   : >> { %v2350_v5 = vpop.permute.xlu1 %2349 }
 0x5e0   : >> { %v2379_v27 = vsub.f32 %v8716_v47, %v2350_v5 }
 0x5e2   : >> { %v2389_v28 = vmul.f32 1.442695, %v2379_v27 }
 0x5e3   : >> { %v2340_v29 = vpop.permute.xlu0 %2339 }
 0x5e4   : >> { %7366 = vpow2.f32 %v2389_v28  ;;  %v2377_v30 = vsub.f32 %v8722_v15, %v2340_v29  ;;  %v2333_v29 = vmul.f32 1.442695, %v2319_v63  ;;  %v2401_v63 = vld [vmem:[#allocation6] sm:$0xff] }
 0x5e6   : >> { %v2385_v31 = vmul.f32 1.442695, %v2377_v30 }
 0x5e8   : >> { %7368 = vpow2.f32 %v2385_v31 }
 0x5eb   : >> { %v2370_v36 = vpop.permute.xlu1 %2369 }
 0x5ec   : >> { %v2383_v39 = vsub.f32 %v8718_v13, %v2370_v36 }
 0x5ee   : >> { %v2397_v44 = vmul.f32 1.442695, %v2383_v39 }
 0x5ef   : >> { %v2360_v45 = vpop.permute.xlu1 %2359 }
 0x5f0   : >> { %7370 = vpow2.f32 %v2397_v44  ;;  %v2381_v48 = vsub.f32 %v8724_v16, %v2360_v45  ;;  %v2403_v45 = vld [vmem:[#allocation6 + $0x10] sm:$0xff] }
 0x5f1   : >> { %v7367_v32 = vpop.eup %7366 }
 0x5f2   : >> { %v2393_v33 = vmul.f32 1.442695, %v2381_v48  ;;  %v2423_v54 = vsel %vm2280_vm1, %v7367_v32, 0.0  ;;  %v2411_v48 = vmul.f32 %v8784_v21, %v2403_v45 }
 0x5f3   : >> { %2424 = vadd.xlane.f32.xlu0 %v2423_v54  ;;  %v2355_v47 = vpop.permute.xlu1 %2354 }
 0x5f4   : >> { %7372 = vpow2.f32 %v2393_v33  ;;  %v2380_v57 = vsub.f32 %v8728_v17, %v2355_v47  ;;  %v2409_v33 = vmul.f32 %v8773_v11, %v2401_v63 }
 0x5f5   : >> { %v7369_v15 = vpop.eup %7368  ;;  %v2468_v6 = vpop.permute.xlu0 %2467 }
 0x5f6   : >> { %v2391_v58 = vmul.f32 1.442695, %v2380_v57  ;;  %v2417_v22 = vsel %vm2280_vm1, %v7369_v15, 0.0  ;;  %v2407_v57 = vld [vmem:[#allocation6 + $0x30] sm:$0xff] }
 0x5f7   : >> { %v2345_v61 = vpop.permute.xlu1 %2344  ;;  %2418 = vadd.xlane.f32.xlu1 %v2417_v22  ;;  %v2405_v22 = vld [vmem:[#allocation6 + $0x20] sm:$0xff] }
 0x5f8   : >> { %7374 = vpow2.f32 %v2391_v58  ;;  %v2378_v13 = vsub.f32 %v8734_v12, %v2345_v61  ;;  %v2413_v21 = vmul.f32 %v8789_v25, %v2405_v22 }
 0x5f9   : >> { %v2483_v36 = vpop.permute.xlu0 %2482 }
 0x5fa   : >> { %v2387_v9 = vmul.f32 1.442695, %v2378_v13 }
 0x5fb   : >> { %v2365_v16 = vpop.permute.xlu1 %2364 }
 0x5fc   : >> { %7376 = vpow2.f32 %v2387_v9  ;;  %v2382_v23 = vsub.f32 %v8736_v56, %v2365_v16  ;;  %v2404_v9 = vld [vmem:[#allocation6 + $0x18] sm:$0xff] }
 0x5fd   : >> { %v7371_v35 = vpop.eup %7370  ;;  %v8824_v44 = vpop.permute.xlu0 %2492  ;;  %v2412_v11 = vmul.f32 %v8776_v18, %v2404_v9 }
 0x5fe   : >> { %v2395_v0 = vmul.f32 1.442695, %v2382_v23  ;;  %v2435_v42 = vsel %vm2280_vm1, %v7371_v35, 0.0 }
 0x5ff   : >> { %2436 = vadd.xlane.f32.xlu0 %v2435_v42  ;;  %v2375_v17 = vpop.permute.xlu1 %2374 }
 0x600   : >> { %7378 = vpow2.f32 %v2395_v0  ;;  %v2384_v3 = vsub.f32 %v8732_v46, %v2375_v17 }
 0x601   : >> { %v7373_v7 = vpop.eup %7372 }
 0x602   : >> { %v2399_v10 = vmul.f32 1.442695, %v2384_v3  ;;  %v2429_v14 = vsel %vm2280_vm1, %v7373_v7, 0.0 }
 0x603   : >> { %2430 = vadd.xlane.f32.xlu0 %v2429_v14  ;;  %v2478_v31 = vpop.permute.xlu1 %2477  ;;  %v2406_v14 = vld [vmem:[#allocation6 + $0x28] sm:$0xff] }
 0x604   : >> { %7380 = vpow2.f32 %v2399_v10  ;;  %v2414_v18 = vmul.f32 %v8779_v59, %v2406_v14  ;;  %v2461_v59 = vld [vmem:[#allocation7 + $0x8] sm:$0xff] }
 0x605   : >> { %v7375_v12 = vpop.eup %7374  ;;  %7382 = vpow2.f32 %v2335_v4 }
 0x606   : >> { %v2426_v55 = vsel %vm2280_vm1, %v7375_v12, 0.0  ;;  %v2514_v60 = vpack.c.bf16 %v7375_v12, %v7367_v32  ;;  %7384 = vpow2.f32 %v2333_v29  ;;  %v2463_v29 = vld [vmem:[#allocation7 + $0x28] sm:$0xff] }
 0x607   : >> { %2427 = vadd.xlane.f32.xlu1 %v2426_v55  ;;  %v8822_v39 = vpop.permute.xlu1 %2487 }
 0x609   : >> { %v7377_v56 = vpop.eup %7376 }
 0x60a   : >> { %v2420_v19 = vsel %vm2280_vm1, %v7377_v56, 0.0  ;;  %v2513_v20 = vpack.c.bf16 %v7377_v56, %v7369_v15 }
 0x60b   : >> { %2421 = vadd.xlane.f32.xlu0 %v2420_v19  ;;  %v2473_v8 = vpop.permute.xlu1 %2472  ;;  %v2459_v19 = vld [vmem:[#allocation7 + $0x18] sm:$0xff] }
 0x60c   : >> { %6939 = vmatprep.mubr.msk.bf16.mxu0 %vm2280_vm1, %v2513_v20  ;;  %v2457_v20 = vld [vmem:[#allocation7 + $0x30] sm:$0xff] }
 0x60d   : >> { %v7379_v24 = vpop.eup %7378  ;;  %6940 = vmatmul.mubr.msk.bf16.vlgmr.msra.gmra.mxu0 %vm2280_vm1, %v2514_v60  ;;  %v2460_v60 = vld [vmem:[#allocation7 + $0x10] sm:$0xff] }
 0x60e   : >> { %v2515_v46 = vpack.c.bf16 %v7379_v24, %v7373_v7  ;;  %v2432_v30 = vsel %vm2280_vm1, %v7379_v24, 0.0  ;;  %v2408_v7 = vld [vmem:[#allocation6 + $0x38] sm:$0xff] }
 0x610   : >> { %6947 = vmatprep.mubr.msk.bf16.mxu1 %vm2280_vm1, %v2515_v46  ;;  %v2505_v46 = vmul.f32 %v2468_v6, %v2457_v20 }
 0x611   : >> { %v7381_v5 = vpop.eup %7380 }
 0x612   : >> { %v2438_v27 = vsel %vm2280_vm1, %v7381_v5, 0.0  ;;  %v2516_v28 = vpack.c.bf16 %v7381_v5, %v7371_v35  ;;  %v7383_v62 = vpop.eup %7382  ;;  %v2402_v35 = vld [vmem:[#allocation6 + $0x8] sm:$0xff]  ;;  %v2458_v5 = vld [vmem:[#allocation7] sm:$0xff] }
 0x613   : >> { %2439 = vadd.xlane.f32.xlu1 %v2438_v27  ;;  %v7385_v2 = vpop.eup %7384  ;;  %v2410_v42 = vmul.f32 %v8793_v26, %v2402_v35  ;;  %v2416_v25 = vmul.f32 %v7383_v62, %v2408_v7  ;;  %v2507_v26 = vmul.f32 %v2478_v31, %v2459_v19  ;;  %v2506_v45 = vmul.f32 %v2473_v8, %v2458_v5 }
 0x614   : >> { %6948 = vmatmul.mubr.msk.bf16.vlgmr.msra.gmra.mxu1 %vm2280_vm1, %v2516_v28  ;;  %v2415_v15 = vmul.f32 %v7385_v2, %v2407_v57  ;;  %v2508_v28 = vmul.f32 %v2483_v36, %v2460_v60  ;;  %v2462_v36 = vld [vmem:[#allocation7 + $0x20] sm:$0xff] }
 0x615   : >> { %v2510_v8 = vmul.f32 %v8824_v44, %v2462_v36 }
 0x617   : >> { %2433 = vadd.xlane.f32.xlu1 %v2432_v30 }
 0x621   : >> { %2502 = vperm.xlu0 %7344, %v7383_v62  }
 0x628   : >> { %2497 = vperm.xlu1 %7345, %v7385_v2  }
 0x67c   : >> { %v2425_v34 = vpop.xlane.xlu0 %2424 }
 0x67d   : >> { %v2443_v32 = vadd.f32 %v2425_v34, %v2411_v48 }
 0x67f   : >> { %2451 = vst.msk [vmem:[#allocation6 + $0x10] sm:$0xff] %vm2086_vm0, %v2443_v32  ;;  %v2464_v32 = vld [vmem:[#allocation7 + $0x38] sm:$0xff] }
 0x680   : >> { %v2419_v54 = vpop.xlane.xlu1 %2418 }
 0x681   : >> { %v2441_v47 = vadd.f32 %v2419_v54, %v2409_v33  ;;  %v2509_v54 = vmul.f32 %v8822_v39, %v2461_v59 }
 0x683   : >> { %2449 = vst.msk [vmem:[#allocation6] sm:$0xff] %vm2086_vm0, %v2441_v47 }
 0x688   : >> { %v2437_v58 = vpop.xlane.xlu0 %2436 }
 0x689   : >> { %v2447_v61 = vadd.f32 %v2437_v58, %v2415_v15 }
 0x68b   : >> { %2455 = vst.msk [vmem:[#allocation6 + $0x30] sm:$0xff] %vm2086_vm0, %v2447_v61 }
 0x68c   : >> { %v2431_v13 = vpop.xlane.xlu0 %2430 }
 0x68d   : >> { %v2445_v16 = vadd.f32 %v2431_v13, %v2413_v21 }
 0x68f   : >> { %2453 = vst.msk [vmem:[#allocation6 + $0x20] sm:$0xff] %vm2086_vm0, %v2445_v16 }
 0x690   : >> { %v2428_v23 = vpop.xlane.xlu1 %2427 }
 0x691   : >> { %v2444_v0 = vadd.f32 %v2428_v23, %v2412_v11 }
 0x693   : >> { %2452 = vst.msk [vmem:[#allocation6 + $0x18] sm:$0xff] %vm2086_vm0, %v2444_v0 }
 0x694   : >> { %v2422_v17 = vpop.xlane.xlu0 %2421 }
 0x695   : >> { %v2442_v3 = vadd.f32 %v2422_v17, %v2410_v42 }
 0x697   : >> { %2450 = vst.msk [vmem:[#allocation6 + $0x8] sm:$0xff] %vm2086_vm0, %v2442_v3 }
 0x69c   : >> { %v2440_v10 = vpop.xlane.xlu1 %2439  ;;  %v2503_v31 = vpop.permute.xlu0 %2502 }
 0x69d   : >> { %v2448_v12 = vadd.f32 %v2440_v10, %v2416_v25  ;;  %v2512_v15 = vmul.f32 %v2503_v31, %v2464_v32 }
 0x69f   : >> { %2456 = vst.msk [vmem:[#allocation6 + $0x38] sm:$0xff] %vm2086_vm0, %v2448_v12 }
 0x6a0   : >> { %v2434_v55 = vpop.xlane.xlu1 %2433 }
 0x6a1   : >> { %v2446_v56 = vadd.f32 %v2434_v55, %v2414_v18 }
 0x6a3   : >> { %2454 = vst.msk [vmem:[#allocation6 + $0x28] sm:$0xff] %vm2086_vm0, %v2446_v56 }
 0x6a4   : >> { %v2498_v30 = vpop.permute.xlu1 %2497 }
 0x6a5   : >> { %v2511_v34 = vmul.f32 %v2498_v30, %v2463_v29 }
 0x6cd   : >> { %v6941_v24 = vpop.f32.mrf.mxu0 }
 0x6ce   : >> { %v2653_v4 = vadd.f32 %v6941_v24, %v2507_v26 }
 0x6cf   : >> { %v2569_v27 = vpop.f32.mrf.mxu0 }
 0x6d0   : >> { %2661 = vst [vmem:[#allocation7 + $0x18] sm:$0xff] %v2653_v4  ;;  %v2651_v62 = vadd.f32 %v2569_v27, %v2505_v46 }
 0x6d1   : >> { %v6942_v2 = vpop.f32.mrf.mxu0 }
 0x6d2   : >> { %2659 = vst [vmem:[#allocation7 + $0x30] sm:$0xff] %v2651_v62  ;;  %v2654_v48 = vadd.f32 %v6942_v2, %v2508_v28 }
 0x6d3   : >> { %v2572_v63 = vpop.f32.mrf.mxu0 }
 0x6d4   : >> { %2662 = vst [vmem:[#allocation7 + $0x10] sm:$0xff] %v2654_v48  ;;  %v2652_v33 = vadd.f32 %v2572_v63, %v2506_v45  ;;  %v6949_v6 = vpop.f32.mrf.mxu1 }
 0x6d5   : >> { %v2657_v47 = vadd.f32 %v6949_v6, %v2511_v34 }
 0x6d6   : >> { %2660 = vst [vmem:[#allocation7] sm:$0xff] %v2652_v33  ;;  %v2636_v57 = vpop.f32.mrf.mxu1 }
 0x6d7   : >> { %2665 = vst [vmem:[#allocation7 + $0x28] sm:$0xff] %v2657_v47  ;;  %v2655_v58 = vadd.f32 %v2636_v57, %v2509_v54 }
 0x6d8   : >> { %v6950_v22 = vpop.f32.mrf.mxu1 }
 0x6d9   : >> { %2663 = vst [vmem:[#allocation7 + $0x8] sm:$0xff] %v2655_v58  ;;  %v2658_v61 = vadd.f32 %v6950_v22, %v2512_v15  ;;  %2126 = sbr.rel (!%p2123_p10) target bundleno = 1025 (0x401), region = 170 }
 0x6da   : >> { %v2639_v21 = vpop.f32.mrf.mxu1 }
 0x6db   : >> { %2666 = vst [vmem:[#allocation7 + $0x38] sm:$0xff] %v2658_v61  ;;  %v2656_v13 = vadd.f32 %v2639_v21, %v2510_v8 }
 0x6dd   : >> { %2664 = vst [vmem:[#allocation7 + $0x20] sm:$0xff] %v2656_v13 }
 0x6de PF: > { %s6281_s4 = sshll.u32 %s1800_s1, 2  ;;  %6955 = vmatprep.mubr.bf16.mxu1 %v8695_v43  ;;  %v2818_v43 = vand.u32 127, %v2111_v40  ;;  %vm2848_vm3 = vcmask 261120   ;;  %v8131_v25 = vmov 0   ;;  %v8908_v24 = vld [vmem:[#allocation5 + $0x10] sm:$0xff]  ;;  %v8910_v46 = vld [vmem:[#allocation5] sm:$0xff] }
 0x6df   : > { %s2676_s3 = scalar_lea.vmem [#allocation3], %s6281_s4  ;;  %s8849_s24 = scalar_lea.vmem [#allocation4], %s6281_s4  ;;  %7387 = vset.pattern.permute.xlu1 %v8131_v25  ;;  %7386 = vset.pattern.permute.xlu0 %v8131_v25  ;;  %v8915_v27 = vld [vmem:[#allocation5 + $0x18] sm:$0xff]  ;;  %v8925_v30 = vld [vmem:[#allocation5 + $0x8] sm:$0xff]  ;;  %v8949_v32 = vld [vmem:[#allocation5 + $0x20] sm:$0xff] }
 0x6e0   : > { %v7388_v39 = vld [vmem:[%s2676_s3 + $0x8] sm:$0xff]   ;;  %v7389_v44 = vld [vmem:[%s2676_s3] sm:$0xff]   ;;  %v2819_v11 = vadd.s32 %v2818_v43, %v8664_v49  ;;  %v8954_v6 = vld [vmem:[#allocation5 + $0x30] sm:$0xff]  ;;  %s9545_s9 = sld [smem:[#allocation36_spill]]  ;;  %s6633_s7 = sshll.u32 %s1800_s1, 4 }
 0x6e1   : > { %6951 = vmatprep.subr.bf16.mxu1 %v7388_v39  ;;  %v7390_v9 = vld [vmem:[%s2676_s3 + $0x28] sm:$0xff]   ;;  %v7391_v16 = vld [vmem:[%s2676_s3 + $0x20] sm:$0xff]   ;;  %v8969_v8 = vld [vmem:[#allocation5 + $0x38] sm:$0xff]  ;;  %s9084_s25 = scalar_lea.vmem %s8424_s8, %s6633_s7 [#allocation8]  ;;  %s9546_s1 = sld [smem:[#allocation39_spill]] }
 0x6e2   : > { %6952 = vmatpush3.bf16.xpose.msra.mxu1 %v7388_v39  ;;  %vm2822_vm2 = vcmp.gt.s32.totalorder %v2819_v11, %v8690_v52  ;;  %vm2820_vm4 = vcmp.gt.s32.totalorder %v2819_v11, %v8684_v50  ;;  %vm2823_vm5 = vcmp.gt.s32.totalorder %v2819_v11, %v8693_v53  ;;  %vm2821_vm6 = vcmp.gt.s32.totalorder %v2819_v11, %v8687_v51  ;;  %v7392_v63 = vld [vmem:[%s8849_s24 + $0x8] sm:$0xff]   ;;  %v7393_v22 = vld [vmem:[%s8849_s24] sm:$0xff]   ;;  %s9547_s2 = sld [smem:[#allocation42_spill]]  ;;  %s5926_s8 = sshll.u32 %s8452_s16, 4  ;;  %s9408_s8 = int_to_ptr.vmem [resolvable:$true] %s5926_s8 }
 0x6e3   : > { %6953 = vmatprep.subr.bf16.mxu1 %v7389_v44  ;;  %v8956_v54 = vld [vmem:[#allocation5 + $0x28] sm:$0xff]  ;;  %s9549_s28 = sld [smem:[#allocation29_spill]]  ;;  %s9420_s4 = scalar_lea.sflag [#allocation10], %s597_s12 }
 0x6e4   : > { %s9550_s10 = sld [smem:[#allocation30_spill]]  ;;  %s7966_s3 = scalar_lea.vmem %s9408_s8, 1024 }
 0x6e5   : > { %s9551_s27 = sld [smem:[#allocation45_spill]]  ;;  %p7967_p9 = scmp.ne.s32.totalorder %s9408_s8, %s7966_s3 }
 0x6e7   : > { %p7968_p11 = pnand %p7967_p9, %p8391_p6 }
 0x6e9   : > { %p7969_p12 = pneg %p7968_p11 }
 0x6ea   : > { %6954 = vmatpush3.bf16.xpose.msra.mxu1 %v7389_v44  ;;  %s6587_s7 = sshll.u32 %s9550_s10, 4 }
 0x6eb   : > { %6959 = vmatprep.subr.bf16.mxu1 %v7390_v9 }
 0x6f1   : > { %6956 = vmatmul.mubr.bf16.vlgmr.msra.gmra.mxu1 %v8697_v1 }
 0x6f2   : > { %6960 = vmatpush3.bf16.xpose.msra.mxu1 %v7390_v9  ;;  %6963 = vmatprep.mubr.bf16.mxu1 %v8699_v37  ;;  %v7394_v9 = vld [vmem:[%s8849_s24 + $0x28] sm:$0xff]  }
 0x6f3   : > { %6961 = vmatprep.subr.bf16.mxu1 %v7391_v16 }
 0x6fa   : > { %6962 = vmatpush3.bf16.xpose.msra.mxu1 %v7391_v16 }
 0x6fb   : > { %6967 = vmatprep.subr.bf16.mxu1 %v7392_v63 }
 0x701   : > { %6964 = vmatmul.mubr.bf16.vlgmr.msra.gmra.mxu1 %v8701_v38 }
 0x702   : > { %6968 = vmatpush3.bf16.msra.mxu1 %v7392_v63 }
 0x703   : > { %6969 = vmatprep.subr.bf16.mxu1 %v7393_v22 }
 0x706   : > { %6970 = vmatpush3.bf16.msra.mxu1 %v7393_v22 }
 0x707   : > { %6975 = vmatprep.subr.bf16.mxu1 %v7394_v9 }
 0x7b1   : > { %v6957_v23 = vpop.f32.mrf.mxu1 }
 0x7b2   : > { %v8860_v1 = vsel %vm2822_vm2, -1e+30, %v6957_v23 }
 0x7b3   : > { %v2741_v35 = vpop.f32.mrf.mxu1  ;;  %v2855_v37 = vsel %vm2848_vm3, %v8860_v1, -inf }
 0x7b4   : > { %v8867_v40 = vsel %vm2820_vm4, -1e+30, %v2741_v35  ;;  %2856 = vmax.xlane.f32.xlu1 %v2855_v37 }
 0x7b5   : > { %v6958_v49 = vpop.f32.mrf.mxu1  ;;  %v2849_v38 = vsel %vm2848_vm3, %v8867_v40, -inf }
 0x7b6   : > { %v8874_v0 = vsel %vm2823_vm5, -1e+30, %v6958_v49  ;;  %2850 = vmax.xlane.f32.xlu0 %v2849_v38 }
 0x7b7   : > { %v2744_v42 = vpop.f32.mrf.mxu1  ;;  %v2858_v17 = vsel %vm2848_vm3, %v8874_v0, -inf }
 0x7b8   : > { %v8880_v3 = vsel %vm2821_vm6, -1e+30, %v2744_v42  ;;  %2859 = vmax.xlane.f32.xlu1 %v2858_v17 }
 0x7b9   : > { %v2852_v7 = vsel %vm2848_vm3, %v8880_v3, -inf }
 0x7ba   : > { %2853 = vmax.xlane.f32.xlu0 %v2852_v7 }
 0x7c1   : > { %v6965_v10 = vpop.f32.mrf.mxu1 }
 0x7c2   : > { %v8892_v56 = vsel %vm2822_vm2, -1e+30, %v6965_v10 }
 0x7c3   : > { %v2802_v14 = vpop.f32.mrf.mxu1  ;;  %v2867_v26 = vsel %vm2848_vm3, %v8892_v56, -inf }
 0x7c4   : > { %v8886_v12 = vsel %vm2820_vm4, -1e+30, %v2802_v14 }
 0x7c5   : > { %v6966_v18 = vpop.f32.mrf.mxu1  ;;  %v2861_v55 = vsel %vm2848_vm3, %v8886_v12, -inf }
 0x7c6   : > { %2862 = vmax.xlane.f32.xlu0 %v2861_v55  ;;  %v8904_v60 = vsel %vm2823_vm5, -1e+30, %v6966_v18 }
 0x7c7   : > { %v2805_v19 = vpop.f32.mrf.mxu1  ;;  %v2870_v52 = vsel %vm2848_vm3, %v8904_v60, -inf }
 0x7c8   : > { %v8896_v20 = vsel %vm2821_vm6, -1e+30, %v2805_v19 }
 0x7c9   : > { %v2864_v50 = vsel %vm2848_vm3, %v8896_v20, -inf }
 0x7ca   : > { %2868 = vmax.xlane.f32.xlu0 %v2867_v26  ;;  %2865 = vmax.xlane.f32.xlu1 %v2864_v50  ;;  %v7395_v50 = vld [vmem:[%s8849_s24 + $0x20] sm:$0xff]   ;;  %s9548_s24 = sld [smem:[#allocation44_spill]] }
 0x7ce   : > { %2871 = vmax.xlane.f32.xlu1 %v2870_v52 }
 0x83d   : > { %v2857_v51 = vpop.xlane.xlu1 %2856 }
 0x83e   : > { %v8913_v4 = vmax.f32 %v8908_v24, %v2857_v51 }
 0x83f   : > { %v2851_v5 = vpop.xlane.xlu0 %2850 }
 0x840   : > { %v2883_v53 = vsub.f32 %v8908_v24, %v8913_v4  ;;  %3237 = vst.msk [vmem:[#allocation5 + $0x10] sm:$0xff] %vm2086_vm0, %v8913_v4  ;;  %v8922_v28 = vmax.f32 %v8910_v46, %v2851_v5  ;;  %2917 = vperm.xlu1 %7387, %v8913_v4  }
 0x841   : > { %v2860_v29 = vpop.xlane.xlu1 %2859 }
 0x842   : > { %v2881_v62 = vsub.f32 %v8910_v46, %v8922_v28  ;;  %3235 = vst.msk [vmem:[#allocation5] sm:$0xff] %vm2086_vm0, %v8922_v28  ;;  %v8932_v2 = vmax.f32 %v8915_v27, %v2860_v29  ;;  %2907 = vperm.xlu0 %7386, %v8922_v28  }
 0x843   : > { %v2854_v59 = vpop.xlane.xlu0 %2853 }
 0x844   : > { %v2884_v45 = vsub.f32 %v8915_v27, %v8932_v2  ;;  %3238 = vst.msk [vmem:[#allocation5 + $0x18] sm:$0xff] %vm2086_vm0, %v8932_v2  ;;  %v8940_v48 = vmax.f32 %v8925_v30, %v2854_v59  ;;  %2922 = vperm.xlu1 %7387, %v8932_v2  }
 0x846   : > { %v2882_v34 = vsub.f32 %v8925_v30, %v8940_v48  ;;  %3236 = vst.msk [vmem:[#allocation5 + $0x8] sm:$0xff] %vm2086_vm0, %v8940_v48  ;;  %v7396_v30 = vld [vmem:[#allocation16 + $0x74] ss:$8 sps:$4 sm:$0xff]  }
 0x847   : > { %3523 = vmatprep.subr.bf16.mxu0 %v7396_v30 }
 0x848   : > { %2912 = vperm.xlu1 %7387, %v8940_v48   ;;  %v7398_v48 = vld [vmem:[#allocation16 + $0x70] ss:$8 sps:$4 sm:$0xff]  }
 0x849   : > { %3524 = vmatpush1.bf16.msra.mxu0 %v7398_v48 }
 0x84f   : > { %v2863_v31 = vpop.xlane.xlu0 %2862 }
 0x850   : > { %v8952_v33 = vmax.f32 %v8949_v32, %v2863_v31 }
 0x852   : > { %v2885_v47 = vsub.f32 %v8949_v32, %v8952_v33  ;;  %3239 = vst.msk [vmem:[#allocation5 + $0x20] sm:$0xff] %vm2086_vm0, %v8952_v33  ;;  %v7401_v32 = vld [vmem:[#allocation16 + $0x60] ss:$8 sps:$4 sm:$0xff]  }
 0x853   : > { %v2869_v36 = vpop.xlane.xlu0 %2868  ;;  %v2866_v57 = vpop.xlane.xlu1 %2865 }
 0x854   : > { %v8963_v15 = vmax.f32 %v8954_v6, %v2869_v36  ;;  %v8966_v58 = vmax.f32 %v8956_v54, %v2866_v57 }
 0x856   : > { %v2887_v61 = vsub.f32 %v8954_v6, %v8963_v15  ;;  %3241 = vst.msk [vmem:[#allocation5 + $0x30] sm:$0xff] %vm2086_vm0, %v8963_v15  ;;  %v2886_v21 = vsub.f32 %v8956_v54, %v8966_v58  ;;  %3240 = vst.msk [vmem:[#allocation5 + $0x28] sm:$0xff] %vm2086_vm0, %v8966_v58  ;;  %2937 = vperm.xlu1 %7387, %v8963_v15   ;;  %v2897_v54 = vmul.f32 1.442695, %v2885_v47  ;;  %v7404_v47 = vld [vmem:[#allocation16 + $0x50] ss:$8 sps:$4 sm:$0xff]  }
 0x857   : > { %v2872_v13 = vpop.xlane.xlu1 %2871 }
 0x858   : > { %v8981_v39 = vmax.f32 %v8969_v8, %v2872_v13 }
 0x85a   : > { %v2888_v44 = vsub.f32 %v8969_v8, %v8981_v39  ;;  %3242 = vst.msk [vmem:[#allocation5 + $0x38] sm:$0xff] %vm2086_vm0, %v8981_v39  ;;  %2927 = vperm.xlu1 %7387, %v8952_v33   ;;  %v7402_v33 = vld [vmem:[#allocation16 + $0x54] ss:$8 sps:$4 sm:$0xff]   ;;  %v2893_v8 = vmul.f32 1.442695, %v2883_v53  ;;  %v2969_v53 = vld [vmem:[#allocation6] sm:$0xff] }
 0x85e   : > { %2932 = vperm.xlu1 %7387, %v8966_v58   ;;  %v2891_v58 = vmul.f32 1.442695, %v2882_v34  ;;  %v7399_v34 = vld [vmem:[#allocation16 + $0x64] ss:$8 sps:$4 sm:$0xff]  }
 0x85f   : > { %3525 = vmatprep.subr.bf16.mxu0 %v7399_v34 }
 0x860   : > { %3526 = vmatpush1.bf16.msra.mxu0 %v7401_v32 }
 0x861   : > { %3527 = vmatprep.subr.bf16.mxu0 %v7402_v33 }
 0x862   : > { %2942 = vperm.xlu1 %7387, %v8981_v39   ;;  %v2973_v39 = vld [vmem:[#allocation6 + $0x20] sm:$0xff] }
 0x864   : > { %3528 = vmatpush1.bf16.msra.mxu0 %v7404_v47 }
 0x8bb   : > { %v2918_v16 = vpop.permute.xlu1 %2917 }
 0x8bc   : > { %v2947_v37 = vsub.f32 %v8860_v1, %v2918_v16 }
 0x8bd   : > { %v2908_v43 = vpop.permute.xlu0 %2907 }
 0x8be   : > { %v2945_v11 = vsub.f32 %v8867_v40, %v2908_v43  ;;  %v2957_v7 = vmul.f32 1.442695, %v2947_v37 }
 0x8bf   : > { %v2923_v23 = vpop.permute.xlu1 %2922 }
 0x8c0   : > { %v2948_v35 = vsub.f32 %v8874_v0, %v2923_v23  ;;  %v2953_v49 = vmul.f32 1.442695, %v2945_v11  ;;  %v2899_v23 = vmul.f32 1.442695, %v2886_v21 }
 0x8c2   : > { %v2959_v38 = vmul.f32 1.442695, %v2948_v35  ;;  %7636 = vpow2.f32 %v2953_v49  ;;  %v2889_v49 = vmul.f32 1.442695, %v2881_v62 }
 0x8c3   : > { %v2913_v42 = vpop.permute.xlu1 %2912 }
 0x8c4   : > { %v2946_v17 = vsub.f32 %v8880_v3, %v2913_v42  ;;  %7638 = vpow2.f32 %v2959_v38  ;;  %v7405_v42 = vld [vmem:[#allocation16 + $0x44] ss:$8 sps:$4 sm:$0xff]  }
 0x8c5   : > { %3529 = vmatprep.subr.bf16.mxu0 %v7405_v42 }
 0x8c6   : > { %v2955_v25 = vmul.f32 1.442695, %v2946_v17  ;;  %v7407_v17 = vld [vmem:[#allocation16 + $0x40] ss:$8 sps:$4 sm:$0xff]  }
 0x8c7   : > { %3530 = vmatpush1.bf16.msra.mxu0 %v7407_v17  ;;  %v7435_v17 = vld [vmem:[#allocation16 + $0xa4] ss:$8 sps:$4 sm:$0xff]  }
 0x8c8   : > { %7640 = vpow2.f32 %v2955_v25  ;;  %v7410_v25 = vld [vmem:[#allocation16 + $0x30] ss:$8 sps:$4 sm:$0xff]  }
 0x8c9   : > { %7642 = vpow2.f32 %v2957_v7  ;;  %v7408_v7 = vld [vmem:[#allocation16 + $0x34] ss:$8 sps:$4 sm:$0xff]  }
 0x8ca   : > { %3531 = vmatprep.subr.bf16.mxu0 %v7408_v7  ;;  %v7437_v7 = vld [vmem:[#allocation16 + $0xa0] ss:$8 sps:$4 sm:$0xff]  }
 0x8cb   : > { %3532 = vmatpush1.bf16.msra.mxu0 %v7410_v25 }
 0x8cf   : > { %v7637_v14 = vpop.eup %7636 }
 0x8d0   : > { %v2985_v16 = vsel %vm2848_vm3, %v7637_v14, 0.0 }
 0x8d1   : > { %v2938_v10 = vpop.permute.xlu1 %2937  ;;  %v7639_v40 = vpop.eup %7638 }
 0x8d2   : > { %v2951_v3 = vsub.f32 %v8892_v56, %v2938_v10  ;;  %v2994_v37 = vsel %vm2848_vm3, %v7639_v40, 0.0  ;;  %v7411_v10 = vld [vmem:[#allocation16 + $0x24] ss:$8 sps:$4 sm:$0xff]  }
 0x8d3   : > { %3533 = vmatprep.subr.bf16.mxu0 %v7411_v10  ;;  %v7438_v10 = vld [vmem:[#allocation16 + $0x94] ss:$8 sps:$4 sm:$0xff]  }
 0x8d4   : > { %v2965_v59 = vmul.f32 1.442695, %v2951_v3  ;;  %v7428_v3 = vld [vmem:[#allocation16 + $0xd0] ss:$8 sps:$4 sm:$0xff]  }
 0x8d5   : > { %v7641_v18 = vpop.eup %7640  ;;  %v2928_v55 = vpop.permute.xlu1 %2927 }
 0x8d6   : > { %v7643_v0 = vpop.eup %7642  ;;  %v2949_v1 = vsub.f32 %v8886_v12, %v2928_v55  ;;  %v3081_v19 = vpack.c.bf16 %v7641_v18, %v7637_v14  ;;  %v2988_v22 = vsel %vm2848_vm3, %v7641_v18, 0.0  ;;  %v7413_v14 = vld [vmem:[#allocation16 + $0x20] ss:$8 sps:$4 sm:$0xff]   ;;  %v7416_v18 = vld [vmem:[#allocation16 + $0x10] ss:$8 sps:$4 sm:$0xff]  }
 0x8d7   : > { %v3082_v26 = vpack.c.bf16 %v7639_v40, %v7643_v0  ;;  %v2991_v38 = vsel %vm2848_vm3, %v7643_v0, 0.0  ;;  %v7414_v40 = vld [vmem:[#allocation16 + $0x14] ss:$8 sps:$4 sm:$0xff]   ;;  %3534 = vmatpush1.bf16.msra.mxu0 %v7413_v14  ;;  %v7417_v55 = vld [vmem:[#allocation16 + $0x4] ss:$8 sps:$4 sm:$0xff]  }
 0x8d8   : > { %v2961_v52 = vmul.f32 1.442695, %v2949_v1  ;;  %6971 = vmatprep.mubr.msk.bf16.mxu1 %vm2848_vm3, %v3081_v19  ;;  %3535 = vmatprep.subr.bf16.mxu0 %v7414_v40  ;;  %v7419_v0 = vld [vmem:[#allocation16] ss:$8 sps:$4 sm:$0xff]   ;;  %v7420_v1 = vld [vmem:[#allocation16 + $0xf4] ss:$8 sps:$4 sm:$0xff]  }
 0x8d9   : > { %6972 = vmatmul.mubr.msk.bf16.vlgmr.msra.gmra.mxu1 %vm2848_vm3, %v3082_v26  ;;  %v2933_v51 = vpop.permute.xlu1 %2932  ;;  %v7422_v19 = vld [vmem:[#allocation16 + $0xf0] ss:$8 sps:$4 sm:$0xff]   ;;  %v7423_v26 = vld [vmem:[#allocation16 + $0xe4] ss:$8 sps:$4 sm:$0xff]  }
 0x8da   : > { %7644 = vpow2.f32 %v2961_v52  ;;  %v2950_v5 = vsub.f32 %v8896_v20, %v2933_v51  ;;  %6976 = vmatpush3.bf16.msra.mxu1 %v7394_v9  ;;  %v7426_v52 = vld [vmem:[#allocation16 + $0xd4] ss:$8 sps:$4 sm:$0xff]   ;;  %v7429_v51 = vld [vmem:[#allocation16 + $0xc4] ss:$8 sps:$4 sm:$0xff]   ;;  %v7440_v14 = vld [vmem:[#allocation16 + $0x90] ss:$8 sps:$4 sm:$0xff]  }
 0x8db   : > { %6977 = vmatprep.subr.bf16.mxu1 %v7395_v50  ;;  %3536 = vmatpush1.bf16.msra.mxu0 %v7416_v18 }
 0x8dc   : > { %v2963_v29 = vmul.f32 1.442695, %v2950_v5  ;;  %3537 = vmatprep.subr.bf16.mxu0 %v7417_v55  ;;  %v2903_v5 = vmul.f32 1.442695, %v2888_v44  ;;  %v2970_v44 = vld [vmem:[#allocation6 + $0x8] sm:$0xff] }
 0x8dd   : > { %v2943_v63 = vpop.permute.xlu1 %2942 }
 0x8de   : > { %7646 = vpow2.f32 %v2963_v29  ;;  %v2952_v12 = vsub.f32 %v8904_v60, %v2943_v63  ;;  %6978 = vmatpush3.bf16.msra.mxu1 %v7395_v50  ;;  %v7425_v50 = vld [vmem:[#allocation16 + $0xe0] ss:$8 sps:$4 sm:$0xff]   ;;  %v2895_v63 = vmul.f32 1.442695, %v2884_v45 }
 0x8df   : > { %7648 = vpow2.f32 %v2965_v59  ;;  %3538 = vmatpush1.bf16.msra.mxu0 %v7419_v0  ;;  %v7431_v29 = vld [vmem:[#allocation16 + $0xc0] ss:$8 sps:$4 sm:$0xff]   ;;  %v7432_v59 = vld [vmem:[#allocation16 + $0xb4] ss:$8 sps:$4 sm:$0xff]   ;;  %v7441_v0 = vld [vmem:[#allocation16 + $0x84] ss:$8 sps:$4 sm:$0xff]  }
 0x8e0   : > { %v2967_v31 = vmul.f32 1.442695, %v2952_v12  ;;  %3539 = vmatprep.subr.bf16.mxu0 %v7420_v1  ;;  %v2901_v12 = vmul.f32 1.442695, %v2887_v61  ;;  %v2974_v45 = vld [vmem:[#allocation6 + $0x28] sm:$0xff] }
 0x8e1   : > { %v7443_v1 = vld [vmem:[#allocation16 + $0x80] ss:$8 sps:$4 sm:$0xff]  }
 0x8e2   : > { %7650 = vpow2.f32 %v2967_v31  ;;  %v7434_v31 = vld [vmem:[#allocation16 + $0xb0] ss:$8 sps:$4 sm:$0xff]  }
 0x8e3   : > { %7652 = vpow2.f32 %v2899_v23  ;;  %3540 = vmatpush2.bf16.msra.mxu0 %v7422_v19  ;;  %v2972_v23 = vld [vmem:[#allocation6 + $0x18] sm:$0xff] }
 0x8e4   : > { %7654 = vpow2.f32 %v2889_v49  ;;  %3541 = vmatprep.subr.bf16.mxu0 %v7423_v26 }
 0x8e5   : > { %7656 = vpow2.f32 %v2897_v54 }
 0x8e6   : > { %7658 = vpow2.f32 %v2891_v58 }
 0x8e7   : > { %v7645_v36 = vpop.eup %7644  ;;  %3542 = vmatpush2.bf16.msra.mxu0 %v7425_v50  ;;  %7660 = vpow2.f32 %v2903_v5  ;;  %v3025_v5 = vld [vmem:[#allocation7 + $0x30] sm:$0xff] }
 0x8e8   : > { %v2997_v56 = vsel %vm2848_vm3, %v7645_v36, 0.0  ;;  %3543 = vmatprep.subr.bf16.mxu0 %v7426_v52  ;;  %7662 = vpow2.f32 %v2895_v63 }
 0x8e9   : > { %2998 = vadd.xlane.f32.xlu1 %v2997_v56  ;;  %7664 = vpow2.f32 %v2901_v12  ;;  %v2976_v56 = vld [vmem:[#allocation6 + $0x38] sm:$0xff]  ;;  %v3026_v12 = vld [vmem:[#allocation7] sm:$0xff] }
 0x8ea   : > { %7666 = vpow2.f32 %v2893_v8 }
 0x8eb   : > { %v7647_v57 = vpop.eup %7646  ;;  %3544 = vmatpush2.bf16.msra.mxu0 %v7428_v3 }
 0x8ec   : > { %v3000_v20 = vsel %vm2848_vm3, %v7647_v57, 0.0  ;;  %v3083_v13 = vpack.c.bf16 %v7647_v57, %v7645_v36  ;;  %v7649_v9 = vpop.eup %7648  ;;  %3545 = vmatprep.subr.bf16.mxu0 %v7429_v51 }
 0x8ed   : > { %2989 = vadd.xlane.f32.xlu1 %v2988_v22  ;;  %3001 = vadd.xlane.f32.xlu0 %v3000_v20  ;;  %v3003_v35 = vsel %vm2848_vm3, %v7649_v9, 0.0 }
 0x8ee   : > { %6979 = vmatprep.mubr.msk.bf16.mxu1 %vm2848_vm3, %v3083_v13 }
 0x8ef   : > { %v7651_v60 = vpop.eup %7650  ;;  %3546 = vmatpush2.bf16.msra.mxu0 %v7431_v29 }
 0x8f0   : > { %v3006_v43 = vsel %vm2848_vm3, %v7651_v60, 0.0  ;;  %v3084_v11 = vpack.c.bf16 %v7651_v60, %v7649_v9  ;;  %v9024_v21 = vpop.eup %7652  ;;  %3547 = vmatprep.subr.bf16.mxu0 %v7432_v59 }
 0x8f1   : > { %2986 = vadd.xlane.f32.xlu0 %v2985_v16  ;;  %3007 = vadd.xlane.f32.xlu1 %v3006_v43  ;;  %v9027_v46 = vpop.eup %7654  ;;  %v2982_v15 = vmul.f32 %v9024_v21, %v2974_v45 }
 0x8f2   : > { %6980 = vmatmul.mubr.msk.bf16.vlgmr.msra.gmra.mxu1 %vm2848_vm3, %v3084_v11  ;;  %v9030_v28 = vpop.eup %7656  ;;  %v2977_v13 = vmul.f32 %v9027_v46, %v2969_v53  ;;  %v2975_v11 = vld [vmem:[#allocation6 + $0x30] sm:$0xff] }
 0x8f3   : > { %v9033_v62 = vpop.eup %7658  ;;  %3548 = vmatpush2.bf16.msra.mxu0 %v7434_v31  ;;  %v2981_v27 = vmul.f32 %v9030_v28, %v2973_v39 }
 0x8f4   : > { %v2978_v61 = vmul.f32 %v9033_v62, %v2970_v44  ;;  %v9052_v36 = vpop.eup %7660  ;;  %3549 = vmatprep.subr.bf16.mxu0 %v7435_v17 }
 0x8f5   : > { %3004 = vadd.xlane.f32.xlu0 %v3003_v35  ;;  %2995 = vadd.xlane.f32.xlu1 %v2994_v37  ;;  %v9054_v20 = vpop.eup %7662  ;;  %v2984_v9 = vmul.f32 %v9052_v36, %v2976_v56  ;;  %v3030_v56 = vld [vmem:[#allocation7 + $0x20] sm:$0xff] }
 0x8f6   : > { %v7665_v60 = vpop.eup %7664  ;;  %v2980_v54 = vmul.f32 %v9054_v20, %v2972_v23 }
 0x8f7   : > { %v7667_v58 = vpop.eup %7666  ;;  %3550 = vmatpush2.bf16.msra.mxu0 %v7437_v7 }
 0x8f8   : > { %3551 = vmatprep.subr.bf16.mxu0 %v7438_v10 }
 0x8f9   : > { %2992 = vadd.xlane.f32.xlu0 %v2991_v38  ;;  %v2983_v38 = vmul.f32 %v7665_v60, %v2975_v11 }
 0x8fb   : > { %3552 = vmatpush2.bf16.msra.mxu0 %v7440_v14 }
 0x8fc   : > { %3553 = vmatprep.subr.bf16.mxu0 %v7441_v0 }
 0x8ff   : > { %3554 = vmatpush2.bf16.msra.mxu0 %v7443_v1 }
 0x906   : > { %3060 = vperm.xlu1 %7387, %v9024_v21  }
 0x90a   : > { %3035 = vperm.xlu1 %7387, %v9027_v46  }
 0x90f   : > { %3055 = vperm.xlu0 %7386, %v9030_v28   ;;  %v2971_v28 = vld [vmem:[#allocation6 + $0x10] sm:$0xff] }
 0x910   : > { %v2979_v34 = vmul.f32 %v7667_v58, %v2971_v28 }
 0x913   : > { %3040 = vperm.xlu0 %7386, %v9033_v62  }
 0x972   : > { %v2999_v2 = vpop.xlane.xlu1 %2998 }
 0x973   : > { %v3013_v6 = vadd.f32 %v2999_v2, %v2981_v27 }
 0x975   : > { %3021 = vst.msk [vmem:[#allocation6 + $0x20] sm:$0xff] %vm2086_vm0, %v3013_v6 }
 0x976   : > { %v3002_v24 = vpop.xlane.xlu0 %3001  ;;  %v2990_v4 = vpop.xlane.xlu1 %2989 }
 0x977   : > { %v3014_v57 = vadd.f32 %v3002_v24, %v2982_v15  ;;  %v3010_v22 = vadd.f32 %v2990_v4, %v2978_v61  ;;  %v3029_v24 = vld [vmem:[#allocation7 + $0x8] sm:$0xff] }
 0x979   : > { %3022 = vst.msk [vmem:[#allocation6 + $0x28] sm:$0xff] %vm2086_vm0, %v3014_v57  ;;  %3018 = vst.msk [vmem:[#allocation6 + $0x8] sm:$0xff] %vm2086_vm0, %v3010_v22 }
 0x97a   : > { %v2987_v16 = vpop.xlane.xlu0 %2986  ;;  %v3008_v43 = vpop.xlane.xlu1 %3007 }
 0x97b   : > { %v3009_v35 = vadd.f32 %v2987_v16, %v2977_v13  ;;  %v3016_v37 = vadd.f32 %v3008_v43, %v2984_v9 }
 0x97c   : > { %v3255_v49 = vld [vmem:[#allocation6 + $0x20] sm:$0xff] }
 0x97d   : > { %3017 = vst.msk [vmem:[#allocation6] sm:$0xff] %vm2086_vm0, %v3009_v35  ;;  %3024 = vst.msk [vmem:[#allocation6 + $0x38] sm:$0xff] %vm2086_vm0, %v3016_v37  ;;  %7668 = vrcp.f32 %v3255_v49 }
 0x97e   : > { %v3005_v21 = vpop.xlane.xlu0 %3004  ;;  %v2996_v46 = vpop.xlane.xlu1 %2995 }
 0x97f   : > { %v3015_v62 = vadd.f32 %v3005_v21, %v2983_v38  ;;  %v3012_v30 = vadd.f32 %v2996_v46, %v2980_v54  ;;  %v3031_v21 = vld [vmem:[#allocation7 + $0x28] sm:$0xff] }
 0x980   : > { %v3256_v48 = vld [vmem:[#allocation6 + $0x28] sm:$0xff] }
 0x981   : > { %3023 = vst.msk [vmem:[#allocation6 + $0x30] sm:$0xff] %vm2086_vm0, %v3015_v62  ;;  %3020 = vst.msk [vmem:[#allocation6 + $0x18] sm:$0xff] %vm2086_vm0, %v3012_v30  ;;  %7670 = vrcp.f32 %v3256_v48  ;;  %v3252_v32 = vld [vmem:[#allocation6 + $0x8] sm:$0xff] }
 0x982   : > { %v2993_v33 = vpop.xlane.xlu0 %2992  ;;  %7672 = vrcp.f32 %v3252_v32  ;;  %v3061_v26 = vpop.permute.xlu1 %3060  ;;  %v3027_v32 = vld [vmem:[#allocation7 + $0x18] sm:$0xff] }
 0x983   : > { %v3011_v47 = vadd.f32 %v2993_v33, %v2979_v34  ;;  %v3078_v13 = vmul.f32 %v3061_v26, %v3030_v56  ;;  %v3028_v34 = vld [vmem:[#allocation7 + $0x10] sm:$0xff] }
 0x984   : > { %v3251_v42 = vld [vmem:[#allocation6] sm:$0xff]  ;;  %v3258_v40 = vld [vmem:[#allocation6 + $0x38] sm:$0xff] }
 0x985   : > { %3019 = vst.msk [vmem:[#allocation6 + $0x10] sm:$0xff] %vm2086_vm0, %v3011_v47  ;;  %7674 = vrcp.f32 %v3251_v42 }
 0x986   : > { %7676 = vrcp.f32 %v3258_v40  ;;  %v3036_v29 = vpop.permute.xlu1 %3035 }
 0x987   : > { %v3073_v63 = vmul.f32 %v3036_v29, %v3025_v5  ;;  %v3351_v5 = vld [vmem:[%s9545_s9] sm:$0x3]  ;;  %v9078_v29 = vsub.s32 1, %v8658_v41  ;;  %s6634_s9 = sshll.u32 %s9549_s28, 3 }
 0x988   : > { %v3257_v55 = vld [vmem:[#allocation6 + $0x30] sm:$0xff]  ;;  %v3254_v50 = vld [vmem:[#allocation6 + $0x18] sm:$0xff] }
 0x989   : > { %7678 = vrcp.f32 %v3257_v55 }
 0x98a   : > { %v7669_v25 = vpop.eup %7668  ;;  %7680 = vrcp.f32 %v3254_v50  ;;  %v3056_v51 = vpop.permute.xlu0 %3055 }
 0x98b   : > { %3289 = vperm.xlu1 %7387, %v7669_v25   ;;  %v3077_v53 = vmul.f32 %v3056_v51, %v3029_v24  ;;  %v9072_v51 = vsub.s32 0, %v8658_v41  ;;  %v3581_v24 = vld [vmem:[%s9084_s25 + $0x18] sm:$0xff] }
 0x98c   : > { %v3253_v3 = vld [vmem:[#allocation6 + $0x10] sm:$0xff] }
 0x98d   : > { %7682 = vrcp.f32 %v3253_v3 }
 0x98e   : > { %v7671_v18 = vpop.eup %7670  ;;  %v3041_v31 = vpop.permute.xlu0 %3040 }
 0x98f   : > { %3294 = vperm.xlu0 %7386, %v7671_v18   ;;  %v7673_v19 = vpop.eup %7672  ;;  %v3074_v44 = vmul.f32 %v3041_v31, %v3026_v12 }
 0x992   : > { %v7675_v52 = vpop.eup %7674 }
 0x993   : > { %3269 = vperm.xlu1 %7387, %v7675_v52   ;;  %3274 = vperm.xlu0 %7386, %v7673_v19   ;;  %v7677_v27 = vpop.eup %7676 }
 0x996   : > { %v7679_v45 = vpop.eup %7678 }
 0x997   : > { %3065 = vperm.xlu1 %7387, %v7665_v60   ;;  %3070 = vperm.xlu0 %7386, %v9052_v36   ;;  %v7681_v61 = vpop.eup %7680 }
 0x999   : > { %v9067_v59 = vpop.f32.mrf.mxu1 }
 0x99a   : > { %v7683_v36 = vpop.eup %7682 }
 0x99b   : > { %v3137_v8 = vpop.f32.mrf.mxu1  ;;  %3045 = vperm.xlu1 %7387, %v7667_v58   ;;  %3050 = vperm.xlu0 %7386, %v9054_v20   ;;  %v3032_v58 = vld [vmem:[#allocation7 + $0x38] sm:$0xff] }
 0x99c   : > { %v3219_v39 = vadd.f32 %v3137_v8, %v3073_v63  ;;  %v3360_v63 = vrot.slane %v3351_v5, %v9078_v29  ;;  %v3578_v8 = vld [vmem:[%s9084_s25] sm:$0xff] }
 0x99d   : > { %v6974_v2 = vpop.f32.mrf.mxu1 }
 0x99e   : > { %3227 = vst [vmem:[#allocation7 + $0x30] sm:$0xff] %v3219_v39 }
 0x99f   : > { %v3140_v6 = vpop.f32.mrf.mxu1  ;;  %3299 = vperm.xlu1 %7387, %v7679_v45   ;;  %3304 = vperm.xlu0 %7386, %v7677_v27   ;;  %v3579_v27 = vld [vmem:[%s9084_s25 + $0x8] sm:$0xff] }
 0x9a0   : > { %v3220_v15 = vadd.f32 %v3140_v6, %v3074_v44 }
 0x9a2   : > { %3228 = vst [vmem:[#allocation7] sm:$0xff] %v3220_v15 }
 0x9a3   : > { %3279 = vperm.xlu1 %7387, %v7683_v36   ;;  %3284 = vperm.xlu0 %7386, %v7681_v61   ;;  %v3580_v61 = vld [vmem:[%s9084_s25 + $0x10] sm:$0xff] }
 0x9b2   : > { %v6981_v4 = vpop.f32.mrf.mxu1 }
 0x9b4   : > { %v3204_v57 = vpop.f32.mrf.mxu1 }
 0x9b5   : > { %v3223_v22 = vadd.f32 %v3204_v57, %v3077_v53 }
 0x9b6   : > { %v6982_v20 = vpop.f32.mrf.mxu1 }
 0x9b7   : > { %3231 = vst [vmem:[#allocation7 + $0x8] sm:$0xff] %v3223_v22 }
 0x9b8   : > { %v3207_v9 = vpop.f32.mrf.mxu1 }
 0x9b9   : > { %v3224_v60 = vadd.f32 %v3207_v9, %v3078_v13  ;;  %v3582_v9 = vld [vmem:[%s9084_s25 + $0x20] sm:$0xff] }
 0x9bb   : > { %3232 = vst [vmem:[#allocation7 + $0x20] sm:$0xff] %v3224_v60 }
 0xa06   : > { %v3290_v16 = vpop.permute.xlu1 %3289 }
 0xa07   : > { %v3311_v11 = vmul.f32 %v3290_v16, %v3223_v22  ;;  %v3583_v16 = vld [vmem:[%s9084_s25 + $0x28] sm:$0xff] }
 0xa0a   : > { %v3295_v43 = vpop.permute.xlu0 %3294 }
 0xa0b   : > { %v3312_v23 = vmul.f32 %v3295_v43, %v3224_v60 }
 0xa0d   : > { %v3317_v35 = vpack.c.bf16 %v3312_v23, %v3311_v11 }
 0xa0e   : > { %v3275_v37 = vpop.permute.xlu0 %3274  ;;  %v3270_v49 = vpop.permute.xlu1 %3269 }
 0xa0f   : > { %v3308_v38 = vmul.f32 %v3275_v37, %v3220_v15  ;;  %v3307_v54 = vmul.f32 %v3270_v49, %v3219_v39  ;;  %3555 = vmatprep.mubr.bf16.mxu0 %v3317_v35  ;;  %v3584_v49 = vld [vmem:[%s9084_s25 + $0x30] sm:$0xff] }
 0xa11   : > { %v3315_v46 = vpack.c.bf16 %v3308_v38, %v3307_v54  ;;  %v3585_v54 = vld [vmem:[%s9084_s25 + $0x38] sm:$0xff]  ;;  %s5923_s25 = sadd.s32 %s6634_s9, %s6587_s7 }
 0xa12   : > { %v3071_v28 = vpop.permute.xlu0 %3070  ;;  %v3066_v62 = vpop.permute.xlu1 %3065  ;;  %s6588_s19 = sshll.u32 %s5923_s25, 7 }
 0xa13   : > { %v3080_v30 = vmul.f32 %v3071_v28, %v3032_v58  ;;  %v3079_v48 = vmul.f32 %v3066_v62, %v3031_v21  ;;  %3556 = vmatmul.mubr.bf16.vlgmr.msra.gmra.mxu0 %v3315_v46 }
 0xa15   : > { %v3226_v33 = vadd.f32 %v6982_v20, %v3080_v30  ;;  %v3225_v47 = vadd.f32 %v6981_v4, %v3079_v48  ;;  %v3759_v30 = vld [vmem:[#allocation19 + $0x1c0] sm:$0xff] }
 0xa16   : > { %v3051_v42 = vpop.permute.xlu0 %3050  ;;  %v3046_v17 = vpop.permute.xlu1 %3045  ;;  %v3763_v48 = vld [vmem:[#allocation19 + $0x1e0] sm:$0xff] }
 0xa17   : > { %3234 = vst [vmem:[#allocation7 + $0x38] sm:$0xff] %v3226_v33  ;;  %3233 = vst [vmem:[#allocation7 + $0x28] sm:$0xff] %v3225_v47  ;;  %v3076_v7 = vmul.f32 %v3051_v42, %v3028_v34  ;;  %v3075_v25 = vmul.f32 %v3046_v17, %v3027_v32  ;;  %v3760_v34 = vld [vmem:[#allocation19 + $0x1c8] sm:$0xff]  ;;  %v6384_v32 = vcombine.low %v3759_v30, %v3763_v48  ;;  %v3751_v42 = vld [vmem:[#allocation19 + $0x180] sm:$0xff] }
 0xa18   : > { %v3755_v17 = vld [vmem:[#allocation19 + $0x1a0] sm:$0xff] }
 0xa19   : > { %v3222_v10 = vadd.f32 %v6974_v2, %v3076_v7  ;;  %v3221_v14 = vadd.f32 %v9067_v59, %v3075_v25  ;;  %v3356_v59 = vrot.slane %v3351_v5, %v9072_v51  ;;  %v3735_v5 = vld [vmem:[#allocation19 + $0x100] sm:$0xff] }
 0xa1a   : > { %v3305_v40 = vpop.permute.xlu0 %3304  ;;  %v3300_v18 = vpop.permute.xlu1 %3299 }
 0xa1b   : > { %3230 = vst [vmem:[#allocation7 + $0x10] sm:$0xff] %v3222_v10  ;;  %3229 = vst [vmem:[#allocation7 + $0x18] sm:$0xff] %v3221_v14  ;;  %v3314_v55 = vmul.f32 %v3305_v40, %v3226_v33  ;;  %v3313_v0 = vmul.f32 %v3300_v18, %v3225_v47  ;;  %v6385_v33 = vcombine.high %v3759_v30, %v3763_v48  ;;  %v3764_v47 = vld [vmem:[#allocation19 + $0x1e8] sm:$0xff]  ;;  %v3743_v18 = vld [vmem:[#allocation19 + $0x140] sm:$0xff] }
 0xa1c   : > { %v6386_v7 = vcombine.low %v3760_v34, %v3764_v47  ;;  %v6387_v25 = vcombine.high %v3760_v34, %v3764_v47  ;;  %v3756_v40 = vld [vmem:[#allocation19 + $0x1a8] sm:$0xff]  ;;  %v3703_v48 = vld [vmem:[#allocation19] sm:$0xff] }
 0xa1d   : > { %v3318_v1 = vpack.c.bf16 %v3314_v55, %v3313_v0  ;;  %4513 = vmatprep.subr.bf16.mxu1 %v6385_v33  ;;  %v3747_v0 = vld [vmem:[#allocation19 + $0x160] sm:$0xff]  ;;  %v3708_v33 = vld [vmem:[#allocation19 + $0x28] sm:$0xff] }
 0xa1e   : > { %v3285_v19 = vpop.permute.xlu0 %3284  ;;  %v3280_v26 = vpop.permute.xlu1 %3279  ;;  %4566 = vmatprep.subr.bf16.mxu0 %v6387_v25  ;;  %4514 = vmatpush1.bf16.msra.mxu1 %v6384_v32  ;;  %v3707_v34 = vld [vmem:[#allocation19 + $0x20] sm:$0xff]  ;;  %v3704_v32 = vld [vmem:[#allocation19 + $0x8] sm:$0xff] }
 0xa1f   : > { %v3310_v50 = vmul.f32 %v3285_v19, %v3222_v10  ;;  %v3309_v52 = vmul.f32 %v3280_v26, %v3221_v14  ;;  %3565 = vmatprep.mubr.bf16.mxu0 %v3318_v1  ;;  %v6377_v10 = vcombine.high %v3751_v42, %v3755_v17  ;;  %v3752_v14 = vld [vmem:[#allocation19 + $0x188] sm:$0xff]  ;;  %v6376_v26 = vcombine.low %v3751_v42, %v3755_v17  ;;  %v3823_v25 = vld [vmem:[#allocation19 + $0x3c0] sm:$0xff] }
 0xa20   : > { %v6379_v55 = vcombine.high %v3752_v14, %v3756_v40  ;;  %v3744_v1 = vld [vmem:[#allocation19 + $0x148] sm:$0xff]  ;;  %4567 = vmatpush1.bf16.msra.mxu0 %v6386_v7  ;;  %v6329_v17 = vcombine.high %v3703_v48, %v3707_v34  ;;  %v6331_v7 = vcombine.high %v3704_v32, %v3708_v33 }
 0xa21   : > { %v3316_v3 = vpack.c.bf16 %v3310_v50, %v3309_v52  ;;  %v3748_v19 = vld [vmem:[#allocation19 + $0x168] sm:$0xff]  ;;  %4515 = vmatprep.subr.bf16.mxu1 %v6377_v10  ;;  %v6378_v50 = vcombine.low %v3752_v14, %v3756_v40  ;;  %v6369_v52 = vcombine.high %v3743_v18, %v3747_v0  ;;  %v3827_v10 = vld [vmem:[#allocation19 + $0x3e0] sm:$0xff] }
 0xa22   : > { %4568 = vmatprep.subr.bf16.mxu0 %v6379_v55  ;;  %4516 = vmatpush1.bf16.msra.mxu1 %v6376_v26  ;;  %v3824_v14 = vld [vmem:[#allocation19 + $0x3c8] sm:$0xff]  ;;  %v6330_v55 = vcombine.low %v3704_v32, %v3708_v33 }
 0xa23   : > { %3566 = vmatmul.mubr.bf16.gmra.mxu0 %v3316_v3  ;;  %v6371_v3 = vcombine.high %v3744_v1, %v3748_v19  ;;  %4517 = vmatprep.subr.bf16.mxu1 %v6369_v52  ;;  %v3828_v40 = vld [vmem:[#allocation19 + $0x3e8] sm:$0xff] }
 0xa24   : > { %4569 = vmatpush1.bf16.msra.mxu0 %v6378_v50  ;;  %v6450_v26 = vcombine.low %v3824_v14, %v3828_v40 }
 0xa25   : > { %4570 = vmatprep.subr.bf16.mxu0 %v6371_v3 }
 0xad3   : > { %v3557_v12 = vpop.f32.mrf.mxu0 }
 0xad4   : > { %v3558_v31 = vadd.f32 %v3557_v12, %v3356_v59  ;;  %v3740_v12 = vld [vmem:[#allocation19 + $0x128] sm:$0xff] }
 0xad5   : > { %v3559_v39 = vpop.f32.mrf.mxu0 }
 0xad6   : > { %v3560_v2 = vadd.f32 %v3559_v39, %v3360_v63  ;;  %v9089_v44 = vadd.f32 %v3578_v8, %v3558_v31  ;;  %v6368_v31 = vcombine.low %v3743_v18, %v3747_v0  ;;  %v6370_v8 = vcombine.low %v3744_v1, %v3748_v19 }
 0xad7   : > { %v3561_v45 = vpop.f32.mrf.mxu0  ;;  %v6328_v18 = vcombine.low %v3703_v48, %v3707_v34  ;;  %v6449_v0 = vcombine.high %v3823_v25, %v3827_v10  ;;  %v6451_v1 = vcombine.high %v3824_v14, %v3828_v40  ;;  %v6448_v19 = vcombine.low %v3823_v25, %v3827_v10  ;;  %v3799_v25 = vld [vmem:[#allocation19 + $0x300] sm:$0xff]  ;;  %v3800_v14 = vld [vmem:[#allocation19 + $0x308] sm:$0xff] }
 0xad8   : > { %v9091_v6 = vadd.f32 %v3579_v27, %v3560_v2  ;;  %v3562_v15 = vadd.f32 %v3561_v45, %v3356_v59  ;;  %v3727_v2 = vld [vmem:[#allocation19 + $0xc0] sm:$0xff]  ;;  %4518 = vmatpush1.bf16.msra.mxu1 %v6368_v31  ;;  %4571 = vmatpush1.bf16.msra.mxu0 %v6370_v8 }
 0xad9   : > { %v3563_v36 = vpop.f32.mrf.mxu0  ;;  %v3731_v45 = vld [vmem:[#allocation19 + $0xe0] sm:$0xff] }
 0xada   : > { %v3564_v4 = vadd.f32 %v3563_v36, %v3360_v63  ;;  %v3596_v53 = vadd.f32 %v9091_v6, %v9089_v44  ;;  %v9097_v56 = vadd.f32 %v3580_v61, %v3562_v15  ;;  %v3728_v15 = vld [vmem:[#allocation19 + $0xc8] sm:$0xff]  ;;  %v3803_v10 = vld [vmem:[#allocation19 + $0x320] sm:$0xff] }
 0xadb   : > { %v3732_v61 = vld [vmem:[#allocation19 + $0xe8] sm:$0xff]  ;;  %v6425_v40 = vcombine.high %v3799_v25, %v3803_v10 }
 0xadc   : > { %v9099_v57 = vadd.f32 %v3581_v24, %v3564_v4  ;;  %3597 = vadd.xlane.f32.xlu1 %v3596_v53  ;;  %v6353_v4 = vcombine.high %v3727_v2, %v3731_v45  ;;  %v6355_v53 = vcombine.high %v3728_v15, %v3732_v61 }
 0xade   : > { %v3599_v22 = vadd.f32 %v9099_v57, %v9097_v56 }
 0xae0   : > { %3600 = vadd.xlane.f32.xlu0 %v3599_v22  ;;  %v3719_v22 = vld [vmem:[#allocation19 + $0x80] sm:$0xff] }
 0xae3   : > { %v3567_v20 = vpop.f32.mrf.mxu0 }
 0xae4   : > { %v3568_v13 = vadd.f32 %v3567_v20, %v3356_v59  ;;  %v3723_v20 = vld [vmem:[#allocation19 + $0xa0] sm:$0xff] }
 0xae5   : > { %v3569_v60 = vpop.f32.mrf.mxu0 }
 0xae6   : > { %v3570_v43 = vadd.f32 %v3569_v60, %v3360_v63  ;;  %v9105_v23 = vadd.f32 %v3582_v9, %v3568_v13  ;;  %v3720_v13 = vld [vmem:[#allocation19 + $0x88] sm:$0xff]  ;;  %v6352_v60 = vcombine.low %v3727_v2, %v3731_v45 }
 0xae7   : > { %v3571_v11 = vpop.f32.mrf.mxu0  ;;  %v3724_v9 = vld [vmem:[#allocation19 + $0xa8] sm:$0xff] }
 0xae8   : > { %v9107_v35 = vadd.f32 %v3583_v16, %v3570_v43  ;;  %v3572_v37 = vadd.f32 %v3571_v11, %v3356_v59  ;;  %v3739_v59 = vld [vmem:[#allocation19 + $0x120] sm:$0xff]  ;;  %v6354_v16 = vcombine.low %v3728_v15, %v3732_v61  ;;  %v6345_v43 = vcombine.high %v3719_v22, %v3723_v20 }
 0xae9   : > { %v3573_v38 = vpop.f32.mrf.mxu0  ;;  %v6361_v39 = vcombine.high %v3735_v5, %v3739_v59  ;;  %v6360_v36 = vcombine.low %v3735_v5, %v3739_v59  ;;  %v6347_v11 = vcombine.high %v3720_v13, %v3724_v9 }
 0xaea   : > { %v3574_v58 = vadd.f32 %v3573_v38, %v3360_v63  ;;  %v3602_v21 = vadd.f32 %v9107_v35, %v9105_v23  ;;  %v9113_v46 = vadd.f32 %v3584_v49, %v3572_v37  ;;  %v3736_v63 = vld [vmem:[#allocation19 + $0x108] sm:$0xff]  ;;  %v3711_v37 = vld [vmem:[#allocation19 + $0x40] sm:$0xff] }
 0xaeb   : > { %v6363_v27 = vcombine.high %v3736_v63, %v3740_v12  ;;  %4519 = vmatprep.subr.bf16.mxu1 %v6361_v39  ;;  %v6362_v24 = vcombine.low %v3736_v63, %v3740_v12  ;;  %v3715_v49 = vld [vmem:[#allocation19 + $0x60] sm:$0xff]  ;;  %v3712_v38 = vld [vmem:[#allocation19 + $0x48] sm:$0xff] }
 0xaec   : > { %v9115_v28 = vadd.f32 %v3585_v54, %v3574_v58  ;;  %3603 = vadd.xlane.f32.xlu0 %v3602_v21  ;;  %4520 = vmatpush1.bf16.msra.mxu1 %v6360_v36  ;;  %v3716_v54 = vld [vmem:[#allocation19 + $0x68] sm:$0xff]  ;;  %v6344_v58 = vcombine.low %v3719_v22, %v3723_v20  ;;  %v6346_v21 = vcombine.low %v3720_v13, %v3724_v9 }
 0xaed   : > { %4572 = vmatprep.subr.bf16.mxu0 %v6363_v27  ;;  %4521 = vmatprep.subr.bf16.mxu1 %v6353_v4  ;;  %v6339_v30 = vcombine.high %v3712_v38, %v3716_v54  ;;  %v6336_v47 = vcombine.low %v3711_v37, %v3715_v49  ;;  %v6338_v42 = vcombine.low %v3712_v38, %v3716_v54  ;;  %v3819_v4 = vld [vmem:[#allocation19 + $0x3a0] sm:$0xff]  ;;  %v3820_v20 = vld [vmem:[#allocation19 + $0x3a8] sm:$0xff] }
 0xaee   : > { %v3605_v62 = vadd.f32 %v9115_v28, %v9113_v46  ;;  %4573 = vmatpush1.bf16.msra.mxu0 %v6362_v24  ;;  %v3815_v24 = vld [vmem:[#allocation19 + $0x380] sm:$0xff] }
 0xaef   : > { %4574 = vmatprep.subr.bf16.mxu0 %v6355_v53  ;;  %v3816_v53 = vld [vmem:[#allocation19 + $0x388] sm:$0xff]  ;;  %v6441_v22 = vcombine.high %v3815_v24, %v3819_v4  ;;  %v3807_v38 = vld [vmem:[#allocation19 + $0x340] sm:$0xff] }
 0xaf0   : > { %3606 = vadd.xlane.f32.xlu1 %v3605_v62  ;;  %4522 = vmatpush1.bf16.msra.mxu1 %v6352_v60  ;;  %v6337_v62 = vcombine.high %v3711_v37, %v3715_v49  ;;  %v6440_v60 = vcombine.low %v3815_v24, %v3819_v4  ;;  %v3811_v54 = vld [vmem:[#allocation19 + $0x360] sm:$0xff] }
 0xaf1   : > { %4523 = vmatprep.subr.bf16.mxu1 %v6345_v43  ;;  %v6432_v32 = vcombine.low %v3807_v38, %v3811_v54 }
 0xaf2   : > { %4575 = vmatpush1.bf16.msra.mxu0 %v6354_v16  ;;  %v6442_v16 = vcombine.low %v3816_v53, %v3820_v20 }
 0xaf3   : > { %4576 = vmatprep.subr.bf16.mxu0 %v6347_v11  ;;  %v6443_v11 = vcombine.high %v3816_v53, %v3820_v20  ;;  %v3779_v20 = vld [vmem:[#allocation19 + $0x260] sm:$0xff] }
 0xaf4   : > { %4524 = vmatpush1.bf16.msra.mxu1 %v6344_v58  ;;  %v3808_v58 = vld [vmem:[#allocation19 + $0x348] sm:$0xff] }
 0xaf5   : > { %4525 = vmatprep.subr.bf16.mxu1 %v6337_v62  ;;  %v6433_v62 = vcombine.high %v3807_v38, %v3811_v54  ;;  %v3767_v38 = vld [vmem:[#allocation19 + $0x200] sm:$0xff] }
 0xaf6   : > { %4577 = vmatpush1.bf16.msra.mxu0 %v6346_v21  ;;  %v3771_v54 = vld [vmem:[#allocation19 + $0x220] sm:$0xff] }
 0xaf7   : > { %4578 = vmatprep.subr.bf16.mxu0 %v6339_v30  ;;  %v3812_v30 = vld [vmem:[#allocation19 + $0x368] sm:$0xff] }
 0xaf8   : > { %4526 = vmatpush1.bf16.msra.mxu1 %v6336_v47  ;;  %v6434_v33 = vcombine.low %v3808_v58, %v3812_v30 }
 0xaf9   : > { %4527 = vmatprep.subr.bf16.mxu1 %v6329_v17 }
 0xafa   : > { %4579 = vmatpush1.bf16.msra.mxu0 %v6338_v42  ;;  %v6435_v42 = vcombine.high %v3808_v58, %v3812_v30  ;;  %v3768_v58 = vld [vmem:[#allocation19 + $0x208] sm:$0xff]  ;;  %v6392_v30 = vcombine.low %v3767_v38, %v3771_v54 }
 0xafb   : > { %4580 = vmatprep.subr.bf16.mxu0 %v6331_v7 }
 0xafc   : > { %4528 = vmatpush1.bf16.msra.mxu1 %v6328_v18  ;;  %v3804_v18 = vld [vmem:[#allocation19 + $0x328] sm:$0xff] }
 0xafd   : > { %4529 = vmatprep.subr.bf16.mxu1 %v6449_v0  ;;  %v6424_v0 = vcombine.low %v3799_v25, %v3803_v10  ;;  %v3766_v25 = vld [vmem:[#allocation19 + $0x1f8] sm:$0xff] }
 0xafe   : > { %4581 = vmatpush1.bf16.msra.mxu0 %v6330_v55 }
 0xaff   : > { %4582 = vmatprep.subr.bf16.mxu0 %v6451_v1  ;;  %v6426_v1 = vcombine.low %v3800_v14, %v3804_v18 }
 0xb00   : > { %4530 = vmatpush2.bf16.msra.mxu1 %v6448_v19  ;;  %v6427_v19 = vcombine.high %v3800_v14, %v3804_v18 }
 0xb01   : > { %4531 = vmatprep.subr.bf16.mxu1 %v6441_v22  ;;  %v3775_v22 = vld [vmem:[#allocation19 + $0x240] sm:$0xff] }
 0xb02   : > { %4583 = vmatpush2.bf16.msra.mxu0 %v6450_v26  ;;  %v3791_v26 = vld [vmem:[#allocation19 + $0x2c0] sm:$0xff] }
 0xb03   : > { %4584 = vmatprep.subr.bf16.mxu0 %v6443_v11  ;;  %v6400_v11 = vcombine.low %v3775_v22, %v3779_v20 }
 0xb04   : > { %4532 = vmatpush2.bf16.msra.mxu1 %v6440_v60  ;;  %v3776_v60 = vld [vmem:[#allocation19 + $0x248] sm:$0xff] }
 0xb05   : > { %4533 = vmatprep.subr.bf16.mxu1 %v6433_v62  ;;  %v3772_v62 = vld [vmem:[#allocation19 + $0x228] sm:$0xff] }
 0xb06   : > { %4585 = vmatpush2.bf16.msra.mxu0 %v6442_v16  ;;  %v6401_v16 = vcombine.high %v3775_v22, %v3779_v20 }
 0xb07   : > { %4586 = vmatprep.subr.bf16.mxu0 %v6435_v42  ;;  %v9161_v42 = vld [vmem:[#allocation19 + $0x1f0] sm:$0xff] }
 0xb08   : > { %4534 = vmatpush2.bf16.msra.mxu1 %v6432_v32  ;;  %v6394_v32 = vcombine.low %v3768_v58, %v3772_v62 }
 0xb09   : > { %4535 = vmatprep.subr.bf16.mxu1 %v6425_v40 }
 0xb0a   : > { %4587 = vmatpush2.bf16.msra.mxu0 %v6434_v33  ;;  %v6395_v33 = vcombine.high %v3768_v58, %v3772_v62  ;;  %v3758_v58 = vld [vmem:[#allocation19 + $0x1b8] sm:$0xff] }
 0xb0b   : > { %4588 = vmatprep.subr.bf16.mxu0 %v6427_v19 }
 0xb0c   : > { %4536 = vmatpush2.bf16.msra.mxu1 %v6424_v0 }
 0xb0e   : > { %4589 = vmatpush2.bf16.msra.mxu0 %v6426_v1 }
 0xb65   : > { %v3598_v50 = vpop.xlane.xlu1 %3597 }
 0xb66   : > { %v3609_v52 = vmul.f32 0.00390625, %v3598_v50  ;;  %v3795_v50 = vld [vmem:[#allocation19 + $0x2e0] sm:$0xff] }
 0xb68   : > { %v9120_v3 = vsub.f32 %v9089_v44, %v3609_v52  ;;  %v9123_v5 = vsub.f32 %v9091_v6, %v3609_v52  ;;  %v3792_v52 = vld [vmem:[#allocation19 + $0x2c8] sm:$0xff] }
 0xb69   : > { %v3601_v59 = vpop.xlane.xlu0 %3600 }
 0xb6a   : > { %v3610_v63 = vmul.f32 0.00390625, %v3601_v59  ;;  %v3621_v12 = vmul.f32 %v9120_v3, %v9120_v3  ;;  %v3622_v31 = vmul.f32 %v9123_v5, %v9123_v5  ;;  %v6417_v59 = vcombine.high %v3791_v26, %v3795_v50 }
 0xb6c   : > { %v9130_v8 = vsub.f32 %v9097_v56, %v3610_v63  ;;  %v9133_v39 = vsub.f32 %v9099_v57, %v3610_v63  ;;  %v3629_v27 = vadd.f32 %v3622_v31, %v3621_v12  ;;  %v3796_v63 = vld [vmem:[#allocation19 + $0x2e8] sm:$0xff]  ;;  %v3783_v12 = vld [vmem:[#allocation19 + $0x280] sm:$0xff]  ;;  %4537 = vmatprep.subr.bf16.mxu1 %v6417_v59 }
 0xb6d   : > { %v3787_v31 = vld [vmem:[#allocation19 + $0x2a0] sm:$0xff] }
 0xb6e   : > { %v3623_v2 = vmul.f32 %v9130_v8, %v9130_v8  ;;  %v3624_v45 = vmul.f32 %v9133_v39, %v9133_v39  ;;  %3630 = vadd.xlane.f32.xlu0 %v3629_v27  ;;  %v6419_v27 = vcombine.high %v3792_v52, %v3796_v63  ;;  %v6408_v4 = vcombine.low %v3783_v12, %v3787_v31 }
 0xb70   : > { %v3632_v15 = vadd.f32 %v3624_v45, %v3623_v2  ;;  %v3784_v2 = vld [vmem:[#allocation19 + $0x288] sm:$0xff]  ;;  %4590 = vmatprep.subr.bf16.mxu0 %v6419_v27 }
 0xb71   : > { %v3788_v45 = vld [vmem:[#allocation19 + $0x2a8] sm:$0xff] }
 0xb72   : > { %3633 = vadd.xlane.f32.xlu1 %v3632_v15  ;;  %v6416_v15 = vcombine.low %v3791_v26, %v3795_v50  ;;  %v6411_v24 = vcombine.high %v3784_v2, %v3788_v45  ;;  %v6410_v53 = vcombine.low %v3784_v2, %v3788_v45  ;;  %v3594_v50 = vld [vmem:[%s9546_s1] sm:$0x3] }
 0xb73   : > { %v9178_v59 = vrot.slane %v3594_v50, %v9072_v51 }
 0xb74   : > { %4538 = vmatpush2.bf16.msra.mxu1 %v6416_v15 }
 0xb75   : > { %v3604_v61 = vpop.xlane.xlu0 %3603  ;;  %v3656_v45 = vmul.f32 %v9178_v59, %v9120_v3  ;;  %v3658_v15 = vmul.f32 %v9178_v59, %v9130_v8 }
 0xb76   : > { %v3611_v36 = vmul.f32 0.00390625, %v3604_v61  ;;  %v6418_v61 = vcombine.low %v3792_v52, %v3796_v63  ;;  %v9175_v52 = vrot.slane %v3594_v50, %v9078_v29 }
 0xb78   : > { %v9140_v13 = vsub.f32 %v9105_v23, %v3611_v36  ;;  %v9143_v9 = vsub.f32 %v9107_v35, %v3611_v36  ;;  %v6409_v36 = vcombine.high %v3783_v12, %v3787_v31  ;;  %4591 = vmatpush2.bf16.msra.mxu0 %v6418_v61  ;;  %v3595_v12 = vld [vmem:[#allocation17] sm:$0x3]  ;;  %v3657_v31 = vmul.f32 %v9175_v52, %v9123_v5 }
 0xb79   : > { %v3607_v43 = vpop.xlane.xlu1 %3606  ;;  %4592 = vmatprep.subr.bf16.mxu0 %v6411_v24  ;;  %v9192_v5 = vrot.slane %v3595_v12, %v9072_v51 }
 0xb7a   : > { %v3612_v37 = vmul.f32 0.00390625, %v3607_v43  ;;  %v3625_v49 = vmul.f32 %v9140_v13, %v9140_v13  ;;  %v3626_v21 = vmul.f32 %v9143_v9, %v9143_v9  ;;  %4539 = vmatprep.subr.bf16.mxu1 %v6409_v36  ;;  %v3780_v43 = vld [vmem:[#allocation19 + $0x268] sm:$0xff] }
 0xb7b   : > { %4540 = vmatpush2.bf16.msra.mxu1 %v6408_v4  ;;  %v9187_v4 = vrot.slane %v3595_v12, %v9078_v29 }
 0xb7c   : > { %v9150_v48 = vsub.f32 %v9113_v46, %v3612_v37  ;;  %v9153_v34 = vsub.f32 %v9115_v28, %v3612_v37  ;;  %v3635_v47 = vadd.f32 %v3626_v21, %v3625_v49  ;;  %4593 = vmatpush2.bf16.msra.mxu0 %v6410_v53  ;;  %v6402_v37 = vcombine.low %v3776_v60, %v3780_v43 }
 0xb7d   : > { %v6403_v49 = vcombine.high %v3776_v60, %v3780_v43  ;;  %4541 = vmatprep.subr.bf16.mxu1 %v6401_v16  ;;  %v6393_v21 = vcombine.high %v3767_v38, %v3771_v54  ;;  %v3659_v53 = vmul.f32 %v9175_v52, %v9133_v39  ;;  %v3757_v38 = vld [vmem:[#allocation19 + $0x1b0] sm:$0xff]  ;;  %v3754_v54 = vld [vmem:[#allocation19 + $0x198] sm:$0xff] }
 0xb7e   : > { %v3627_v17 = vmul.f32 %v9150_v48, %v9150_v48  ;;  %v3628_v7 = vmul.f32 %v9153_v34, %v9153_v34  ;;  %3636 = vadd.xlane.f32.xlu0 %v3635_v47  ;;  %v9159_v47 = vld [vmem:[#allocation19 + $0x1d0] sm:$0xff] }
 0xb7f   : > { %4594 = vmatprep.subr.bf16.mxu0 %v6403_v49  ;;  %4542 = vmatpush2.bf16.msra.mxu1 %v6400_v11  ;;  %v6388_v10 = vcombine.low %v9159_v47, %v9161_v42  ;;  %v3753_v11 = vld [vmem:[#allocation19 + $0x190] sm:$0xff] }
 0xb80   : > { %v3638_v55 = vadd.f32 %v3628_v7, %v3627_v17  ;;  %4595 = vmatpush2.bf16.msra.mxu0 %v6402_v37  ;;  %4543 = vmatprep.subr.bf16.mxu1 %v6393_v21  ;;  %v9163_v17 = vld [vmem:[#allocation19 + $0x1d8] sm:$0xff]  ;;  %v6389_v7 = vcombine.high %v9159_v47, %v9161_v42  ;;  %v3749_v47 = vld [vmem:[#allocation19 + $0x170] sm:$0xff] }
 0xb81   : > { %4596 = vmatprep.subr.bf16.mxu0 %v6395_v33  ;;  %v6390_v14 = vcombine.low %v9163_v17, %v3766_v25  ;;  %v6391_v40 = vcombine.high %v9163_v17, %v3766_v25  ;;  %v3745_v33 = vld [vmem:[#allocation19 + $0x150] sm:$0xff]  ;;  %v3746_v42 = vld [vmem:[#allocation19 + $0x158] sm:$0xff]  ;;  %v6382_v25 = vcombine.low %v3754_v54, %v3758_v58 }
 0xb82   : > { %3639 = vadd.xlane.f32.xlu1 %v3638_v55  ;;  %v3750_v17 = vld [vmem:[#allocation19 + $0x178] sm:$0xff] }
 0xb83   : > { %4544 = vmatpush2.bf16.msra.mxu1 %v6392_v30  ;;  %v6381_v30 = vcombine.high %v3753_v11, %v3757_v38 }
 0xb84   : > { %4597 = vmatpush2.bf16.msra.mxu0 %v6394_v32  ;;  %4619 = vmatprep.subr.bf16.mxu1 %v6389_v7  ;;  %v6383_v32 = vcombine.high %v3754_v54, %v3758_v58  ;;  %v6380_v7 = vcombine.low %v3753_v11, %v3757_v38 }
 0xb85   : > { %4672 = vmatprep.subr.bf16.mxu0 %v6391_v40  ;;  %v6373_v40 = vcombine.high %v3745_v33, %v3749_v47 }
 0xbf7   : > { %v3631_v18 = vpop.xlane.xlu0 %3630 }
 0xbf8   : > { %v3641_v55 = vmul.f32 0.00390625, %v3631_v18  ;;  %v6375_v18 = vcombine.high %v3746_v42, %v3750_v17 }
 0xbfa   : > { %v3664_v0 = vadd.f32 1e-05, %v3641_v55  ;;  %v3737_v55 = vld [vmem:[#allocation19 + $0x110] sm:$0xff] }
 0xbfb   : > { %v3634_v1 = vpop.xlane.xlu1 %3633 }
 0xbfc   : > { %v3642_v19 = vmul.f32 0.00390625, %v3634_v1  ;;  %7684 = vrsqrt.f32 %v3664_v0  ;;  %v3741_v0 = vld [vmem:[#allocation19 + $0x130] sm:$0xff]  ;;  %v3738_v1 = vld [vmem:[#allocation19 + $0x118] sm:$0xff] }
 0xbfd   : > { %v6365_v12 = vcombine.high %v3737_v55, %v3741_v0 }
 0xbfe   : > { %v3665_v26 = vadd.f32 1e-05, %v3642_v19  ;;  %v3742_v19 = vld [vmem:[#allocation19 + $0x138] sm:$0xff] }
 0xc00   : > { %7686 = vrsqrt.f32 %v3665_v26  ;;  %v3660_v26 = vmul.f32 %v9178_v59, %v9140_v13  ;;  %v3733_v13 = vld [vmem:[#allocation19 + $0xf0] sm:$0xff] }
 0xc07   : > { %v3637_v63 = vpop.xlane.xlu0 %3636 }
 0xc08   : > { %v3643_v27 = vmul.f32 0.00390625, %v3637_v63  ;;  %v3661_v63 = vmul.f32 %v9175_v52, %v9143_v9 }
 0xc09   : > { %v7685_v2 = vpop.eup %7684 }
 0xc0a   : > { %v3666_v61 = vadd.f32 1e-05, %v3643_v27  ;;  %v3673_v24 = vmul.f32 %v7685_v2, %v3657_v31  ;;  %v3672_v20 = vmul.f32 %v7685_v2, %v3656_v45  ;;  %v6367_v31 = vcombine.high %v3738_v1, %v3742_v19  ;;  %v3729_v27 = vld [vmem:[#allocation19 + $0xd0] sm:$0xff] }
 0xc0b   : > { %v3640_v36 = vpop.xlane.xlu1 %3639  ;;  %v3662_v2 = vmul.f32 %v9178_v59, %v9150_v48  ;;  %v3663_v45 = vmul.f32 %v9175_v52, %v9153_v34  ;;  %v3721_v48 = vld [vmem:[#allocation19 + $0x90] sm:$0xff] }
 0xc0c   : > { %v3644_v22 = vmul.f32 0.00390625, %v3640_v36  ;;  %7688 = vrsqrt.f32 %v3666_v61  ;;  %v3692_v8 = vadd.f32 %v9187_v4, %v3673_v24  ;;  %v3691_v49 = vadd.f32 %v9192_v5, %v3672_v20  ;;  %v3734_v61 = vld [vmem:[#allocation19 + $0xf8] sm:$0xff]  ;;  %v3725_v52 = vld [vmem:[#allocation19 + $0xb0] sm:$0xff] }
 0xc0d   : > { %v7687_v60 = vpop.eup %7686  ;;  %v6349_v58 = vcombine.high %v3721_v48, %v3725_v52 }
 0xc0e   : > { %v3667_v3 = vadd.f32 1e-05, %v3644_v22  ;;  %v3675_v16 = vmul.f32 %v7687_v60, %v3659_v53  ;;  %v3674_v43 = vmul.f32 %v7687_v60, %v3658_v15  ;;  %v3730_v15 = vld [vmem:[#allocation19 + $0xd8] sm:$0xff]  ;;  %v6364_v53 = vcombine.low %v3737_v55, %v3741_v0 }
 0xc0f   : > { %v6366_v22 = vcombine.low %v3738_v1, %v3742_v19  ;;  %v3710_v55 = vld [vmem:[#allocation19 + $0x38] sm:$0xff] }
 0xc10   : > { %7690 = vrsqrt.f32 %v3667_v3  ;;  %v3694_v37 = vadd.f32 %v9187_v4, %v3675_v16  ;;  %v3693_v39 = vadd.f32 %v9192_v5, %v3674_v43  ;;  %v6357_v3 = vcombine.high %v3729_v27, %v3733_v13  ;;  %v3722_v43 = vld [vmem:[#allocation19 + $0x98] sm:$0xff] }
 0xc11   : > { %v6359_v16 = vcombine.high %v3730_v15, %v3734_v61 }
 0xc12   : > { %v9198_v21 = vpack.c.bf16 %v3694_v37, %v3692_v8  ;;  %v9200_v62 = vpack.c.bf16 %v3693_v39, %v3691_v49  ;;  %v3726_v8 = vld [vmem:[#allocation19 + $0xb8] sm:$0xff]  ;;  %v6356_v49 = vcombine.low %v3729_v27, %v3733_v13  ;;  %v6358_v39 = vcombine.low %v3730_v15, %v3734_v61 }
 0xc13   : > { %v3818_v13 = vld [vmem:[#allocation19 + $0x398] sm:$0xff] }
 0xc14   : > { %4545 = vmatprep.mubr.bf16.mxu1 %v9198_v21  ;;  %4598 = vmatprep.mubr.bf16.mxu0 %v9198_v21  ;;  %v3822_v15 = vld [vmem:[#allocation19 + $0x3b8] sm:$0xff] }
 0xc15   : > { %4546 = vmatmul.mubr.bf16.vlgmr.msra.gmra.mxu1 %v9200_v62  ;;  %4599 = vmatmul.mubr.bf16.vlgmr.msra.gmra.mxu0 %v9200_v62 }
 0xc16   : > { %4620 = vmatpush1.bf16.msra.mxu1 %v6388_v10  ;;  %4673 = vmatpush1.bf16.msra.mxu0 %v6390_v14  ;;  %v6372_v10 = vcombine.low %v3745_v33, %v3749_v47  ;;  %v6374_v14 = vcombine.low %v3746_v42, %v3750_v17  ;;  %v3714_v33 = vld [vmem:[#allocation19 + $0x58] sm:$0xff]  ;;  %v6348_v47 = vcombine.low %v3721_v48, %v3725_v52  ;;  %v3805_v52 = vld [vmem:[#allocation19 + $0x330] sm:$0xff] }
 0xc17   : > { %4621 = vmatprep.subr.bf16.mxu1 %v6381_v30  ;;  %4674 = vmatprep.subr.bf16.mxu0 %v6383_v32  ;;  %v6351_v30 = vcombine.high %v3722_v43, %v3726_v8  ;;  %v3717_v32 = vld [vmem:[#allocation19 + $0x70] sm:$0xff]  ;;  %v6350_v42 = vcombine.low %v3722_v43, %v3726_v8  ;;  %v3802_v43 = vld [vmem:[#allocation19 + $0x318] sm:$0xff] }
 0xc18   : > { %v3806_v8 = vld [vmem:[#allocation19 + $0x338] sm:$0xff] }
 0xc19   : > { %v7689_v50 = vpop.eup %7688 }
 0xc1a   : > { %4622 = vmatpush1.bf16.msra.mxu1 %v6380_v7  ;;  %4675 = vmatpush1.bf16.msra.mxu0 %v6382_v25  ;;  %v3677_v36 = vmul.f32 %v7689_v50, %v3661_v63  ;;  %v3676_v9 = vmul.f32 %v7689_v50, %v3660_v26  ;;  %v3705_v25 = vld [vmem:[#allocation19 + $0x10] sm:$0xff] }
 0xc1b   : > { %4623 = vmatprep.subr.bf16.mxu1 %v6373_v40  ;;  %4676 = vmatprep.subr.bf16.mxu0 %v6375_v18  ;;  %v3709_v40 = vld [vmem:[#allocation19 + $0x30] sm:$0xff]  ;;  %v3706_v18 = vld [vmem:[#allocation19 + $0x18] sm:$0xff] }
 0xc1c   : > { %v3696_v59 = vadd.f32 %v9187_v4, %v3677_v36  ;;  %v3695_v11 = vadd.f32 %v9192_v5, %v3676_v9  ;;  %v6333_v19 = vcombine.high %v3705_v25, %v3709_v40  ;;  %v6335_v26 = vcombine.high %v3706_v18, %v3710_v55  ;;  %v3825_v50 = vld [vmem:[#allocation19 + $0x3d0] sm:$0xff] }
 0xc1d   : > { %v7691_v24 = vpop.eup %7690  ;;  %v3829_v63 = vld [vmem:[#allocation19 + $0x3f0] sm:$0xff] }
 0xc1e   : > { %4624 = vmatpush1.bf16.msra.mxu1 %v6372_v10  ;;  %4677 = vmatpush1.bf16.msra.mxu0 %v6374_v14  ;;  %v3679_v20 = vmul.f32 %v7691_v24, %v3663_v45  ;;  %v3678_v60 = vmul.f32 %v7691_v24, %v3662_v2  ;;  %v3826_v10 = vld [vmem:[#allocation19 + $0x3d8] sm:$0xff]  ;;  %v3817_v2 = vld [vmem:[#allocation19 + $0x390] sm:$0xff]  ;;  %v6452_v61 = vcombine.low %v3825_v50, %v3829_v63 }
 0xc1f   : > { %4625 = vmatprep.subr.bf16.mxu1 %v6365_v12  ;;  %4678 = vmatprep.subr.bf16.mxu0 %v6367_v31  ;;  %v3830_v14 = vld [vmem:[#allocation19 + $0x3f8] sm:$0xff]  ;;  %v6332_v12 = vcombine.low %v3705_v25, %v3709_v40  ;;  %v6334_v31 = vcombine.low %v3706_v18, %v3710_v55  ;;  %v3821_v45 = vld [vmem:[#allocation19 + $0x3b0] sm:$0xff]  ;;  %v6447_v24 = vcombine.high %v3818_v13, %v3822_v15 }
 0xc20   : > { %v3698_v34 = vadd.f32 %v9187_v4, %v3679_v20  ;;  %v3697_v37 = vadd.f32 %v9192_v5, %v3678_v60  ;;  %v3713_v4 = vld [vmem:[#allocation19 + $0x50] sm:$0xff]  ;;  %v3718_v5 = vld [vmem:[#allocation19 + $0x78] sm:$0xff]  ;;  %v6455_v27 = vcombine.high %v3826_v10, %v3830_v14  ;;  %v6454_v36 = vcombine.low %v3826_v10, %v3830_v14 }
 0xc21   : > { %v6341_v17 = vcombine.high %v3713_v4, %v3717_v32  ;;  %v6343_v7 = vcombine.high %v3714_v33, %v3718_v5  ;;  %v6340_v0 = vcombine.low %v3713_v4, %v3717_v32  ;;  %v6342_v1 = vcombine.low %v3714_v33, %v3718_v5  ;;  %v3810_v20 = vld [vmem:[#allocation19 + $0x358] sm:$0xff] }
 0xc22   : > { %4626 = vmatpush1.bf16.msra.mxu1 %v6364_v53  ;;  %4679 = vmatpush1.bf16.msra.mxu0 %v6366_v22  ;;  %v9218_v38 = vpack.c.bf16 %v3698_v34, %v3696_v59  ;;  %v9220_v54 = vpack.c.bf16 %v3697_v37, %v3695_v11  ;;  %v6445_v9 = vcombine.high %v3817_v2, %v3821_v45  ;;  %v3809_v53 = vld [vmem:[#allocation19 + $0x350] sm:$0xff]  ;;  %v3814_v60 = vld [vmem:[#allocation19 + $0x378] sm:$0xff] }
 0xc23   : > { %4627 = vmatprep.subr.bf16.mxu1 %v6357_v3  ;;  %4680 = vmatprep.subr.bf16.mxu0 %v6359_v16  ;;  %v3813_v22 = vld [vmem:[#allocation19 + $0x370] sm:$0xff]  ;;  %v6444_v3 = vcombine.low %v3817_v2, %v3821_v45  ;;  %v6446_v16 = vcombine.low %v3818_v13, %v3822_v15  ;;  %v6439_v59 = vcombine.high %v3810_v20, %v3814_v60  ;;  %v3794_v4 = vld [vmem:[#allocation19 + $0x2d8] sm:$0xff] }
 0xc24   : > { %4555 = vmatprep.mubr.bf16.mxu1 %v9218_v38  ;;  %4608 = vmatprep.mubr.bf16.mxu0 %v9218_v38  ;;  %v6437_v48 = vcombine.high %v3809_v53, %v3813_v22  ;;  %v3801_v34 = vld [vmem:[#allocation19 + $0x310] sm:$0xff]  ;;  %v6436_v11 = vcombine.low %v3809_v53, %v3813_v22  ;;  %v6438_v37 = vcombine.low %v3810_v20, %v3814_v60  ;;  %v3798_v32 = vld [vmem:[#allocation19 + $0x2f8] sm:$0xff] }
 0xc25   : > { %4556 = vmatmul.mubr.bf16.gmra.mxu1 %v9220_v54  ;;  %4609 = vmatmul.mubr.bf16.gmra.mxu0 %v9220_v54  ;;  %v6428_v33 = vcombine.low %v3801_v34, %v3805_v52  ;;  %v6430_v5 = vcombine.low %v3802_v43, %v3806_v8  ;;  %v3786_v25 = vld [vmem:[#allocation19 + $0x298] sm:$0xff]  ;;  %v6422_v55 = vcombine.low %v3794_v4, %v3798_v32 }
 0xc26   : > { %4628 = vmatpush1.bf16.msra.mxu1 %v6356_v49  ;;  %4681 = vmatpush1.bf16.msra.mxu0 %v6358_v39  ;;  %v6429_v49 = vcombine.high %v3801_v34, %v3805_v52  ;;  %v6431_v39 = vcombine.high %v3802_v43, %v3806_v8  ;;  %v3790_v40 = vld [vmem:[#allocation19 + $0x2b8] sm:$0xff] }
 0xc27   : > { %4629 = vmatprep.subr.bf16.mxu1 %v6349_v58  ;;  %4682 = vmatprep.subr.bf16.mxu0 %v6351_v30  ;;  %v3793_v58 = vld [vmem:[#allocation19 + $0x2d0] sm:$0xff]  ;;  %v6414_v14 = vcombine.low %v3786_v25, %v3790_v40  ;;  %v3770_v2 = vld [vmem:[#allocation19 + $0x218] sm:$0xff] }
 0xc28   : > { %4651 = vmatprep.mubr.bf16.mxu1 %v9198_v21  ;;  %4704 = vmatprep.mubr.bf16.mxu0 %v9198_v21  ;;  %v6453_v21 = vcombine.high %v3825_v50, %v3829_v63  ;;  %v3797_v30 = vld [vmem:[#allocation19 + $0x2f0] sm:$0xff]  ;;  %v3778_v50 = vld [vmem:[#allocation19 + $0x258] sm:$0xff] }
 0xc29   : > { %v6420_v18 = vcombine.low %v3793_v58, %v3797_v30  ;;  %v3782_v63 = vld [vmem:[#allocation19 + $0x278] sm:$0xff] }
 0xc2a   : > { %4630 = vmatpush1.bf16.msra.mxu1 %v6348_v47  ;;  %4683 = vmatpush1.bf16.msra.mxu0 %v6350_v42  ;;  %v6421_v47 = vcombine.high %v3793_v58, %v3797_v30  ;;  %v6423_v42 = vcombine.high %v3794_v4, %v3798_v32  ;;  %v3774_v45 = vld [vmem:[#allocation19 + $0x238] sm:$0xff]  ;;  %v6406_v15 = vcombine.low %v3778_v50, %v3782_v63  ;;  %v7476_v4 = vld [vmem:[#allocation20 + $0x24] ss:$8 sps:$4 sm:$0xff]  }
 0xc2b   : > { %4631 = vmatprep.subr.bf16.mxu1 %v6341_v17  ;;  %4684 = vmatprep.subr.bf16.mxu0 %v6343_v7  ;;  %v3785_v17 = vld [vmem:[#allocation19 + $0x290] sm:$0xff]  ;;  %v7479_v32 = vld [vmem:[#allocation20 + $0x124] ss:$8 sps:$4 sm:$0xff]  }
 0xc2c   : > { %v3789_v7 = vld [vmem:[#allocation19 + $0x2b0] sm:$0xff] }
 0xc2d   : > { %v6412_v10 = vcombine.low %v3785_v17, %v3789_v7  ;;  %v7446_v53 = vld [vmem:[#allocation20 + $0x74] ss:$8 sps:$4 sm:$0xff]   ;;  %v7444_v20 = vld [vmem:[#allocation20 + $0x70] ss:$8 sps:$4 sm:$0xff]  }
 0xc2e   : > { %4632 = vmatpush1.bf16.msra.mxu1 %v6340_v0  ;;  %4685 = vmatpush1.bf16.msra.mxu0 %v6342_v1  ;;  %v6413_v0 = vcombine.high %v3785_v17, %v3789_v7  ;;  %v6415_v1 = vcombine.high %v3786_v25, %v3790_v40  ;;  %v7449_v22 = vld [vmem:[#allocation20 + $0x174] ss:$8 sps:$4 sm:$0xff]   ;;  %v7447_v60 = vld [vmem:[#allocation20 + $0x170] ss:$8 sps:$4 sm:$0xff]   ;;  %v7488_v7 = vld [vmem:[#allocation20 + $0x4] ss:$8 sps:$4 sm:$0xff]  }
 0xc2f   : > { %4633 = vmatprep.subr.bf16.mxu1 %v6333_v19  ;;  %4686 = vmatprep.subr.bf16.mxu0 %v6335_v26  ;;  %v3777_v19 = vld [vmem:[#allocation19 + $0x250] sm:$0xff]  ;;  %v7491_v25 = vld [vmem:[#allocation20 + $0x104] ss:$8 sps:$4 sm:$0xff]   ;;  %v7486_v40 = vld [vmem:[#allocation20] ss:$8 sps:$4 sm:$0xff]  }
 0xc30   : > { %v3781_v26 = vld [vmem:[#allocation19 + $0x270] sm:$0xff] }
 0xc31   : > { %v6404_v13 = vcombine.low %v3777_v19, %v3781_v26  ;;  %v7458_v34 = vld [vmem:[#allocation20 + $0x54] ss:$8 sps:$4 sm:$0xff]   ;;  %v7456_v43 = vld [vmem:[#allocation20 + $0x50] ss:$8 sps:$4 sm:$0xff]  }
 0xc32   : > { %4634 = vmatpush1.bf16.msra.mxu1 %v6332_v12  ;;  %4687 = vmatpush1.bf16.msra.mxu0 %v6334_v31  ;;  %v6405_v12 = vcombine.high %v3777_v19, %v3781_v26  ;;  %v6407_v31 = vcombine.high %v3778_v50, %v3782_v63  ;;  %v7461_v52 = vld [vmem:[#allocation20 + $0x154] ss:$8 sps:$4 sm:$0xff]   ;;  %v7459_v8 = vld [vmem:[#allocation20 + $0x150] ss:$8 sps:$4 sm:$0xff]   ;;  %v7500_v26 = vld [vmem:[#allocation20 + $0xe4] ss:$8 sps:$4 sm:$0xff]  }
 0xc33   : > { %4635 = vmatprep.subr.bf16.mxu1 %v6453_v21  ;;  %4688 = vmatprep.subr.bf16.mxu0 %v6455_v27  ;;  %v3769_v21 = vld [vmem:[#allocation19 + $0x210] sm:$0xff]  ;;  %v7503_v50 = vld [vmem:[#allocation20 + $0x1e4] ss:$8 sps:$4 sm:$0xff]   ;;  %v7498_v63 = vld [vmem:[#allocation20 + $0xe0] ss:$8 sps:$4 sm:$0xff]  }
 0xc34   : > { %v3773_v27 = vld [vmem:[#allocation19 + $0x230] sm:$0xff] }
 0xc35   : > { %v7468_v58 = vld [vmem:[#allocation20 + $0x30] ss:$8 sps:$4 sm:$0xff]  }
 0xc36   : > { %4636 = vmatpush2.bf16.msra.mxu1 %v6452_v61  ;;  %4689 = vmatpush2.bf16.msra.mxu0 %v6454_v36  ;;  %v6397_v61 = vcombine.high %v3769_v21, %v3773_v27  ;;  %v6399_v36 = vcombine.high %v3770_v2, %v3774_v45  ;;  %v7471_v30 = vld [vmem:[#allocation20 + $0x130] ss:$8 sps:$4 sm:$0xff]  }
 0xc37   : > { %4637 = vmatprep.subr.bf16.mxu1 %v6445_v9  ;;  %4690 = vmatprep.subr.bf16.mxu0 %v6447_v24  ;;  %v6396_v9 = vcombine.low %v3769_v21, %v3773_v27  ;;  %v6398_v24 = vcombine.low %v3770_v2, %v3774_v45  ;;  %v7483_v17 = vld [vmem:[#allocation20 + $0x110] ss:$8 sps:$4 sm:$0xff]   ;;  %v7512_v27 = vld [vmem:[#allocation20 + $0xc4] ss:$8 sps:$4 sm:$0xff]   ;;  %v7510_v45 = vld [vmem:[#allocation20 + $0xc0] ss:$8 sps:$4 sm:$0xff]  }
 0xc38   : > { %v7495_v19 = vld [vmem:[#allocation20 + $0x1f0] ss:$8 sps:$4 sm:$0xff]   ;;  %v7515_v2 = vld [vmem:[#allocation20 + $0x1c4] ss:$8 sps:$4 sm:$0xff]  }
 0xc39   : > { %v7507_v21 = vld [vmem:[#allocation20 + $0x1d0] ss:$8 sps:$4 sm:$0xff]  }
 0xc3a   : > { %4638 = vmatpush2.bf16.msra.mxu1 %v6444_v3  ;;  %4691 = vmatpush2.bf16.msra.mxu0 %v6446_v16  ;;  %v7452_v3 = vld [vmem:[#allocation20 + $0x64] ss:$8 sps:$4 sm:$0xff]  }
 0xc3b   : > { %4639 = vmatprep.subr.bf16.mxu1 %v6437_v48  ;;  %4692 = vmatprep.subr.bf16.mxu0 %v6439_v59  ;;  %v7455_v16 = vld [vmem:[#allocation20 + $0x164] ss:$8 sps:$4 sm:$0xff]   ;;  %v7450_v48 = vld [vmem:[#allocation20 + $0x60] ss:$8 sps:$4 sm:$0xff]  }
 0xc3c   : > { %v7453_v59 = vld [vmem:[#allocation20 + $0x160] ss:$8 sps:$4 sm:$0xff]  }
 0xc3e   : > { %4640 = vmatpush2.bf16.msra.mxu1 %v6436_v11  ;;  %4693 = vmatpush2.bf16.msra.mxu0 %v6438_v37  ;;  %v7464_v11 = vld [vmem:[#allocation20 + $0x44] ss:$8 sps:$4 sm:$0xff]   ;;  %v7465_v37 = vld [vmem:[#allocation20 + $0x140] ss:$8 sps:$4 sm:$0xff]  }
 0xc3f   : > { %4641 = vmatprep.subr.bf16.mxu1 %v6429_v49  ;;  %4694 = vmatprep.subr.bf16.mxu0 %v6431_v39  ;;  %v7470_v49 = vld [vmem:[#allocation20 + $0x34] ss:$8 sps:$4 sm:$0xff]  }
 0xc40   : > { %v7473_v39 = vld [vmem:[#allocation20 + $0x134] ss:$8 sps:$4 sm:$0xff]  }
 0xc42   : > { %4642 = vmatpush2.bf16.msra.mxu1 %v6428_v33  ;;  %4695 = vmatpush2.bf16.msra.mxu0 %v6430_v5  ;;  %v7474_v33 = vld [vmem:[#allocation20 + $0x20] ss:$8 sps:$4 sm:$0xff]   ;;  %v7482_v5 = vld [vmem:[#allocation20 + $0x14] ss:$8 sps:$4 sm:$0xff]  }
 0xc43   : > { %4643 = vmatprep.subr.bf16.mxu1 %v6421_v47  ;;  %4696 = vmatprep.subr.bf16.mxu0 %v6423_v42  ;;  %v7485_v47 = vld [vmem:[#allocation20 + $0x114] ss:$8 sps:$4 sm:$0xff]   ;;  %v7480_v42 = vld [vmem:[#allocation20 + $0x10] ss:$8 sps:$4 sm:$0xff]  }
 0xc46   : > { %4644 = vmatpush2.bf16.msra.mxu1 %v6420_v18  ;;  %4697 = vmatpush2.bf16.msra.mxu0 %v6422_v55  ;;  %v7489_v18 = vld [vmem:[#allocation20 + $0x100] ss:$8 sps:$4 sm:$0xff]   ;;  %v7494_v55 = vld [vmem:[#allocation20 + $0xf4] ss:$8 sps:$4 sm:$0xff]  }
 0xc47   : > { %4645 = vmatprep.subr.bf16.mxu1 %v6413_v0  ;;  %4698 = vmatprep.subr.bf16.mxu0 %v6415_v1  ;;  %v7497_v0 = vld [vmem:[#allocation20 + $0x1f4] ss:$8 sps:$4 sm:$0xff]   ;;  %v7492_v1 = vld [vmem:[#allocation20 + $0xf0] ss:$8 sps:$4 sm:$0xff]  }
 0xc4a   : > { %4646 = vmatpush2.bf16.msra.mxu1 %v6412_v10  ;;  %4699 = vmatpush2.bf16.msra.mxu0 %v6414_v14  ;;  %v7501_v10 = vld [vmem:[#allocation20 + $0x1e0] ss:$8 sps:$4 sm:$0xff]   ;;  %v7506_v14 = vld [vmem:[#allocation20 + $0xd4] ss:$8 sps:$4 sm:$0xff]  }
 0xc4b   : > { %4647 = vmatprep.subr.bf16.mxu1 %v6405_v12  ;;  %4700 = vmatprep.subr.bf16.mxu0 %v6407_v31  ;;  %v7509_v12 = vld [vmem:[#allocation20 + $0x1d4] ss:$8 sps:$4 sm:$0xff]   ;;  %v7504_v31 = vld [vmem:[#allocation20 + $0xd0] ss:$8 sps:$4 sm:$0xff]  }
 0xc4e   : > { %4648 = vmatpush2.bf16.msra.mxu1 %v6404_v13  ;;  %4701 = vmatpush2.bf16.msra.mxu0 %v6406_v15  ;;  %v7513_v13 = vld [vmem:[#allocation20 + $0x1c0] ss:$8 sps:$4 sm:$0xff]   ;;  %v7518_v15 = vld [vmem:[#allocation20 + $0xb4] ss:$8 sps:$4 sm:$0xff]  }
 0xc4f   : > { %4649 = vmatprep.subr.bf16.mxu1 %v6397_v61  ;;  %4702 = vmatprep.subr.bf16.mxu0 %v6399_v36  ;;  %v7521_v61 = vld [vmem:[#allocation20 + $0x1b4] ss:$8 sps:$4 sm:$0xff]   ;;  %v7516_v36 = vld [vmem:[#allocation20 + $0xb0] ss:$8 sps:$4 sm:$0xff]  }
 0xc52   : > { %4650 = vmatpush2.bf16.msra.mxu1 %v6396_v9  ;;  %4703 = vmatpush2.bf16.msra.mxu0 %v6398_v24  ;;  %v7519_v9 = vld [vmem:[#allocation20 + $0x1b0] ss:$8 sps:$4 sm:$0xff]   ;;  %v7524_v24 = vld [vmem:[#allocation20 + $0xa4] ss:$8 sps:$4 sm:$0xff]  }
 0xc53   : > { %5681 = vmatprep.subr.bf16.mxu1 %v7446_v53  ;;  %5734 = vmatprep.subr.bf16.mxu0 %v7449_v22  ;;  %v7527_v53 = vld [vmem:[#allocation20 + $0x1a4] ss:$8 sps:$4 sm:$0xff]   ;;  %v7522_v22 = vld [vmem:[#allocation20 + $0xa0] ss:$8 sps:$4 sm:$0xff]  }
 0xc55   : > { %4652 = vmatmul.mubr.bf16.vlgmr.msra.gmra.mxu1 %v9200_v62  ;;  %4705 = vmatmul.mubr.bf16.vlgmr.msra.gmra.mxu0 %v9200_v62  ;;  %v7467_v62 = vld [vmem:[#allocation20 + $0x144] ss:$8 sps:$4 sm:$0xff]  }
 0xc56   : > { %4661 = vmatprep.mubr.bf16.mxu1 %v9218_v38  ;;  %4714 = vmatprep.mubr.bf16.mxu0 %v9218_v38  ;;  %v7462_v38 = vld [vmem:[#allocation20 + $0x40] ss:$8 sps:$4 sm:$0xff]  }
 0xc57   : > { %5682 = vmatpush1.bf16.msra.mxu1 %v7444_v20  ;;  %5735 = vmatpush1.bf16.msra.mxu0 %v7447_v60  ;;  %v7525_v20 = vld [vmem:[#allocation20 + $0x1a0] ss:$8 sps:$4 sm:$0xff]   ;;  %v7530_v60 = vld [vmem:[#allocation20 + $0x94] ss:$8 sps:$4 sm:$0xff]  }
 0xc58   : > { %5683 = vmatprep.subr.bf16.mxu1 %v7452_v3  ;;  %5736 = vmatprep.subr.bf16.mxu0 %v7455_v16  ;;  %v7533_v3 = vld [vmem:[#allocation20 + $0x194] ss:$8 sps:$4 sm:$0xff]   ;;  %v7528_v16 = vld [vmem:[#allocation20 + $0x90] ss:$8 sps:$4 sm:$0xff]  }
 0xc5b   : > { %5684 = vmatpush1.bf16.msra.mxu1 %v7450_v48  ;;  %5737 = vmatpush1.bf16.msra.mxu0 %v7453_v59  ;;  %v7531_v48 = vld [vmem:[#allocation20 + $0x190] ss:$8 sps:$4 sm:$0xff]   ;;  %v7536_v59 = vld [vmem:[#allocation20 + $0x84] ss:$8 sps:$4 sm:$0xff]  }
 0xc5c   : > { %5685 = vmatprep.subr.bf16.mxu1 %v7458_v34  ;;  %5738 = vmatprep.subr.bf16.mxu0 %v7461_v52  ;;  %v7539_v34 = vld [vmem:[#allocation20 + $0x184] ss:$8 sps:$4 sm:$0xff]   ;;  %v7534_v52 = vld [vmem:[#allocation20 + $0x80] ss:$8 sps:$4 sm:$0xff]  }
 0xc5d   : > { %4662 = vmatmul.mubr.bf16.gmra.mxu1 %v9220_v54  ;;  %4715 = vmatmul.mubr.bf16.gmra.mxu0 %v9220_v54  ;;  %v7477_v54 = vld [vmem:[#allocation20 + $0x120] ss:$8 sps:$4 sm:$0xff]  }
 0xc5f   : > { %5686 = vmatpush1.bf16.msra.mxu1 %v7456_v43  ;;  %5739 = vmatpush1.bf16.msra.mxu0 %v7459_v8  ;;  %v7537_v43 = vld [vmem:[#allocation20 + $0x180] ss:$8 sps:$4 sm:$0xff]   ;;  %v7542_v8 = vld [vmem:[#allocation20 + $0x274] ss:$8 sps:$4 sm:$0xff]  }
 0xc60   : > { %5687 = vmatprep.subr.bf16.mxu1 %v7464_v11  ;;  %5740 = vmatprep.subr.bf16.mxu0 %v7467_v62  ;;  %v7545_v11 = vld [vmem:[#allocation20 + $0x374] ss:$8 sps:$4 sm:$0xff]   ;;  %v3843_v62 = vsub.s32 2, %v8658_v41 }
 0xc63   : > { %5688 = vmatpush1.bf16.msra.mxu1 %v7462_v38  ;;  %5741 = vmatpush1.bf16.msra.mxu0 %v7465_v37  ;;  %v9238_v38 = vld [vmem:[%s9547_s2] sm:$0xff]  ;;  %v3847_v37 = vsub.s32 3, %v8658_v41  ;;  %s9415_s2 = scalar_lea.hbm %s9551_s27, %s6588_s19 }
 0xc64   : > { %5689 = vmatprep.subr.bf16.mxu1 %v7470_v49  ;;  %5742 = vmatprep.subr.bf16.mxu0 %v7473_v39  ;;  %v3836_v49 = vrot.slane %v9238_v38, %v9072_v51  ;;  %v3844_v39 = vrot.slane %v9238_v38, %v3843_v62 }
 0xc67   : > { %5690 = vmatpush1.bf16.msra.mxu1 %v7468_v58  ;;  %5743 = vmatpush1.bf16.msra.mxu0 %v7471_v30 }
 0xc68   : > { %5691 = vmatprep.subr.bf16.mxu1 %v7476_v4  ;;  %5744 = vmatprep.subr.bf16.mxu0 %v7479_v32  ;;  %v9246_v4 = vrot.slane %v9238_v38, %v9078_v29  ;;  %v9249_v32 = vrot.slane %v9238_v38, %v3847_v37 }
 0xc6b   : > { %5692 = vmatpush1.bf16.msra.mxu1 %v7474_v33  ;;  %5745 = vmatpush1.bf16.msra.mxu0 %v7477_v54 }
 0xc6c   : > { %5693 = vmatprep.subr.bf16.mxu1 %v7482_v5  ;;  %5746 = vmatprep.subr.bf16.mxu0 %v7485_v47 }
 0xc6f   : > { %5694 = vmatpush1.bf16.msra.mxu1 %v7480_v42  ;;  %5747 = vmatpush1.bf16.msra.mxu0 %v7483_v17 }
 0xc70   : > { %5695 = vmatprep.subr.bf16.mxu1 %v7488_v7  ;;  %5748 = vmatprep.subr.bf16.mxu0 %v7491_v25 }
 0xc73   : > { %5696 = vmatpush1.bf16.msra.mxu1 %v7486_v40  ;;  %5749 = vmatpush1.bf16.msra.mxu0 %v7489_v18 }
 0xc74   : > { %5697 = vmatprep.subr.bf16.mxu1 %v7494_v55  ;;  %5750 = vmatprep.subr.bf16.mxu0 %v7497_v0 }
 0xc77   : > { %5698 = vmatpush2.bf16.msra.mxu1 %v7492_v1  ;;  %5751 = vmatpush2.bf16.msra.mxu0 %v7495_v19 }
 0xc78   : > { %5699 = vmatprep.subr.bf16.mxu1 %v7500_v26  ;;  %5752 = vmatprep.subr.bf16.mxu0 %v7503_v50 }
 0xc7b   : > { %5700 = vmatpush2.bf16.msra.mxu1 %v7498_v63  ;;  %5753 = vmatpush2.bf16.msra.mxu0 %v7501_v10 }
 0xc7c   : > { %5701 = vmatprep.subr.bf16.mxu1 %v7506_v14  ;;  %5754 = vmatprep.subr.bf16.mxu0 %v7509_v12 }
 0xc7f   : > { %5702 = vmatpush2.bf16.msra.mxu1 %v7504_v31  ;;  %5755 = vmatpush2.bf16.msra.mxu0 %v7507_v21 }
 0xc80   : > { %5703 = vmatprep.subr.bf16.mxu1 %v7512_v27  ;;  %5756 = vmatprep.subr.bf16.mxu0 %v7515_v2 }
 0xc83   : > { %5704 = vmatpush2.bf16.msra.mxu1 %v7510_v45  ;;  %5757 = vmatpush2.bf16.msra.mxu0 %v7513_v13 }
 0xc84   : > { %5705 = vmatprep.subr.bf16.mxu1 %v7518_v15  ;;  %5758 = vmatprep.subr.bf16.mxu0 %v7521_v61 }
 0xc87   : > { %5706 = vmatpush2.bf16.msra.mxu1 %v7516_v36  ;;  %5759 = vmatpush2.bf16.msra.mxu0 %v7519_v9 }
 0xc88   : > { %5707 = vmatprep.subr.bf16.mxu1 %v7524_v24  ;;  %5760 = vmatprep.subr.bf16.mxu0 %v7527_v53 }
 0xc8b   : > { %5708 = vmatpush2.bf16.msra.mxu1 %v7522_v22  ;;  %5761 = vmatpush2.bf16.msra.mxu0 %v7525_v20 }
 0xc8c   : > { %5709 = vmatprep.subr.bf16.mxu1 %v7530_v60  ;;  %5762 = vmatprep.subr.bf16.mxu0 %v7533_v3 }
 0xc8f   : > { %5710 = vmatpush2.bf16.msra.mxu1 %v7528_v16  ;;  %5763 = vmatpush2.bf16.msra.mxu0 %v7531_v48 }
 0xc90   : > { %5711 = vmatprep.subr.bf16.mxu1 %v7536_v59  ;;  %5764 = vmatprep.subr.bf16.mxu0 %v7539_v34 }
 0xc93   : > { %5712 = vmatpush2.bf16.msra.mxu1 %v7534_v52  ;;  %5765 = vmatpush2.bf16.msra.mxu0 %v7537_v43 }
 0xc94   : > { %5787 = vmatprep.subr.bf16.mxu1 %v7542_v8  ;;  %5840 = vmatprep.subr.bf16.mxu0 %v7545_v11 }
 0xcd5   : > { %v4547_v58 = vpop.f32.mrf.mxu1  ;;  %v4600_v30 = vpop.f32.mrf.mxu0 }
 0xcd6   : > { %v4548_v33 = vadd.f32 %v4547_v58, %v3836_v49  ;;  %v4601_v54 = vadd.f32 %v4600_v30, %v3844_v39 }
 0xcd7   : > { %v4549_v5 = vpop.f32.mrf.mxu1  ;;  %v4602_v47 = vpop.f32.mrf.mxu0 }
 0xcd8   : > { %v4757_v42 = vmul.f32 0.70710677, %v4548_v33  ;;  %v4759_v17 = vmul.f32 0.70710677, %v4601_v54  ;;  %v4550_v7 = vadd.f32 %v4549_v5, %v9246_v4  ;;  %v4603_v25 = vadd.f32 %v4602_v47, %v9249_v32 }
 0xcd9   : > { %v4551_v40 = vpop.f32.mrf.mxu1  ;;  %v4604_v18 = vpop.f32.mrf.mxu0  ;;  %v4725_v61 = vmul.f32 0.5, %v4548_v33  ;;  %v4727_v36 = vmul.f32 0.5, %v4601_v54 }
 0xcda   : > { %7692 = verf.f32 %v4757_v42  ;;  %v4552_v55 = vadd.f32 %v4551_v40, %v3836_v49  ;;  %v4605_v0 = vadd.f32 %v4604_v18, %v3844_v39  ;;  %v4758_v1 = vmul.f32 0.70710677, %v4550_v7 }
 0xcdb   : > { %v4553_v19 = vpop.f32.mrf.mxu1  ;;  %v4606_v26 = vpop.f32.mrf.mxu0  ;;  %7694 = verf.f32 %v4759_v17  ;;  %v4760_v50 = vmul.f32 0.70710677, %v4603_v25  ;;  %v4726_v9 = vmul.f32 0.5, %v4550_v7  ;;  %v4728_v22 = vmul.f32 0.5, %v4603_v25 }
 0xcdc   : > { %v4765_v63 = vmul.f32 0.70710677, %v4552_v55  ;;  %7696 = verf.f32 %v4758_v1  ;;  %v4767_v10 = vmul.f32 0.70710677, %v4605_v0  ;;  %v4554_v14 = vadd.f32 %v4553_v19, %v9246_v4 }
 0xcdd   : > { %v4607_v12 = vadd.f32 %v4606_v26, %v9249_v32  ;;  %7698 = verf.f32 %v4760_v50  ;;  %v4733_v52 = vmul.f32 0.5, %v4552_v55  ;;  %v4735_v43 = vmul.f32 0.5, %v4605_v0 }
 0xcde   : > { %7700 = verf.f32 %v4765_v63  ;;  %v4766_v31 = vmul.f32 0.70710677, %v4554_v14  ;;  %v4734_v37 = vmul.f32 0.5, %v4554_v14 }
 0xcdf   : > { %7702 = verf.f32 %v4767_v10  ;;  %v4768_v21 = vmul.f32 0.70710677, %v4607_v12  ;;  %v4736_v58 = vmul.f32 0.5, %v4607_v12 }
 0xce0   : > { %7704 = verf.f32 %v4766_v31 }
 0xce1   : > { %7706 = verf.f32 %v4768_v21 }
 0xce5   : > { %v4557_v27 = vpop.f32.mrf.mxu1  ;;  %v4610_v2 = vpop.f32.mrf.mxu0 }
 0xce6   : > { %v9255_v24 = vadd.f32 %v4557_v27, %v3836_v49  ;;  %v9257_v20 = vadd.f32 %v4610_v2, %v3844_v39 }
 0xce7   : > { %v7693_v45 = vpop.eup %7692  ;;  %v4559_v13 = vpop.f32.mrf.mxu1 }
 0xce8   : > { %v4612_v15 = vpop.f32.mrf.mxu0  ;;  %v7695_v53 = vpop.eup %7694  ;;  %v9260_v60 = vadd.f32 %v4559_v13, %v9246_v4  ;;  %v4821_v34 = vadd.f32 1.0, %v7693_v45  ;;  %v4773_v54 = vmul.f32 0.70710677, %v9255_v24  ;;  %v4775_v25 = vmul.f32 0.70710677, %v9257_v20 }
 0xce9   : > { %v9263_v3 = vadd.f32 %v4612_v15, %v9249_v32  ;;  %v4561_v16 = vpop.f32.mrf.mxu1  ;;  %v7697_v59 = vpop.eup %7696  ;;  %v4823_v17 = vadd.f32 1.0, %v7695_v53  ;;  %v7540_v53 = vld [vmem:[#allocation20 + $0x270] ss:$8 sps:$4 sm:$0xff]  }
 0xcea   : > { %v4614_v48 = vpop.f32.mrf.mxu0  ;;  %v9265_v8 = vadd.f32 %v4561_v16, %v3836_v49  ;;  %v7699_v11 = vpop.eup %7698  ;;  %v4822_v62 = vadd.f32 1.0, %v7697_v59  ;;  %v4774_v5 = vmul.f32 0.70710677, %v9260_v60  ;;  %v4853_v55 = vmul.f32 %v4821_v34, %v4725_v61  ;;  %v7548_v59 = vld [vmem:[#allocation20 + $0x264] ss:$8 sps:$4 sm:$0xff]  }
 0xceb   : > { %v9267_v30 = vadd.f32 %v4614_v48, %v3844_v39  ;;  %v7701_v33 = vpop.eup %7700  ;;  %v4776_v47 = vmul.f32 0.70710677, %v9263_v3  ;;  %v4563_v40 = vpop.f32.mrf.mxu1  ;;  %v4824_v0 = vadd.f32 1.0, %v7699_v11  ;;  %v4855_v15 = vmul.f32 %v4823_v17, %v4727_v36  ;;  %v7543_v48 = vld [vmem:[#allocation20 + $0x370] ss:$8 sps:$4 sm:$0xff]  }
 0xcec   : > { %v7703_v42 = vpop.eup %7702  ;;  %v4829_v7 = vadd.f32 1.0, %v7701_v33  ;;  %v4781_v49 = vmul.f32 0.70710677, %v9265_v8  ;;  %7708 = verf.f32 %v4774_v5  ;;  %v4616_v1 = vpop.f32.mrf.mxu0  ;;  %v4854_v26 = vmul.f32 %v4822_v62, %v4726_v9  ;;  %v7549_v36 = vld [vmem:[#allocation20 + $0x360] ss:$8 sps:$4 sm:$0xff]  }
 0xced   : > { %v7705_v18 = vpop.eup %7704  ;;  %v4831_v39 = vadd.f32 1.0, %v7703_v42  ;;  %7710 = verf.f32 %v4776_v47  ;;  %v4783_v63 = vmul.f32 0.70710677, %v9267_v30  ;;  %v9276_v12 = vadd.f32 %v4563_v40, %v9246_v4  ;;  %v7552_v62 = vld [vmem:[#allocation20 + $0x250] ss:$8 sps:$4 sm:$0xff]  }
 0xcee   : > { %v7707_v19 = vpop.eup %7706  ;;  %v4830_v50 = vadd.f32 1.0, %v7705_v18  ;;  %v4861_v10 = vmul.f32 %v4829_v7, %v4733_v52  ;;  %7712 = verf.f32 %v4781_v49  ;;  %v9279_v27 = vadd.f32 %v4616_v1, %v9249_v32  ;;  %v7551_v32 = vld [vmem:[#allocation20 + $0x364] ss:$8 sps:$4 sm:$0xff]   ;;  %v7554_v52 = vld [vmem:[#allocation20 + $0x254] ss:$8 sps:$4 sm:$0xff]  }
 0xcef   : > { %v4832_v14 = vadd.f32 1.0, %v7707_v19  ;;  %v4863_v31 = vmul.f32 %v4831_v39, %v4735_v43  ;;  %7714 = verf.f32 %v4783_v63  ;;  %v4856_v2 = vmul.f32 %v4824_v0, %v4728_v22  ;;  %v7546_v22 = vld [vmem:[#allocation20 + $0x260] ss:$8 sps:$4 sm:$0xff]   ;;  %v7557_v43 = vld [vmem:[#allocation20 + $0x354] ss:$8 sps:$4 sm:$0xff]  }
 0xcf0   : > { %v4862_v21 = vmul.f32 %v4830_v50, %v4734_v37  ;;  %7716 = verf.f32 %v4773_v54  ;;  %v4782_v13 = vmul.f32 0.70710677, %v9276_v12  ;;  %v4784_v61 = vmul.f32 0.70710677, %v9279_v27  ;;  %v7560_v33 = vld [vmem:[#allocation20 + $0x244] ss:$8 sps:$4 sm:$0xff]  }
 0xcf1   : > { %v4864_v45 = vmul.f32 %v4832_v14, %v4736_v58  ;;  %7718 = verf.f32 %v4775_v25  ;;  %v4885_v16 = vpack.c.bf16 %v4861_v10, %v4853_v55  ;;  %v4887_v34 = vpack.c.bf16 %v4863_v31, %v4855_v15  ;;  %v7555_v58 = vld [vmem:[#allocation20 + $0x350] ss:$8 sps:$4 sm:$0xff]   ;;  %v7563_v5 = vld [vmem:[#allocation20 + $0x344] ss:$8 sps:$4 sm:$0xff]   ;;  %v7558_v17 = vld [vmem:[#allocation20 + $0x240] ss:$8 sps:$4 sm:$0xff]  }
 0xcf2   : > { %v4886_v9 = vpack.c.bf16 %v4862_v21, %v4854_v26  ;;  %7720 = verf.f32 %v4782_v13  ;;  %v7561_v40 = vld [vmem:[#allocation20 + $0x340] ss:$8 sps:$4 sm:$0xff]   ;;  %v7566_v18 = vld [vmem:[#allocation20 + $0x234] ss:$8 sps:$4 sm:$0xff]   ;;  %v4742_v0 = vmul.f32 0.5, %v9260_v60  ;;  %v4744_v39 = vmul.f32 0.5, %v9263_v3 }
 0xcf3   : > { %v4888_v4 = vpack.c.bf16 %v4864_v45, %v4856_v2  ;;  %7722 = verf.f32 %v4784_v61  ;;  %v7569_v26 = vld [vmem:[#allocation20 + $0x334] ss:$8 sps:$4 sm:$0xff]   ;;  %v4749_v10 = vmul.f32 0.5, %v9265_v8  ;;  %v4750_v14 = vmul.f32 0.5, %v9276_v12  ;;  %v7564_v60 = vld [vmem:[#allocation20 + $0x230] ss:$8 sps:$4 sm:$0xff]  }
 0xcf4   : > { %5713 = vmatprep.mubr.bf16.mxu1 %v4886_v9  ;;  %v4751_v2 = vmul.f32 0.5, %v9267_v30  ;;  %v4752_v45 = vmul.f32 0.5, %v9279_v27  ;;  %v4741_v3 = vmul.f32 0.5, %v9255_v24  ;;  %v4743_v8 = vmul.f32 0.5, %v9257_v20  ;;  %v7572_v30 = vld [vmem:[#allocation20 + $0x224] ss:$8 sps:$4 sm:$0xff]  }
 0xcf5   : > { %5766 = vmatprep.mubr.bf16.mxu0 %v4888_v4  ;;  %5714 = vmatmul.mubr.bf16.vlgmr.msra.gmra.mxu1 %v4885_v16  ;;  %v7570_v24 = vld [vmem:[#allocation20 + $0x220] ss:$8 sps:$4 sm:$0xff]  }
 0xcf6   : > { %5767 = vmatmul.mubr.bf16.vlgmr.msra.gmra.mxu0 %v4887_v34  ;;  %5788 = vmatpush1.bf16.msra.mxu1 %v7540_v53  ;;  %v7567_v53 = vld [vmem:[#allocation20 + $0x330] ss:$8 sps:$4 sm:$0xff]  }
 0xcf7   : > { %5841 = vmatpush1.bf16.msra.mxu0 %v7543_v48  ;;  %5789 = vmatprep.subr.bf16.mxu1 %v7548_v59  ;;  %v7575_v59 = vld [vmem:[#allocation20 + $0x324] ss:$8 sps:$4 sm:$0xff]  }
 0xcf8   : > { %5842 = vmatprep.subr.bf16.mxu0 %v7551_v32 }
 0xcf9   : > { %v7709_v11 = vpop.eup %7708 }
 0xcfa   : > { %5790 = vmatpush1.bf16.msra.mxu1 %v7546_v22  ;;  %v7711_v37 = vpop.eup %7710  ;;  %v4838_v25 = vadd.f32 1.0, %v7709_v11  ;;  %v7573_v22 = vld [vmem:[#allocation20 + $0x320] ss:$8 sps:$4 sm:$0xff]   ;;  %v7576_v11 = vld [vmem:[#allocation20 + $0x210] ss:$8 sps:$4 sm:$0xff]  }
 0xcfb   : > { %5843 = vmatpush1.bf16.msra.mxu0 %v7549_v36  ;;  %5791 = vmatprep.subr.bf16.mxu1 %v7554_v52  ;;  %v7713_v54 = vpop.eup %7712  ;;  %v4840_v1 = vadd.f32 1.0, %v7711_v37  ;;  %v7578_v52 = vld [vmem:[#allocation20 + $0x214] ss:$8 sps:$4 sm:$0xff]   ;;  %v7584_v37 = vld [vmem:[#allocation20 + $0x204] ss:$8 sps:$4 sm:$0xff]  }
 0xcfc   : > { %5844 = vmatprep.subr.bf16.mxu0 %v7557_v43  ;;  %v7715_v47 = vpop.eup %7714  ;;  %v4845_v49 = vadd.f32 1.0, %v7713_v54  ;;  %v4870_v15 = vmul.f32 %v4838_v25, %v4742_v0  ;;  %v7581_v43 = vld [vmem:[#allocation20 + $0x314] ss:$8 sps:$4 sm:$0xff]   ;;  %v3859_v54 = vsub.s32 6, %v8658_v41  ;;  %v3863_v25 = vsub.s32 7, %v8658_v41 }
 0xcfd   : > { %v7717_v42 = vpop.eup %7716  ;;  %v4847_v19 = vadd.f32 1.0, %v7715_v47  ;;  %v4872_v12 = vmul.f32 %v4840_v1, %v4744_v39  ;;  %v7585_v47 = vld [vmem:[#allocation20 + $0x300] ss:$8 sps:$4 sm:$0xff]   ;;  %v7596_v0 = vld [vmem:[#allocation20 + $0x2e4] ss:$8 sps:$4 sm:$0xff]  }
 0xcfe   : > { %5792 = vmatpush1.bf16.msra.mxu1 %v7552_v62  ;;  %v7719_v7 = vpop.eup %7718  ;;  %v4837_v63 = vadd.f32 1.0, %v7717_v42  ;;  %v4877_v61 = vmul.f32 %v4845_v49, %v4749_v10  ;;  %v7579_v62 = vld [vmem:[#allocation20 + $0x310] ss:$8 sps:$4 sm:$0xff]   ;;  %v7590_v42 = vld [vmem:[#allocation20 + $0x2f4] ss:$8 sps:$4 sm:$0xff]  }
 0xcff   : > { %5845 = vmatpush1.bf16.msra.mxu0 %v7555_v58  ;;  %5793 = vmatprep.subr.bf16.mxu1 %v7560_v33  ;;  %v7721_v55 = vpop.eup %7720  ;;  %v4839_v21 = vadd.f32 1.0, %v7719_v7  ;;  %v4879_v16 = vmul.f32 %v4847_v19, %v4751_v2  ;;  %v7587_v58 = vld [vmem:[#allocation20 + $0x304] ss:$8 sps:$4 sm:$0xff]   ;;  %v3851_v33 = vsub.s32 4, %v8658_v41  ;;  %v3855_v7 = vsub.s32 5, %v8658_v41 }
 0xd00   : > { %5846 = vmatprep.subr.bf16.mxu0 %v7563_v5  ;;  %v7723_v50 = vpop.eup %7722  ;;  %v4846_v31 = vadd.f32 1.0, %v7721_v55  ;;  %v4869_v48 = vmul.f32 %v4837_v63, %v4741_v3  ;;  %v7582_v5 = vld [vmem:[#allocation20 + $0x200] ss:$8 sps:$4 sm:$0xff]   ;;  %v7591_v55 = vld [vmem:[#allocation20 + $0x3f0] ss:$8 sps:$4 sm:$0xff]   ;;  %v9305_v41 = vrot.slane %v9238_v38, %v3863_v25 }
 0xd01   : > { %v4848_v13 = vadd.f32 1.0, %v7723_v50  ;;  %v4871_v34 = vmul.f32 %v4839_v21, %v4743_v8  ;;  %v9296_v49 = vrot.slane %v9238_v38, %v3851_v33  ;;  %v9302_v19 = vrot.slane %v9238_v38, %v3855_v7  ;;  %v7597_v21 = vld [vmem:[#allocation20 + $0x3e0] ss:$8 sps:$4 sm:$0xff]  }
 0xd02   : > { %5794 = vmatpush1.bf16.msra.mxu1 %v7558_v17  ;;  %v4878_v9 = vmul.f32 %v4846_v31, %v4750_v14  ;;  %v4893_v36 = vpack.c.bf16 %v4877_v61, %v4869_v48  ;;  %v7593_v17 = vld [vmem:[#allocation20 + $0x3f4] ss:$8 sps:$4 sm:$0xff]   ;;  %v7594_v31 = vld [vmem:[#allocation20 + $0x2e0] ss:$8 sps:$4 sm:$0xff]  }
 0xd03   : > { %5847 = vmatpush1.bf16.msra.mxu0 %v7561_v40  ;;  %5795 = vmatprep.subr.bf16.mxu1 %v7566_v18  ;;  %v4880_v4 = vmul.f32 %v4848_v13, %v4752_v45  ;;  %v4895_v20 = vpack.c.bf16 %v4879_v16, %v4871_v34  ;;  %v9299_v40 = vrot.slane %v9238_v38, %v3859_v54  ;;  %v7588_v18 = vld [vmem:[#allocation20 + $0x2f0] ss:$8 sps:$4 sm:$0xff]   ;;  %v7602_v38 = vld [vmem:[#allocation20 + $0x2d4] ss:$8 sps:$4 sm:$0xff]   ;;  %v7609_v33 = vld [vmem:[#allocation20 + $0x3c0] ss:$8 sps:$4 sm:$0xff]  }
 0xd04   : > { %5848 = vmatprep.subr.bf16.mxu0 %v7569_v26  ;;  %v4894_v27 = vpack.c.bf16 %v4878_v9, %v4870_v15  ;;  %v7599_v26 = vld [vmem:[#allocation20 + $0x3e4] ss:$8 sps:$4 sm:$0xff]   ;;  %v7605_v61 = vld [vmem:[#allocation20 + $0x3d4] ss:$8 sps:$4 sm:$0xff]  }
 0xd05   : > { %v4896_v32 = vpack.c.bf16 %v4880_v4, %v4872_v12  ;;  %v7600_v4 = vld [vmem:[#allocation20 + $0x2d0] ss:$8 sps:$4 sm:$0xff]  }
 0xd06   : > { %5796 = vmatpush1.bf16.msra.mxu1 %v7564_v60  ;;  %5723 = vmatprep.mubr.bf16.mxu1 %v4894_v27 }
 0xd07   : > { %5849 = vmatpush1.bf16.msra.mxu0 %v7567_v53  ;;  %5776 = vmatprep.mubr.bf16.mxu0 %v4896_v32 }
 0xd08   : > { %5797 = vmatprep.subr.bf16.mxu1 %v7572_v30  ;;  %5850 = vmatprep.subr.bf16.mxu0 %v7575_v59  ;;  %v7603_v30 = vld [vmem:[#allocation20 + $0x3d0] ss:$8 sps:$4 sm:$0xff]   ;;  %v7608_v59 = vld [vmem:[#allocation20 + $0x2c4] ss:$8 sps:$4 sm:$0xff]  }
 0xd09   : > { %5724 = vmatmul.mubr.bf16.gmra.mxu1 %v4893_v36  ;;  %5777 = vmatmul.mubr.bf16.gmra.mxu0 %v4895_v20 }
 0xd0a   : > { %5798 = vmatpush1.bf16.msra.mxu1 %v7570_v24 }
 0xd0b   : > { %5851 = vmatpush1.bf16.msra.mxu0 %v7573_v22  ;;  %5799 = vmatprep.subr.bf16.mxu1 %v7578_v52  ;;  %v7611_v52 = vld [vmem:[#allocation20 + $0x3c4] ss:$8 sps:$4 sm:$0xff]  }
 0xd0c   : > { %5852 = vmatprep.subr.bf16.mxu0 %v7581_v43 }
 0xd0e   : > { %5800 = vmatpush1.bf16.msra.mxu1 %v7576_v11 }
 0xd0f   : > { %5853 = vmatpush1.bf16.msra.mxu0 %v7579_v62  ;;  %5801 = vmatprep.subr.bf16.mxu1 %v7584_v37 }
 0xd10   : > { %5854 = vmatprep.subr.bf16.mxu0 %v7587_v58  ;;  %v7606_v58 = vld [vmem:[#allocation20 + $0x2c0] ss:$8 sps:$4 sm:$0xff]  }
 0xd12   : > { %5802 = vmatpush1.bf16.msra.mxu1 %v7582_v5 }
 0xd13   : > { %5855 = vmatpush1.bf16.msra.mxu0 %v7585_v47  ;;  %5803 = vmatprep.subr.bf16.mxu1 %v7590_v42  ;;  %v7614_v47 = vld [vmem:[#allocation20 + $0x2b4] ss:$8 sps:$4 sm:$0xff]  }
 0xd14   : > { %5856 = vmatprep.subr.bf16.mxu0 %v7593_v17 }
 0xd15   : > { %v4653_v39 = vpop.f32.mrf.mxu1  ;;  %v4706_v1 = vpop.f32.mrf.mxu0 }
 0xd16   : > { %v9308_v50 = vadd.f32 %v4653_v39, %v9296_v49  ;;  %v9311_v63 = vadd.f32 %v4706_v1, %v9299_v40  ;;  %5804 = vmatpush2.bf16.msra.mxu1 %v7588_v18  ;;  %v7617_v18 = vld [vmem:[#allocation20 + $0x3b4] ss:$8 sps:$4 sm:$0xff]  }
 0xd17   : > { %v4655_v10 = vpop.f32.mrf.mxu1  ;;  %v4708_v14 = vpop.f32.mrf.mxu0  ;;  %5857 = vmatpush2.bf16.msra.mxu0 %v7591_v55  ;;  %5805 = vmatprep.subr.bf16.mxu1 %v7596_v0 }
 0xd18   : > { %v4761_v2 = vmul.f32 0.70710677, %v9308_v50  ;;  %v4763_v45 = vmul.f32 0.70710677, %v9311_v63  ;;  %v9316_v13 = vadd.f32 %v4655_v10, %v9302_v19  ;;  %v9319_v60 = vadd.f32 %v4708_v14, %v9305_v41  ;;  %5858 = vmatprep.subr.bf16.mxu0 %v7599_v26  ;;  %v7612_v14 = vld [vmem:[#allocation20 + $0x2b0] ss:$8 sps:$4 sm:$0xff]  }
 0xd19   : > { %v4657_v3 = vpop.f32.mrf.mxu1  ;;  %v4710_v15 = vpop.f32.mrf.mxu0 }
 0xd1a   : > { %v9322_v9 = vadd.f32 %v4657_v3, %v9296_v49  ;;  %v9325_v53 = vadd.f32 %v4710_v15, %v9299_v40  ;;  %7724 = verf.f32 %v4761_v2  ;;  %v4762_v8 = vmul.f32 0.70710677, %v9316_v13  ;;  %5806 = vmatpush2.bf16.msra.mxu1 %v7594_v31  ;;  %v7620_v2 = vld [vmem:[#allocation20 + $0x2a4] ss:$8 sps:$4 sm:$0xff]   ;;  %v7618_v15 = vld [vmem:[#allocation20 + $0x2a0] ss:$8 sps:$4 sm:$0xff]  }
 0xd1b   : > { %v4659_v12 = vpop.f32.mrf.mxu1  ;;  %v4712_v16 = vpop.f32.mrf.mxu0  ;;  %7726 = verf.f32 %v4763_v45  ;;  %v4764_v48 = vmul.f32 0.70710677, %v9319_v60  ;;  %5859 = vmatpush2.bf16.msra.mxu0 %v7597_v21  ;;  %5807 = vmatprep.subr.bf16.mxu1 %v7602_v38  ;;  %v7615_v21 = vld [vmem:[#allocation20 + $0x3b0] ss:$8 sps:$4 sm:$0xff]   ;;  %v7623_v45 = vld [vmem:[#allocation20 + $0x3a4] ss:$8 sps:$4 sm:$0xff]  }
 0xd1c   : > { %v4769_v27 = vmul.f32 0.70710677, %v9322_v9  ;;  %7728 = verf.f32 %v4762_v8  ;;  %v4771_v34 = vmul.f32 0.70710677, %v9325_v53  ;;  %v9332_v32 = vadd.f32 %v4659_v12, %v9302_v19  ;;  %5860 = vmatprep.subr.bf16.mxu0 %v7605_v61  ;;  %v7621_v12 = vld [vmem:[#allocation20 + $0x3a0] ss:$8 sps:$4 sm:$0xff]  }
 0xd1d   : > { %v9335_v24 = vadd.f32 %v4712_v16, %v9305_v41  ;;  %v4663_v22 = vpop.f32.mrf.mxu1  ;;  %v4716_v36 = vpop.f32.mrf.mxu0  ;;  %7730 = verf.f32 %v4764_v48  ;;  %v7626_v16 = vld [vmem:[#allocation20 + $0x294] ss:$8 sps:$4 sm:$0xff]  }
 0xd1e   : > { %v9338_v20 = vadd.f32 %v4663_v22, %v9296_v49  ;;  %v9341_v43 = vadd.f32 %v4716_v36, %v9299_v40  ;;  %7732 = verf.f32 %v4769_v27  ;;  %v4770_v11 = vmul.f32 0.70710677, %v9332_v32  ;;  %5808 = vmatpush2.bf16.msra.mxu1 %v7600_v4  ;;  %v7624_v27 = vld [vmem:[#allocation20 + $0x290] ss:$8 sps:$4 sm:$0xff]   ;;  %v7632_v22 = vld [vmem:[#allocation20 + $0x284] ss:$8 sps:$4 sm:$0xff]  }
 0xd1f   : > { %v4665_v62 = vpop.f32.mrf.mxu1  ;;  %v4718_v37 = vpop.f32.mrf.mxu0  ;;  %7734 = verf.f32 %v4771_v34  ;;  %v4772_v54 = vmul.f32 0.70710677, %v9335_v24  ;;  %5861 = vmatpush2.bf16.msra.mxu0 %v7603_v30  ;;  %5809 = vmatprep.subr.bf16.mxu1 %v7608_v59  ;;  %v7627_v34 = vld [vmem:[#allocation20 + $0x390] ss:$8 sps:$4 sm:$0xff]  }
 0xd20   : > { %v4777_v5 = vmul.f32 0.70710677, %v9338_v20  ;;  %7736 = verf.f32 %v4770_v11  ;;  %v4779_v42 = vmul.f32 0.70710677, %v9341_v43  ;;  %v9348_v17 = vadd.f32 %v4665_v62, %v9302_v19  ;;  %5862 = vmatprep.subr.bf16.mxu0 %v7611_v52 }
 0xd21   : > { %v4667_v7 = vpop.f32.mrf.mxu1  ;;  %v4720_v25 = vpop.f32.mrf.mxu0  ;;  %7738 = verf.f32 %v4772_v54  ;;  %v9351_v55 = vadd.f32 %v4718_v37, %v9305_v41  ;;  %v4729_v52 = vmul.f32 0.5, %v9308_v50  ;;  %v4730_v11 = vmul.f32 0.5, %v9316_v13  ;;  %v7630_v50 = vld [vmem:[#allocation20 + $0x280] ss:$8 sps:$4 sm:$0xff]  }
 0xd22   : > { %v9354_v0 = vadd.f32 %v4667_v7, %v9296_v49  ;;  %v9357_v39 = vadd.f32 %v4720_v25, %v9299_v40  ;;  %7740 = verf.f32 %v4777_v5  ;;  %v4778_v1 = vmul.f32 0.70710677, %v9348_v17  ;;  %5810 = vmatpush2.bf16.msra.mxu1 %v7606_v58  ;;  %v7635_v58 = vld [vmem:[#allocation20 + $0x384] ss:$8 sps:$4 sm:$0xff]  }
 0xd23   : > { %v4669_v26 = vpop.f32.mrf.mxu1  ;;  %v4722_v10 = vpop.f32.mrf.mxu0  ;;  %7742 = verf.f32 %v4779_v42  ;;  %v4780_v31 = vmul.f32 0.70710677, %v9351_v55  ;;  %5863 = vmatpush2.bf16.msra.mxu0 %v7609_v33  ;;  %5811 = vmatprep.subr.bf16.mxu1 %v7614_v47  ;;  %v4737_v47 = vmul.f32 0.5, %v9322_v9  ;;  %v7633_v9 = vld [vmem:[#allocation20 + $0x380] ss:$8 sps:$4 sm:$0xff]  }
 0xd24   : > { %7744 = verf.f32 %v4778_v1  ;;  %v4785_v49 = vmul.f32 0.70710677, %v9354_v0  ;;  %v4787_v40 = vmul.f32 0.70710677, %v9357_v39  ;;  %5864 = vmatprep.subr.bf16.mxu0 %v7617_v18  ;;  %v9364_v38 = vadd.f32 %v4669_v26, %v9302_v19  ;;  %v7629_v19 = vld [vmem:[#allocation20 + $0x394] ss:$8 sps:$4 sm:$0xff]  }
 0xd25   : > { %7746 = verf.f32 %v4780_v31  ;;  %v9367_v3 = vadd.f32 %v4722_v10, %v9305_v41  ;;  %v4739_v18 = vmul.f32 0.5, %v9325_v53  ;;  %v4738_v1 = vmul.f32 0.5, %v9332_v32 }
 0xd26   : > { %7748 = verf.f32 %v4785_v49  ;;  %5812 = vmatpush2.bf16.msra.mxu1 %v7612_v14  ;;  %v4786_v8 = vmul.f32 0.70710677, %v9364_v38  ;;  %v4732_v10 = vmul.f32 0.5, %v9319_v60  ;;  %v4740_v31 = vmul.f32 0.5, %v9335_v24 }
 0xd27   : > { %v7725_v61 = vpop.eup %7724  ;;  %7750 = verf.f32 %v4787_v40  ;;  %5865 = vmatpush2.bf16.msra.mxu0 %v7615_v21  ;;  %5813 = vmatprep.subr.bf16.mxu1 %v7620_v2  ;;  %v4788_v30 = vmul.f32 0.70710677, %v9367_v3  ;;  %v4731_v49 = vmul.f32 0.5, %v9311_v63  ;;  %v4745_v63 = vmul.f32 0.5, %v9338_v20 }
 0xd28   : > { %v7727_v4 = vpop.eup %7726  ;;  %5866 = vmatprep.subr.bf16.mxu0 %v7623_v45  ;;  %7752 = verf.f32 %v4786_v8  ;;  %v4825_v54 = vadd.f32 1.0, %v7725_v61  ;;  %v4748_v20 = vmul.f32 0.5, %v9351_v55 }
 0xd29   : > { %v7729_v48 = vpop.eup %7728  ;;  %7754 = verf.f32 %v4788_v30  ;;  %v4827_v25 = vadd.f32 1.0, %v7727_v4 }
 0xd2a   : > { %v7731_v41 = vpop.eup %7730  ;;  %5814 = vmatpush2.bf16.msra.mxu1 %v7618_v15  ;;  %v4826_v62 = vadd.f32 1.0, %v7729_v48  ;;  %v4857_v15 = vmul.f32 %v4825_v54, %v4729_v52 }
 0xd2b   : > { %v7733_v59 = vpop.eup %7732  ;;  %5867 = vmatpush2.bf16.msra.mxu0 %v7621_v12  ;;  %5815 = vmatprep.subr.bf16.mxu1 %v7626_v16  ;;  %v4828_v5 = vadd.f32 1.0, %v7731_v41  ;;  %v4859_v60 = vmul.f32 %v4827_v25, %v4731_v49 }
 0xd2c   : > { %v7735_v36 = vpop.eup %7734  ;;  %v4833_v37 = vadd.f32 1.0, %v7733_v59  ;;  %5868 = vmatprep.subr.bf16.mxu0 %v7629_v19  ;;  %v4858_v40 = vmul.f32 %v4826_v62, %v4730_v11  ;;  %v4753_v11 = vmul.f32 0.5, %v9354_v0 }
 0xd2d   : > { %v7737_v33 = vpop.eup %7736  ;;  %v4835_v42 = vadd.f32 1.0, %v7735_v36  ;;  %v4860_v61 = vmul.f32 %v4828_v5, %v4732_v10  ;;  %v4746_v36 = vmul.f32 0.5, %v9348_v17 }
 0xd2e   : > { %v7739_v7 = vpop.eup %7738  ;;  %v4834_v26 = vadd.f32 1.0, %v7737_v33  ;;  %5816 = vmatpush2.bf16.msra.mxu1 %v7624_v27  ;;  %v4865_v14 = vmul.f32 %v4833_v37, %v4737_v47  ;;  %v4754_v33 = vmul.f32 0.5, %v9364_v38  ;;  %v4756_v47 = vmul.f32 0.5, %v9367_v3 }
 0xd2f   : > { %v7741_v13 = vpop.eup %7740  ;;  %v4836_v21 = vadd.f32 1.0, %v7739_v7  ;;  %5869 = vmatpush2.bf16.msra.mxu0 %v7627_v34  ;;  %5817 = vmatprep.subr.bf16.mxu1 %v7632_v22  ;;  %v4867_v53 = vmul.f32 %v4835_v42, %v4739_v18  ;;  %v4747_v7 = vmul.f32 0.5, %v9341_v43 }
 0xd30   : > { %v7743_v2 = vpop.eup %7742  ;;  %v4866_v45 = vmul.f32 %v4834_v26, %v4738_v1  ;;  %5870 = vmatprep.subr.bf16.mxu0 %v7635_v58  ;;  %v4889_v4 = vpack.c.bf16 %v4865_v14, %v4857_v15  ;;  %v4841_v22 = vadd.f32 1.0, %v7741_v13  ;;  %v4755_v58 = vmul.f32 0.5, %v9357_v39 }
 0xd31   : > { %v7745_v32 = vpop.eup %7744  ;;  %v4868_v8 = vmul.f32 %v4836_v21, %v4740_v31  ;;  %v4891_v48 = vpack.c.bf16 %v4867_v53, %v4859_v60  ;;  %v4843_v37 = vadd.f32 1.0, %v7743_v2  ;;  %v5029_v53 = vld [vmem:[%s9548_s24] sm:$0x3]  ;;  %s8132_s24 = smov [#allocation22]  }
 0xd32   : > { %v7747_v12 = vpop.eup %7746  ;;  %5818 = vmatpush2.bf16.msra.mxu1 %v7630_v50  ;;  %v4890_v16 = vpack.c.bf16 %v4866_v45, %v4858_v40  ;;  %v4842_v27 = vadd.f32 1.0, %v7745_v32  ;;  %v4873_v0 = vmul.f32 %v4841_v22, %v4745_v63  ;;  %v5034_v32 = vrot.slane %v5029_v53, %v9072_v51  ;;  %s7970_s28 = sshll.u32 %s8132_s24, 4  ;;  %s7971_s28 = int_to_ptr.vmem [resolvable:$false] %s7970_s28 }
 0xd33   : > { %v7749_v24 = vpop.eup %7748  ;;  %5871 = vmatpush2.bf16.msra.mxu0 %v7633_v9  ;;  %v4892_v30 = vpack.c.bf16 %v4868_v8, %v4860_v61  ;;  %v4844_v52 = vadd.f32 1.0, %v7747_v12  ;;  %v4875_v50 = vmul.f32 %v4843_v37, %v4747_v7  ;;  %v5038_v61 = vrot.slane %v5029_v53, %v9078_v29  ;;  %s7972_s10 = scalar_lea.vmem %s7971_s28, 2048  ;;  %p7973_p13 = scmp.lt.s32.totalorder %s9408_s8, %s7971_s28 }
 0xd34   : > { %v7751_v19 = vpop.eup %7750  ;;  %v4849_v41 = vadd.f32 1.0, %v7749_v24  ;;  %5819 = vmatprep.mubr.bf16.mxu1 %v4890_v16  ;;  %v4874_v17 = vmul.f32 %v4842_v27, %v4746_v36  ;;  %p7974_p0 = scmp.lt.s32.totalorder %s7972_s10, %s7966_s3 }
 0xd35   : > { %v4851_v59 = vadd.f32 1.0, %v7751_v19  ;;  %5872 = vmatprep.mubr.bf16.mxu0 %v4892_v30  ;;  %5820 = vmatmul.mubr.bf16.vlgmr.msra.gmra.mxu1 %v4889_v4  ;;  %v7753_v34 = vpop.eup %7752  ;;  %v4876_v1 = vmul.f32 %v4844_v52, %v4748_v20 }
 0xd36   : > { %5873 = vmatmul.mubr.bf16.vlgmr.msra.gmra.mxu0 %v4891_v48  ;;  %v7755_v62 = vpop.eup %7754  ;;  %v4850_v54 = vadd.f32 1.0, %v7753_v34  ;;  %v4881_v5 = vmul.f32 %v4849_v41, %v4753_v11  ;;  %p7975_p2 = por %p7974_p0, %p7973_p13 }
 0xd37   : > { %v4852_v42 = vadd.f32 1.0, %v7755_v62  ;;  %v4883_v25 = vmul.f32 %v4851_v59, %v4755_v58 }
 0xd38   : > { %v4882_v18 = vmul.f32 %v4850_v54, %v4754_v33  ;;  %v4897_v10 = vpack.c.bf16 %v4881_v5, %v4873_v0  ;;  %p7976_p8 = pnand %p7975_p2, %p7969_p12 }
 0xd39   : > { %v4884_v26 = vmul.f32 %v4852_v42, %v4756_v47  ;;  %v4899_v38 = vpack.c.bf16 %v4883_v25, %v4875_v50 }
 0xd3a   : > { %v4898_v13 = vpack.c.bf16 %v4882_v18, %v4874_v17 }
 0xd3b   : > { %v4900_v39 = vpack.c.bf16 %v4884_v26, %v4876_v1 }
 0xd3c   : > { %5829 = vmatprep.mubr.bf16.mxu1 %v4898_v13 }
 0xd3d   : > { %5882 = vmatprep.mubr.bf16.mxu0 %v4900_v39  ;;  %5830 = vmatmul.mubr.bf16.gmra.mxu1 %v4897_v10 }
 0xd3e   : > { %5883 = vmatmul.mubr.bf16.gmra.mxu0 %v4899_v38 }
 0xdb5   : > { %v5715_v55 = vpop.f32.mrf.mxu1 }
 0xdb6   : > { %v5768_v3 = vpop.f32.mrf.mxu0  ;;  %v5716_v12 = vadd.f32 %v5715_v55, %v5034_v32 }
 0xdb7   : > { %v5717_v14 = vpop.f32.mrf.mxu1 }
 0xdb8   : > { %v5770_v31 = vpop.f32.mrf.mxu0  ;;  %v5718_v16 = vadd.f32 %v5717_v14, %v5038_v61  ;;  %v5769_v4 = vadd.f32 %v5768_v3, %v5716_v12 }
 0xdb9   : > { %v5719_v43 = vpop.f32.mrf.mxu1 }
 0xdba   : > { %v5772_v21 = vpop.f32.mrf.mxu0  ;;  %v5720_v30 = vadd.f32 %v5719_v43, %v5034_v32  ;;  %v5771_v41 = vadd.f32 %v5770_v31, %v5718_v16 }
 0xdbb   : > { %v5721_v9 = vpop.f32.mrf.mxu1 }
 0xdbc   : > { %v5774_v2 = vpop.f32.mrf.mxu0  ;;  %v5722_v63 = vadd.f32 %v5721_v9, %v5038_v61  ;;  %v5773_v22 = vadd.f32 %v5772_v21, %v5720_v30 }
 0xdbe   : > { %v5775_v62 = vadd.f32 %v5774_v2, %v5722_v63 }
 0xdc9   : > { %v5725_v49 = vpop.f32.mrf.mxu1  ;;  %v5778_v40 = vpop.f32.mrf.mxu0 }
 0xdca   : > { %v5726_v29 = vadd.f32 %v5725_v49, %v5034_v32 }
 0xdcb   : > { %v5727_v45 = vpop.f32.mrf.mxu1  ;;  %v5780_v15 = vpop.f32.mrf.mxu0 }
 0xdcc   : > { %v5728_v20 = vadd.f32 %v5727_v45, %v5038_v61  ;;  %v5779_v25 = vadd.f32 %v5778_v40, %v5726_v29 }
 0xdcd   : > { %v5729_v8 = vpop.f32.mrf.mxu1  ;;  %v5782_v60 = vpop.f32.mrf.mxu0 }
 0xdce   : > { %v5730_v18 = vadd.f32 %v5729_v8, %v5034_v32  ;;  %v5781_v26 = vadd.f32 %v5780_v15, %v5728_v20 }
 0xdcf   : > { %v5731_v24 = vpop.f32.mrf.mxu1  ;;  %v5784_v19 = vpop.f32.mrf.mxu0 }
 0xdd0   : > { %v5732_v50 = vadd.f32 %v5731_v24, %v5038_v61  ;;  %v5783_v38 = vadd.f32 %v5782_v60, %v5730_v18 }
 0xdd2   : > { %v5785_v31 = vadd.f32 %v5784_v19, %v5732_v50 }
 0xdf5   : > { %v5821_v48 = vpop.f32.mrf.mxu1 }
 0xdf6   : > { %v5822_v27 = vadd.f32 %v5821_v48, %v5769_v4  ;;  %v5874_v59 = vpop.f32.mrf.mxu0 }
 0xdf7   : > { %v5823_v34 = vpop.f32.mrf.mxu1 }
 0xdf8   : > { %v5875_v51 = vadd.f32 %v5874_v59, %v5822_v27  ;;  %v5824_v36 = vadd.f32 %v5823_v34, %v5771_v41  ;;  %v5876_v52 = vpop.f32.mrf.mxu0 }
 0xdf9   : > { %v5825_v11 = vpop.f32.mrf.mxu1 }
 0xdfa   : > { %v5893_v37 = vadd.f32 %v5875_v51, %v9089_v44  ;;  %v5877_v58 = vadd.f32 %v5876_v52, %v5824_v36  ;;  %v5826_v33 = vadd.f32 %v5825_v11, %v5773_v22  ;;  %v5878_v54 = vpop.f32.mrf.mxu0 }
 0xdfb   : > { %v5827_v5 = vpop.f32.mrf.mxu1 }
 0xdfc   : > { %5901 = vst [vmem:[%s8452_s16] sm:$0xff] %v5893_v37  ;;  %v5894_v47 = vadd.f32 %v5877_v58, %v9091_v6  ;;  %v5879_v42 = vadd.f32 %v5878_v54, %v5826_v33  ;;  %v5828_v7 = vadd.f32 %v5827_v5, %v5775_v62  ;;  %v5880_v17 = vpop.f32.mrf.mxu0 }
 0xdfd   : > { %v5831_v1 = vpop.f32.mrf.mxu1 }
 0xdfe   : > { %5902 = vst [vmem:[%s8452_s16 + $0x8] sm:$0xff] %v5894_v47  ;;  %v5895_v0 = vadd.f32 %v5879_v42, %v9097_v56  ;;  %v5881_v44 = vadd.f32 %v5880_v17, %v5828_v7  ;;  %v5832_v13 = vadd.f32 %v5831_v1, %v5779_v25  ;;  %v5884_v39 = vpop.f32.mrf.mxu0 }
 0xdff   : > { %v5833_v10 = vpop.f32.mrf.mxu1 }
 0xe00   : > { %5903 = vst [vmem:[%s8452_s16 + $0x10] sm:$0xff] %v5895_v0  ;;  %v5896_v6 = vadd.f32 %v5881_v44, %v9099_v57  ;;  %v5885_v55 = vadd.f32 %v5884_v39, %v5832_v13  ;;  %v5834_v3 = vadd.f32 %v5833_v10, %v5781_v26  ;;  %v5886_v14 = vpop.f32.mrf.mxu0 }
 0xe01   : > { %v5835_v56 = vpop.f32.mrf.mxu1 }
 0xe02   : > { %5904 = vst [vmem:[%s8452_s16 + $0x18] sm:$0xff] %v5896_v6  ;;  %v5897_v43 = vadd.f32 %v5885_v55, %v9105_v23  ;;  %v5887_v21 = vadd.f32 %v5886_v14, %v5834_v3  ;;  %v5836_v9 = vadd.f32 %v5835_v56, %v5783_v38  ;;  %v5888_v2 = vpop.f32.mrf.mxu0 }
 0xe03   : > { %v5837_v57 = vpop.f32.mrf.mxu1 }
 0xe04   : > { %5905 = vst [vmem:[%s8452_s16 + $0x20] sm:$0xff] %v5897_v43  ;;  %v5898_v49 = vadd.f32 %v5887_v21, %v9107_v35  ;;  %v5889_v40 = vadd.f32 %v5888_v2, %v5836_v9  ;;  %v5838_v53 = vadd.f32 %v5837_v57, %v5785_v31  ;;  %v5890_v45 = vpop.f32.mrf.mxu0 }
 0xe06   : > { %5906 = vst [vmem:[%s8452_s16 + $0x28] sm:$0xff] %v5898_v49  ;;  %v5899_v23 = vadd.f32 %v5889_v40, %v9113_v46  ;;  %v5891_v32 = vadd.f32 %v5890_v45, %v5838_v53 }
 0xe08   : > { %5907 = vst [vmem:[%s8452_s16 + $0x30] sm:$0xff] %v5899_v23  ;;  %v5900_v15 = vadd.f32 %v5891_v32, %v9115_v28 }
 0xe0a   : > { %5908 = vst [vmem:[%s8452_s16 + $0x38] sm:$0xff] %v5900_v15 }
 0xe0b   : > { %7979 = shalt.err (!%p7976_p8)
}
 0xe0c   : > { %s7980_s12 = scalar_lea.hbm %s9415_s2, 1024  ;;  %s7984_s7 = scalar_lea.hbm %s9551_s27, 4096 }
 0xe0d   : > { %p7981_p4 = scmp.ne.s32.totalorder %s9415_s2, %s7980_s12  ;;  %p7985_p1 = scmp.lt.s32.totalorder %s9415_s2, %s9551_s27 }
 0xe0e   : > { %p7986_p10 = scmp.lt.s32.totalorder %s7984_s7, %s7980_s12 }
 0xe0f   : > { %p7982_p7 = pnand %p7981_p4, %p8391_p6 }
 0xe10   : > { %p7987_p9 = por %p7986_p10, %p7985_p1 }
 0xe11   : > { %p7983_p3 = pneg %p7982_p7 }
 0xe13   : > { %p7988_p11 = pnand %p7987_p9, %p7983_p3 }
 0xe15   : > { %7991 = shalt.err (!%p7988_p11)
}
 0xe16   : > { %s8133_s1 = smov 256   ;;  %s8134_s13 = smov 16  }
 0xe17   : > { %7045 = dma.vmem_to_hbm [thread:$0]  (%p8391_p6), %s9408_s8, 1024, %s9415_s2, %s9420_s4, %s8133_s1, %s8133_s1, %s8134_s13  }
 0xe18 PF: > { %p7092_p12 = scmp.ge.s32.totalorder %s8106_s23, 2  ;;  %s5941_s3 = sand.u32 1, %s8066_s29  }
 0xe19   : > { %s5942_s24 = scalar_lea.sflag [#allocation10], %s5941_s3 }
 0xe1a   : > { %p7074_p13 = pnand %p7092_p12, %p8404_p5 }
 0xe1c   : > { %p7075_p0 = pneg %p7074_p13 }
 0xe1e   : > { %8061 = dma.done.wait (%p7075_p0), %s5942_s24, 1024  }
 0xe1f   : > { %8063 = vsyncadd (%p7075_p0), %s5942_s24, 4294966272  ;;  %s34_s23 = sadd.s32 1, %s8106_s23   ;;  %s9552_s29 = smov %s8070_s30 }
 0xe20   : > { %p31_p2 = scmp.ge.s32.totalorder %s34_s23, 6   ;;  %s9553_s30 = smov %s8074_s15 }
 0xe21   : > { %s9554_s15 = smov %s8399_s11  ;;  %s9555_s16 = smov %s8082_s17 }
 0xe22   : > { %s9556_s17 = smov %s8086_s18  ;;  %s9557_s18 = smov %s8396_s20 }
 0xe23   : > { %s9558_s19 = smov %s8098_s21  ;;  %s9559_s20 = smov %s8102_s22 }
 0xe24   : > { %s9560_s21 = smov %s9563_s14  ;;  %s9561_s22 = smov %s9567_s6 }
 0xe25   :  { %33 = sbr.rel (!%p31_p2) target bundleno = 28 (0x1c), region = 181 }
 0xe2a   :  { %5947 = vsyncpa [#allocation9], 1 }
 0xe2b   :  { %5949 = vsyncpa [#allocation9 + $0x1], 1 }
 0xe2c   :  { %5950 = vsyncpa [#allocation12], 1 }
 0xe2d   :  { %5951 = vsyncpa [#allocation15], 1 }
 0xe2e   :  { %5952 = vsyncpa [#allocation18], 1 }
 0xe2f   :  { %5953 = vsyncpa [#allocation21], 1 }
 0xe30   :  { %5954 = vsyncpa [#allocation10], 1 }
 0xe31   :  { %5956 = vsyncpa [#allocation10 + $0x1], 1 }

// kernel: tpu_custom_call.1
= control target key start
LH: loop header
LB: loop body
LE: loop exit
PB: predicated region body
PF: predicated region fallthrough
CT: control target
= control target key end

     0   :  { %s9480_s0 = inlined_call_operand.hbm [shape: f32[2,64,256], index: 0, kind: input, shape index: {}]   ;;  %s9481_s1 = inlined_call_operand.hbm [shape: bf16[256,256], index: 1, kind: input, shape index: {}]   ;;  %s9482_s2 = inlined_call_operand.hbm [shape: bf16[2,256,128], index: 2, kind: input, shape index: {}]   ;;  %s9483_s3 = inlined_call_operand.hbm [shape: bf16[2,256,128], index: 3, kind: input, shape index: {}]   ;;  %s9484_s4 = inlined_call_operand.hbm [shape: bf16[256,256], index: 4, kind: input, shape index: {}]   ;;  %s9485_s5 = inlined_call_operand.vmem [shape: f32[1,256], index: 5, kind: input, shape index: {}]   ;;  %s9486_s6 = inlined_call_operand.vmem [shape: f32[1,256], index: 6, kind: input, shape index: {}]   ;;  %s9487_s7 = inlined_call_operand.vmem [shape: f32[1,256], index: 7, kind: input, shape index: {}]   ;;  %s9488_s8 = inlined_call_operand.vmem [shape: f32[1,256], index: 8, kind: input, shape index: {}]   ;;  %s9489_s9 = inlined_call_operand.hbm [shape: f32[1,256], index: 9, kind: input, shape index: {}]   ;;  %s9490_s10 = inlined_call_operand.hbm [shape: bf16[256,1024], index: 10, kind: input, shape index: {}]   ;;  %s9491_s11 = inlined_call_operand.vmem [shape: f32[1,1024], index: 11, kind: input, shape index: {}]   ;;  %s9492_s12 = inlined_call_operand.hbm [shape: bf16[1024,256], index: 12, kind: input, shape index: {}]   ;;  %s9493_s13 = inlined_call_operand.vmem [shape: f32[1,256], index: 13, kind: input, shape index: {}]   ;;  %s9494_s14 = inlined_call_operand.hbm [shape: f32[2,64,256], index: 14, kind: output, shape index: {}]  }
   0x1   :  { %9503 = sst [smem:[#allocation32_spill]] %s9481_s1 }
   0x2   :  { %9504 = sst [smem:[#allocation33_spill]] %s9482_s2 }
   0x3   :  { %9505 = sst [smem:[#allocation34_spill]] %s9483_s3 }
   0x4   :  { %9506 = sst [smem:[#allocation35_spill]] %s9484_s4 }
   0x5   :  { %9507 = sst [smem:[#allocation36_spill]] %s9485_s5 }
   0x6   :  { %9508 = sst [smem:[#allocation37_spill]] %s9486_s6 }
   0x7   :  { %9509 = sst [smem:[#allocation38_spill]] %s9487_s7 }
   0x8   :  { %9510 = sst [smem:[#allocation39_spill]] %s9488_s8 }
   0x9   :  { %9511 = sst [smem:[#allocation40_spill]] %s9489_s9 }
   0xa   :  { %9512 = sst [smem:[#allocation41_spill]] %s9490_s10 }
   0xb   :  { %9513 = sst [smem:[#allocation42_spill]] %s9491_s11 }
   0xc   :  { %9514 = sst [smem:[#allocation43_spill]] %s9492_s12 }
   0xd   :  { %9515 = sst [smem:[#allocation44_spill]] %s9493_s13 }
   0xe   :  { %9516 = sst [smem:[#allocation45_spill]] %s9494_s14 }
   0xf   :  { %19 = vsyncpa [#allocation9], 0 }
  0x10   :  { %21 = vsyncpa [#allocation9 + $0x1], 0 }
  0x11   :  { %22 = vsyncpa [#allocation12], 0 }
  0x12   :  { %23 = vsyncpa [#allocation15], 0 }
  0x13   :  { %24 = vsyncpa [#allocation18], 0 }
  0x14   :  { %25 = vsyncpa [#allocation21], 0 }
  0x15   :  { %26 = vsyncpa [#allocation10], 0 }
  0x16   :  { %28 = vsyncpa [#allocation10 + $0x1], 0  ;;  %s8210_s29 = smov 0   ;;  %s8212_s30 = smov 0  }
  0x17   :  { %s8214_s15 = smov 0   ;;  %s8216_s16 = smov 0  }
  0x18   :  { %s8218_s17 = smov 0   ;;  %s8220_s18 = smov 0  }
  0x19   :  { %s8222_s19 = smov 0   ;;  %s8224_s20 = smov 0  }
  0x1a   :  { %s8226_s21 = smov 0   ;;  %s8228_s22 = smov 0  }
  0x1b   :  { %s8230_s23 = smov 0  }
  0x1c LB: > { %9517 = sst [smem:[#allocation29_spill]] %s8090_s19  ;;  %s9496_s24 = sadd.s32 4294967295, %s8106_s23   ;;  %s8106_s23 = sphi %s8230_s23, %s34_s23   ;;  %s8102_s22 = sphi %s8228_s22, %s9561_s22   ;;  %s8098_s21 = sphi %s8226_s21, %s9560_s21   ;;  %s8094_s20 = sphi %s8224_s20, %s9559_s20   ;;  %s8090_s19 = sphi %s8222_s19, %s9558_s19   ;;  %s8086_s18 = sphi %s8220_s18, %s9557_s18   ;;  %s8082_s17 = sphi %s8218_s17, %s9556_s17   ;;  %s8078_s16 = sphi %s8216_s16, %s9555_s16   ;;  %s8074_s15 = sphi %s8214_s15, %s9554_s15   ;;  %s8070_s30 = sphi %s8212_s30, %s9553_s30   ;;  %s8066_s29 = sphi %s8210_s29, %s9552_s29  }
  0x1d   : > { %9518 = sst [smem:[#allocation30_spill]] %s8094_s20  ;;  %p6099_p0 = scmp.ge.s32.totalorder %s8106_s23, 1 }
  0x1e   : > { %p8269_p1 = scmp.eq.s32.totalorder %s9496_s24, 0  ;;  %p378_p2 = scmp.lt.s32.totalorder %s8106_s23, 5 }
  0x1f   : > { %s8112_s27 = smov [#allocation11]   ;;  %s8113_s24 = smov [#allocation14]  }
  0x20   : > { %p8274_p3 = pnand %p6099_p0, %p378_p2  ;;  %s390_s28 = sshll.u32 %s8112_s27, 4  ;;  %s391_s28 = int_to_ptr.vmem [resolvable:$true] %s390_s28 }
  0x21   : > { %s416_s20 = sshll.u32 %s8113_s24, 4  ;;  %s7767_s11 = scalar_lea.vmem %s391_s28, 4096  ;;  %s417_s20 = int_to_ptr.vmem [resolvable:$true] %s416_s20 }
  0x22   : > { %s9520_s26 = scalar_select %p8274_p3, 1, 0 }
  0x23   : > { %p7047_p4 = pneg %p8274_p3  ;;  %p7768_p7 = scmp.ne.s32.totalorder %s391_s28, %s7767_s11 }
  0x24   : > { %9521 = sst [smem:[#allocation31_spill]] %s9520_s26  ;;  %p7775_p10 = scmp.lt.s32.totalorder %s391_s28, %s391_s28 }
  0x25   : > { %p8282_p5 = pnand %p7047_p4, %p8269_p1  ;;  %p7776_p11 = scmp.lt.s32.totalorder %s7767_s11, %s7767_s11 }
  0x27   : > { %p8288_p6 = pneg %p8282_p5  ;;  %p7777_p12 = por %p7776_p11, %p7775_p10 }
  0x29   : > { %p7770_p8 = pnand %p7768_p7, %p8288_p6 }
  0x2b   : > { %p7771_p9 = pneg %p7770_p8 }
  0x2d   : > { %p7778_p13 = pnand %p7777_p12, %p7771_p9 }
  0x2f   : > { %7781 = shalt.err (!%p7778_p13)
}
  0x30   : > { %s9499_s27 = smov 128   ;;  %s9501_s24 = smov 8  }
  0x31   : > { %s9524_s1 = sld [smem:[#allocation32_spill]]  ;;  %s8116_s7 = smov [#allocation17]  }
  0x32   : > { %s455_s6 = sshll.u32 %s8116_s7, 4  ;;  %s7793_s19 = scalar_lea.vmem %s417_s20, 4096  ;;  %s456_s6 = int_to_ptr.vmem [resolvable:$true] %s455_s6 }
  0x33   : > { %p7794_p0 = scmp.ne.s32.totalorder %s417_s20, %s7793_s19  ;;  %p7801_p7 = scmp.lt.s32.totalorder %s417_s20, %s417_s20 }
  0x34   : > { %p7802_p8 = scmp.lt.s32.totalorder %s7793_s19, %s7793_s19 }
  0x35   : > { %p7796_p2 = pnand %p7794_p0, %p8288_p6 }
  0x36   : > { %p7803_p9 = por %p7802_p8, %p7801_p7 }
  0x37   : > { %7050 = dma.hbm_to_vmem [thread:$0]  (!%p8282_p5), %s9524_s1, 4096, %s391_s28, [#allocation12], %s9499_s27, %s9499_s27, %s9501_s24  }
  0x38   : > { %p7797_p4 = pneg %p7796_p2 }
  0x3a   : > { %p7804_p10 = pnand %p7803_p9, %p7797_p4 }
  0x3c   : > { %7807 = shalt.err (!%p7804_p10)
}
  0x3d   : > { %s8117_s11 = smov 64   ;;  %s8118_s26 = smov 4  }
  0x3e   : > { %s9525_s3 = sld [smem:[#allocation34_spill]]  ;;  %s7819_s8 = scalar_lea.vmem %s456_s6, 32 }
  0x3f   : > { %p7820_p11 = scmp.ne.s32.totalorder %s456_s6, %s7819_s8  ;;  %p7827_p0 = scmp.lt.s32.totalorder %s456_s6, %s456_s6 }
  0x40   : > { %p7828_p2 = scmp.lt.s32.totalorder %s7819_s8, %s7819_s8 }
  0x41   : > { %p7822_p12 = pnand %p7820_p11, %p8288_p6 }
  0x42   : > { %p7829_p4 = por %p7828_p2, %p7827_p0 }
  0x43   : > { %p7823_p13 = pneg %p7822_p12 }
  0x44   : > { %7056 = dma.hbm_to_vmem [thread:$0]  (!%p8282_p5), %s9525_s3, 4096, %s417_s20, [#allocation15], %s8117_s11, %s8117_s11, %s8118_s26  }
  0x45   : > { %p7830_p7 = pnand %p7829_p4, %p7823_p13 }
  0x47   : > { %7833 = shalt.err (!%p7830_p7)
}
  0x48   : > { %s9526_s9 = sld [smem:[#allocation40_spill]]  ;;  %s8119_s5 = smov [#allocation13]  }
  0x49   : > { %s403_s20 = sshll.u32 %s8119_s5, 4  ;;  %s8120_s7 = smov [#allocation16]   ;;  %s404_s20 = int_to_ptr.vmem [resolvable:$true] %s403_s20 }
  0x4a   : > { %s429_s27 = sshll.u32 %s8120_s7, 4  ;;  %s7845_s24 = scalar_lea.vmem %s404_s20, 4096  ;;  %s430_s27 = int_to_ptr.vmem [resolvable:$true] %s429_s27 }
  0x4b   : > { %p7846_p8 = scmp.ne.s32.totalorder %s404_s20, %s7845_s24  ;;  %p7853_p11 = scmp.lt.s32.totalorder %s404_s20, %s404_s20 }
  0x4c   : > { %p7854_p12 = scmp.lt.s32.totalorder %s7845_s24, %s7845_s24 }
  0x4d   : > { %p7848_p9 = pnand %p7846_p8, %p8288_p6 }
  0x4e   : > { %7062 = dma.hbm_to_vmem [thread:$0]  (!%p8282_p5), %s9526_s9, 32, %s456_s6, [#allocation18]  }
  0x4f   : > { %p7849_p10 = pneg %p7848_p9  ;;  %p7855_p13 = por %p7854_p12, %p7853_p11 }
  0x51   : > { %p7856_p0 = pnand %p7855_p13, %p7849_p10 }
  0x53   : > { %7859 = shalt.err (!%p7856_p0)
}
  0x54   : > { %s9527_s2 = sld [smem:[#allocation33_spill]]  ;;  %s7871_s19 = scalar_lea.vmem %s430_s27, 4096 }
  0x55   : > { %p7872_p2 = scmp.ne.s32.totalorder %s430_s27, %s7871_s19  ;;  %p7879_p8 = scmp.lt.s32.totalorder %s430_s27, %s430_s27 }
  0x56   : > { %p7880_p9 = scmp.lt.s32.totalorder %s7871_s19, %s7871_s19 }
  0x57   : > { %p7874_p4 = pnand %p7872_p2, %p8288_p6 }
  0x58   : > { %p7881_p10 = por %p7880_p9, %p7879_p8 }
  0x59   : > { %p7875_p7 = pneg %p7874_p4 }
  0x5a   : > { %7053 = dma.hbm_to_vmem [thread:$0]  (!%p8282_p5), %s9527_s2, 4096, %s404_s20, [#allocation12], %s8117_s11, %s8117_s11, %s8118_s26  }
  0x5b   : > { %p7882_p11 = pnand %p7881_p10, %p7875_p7 }
  0x5d   : > { %7885 = shalt.err (!%p7882_p11)
}
  0x5e   : > { %s9528_s24 = smov 8   ;;  %s9529_s28 = smov 128  }
  0x5f   : > { %s9530_s4 = sld [smem:[#allocation35_spill]]  ;;  %s8121_s26 = smov [#allocation19]  }
  0x60   : > { %s465_s11 = sshll.u32 %s8121_s26, 4  ;;  %s466_s11 = int_to_ptr.vmem [resolvable:$true] %s465_s11 }
  0x61   : > { %s7897_s20 = scalar_lea.vmem %s466_s11, 16384  ;;  %p7905_p2 = scmp.lt.s32.totalorder %s466_s11, %s466_s11 }
  0x62   : > { %p7898_p12 = scmp.ne.s32.totalorder %s466_s11, %s7897_s20  ;;  %p7906_p4 = scmp.lt.s32.totalorder %s7897_s20, %s7897_s20 }
  0x64   : > { %p7900_p13 = pnand %p7898_p12, %p8288_p6  ;;  %p7907_p7 = por %p7906_p4, %p7905_p2 }
  0x65   : > { %7059 = dma.hbm_to_vmem [thread:$0]  (!%p8282_p5), %s9530_s4, 4096, %s430_s27, [#allocation15], %s9529_s28, %s9529_s28, %s9528_s24  }
  0x66   : > { %p7901_p0 = pneg %p7900_p13 }
  0x68   : > { %p7908_p8 = pnand %p7907_p7, %p7901_p0 }
  0x6a   : > { %7911 = shalt.err (!%p7908_p8)
}
  0x6b   : > { %s8122_s6 = smov 512   ;;  %s8123_s8 = smov 32  }
  0x6c   : > { %s9531_s10 = sld [smem:[#allocation41_spill]]  ;;  %s8124_s5 = smov [#allocation20]  }
  0x6d   : > { %s481_s7 = sshll.u32 %s8124_s5, 4  ;;  %s482_s7 = int_to_ptr.vmem [resolvable:$true] %s481_s7 }
  0x6e   : > { %s7923_s26 = scalar_lea.vmem %s482_s7, 16384  ;;  %p7931_p12 = scmp.lt.s32.totalorder %s482_s7, %s482_s7 }
  0x6f   : > { %p7924_p9 = scmp.ne.s32.totalorder %s482_s7, %s7923_s26  ;;  %p7932_p13 = scmp.lt.s32.totalorder %s7923_s26, %s7923_s26 }
  0x71   : > { %p7926_p10 = pnand %p7924_p9, %p8288_p6  ;;  %p7933_p0 = por %p7932_p13, %p7931_p12 }
  0x72   : > { %7065 = dma.hbm_to_vmem [thread:$0]  (!%p8282_p5), %s9531_s10, 16384, %s466_s11, [#allocation18], %s8122_s6, %s8122_s6, %s8123_s8  }
  0x73   : > { %p7927_p11 = pneg %p7926_p10 }
  0x75   : > { %p7934_p2 = pnand %p7933_p0, %p7927_p11 }
  0x77   : > { %7937 = shalt.err (!%p7934_p2)
}
  0x78   : > { %s9532_s12 = sld [smem:[#allocation43_spill]]  ;;  %s6098_s13 = sadd.s32 4294967294, %s8106_s23  }
  0x79   : > { %s43_s14 = sadd.s32 1, %s8098_s21  ;;  %s46_s6 = sadd.s32 1, %s8102_s22 }
  0x7a   : > { %p44_p6 = scmp.ge.s32.totalorder %s43_s14, 2  ;;  %s53_s8 = sadd.s32 1, %s8086_s18 }
  0x7b   : > { %p60_p4 = scmp.ne.s32.totalorder %s8086_s18, %s8082_s17  ;;  %p61_p7 = scmp.eq.s32.totalorder %s8106_s23, 0 }
  0x7c   : > { %s9563_s14 = smov (%p44_p6, %s43_s14), 0  ;;  %s9565_s6 = smov (!%p44_p6, %s46_s6), %s8102_s22 }
  0x7d   : > { %p8366_p8 = por %p61_p7, %p60_p4  ;;  %p48_p9 = scmp.ge.s32.totalorder %s9565_s6, 2 }
  0x7e   : > { %7068 = dma.hbm_to_vmem [thread:$0]  (!%p8282_p5), %s9532_s12, 16384, %s482_s7, [#allocation21], %s9529_s28, %s9529_s28, %s9528_s24  }
  0x7f   : > { %p66_p5 = scmp.ne.s32.totalorder %s8082_s17, %s8078_s16  ;;  %s350_s28 = ssub.s32 %s8098_s21, %s9563_s14 }
  0x80   : > { %s354_s27 = sadd.s32 1, %s8074_s15  ;;  %s9567_s6 = smov (%p48_p9, %s9565_s6), 0 }
  0x81   : > { %p8376_p10 = por %p8269_p1, %p66_p5  ;;  %p364_p11 = scmp.ne.s32.totalorder %s8074_s15, %s8070_s30 }
  0x82   : > { %s9535_s5 = sadd.s32 4294967295, %s8106_s23   ;;  %s50_s7 = ssub.s32 %s8102_s22, %s9567_s6 }
  0x83   : > { %p365_p12 = scmp.eq.s32.totalorder %s9535_s5, 3  ;;  %p370_p13 = scmp.ne.s32.totalorder %s8070_s30, %s8066_s29 }
  0x84   : > { %p51_p0 = scmp.eq.s32.totalorder %s50_s7, 0  ;;  %s351_s16 = sor.u32 %s350_s28, %s50_s7 }
  0x85   : > { %p352_p2 = scmp.eq.s32.totalorder %s351_s16, 0  ;;  %p8391_p6 = por %p365_p12, %p364_p11 }
  0x86   : > { %s8396_s20 = scalar_select %p51_p0, %s8086_s18, %s53_s8  }
  0x87   : > { %s8399_s11 = scalar_select %p352_p2, %s8074_s15, %s354_s27  }
  0x88   : > { %p371_p4 = scmp.eq.s32.totalorder %s6098_s13, 3  ;;  %p7084_p7 = scmp.lt.s32.totalorder %s8106_s23, 4 }
  0x89   : > { %s498_s1 = sand.u32 1, %s8086_s18   ;;  %s6591_s2 = sshll.u32 %s8102_s22, 11 }
  0x8a   : > { %p8404_p5 = por %p371_p4, %p370_p13  ;;  %s6108_s3 = sshll.u32 %s498_s1, 7 }
  0x8b   : > { %s508_s7 = scalar_lea.hbm %s9480_s0, %s6591_s2  ;;  %p8413_p9 = pnand %p7084_p7, %p8366_p8 }
  0x8c   : > { %s502_s8 = scalar_lea.vmem [#allocation8], %s6108_s3  ;;  %s499_s27 = scalar_lea.sflag [#allocation9], %s498_s1 }
  0x8d   : > { %s509_s13 = sshll.u32 %s502_s8, 4  ;;  %p7940_p11 = pneg %p8413_p9  ;;  %s510_s13 = int_to_ptr.vmem [resolvable:$true] %s509_s13 }
  0x8e   : > { %s7951_s9 = scalar_lea.vmem %s510_s13, 2048  ;;  %s8125_s10 = smov [#allocation8]  }
  0x8f   : > { %p7952_p12 = scmp.ne.s32.totalorder %s510_s13, %s7951_s9  ;;  %s7956_s12 = sshll.u32 %s8125_s10, 4  ;;  %s7957_s12 = int_to_ptr.vmem [resolvable:$false] %s7956_s12 }
  0x90   : > { %s7958_s2 = scalar_lea.vmem %s7957_s12, 4096  ;;  %p7959_p2 = scmp.lt.s32.totalorder %s510_s13, %s7957_s12 }
  0x91   : > { %p7954_p13 = pnand %p7952_p12, %p7940_p11  ;;  %p7960_p8 = scmp.lt.s32.totalorder %s7958_s2, %s7951_s9 }
  0x93   : > { %p7955_p0 = pneg %p7954_p13  ;;  %p7961_p4 = por %p7960_p8, %p7959_p2 }
  0x95   : > { %p7962_p7 = pnand %p7961_p4, %p7955_p0 }
  0x97   : > { %7965 = shalt.err (!%p7962_p7)
}
  0x98   : > { %s8126_s4 = smov 256   ;;  %s8127_s3 = smov 16  }
  0x99   : > { %7072 = dma.hbm_to_vmem [thread:$0]  (!%p8413_p9), %s508_s7, 2048, %s510_s13, %s499_s27, %s8126_s4, %s8126_s4, %s8127_s3  }
  0x9a   : > { %521 = sbr.rel (%p8274_p3) target bundleno = 3608 (0xe18), region = 76  ;;  %s523_s24 = sand.u32 (!%p8274_p3), 1, %s8082_s17  }
  0x9b   : > { %s6112_s28 = sshll.u32 (!%p8274_p3), %s523_s24, 7  ;;  %s524_s10 = scalar_lea.sflag (!%p8274_p3), [#allocation9], %s523_s24 }
  0x9c   : > { %s8424_s8 = scalar_lea.vmem (!%p8274_p3), [#allocation8], %s6112_s28 }
  0x9f   : > { %8041 = dma.done.wait (%p8376_p10), %s524_s10, 2048  }
  0xa0   : > { %8043 = vsyncadd (%p8376_p10), %s524_s10, 4294965248 }
  0xa1   : > { %8045 = dma.done.wait (%p8269_p1), [#allocation12], 8192  }
  0xa2   : > { %8047 = vsyncadd (%p8269_p1), [#allocation12], 4294959104 }
  0xa3   : > { %8049 = dma.done.wait (%p8269_p1), [#allocation15], 8192  }
  0xa4   : > { %8051 = vsyncadd (%p8269_p1), [#allocation15], 4294959104 }
  0xa5   : > { %8053 = dma.done.wait (%p8269_p1), [#allocation18], 16416  }
  0xa6   : > { %8055 = vsyncadd (%p8269_p1), [#allocation18], 4294950880 }
  0xa7   : > { %8057 = dma.done.wait (%p8269_p1), [#allocation21], 16384  }
  0xa8   : > { %8059 = vsyncadd (%p8269_p1), [#allocation21], 4294950912  ;;  %s9540_s9 = sld [smem:[#allocation29_spill]]  ;;  %s597_s12 = sand.u32 1, %s8070_s30  }
  0xa9   : > { %s6120_s7 = sshll.u32 %s597_s12, 6 }
  0xaa   : > { %s8452_s16 = scalar_lea.vmem [#allocation22], %s6120_s7 }
  0xae   : > { %s8448_s19 = sshll.u32 %s9540_s9, 5  ;;  %p6122_p3 = scmp.ne.s32.totalorder %s9540_s9, 0 }
  0xaf   : > { %s9541_s27 = sld [smem:[#allocation37_spill]] (!%p6122_p3) }
  0xb0   : > { %606 = sbr.rel (%p6122_p3) target bundleno = 758 (0x2f6), region = 112  ;;  %s9542_s3 = sld [smem:[#allocation38_spill]] (!%p6122_p3) }
  0xb5   : > { %v609_v0 = vld [vmem:[%s8424_s8] sm:$0xff]  ;;  %v610_v1 = vld [vmem:[%s8424_s8 + $0x8] sm:$0xff]  ;;  %v611_v5 = vld [vmem:[%s8424_s8 + $0x10] sm:$0xff] }
  0xb6   : > { %v613_v2 = vld [vmem:[%s8424_s8 + $0x20] sm:$0xff]  ;;  %v625_v3 = vadd.f32 %v610_v1, %v609_v0  ;;  %v614_v4 = vld [vmem:[%s8424_s8 + $0x28] sm:$0xff]  ;;  %v612_v6 = vld [vmem:[%s8424_s8 + $0x18] sm:$0xff] }
  0xb7   : > { %v631_v7 = vadd.f32 %v614_v4, %v613_v2  ;;  %v615_v8 = vld [vmem:[%s8424_s8 + $0x30] sm:$0xff]  ;;  %v616_v9 = vld [vmem:[%s8424_s8 + $0x38] sm:$0xff]  ;;  %v628_v10 = vadd.f32 %v612_v6, %v611_v5  ;;  %v617_v12 = vld [vmem:[%s8424_s8 + $0x40] sm:$0xff] }
  0xb8   : > { %626 = vadd.xlane.f32.xlu0 %v625_v3  ;;  %v634_v11 = vadd.f32 %v616_v9, %v615_v8  ;;  %v618_v13 = vld [vmem:[%s8424_s8 + $0x48] sm:$0xff]  ;;  %v619_v14 = vld [vmem:[%s8424_s8 + $0x50] sm:$0xff]  ;;  %v620_v15 = vld [vmem:[%s8424_s8 + $0x58] sm:$0xff] }
  0xb9   : > { %632 = vadd.xlane.f32.xlu1 %v631_v7  ;;  %v8468_v16 = vld [vmem:[%s8424_s8 + $0x60] sm:$0xff]  ;;  %v8471_v17 = vld [vmem:[%s8424_s8 + $0x68] sm:$0xff]  ;;  %v637_v18 = vadd.f32 %v618_v13, %v617_v12  ;;  %v8474_v19 = vld [vmem:[%s8424_s8 + $0x70] sm:$0xff]  ;;  %v640_v21 = vadd.f32 %v620_v15, %v619_v14 }
  0xba   : > { %v8477_v20 = vld [vmem:[%s8424_s8 + $0x78] sm:$0xff]  ;;  %v643_v22 = vadd.f32 %v8471_v17, %v8468_v16 }
  0xbb   : > { %v646_v23 = vadd.f32 %v8477_v20, %v8474_v19  ;;  %v7210_v24 = vld [vmem:[#allocation13 + $0x78] sm:$0xff]  }
  0xbc   : > { %629 = vadd.xlane.f32.xlu0 %v628_v10  ;;  %v7211_v25 = vld [vmem:[#allocation14 + $0x78] sm:$0xff]   ;;  %6727 = vmatprep.subr.bf16.mxu0 %v7210_v24  ;;  %v7218_v24 = vld [vmem:[#allocation13 + $0x68] sm:$0xff]  }
  0xbd   : > { %635 = vadd.xlane.f32.xlu1 %v634_v11  ;;  %v7212_v26 = vld [vmem:[#allocation13 + $0x38] sm:$0xff]   ;;  %6767 = vmatprep.subr.bf16.mxu1 %v7211_v25  ;;  %v7219_v25 = vld [vmem:[#allocation14 + $0x68] sm:$0xff]  }
  0xbe   : > { %v7213_v27 = vld [vmem:[#allocation14 + $0x38] sm:$0xff]   ;;  %6728 = vmatpush3.bf16.msra.mxu0 %v7212_v26  ;;  %v7220_v26 = vld [vmem:[#allocation13 + $0x28] sm:$0xff]  }
  0xbf   : > { %6768 = vmatpush3.bf16.msra.mxu1 %v7213_v27  ;;  %v7221_v27 = vld [vmem:[#allocation14 + $0x28] sm:$0xff]  }
  0xc0   : > { %638 = vadd.xlane.f32.xlu0 %v637_v18 }
  0xc1   : > { %641 = vadd.xlane.f32.xlu1 %v640_v21  ;;  %v7216_v21 = vld [vmem:[#allocation13 + $0x30] sm:$0xff]  }
  0xc4   : > { %644 = vadd.xlane.f32.xlu0 %v643_v22  ;;  %v7217_v22 = vld [vmem:[#allocation14 + $0x30] sm:$0xff]  }
  0xc5   : > { %647 = vadd.xlane.f32.xlu1 %v646_v23 }
 0x141   : > { %v627_v28 = vpop.xlane.xlu0 %626 }
 0x142   : > { %v650_v29 = vmul.f32 0.00390625, %v627_v28  ;;  %v633_v30 = vpop.xlane.xlu1 %632  ;;  %v7222_v28 = vld [vmem:[#allocation13 + $0x60] sm:$0xff]  }
 0x143   : > { %v652_v31 = vmul.f32 0.00390625, %v633_v30  ;;  %v7224_v30 = vld [vmem:[#allocation13 + $0x20] sm:$0xff]  }
 0x144   : > { %v8483_v32 = vsub.f32 %v609_v0, %v650_v29  ;;  %v8485_v33 = vsub.f32 %v610_v1, %v650_v29  ;;  %v7223_v29 = vld [vmem:[#allocation14 + $0x60] sm:$0xff]  }
 0x145   : > { %v8487_v34 = vsub.f32 %v613_v2, %v652_v31  ;;  %v8489_v35 = vsub.f32 %v614_v4, %v652_v31  ;;  %v630_v36 = vpop.xlane.xlu0 %629  ;;  %v7225_v31 = vld [vmem:[#allocation14 + $0x20] sm:$0xff]  }
 0x146   : > { %v651_v37 = vmul.f32 0.00390625, %v630_v36  ;;  %v636_v38 = vpop.xlane.xlu1 %635  ;;  %v674_v39 = vmul.f32 %v8483_v32, %v8483_v32  ;;  %v675_v41 = vmul.f32 %v8485_v33, %v8485_v33  ;;  %v7226_v36 = vld [vmem:[#allocation13 + $0x58] sm:$0xff]  }
 0x147   : > { %v653_v40 = vmul.f32 0.00390625, %v636_v38  ;;  %v678_v44 = vmul.f32 %v8487_v34, %v8487_v34  ;;  %v679_v45 = vmul.f32 %v8489_v35, %v8489_v35  ;;  %v7228_v38 = vld [vmem:[#allocation13 + $0x18] sm:$0xff]  }
 0x148   : > { %v8495_v42 = vsub.f32 %v611_v5, %v651_v37  ;;  %v8497_v43 = vsub.f32 %v612_v6, %v651_v37  ;;  %v690_v49 = vadd.f32 %v675_v41, %v674_v39  ;;  %v7227_v37 = vld [vmem:[#allocation14 + $0x58] sm:$0xff]   ;;  %v7231_v41 = vld [vmem:[#allocation14 + $0x50] sm:$0xff]  }
 0x149   : > { %v8503_v46 = vsub.f32 %v615_v8, %v653_v40  ;;  %v8505_v47 = vsub.f32 %v616_v9, %v653_v40  ;;  %v639_v48 = vpop.xlane.xlu0 %638  ;;  %v696_v53 = vadd.f32 %v679_v45, %v678_v44  ;;  %v7229_v39 = vld [vmem:[#allocation14 + $0x18] sm:$0xff]   ;;  %v7230_v40 = vld [vmem:[#allocation13 + $0x50] sm:$0xff]  }
 0x14a   : > { %v654_v50 = vmul.f32 0.00390625, %v639_v48  ;;  %v642_v51 = vpop.xlane.xlu1 %641  ;;  %691 = vadd.xlane.f32.xlu0 %v690_v49  ;;  %v676_v54 = vmul.f32 %v8495_v42, %v8495_v42  ;;  %v677_v57 = vmul.f32 %v8497_v43, %v8497_v43  ;;  %v7232_v44 = vld [vmem:[#allocation13 + $0x10] sm:$0xff]   ;;  %v7234_v48 = vld [vmem:[#allocation13 + $0x48] sm:$0xff]  }
 0x14b   : > { %v655_v52 = vmul.f32 0.00390625, %v642_v51  ;;  %v680_v58 = vmul.f32 %v8503_v46, %v8503_v46  ;;  %v681_v62 = vmul.f32 %v8505_v47, %v8505_v47  ;;  %v7233_v45 = vld [vmem:[#allocation14 + $0x10] sm:$0xff]   ;;  %v7235_v49 = vld [vmem:[#allocation14 + $0x48] sm:$0xff]  }
 0x14c   : > { %v8509_v55 = vsub.f32 %v617_v12, %v654_v50  ;;  %v8511_v56 = vsub.f32 %v618_v13, %v654_v50  ;;  %v693_v0 = vadd.f32 %v677_v57, %v676_v54  ;;  %v7236_v50 = vld [vmem:[#allocation13 + $0x8] sm:$0xff]   ;;  %v7240_v54 = vld [vmem:[#allocation13] sm:$0xff]  }
 0x14d   : > { %v8517_v59 = vsub.f32 %v619_v14, %v655_v52  ;;  %v8519_v60 = vsub.f32 %v620_v15, %v655_v52  ;;  %v645_v61 = vpop.xlane.xlu0 %644  ;;  %v699_v3 = vadd.f32 %v681_v62, %v680_v58  ;;  %v7237_v51 = vld [vmem:[#allocation14 + $0x8] sm:$0xff]   ;;  %v7238_v52 = vld [vmem:[#allocation13 + $0x40] sm:$0xff]   ;;  %v7242_v58 = vld [vmem:[#allocation13 + $0xf8] sm:$0xff]  }
 0x14e   : > { %v656_v63 = vmul.f32 0.00390625, %v645_v61  ;;  %v648_v1 = vpop.xlane.xlu1 %647  ;;  %697 = vadd.xlane.f32.xlu0 %v696_v53  ;;  %694 = vadd.xlane.f32.xlu1 %v693_v0  ;;  %v682_v6 = vmul.f32 %v8509_v55, %v8509_v55  ;;  %v683_v7 = vmul.f32 %v8511_v56, %v8511_v56  ;;  %v7239_v53 = vld [vmem:[#allocation14 + $0x40] sm:$0xff]   ;;  %v7243_v61 = vld [vmem:[#allocation14 + $0xf8] sm:$0xff]  }
 0x14f   : > { %v657_v2 = vmul.f32 0.00390625, %v648_v1  ;;  %v684_v10 = vmul.f32 %v8517_v59, %v8517_v59  ;;  %v685_v11 = vmul.f32 %v8519_v60, %v8519_v60  ;;  %v7241_v57 = vld [vmem:[#allocation14] sm:$0xff]  }
 0x150   : > { %v8524_v4 = vsub.f32 %v8468_v16, %v656_v63  ;;  %v8527_v5 = vsub.f32 %v8471_v17, %v656_v63  ;;  %v702_v12 = vadd.f32 %v683_v7, %v682_v6  ;;  %v723_v63 = vlaneseq }
 0x151   : > { %v8534_v8 = vsub.f32 %v8474_v19, %v657_v2  ;;  %v8537_v9 = vsub.f32 %v8477_v20, %v657_v2  ;;  %v705_v15 = vadd.f32 %v685_v11, %v684_v10  ;;  %v7214_v19 = vld [vmem:[#allocation13 + $0x70] sm:$0xff]  }
 0x152   : > { %v686_v13 = vmul.f32 %v8524_v4, %v8524_v4  ;;  %v687_v14 = vmul.f32 %v8527_v5, %v8527_v5  ;;  %700 = vadd.xlane.f32.xlu1 %v699_v3  ;;  %703 = vadd.xlane.f32.xlu0 %v702_v12  ;;  %v7215_v20 = vld [vmem:[#allocation14 + $0x70] sm:$0xff]   ;;  %v724_v3 = vshrl.u32 %v723_v63, 7 }
 0x153   : > { %v688_v16 = vmul.f32 %v8534_v8, %v8534_v8  ;;  %v689_v17 = vmul.f32 %v8537_v9, %v8537_v9  ;;  %6729 = vmatprep.subr.bf16.mxu0 %v7214_v19  ;;  %6769 = vmatprep.subr.bf16.mxu1 %v7215_v20 }
 0x154   : > { %v708_v18 = vadd.f32 %v687_v14, %v686_v13  ;;  %6730 = vmatpush3.bf16.msra.mxu0 %v7216_v21  ;;  %6770 = vmatpush3.bf16.msra.mxu1 %v7217_v22  ;;  %v725_v13 = vsub.s32 0, %v724_v3  ;;  %v729_v14 = vsub.s32 1, %v724_v3 }
 0x155   : > { %v711_v23 = vadd.f32 %v689_v17, %v688_v16  ;;  %6731 = vmatprep.subr.bf16.mxu0 %v7218_v24  ;;  %6771 = vmatprep.subr.bf16.mxu1 %v7219_v25  ;;  %v607_v17 = vld [vmem:[%s9541_s27] sm:$0x3] }
 0x156   : > { %706 = vadd.xlane.f32.xlu1 %v705_v15  ;;  %709 = vadd.xlane.f32.xlu0 %v708_v18  ;;  %v8554_v22 = vrot.slane %v607_v17, %v725_v13 }
 0x158   : > { %6732 = vmatpush3.bf16.msra.mxu0 %v7220_v26  ;;  %6772 = vmatpush3.bf16.msra.mxu1 %v7221_v27  ;;  %v608_v26 = vld [vmem:[%s9542_s3] sm:$0x3]  ;;  %v741_v3 = vmul.f32 %v8554_v22, %v8509_v55  ;;  %v7246_v55 = vld [vmem:[#allocation13 + $0xf0] sm:$0xff]  }
 0x159   : > { %6733 = vmatprep.subr.bf16.mxu0 %v7222_v28  ;;  %6773 = vmatprep.subr.bf16.mxu1 %v7223_v29 }
 0x15a   : > { %712 = vadd.xlane.f32.xlu1 %v711_v23  ;;  %v8556_v23 = vrot.slane %v607_v17, %v729_v14  ;;  %v7247_v17 = vld [vmem:[#allocation14 + $0xf0] sm:$0xff]  }
 0x15c   : > { %6734 = vmatpush3.bf16.msra.mxu0 %v7224_v30  ;;  %6774 = vmatpush3.bf16.msra.mxu1 %v7225_v31  ;;  %v733_v31 = vmul.f32 %v8554_v22, %v8483_v32  ;;  %v738_v32 = vmul.f32 %v8556_v23, %v8489_v35 }
 0x15d   : > { %6735 = vmatprep.subr.bf16.mxu0 %v7226_v36  ;;  %6775 = vmatprep.subr.bf16.mxu1 %v7227_v37  ;;  %v734_v36 = vmul.f32 %v8556_v23, %v8485_v33  ;;  %v8565_v37 = vrot.slane %v608_v26, %v725_v13  ;;  %v7244_v13 = vld [vmem:[#allocation13 + $0xb8] sm:$0xff]  }
 0x160   : > { %6736 = vmatpush3.bf16.msra.mxu0 %v7228_v38  ;;  %6776 = vmatpush3.bf16.msra.mxu1 %v7229_v39  ;;  %v8567_v38 = vrot.slane %v608_v26, %v729_v14  ;;  %v7245_v14 = vld [vmem:[#allocation14 + $0xb8] sm:$0xff]  }
 0x161   : > { %6737 = vmatprep.subr.bf16.mxu0 %v7230_v40  ;;  %6777 = vmatprep.subr.bf16.mxu1 %v7231_v41 }
 0x164   : > { %6738 = vmatpush3.bf16.msra.mxu0 %v7232_v44  ;;  %6778 = vmatpush3.bf16.msra.mxu1 %v7233_v45 }
 0x165   : > { %6739 = vmatprep.subr.bf16.mxu0 %v7234_v48  ;;  %6779 = vmatprep.subr.bf16.mxu1 %v7235_v49  ;;  %v737_v49 = vmul.f32 %v8554_v22, %v8487_v34 }
 0x168   : > { %6740 = vmatpush3.bf16.msra.mxu0 %v7236_v50  ;;  %6780 = vmatpush3.bf16.msra.mxu1 %v7237_v51 }
 0x169   : > { %6741 = vmatprep.subr.bf16.mxu0 %v7238_v52  ;;  %6781 = vmatprep.subr.bf16.mxu1 %v7239_v53  ;;  %v735_v52 = vmul.f32 %v8554_v22, %v8495_v42  ;;  %v736_v53 = vmul.f32 %v8556_v23, %v8497_v43  ;;  %v740_v42 = vmul.f32 %v8556_v23, %v8505_v47 }
 0x16c   : > { %6742 = vmatpush3.bf16.msra.mxu0 %v7240_v54  ;;  %6782 = vmatpush3.bf16.msra.mxu1 %v7241_v57 }
 0x16d   : > { %6807 = vmatprep.subr.bf16.mxu0 %v7242_v58  ;;  %6847 = vmatprep.subr.bf16.mxu1 %v7243_v61 }
 0x1d3   : > { %v692_v62 = vpop.xlane.xlu0 %691 }
 0x1d4   : > { %v714_v0 = vmul.f32 0.00390625, %v692_v62 }
 0x1d6   : > { %v749_v1 = vadd.f32 1e-05, %v714_v0  ;;  %v739_v0 = vmul.f32 %v8554_v22, %v8503_v46 }
 0x1d7   : > { %v698_v2 = vpop.xlane.xlu0 %697  ;;  %v695_v6 = vpop.xlane.xlu1 %694 }
 0x1d8   : > { %7274 = vrsqrt.f32 %v749_v1  ;;  %v716_v7 = vmul.f32 0.00390625, %v698_v2  ;;  %v715_v10 = vmul.f32 0.00390625, %v695_v6  ;;  %v742_v6 = vmul.f32 %v8556_v23, %v8511_v56 }
 0x1da   : > { %v751_v11 = vadd.f32 1e-05, %v716_v7  ;;  %v750_v12 = vadd.f32 1e-05, %v715_v10  ;;  %v743_v7 = vmul.f32 %v8554_v22, %v8517_v59  ;;  %v745_v59 = vmul.f32 %v8554_v22, %v8524_v4 }
 0x1db   : > { %v701_v15 = vpop.xlane.xlu1 %700  ;;  %v704_v16 = vpop.xlane.xlu0 %703 }
 0x1dc   : > { %7276 = vrsqrt.f32 %v751_v11  ;;  %v717_v18 = vmul.f32 0.00390625, %v701_v15  ;;  %v718_v19 = vmul.f32 0.00390625, %v704_v16  ;;  %v744_v16 = vmul.f32 %v8556_v23, %v8519_v60 }
 0x1dd   : > { %7278 = vrsqrt.f32 %v750_v12 }
 0x1de   : > { %v752_v20 = vadd.f32 1e-05, %v717_v18  ;;  %v753_v21 = vadd.f32 1e-05, %v718_v19 }
 0x1df   : > { %v707_v24 = vpop.xlane.xlu1 %706  ;;  %v710_v25 = vpop.xlane.xlu0 %709 }
 0x1e0   : > { %7280 = vrsqrt.f32 %v752_v20  ;;  %v719_v27 = vmul.f32 0.00390625, %v707_v24  ;;  %v720_v28 = vmul.f32 0.00390625, %v710_v25  ;;  %v746_v20 = vmul.f32 %v8556_v23, %v8527_v5 }
 0x1e1   : > { %7282 = vrsqrt.f32 %v753_v21 }
 0x1e2   : > { %v754_v29 = vadd.f32 1e-05, %v719_v27  ;;  %v755_v30 = vadd.f32 1e-05, %v720_v28  ;;  %v7248_v27 = vld [vmem:[#allocation13 + $0xb0] sm:$0xff]  }
 0x1e3   : > { %v713_v39 = vpop.xlane.xlu1 %712  ;;  %v7249_v28 = vld [vmem:[#allocation14 + $0xb0] sm:$0xff]  }
 0x1e4   : > { %7284 = vrsqrt.f32 %v754_v29  ;;  %v721_v41 = vmul.f32 0.00390625, %v713_v39 }
 0x1e5   : > { %v7275_v40 = vpop.eup %7274  ;;  %7286 = vrsqrt.f32 %v755_v30 }
 0x1e6   : > { %v766_v44 = vmul.f32 %v7275_v40, %v734_v36  ;;  %v765_v45 = vmul.f32 %v7275_v40, %v733_v31  ;;  %v756_v48 = vadd.f32 1e-05, %v721_v41  ;;  %v7250_v31 = vld [vmem:[#allocation13 + $0xe8] sm:$0xff]  }
 0x1e7   : > { %v7251_v36 = vld [vmem:[#allocation14 + $0xe8] sm:$0xff]  }
 0x1e8   : > { %v793_v33 = vadd.f32 %v8567_v38, %v766_v44  ;;  %v792_v50 = vadd.f32 %v8565_v37, %v765_v45  ;;  %7288 = vrsqrt.f32 %v756_v48 }
 0x1e9   : > { %v7277_v51 = vpop.eup %7276 }
 0x1ea   : > { %v7279_v54 = vpop.eup %7278  ;;  %v6592_v57 = vpack.c.bf16 %v793_v33, %v792_v50  ;;  %v770_v58 = vmul.f32 %v7277_v51, %v738_v32  ;;  %v769_v61 = vmul.f32 %v7277_v51, %v737_v49  ;;  %v747_v32 = vmul.f32 %v8554_v22, %v8534_v8  ;;  %v7252_v51 = vld [vmem:[#allocation13 + $0xa8] sm:$0xff]  }
 0x1eb   : > { %v768_v34 = vmul.f32 %v7279_v54, %v736_v53  ;;  %v767_v62 = vmul.f32 %v7279_v54, %v735_v52  ;;  %v7253_v52 = vld [vmem:[#allocation14 + $0xa8] sm:$0xff]  }
 0x1ec   : > { %856 = vst [vmem:[#allocation2] sm:$0xff] %v6592_v57  ;;  %v797_v35 = vadd.f32 %v8567_v38, %v770_v58  ;;  %v796_v63 = vadd.f32 %v8565_v37, %v769_v61  ;;  %v7254_v61 = vld [vmem:[#allocation13 + $0xe0] sm:$0xff]  }
 0x1ed   : > { %v795_v43 = vadd.f32 %v8567_v38, %v768_v34  ;;  %v794_v1 = vadd.f32 %v8565_v37, %v767_v62  ;;  %v7281_v2 = vpop.eup %7280 }
 0x1ee   : > { %v6594_v10 = vpack.c.bf16 %v797_v35, %v796_v63  ;;  %v7283_v11 = vpop.eup %7282  ;;  %v772_v15 = vmul.f32 %v7281_v2, %v740_v42  ;;  %v771_v18 = vmul.f32 %v7281_v2, %v739_v0  ;;  %v7258_v42 = vld [vmem:[#allocation13 + $0xd8] sm:$0xff]  }
 0x1ef   : > { %v8593_v46 = vpack.c.bf16 %v795_v43, %v793_v33  ;;  %v8595_v12 = vpack.c.bf16 %v794_v1, %v792_v50  ;;  %v6593_v47 = vpack.c.bf16 %v795_v43, %v794_v1  ;;  %v774_v56 = vmul.f32 %v7283_v11, %v742_v6  ;;  %v7259_v43 = vld [vmem:[#allocation14 + $0xd8] sm:$0xff]   ;;  %v7262_v6 = vld [vmem:[#allocation13 + $0xd0] sm:$0xff]  }
 0x1f0   : > { %858 = vst [vmem:[#allocation2 + $0x10] sm:$0xff] %v6594_v10  ;;  %v773_v19 = vmul.f32 %v7283_v11, %v741_v3  ;;  %v799_v21 = vadd.f32 %v8567_v38, %v772_v15  ;;  %v798_v24 = vadd.f32 %v8565_v37, %v771_v18  ;;  %v748_v33 = vmul.f32 %v8556_v23, %v8537_v9  ;;  %v7255_v9 = vld [vmem:[#allocation14 + $0xe0] sm:$0xff]   ;;  %v7264_v10 = vld [vmem:[#allocation13 + $0x90] sm:$0xff]   ;;  %v7269_v15 = vld [vmem:[#allocation14 + $0x88] sm:$0xff]  }
 0x1f1   : > { %1024 = vmatprep.mubr.bf16.mxu0 %v8593_v46  ;;  %1257 = vmatprep.mubr.bf16.mxu1 %v8593_v46  ;;  %857 = vst [vmem:[#allocation2 + $0x8] sm:$0xff] %v6593_v47  ;;  %v7285_v60 = vpop.eup %7284  ;;  %v801_v25 = vadd.f32 %v8567_v38, %v774_v56  ;;  %v7265_v11 = vld [vmem:[#allocation14 + $0x90] sm:$0xff]   ;;  %v7266_v47 = vld [vmem:[#allocation13 + $0xc8] sm:$0xff]   ;;  %v7273_v18 = vld [vmem:[#allocation14 + $0x80] sm:$0xff]  }
 0x1f2   : > { %1025 = vmatmul.mubr.bf16.vlgmr.msra.gmra.mxu0 %v8595_v12  ;;  %1258 = vmatmul.mubr.bf16.vlgmr.msra.gmra.mxu1 %v8595_v12  ;;  %v800_v4 = vadd.f32 %v8565_v37, %v773_v19  ;;  %v7287_v26 = vpop.eup %7286  ;;  %v8611_v5 = vpack.c.bf16 %v799_v21, %v797_v35  ;;  %v776_v29 = vmul.f32 %v7285_v60, %v744_v16  ;;  %v7256_v35 = vld [vmem:[#allocation13 + $0xa0] sm:$0xff]  }
 0x1f3   : > { %6808 = vmatpush3.bf16.msra.mxu0 %v7244_v13  ;;  %6848 = vmatpush3.bf16.msra.mxu1 %v7245_v14  ;;  %v775_v30 = vmul.f32 %v7285_v60, %v743_v7  ;;  %v8613_v39 = vpack.c.bf16 %v798_v24, %v796_v63  ;;  %v6595_v40 = vpack.c.bf16 %v799_v21, %v798_v24  ;;  %v7257_v63 = vld [vmem:[#allocation14 + $0xa0] sm:$0xff]   ;;  %v7263_v7 = vld [vmem:[#allocation14 + $0xd0] sm:$0xff]   ;;  %v7267_v13 = vld [vmem:[#allocation14 + $0xc8] sm:$0xff]  }
 0x1f4   : > { %6809 = vmatprep.subr.bf16.mxu0 %v7246_v55  ;;  %6849 = vmatprep.subr.bf16.mxu1 %v7247_v17  ;;  %v6596_v41 = vpack.c.bf16 %v801_v25, %v800_v4  ;;  %v803_v44 = vadd.f32 %v8567_v38, %v776_v29  ;;  %v778_v48 = vmul.f32 %v7287_v26, %v746_v20  ;;  %v7268_v14 = vld [vmem:[#allocation13 + $0x88] sm:$0xff]   ;;  %v7270_v16 = vld [vmem:[#allocation13 + $0xc0] sm:$0xff]  }
 0x1f5   : > { %1032 = vmatprep.mubr.bf16.mxu0 %v8611_v5  ;;  %1265 = vmatprep.mubr.bf16.mxu1 %v8611_v5  ;;  %v802_v45 = vadd.f32 %v8565_v37, %v775_v30  ;;  %v7289_v49 = vpop.eup %7288  ;;  %859 = vst [vmem:[#allocation2 + $0x18] sm:$0xff] %v6595_v40  ;;  %v777_v50 = vmul.f32 %v7287_v26, %v745_v59  ;;  %v7271_v55 = vld [vmem:[#allocation14 + $0xc0] sm:$0xff]  }
 0x1f6   : > { %860 = vst [vmem:[#allocation2 + $0x20] sm:$0xff] %v6596_v41  ;;  %v8623_v53 = vpack.c.bf16 %v803_v44, %v801_v25  ;;  %v780_v58 = vmul.f32 %v7289_v49, %v748_v33  ;;  %v805_v8 = vadd.f32 %v8567_v38, %v778_v48  ;;  %v779_v22 = vmul.f32 %v7289_v49, %v747_v32  ;;  %v7272_v17 = vld [vmem:[#allocation13 + $0x80] sm:$0xff]  }
 0x1f7   : > { %6810 = vmatpush3.bf16.msra.mxu0 %v7248_v27  ;;  %6850 = vmatpush3.bf16.msra.mxu1 %v7249_v28  ;;  %v8625_v54 = vpack.c.bf16 %v802_v45, %v800_v4  ;;  %v6597_v57 = vpack.c.bf16 %v803_v44, %v802_v45  ;;  %v804_v23 = vadd.f32 %v8565_v37, %v777_v50 }
 0x1f8   : > { %6811 = vmatprep.subr.bf16.mxu0 %v7250_v31  ;;  %6851 = vmatprep.subr.bf16.mxu1 %v7251_v36  ;;  %v807_v34 = vadd.f32 %v8567_v38, %v780_v58  ;;  %v806_v62 = vadd.f32 %v8565_v37, %v779_v22  ;;  %v7260_v37 = vld [vmem:[#allocation13 + $0x98] sm:$0xff]  }
 0x1f9   : > { %861 = vst [vmem:[#allocation2 + $0x28] sm:$0xff] %v6597_v57  ;;  %v6598_v0 = vpack.c.bf16 %v805_v8, %v804_v23  ;;  %v7261_v38 = vld [vmem:[#allocation14 + $0x98] sm:$0xff]  }
 0x1fa   : > { %1033 = vmatmul.mubr.bf16.gmra.mxu0 %v8613_v39  ;;  %1266 = vmatmul.mubr.bf16.gmra.mxu1 %v8613_v39  ;;  %v815_v1 = vpack.c.bf16 %v807_v34, %v805_v8  ;;  %v814_v2 = vpack.c.bf16 %v806_v62, %v804_v23  ;;  %v6599_v3 = vpack.c.bf16 %v807_v34, %v806_v62 }
 0x1fb   : > { %6812 = vmatpush3.bf16.msra.mxu0 %v7252_v51  ;;  %6852 = vmatpush3.bf16.msra.mxu1 %v7253_v52  ;;  %862 = vst [vmem:[#allocation2 + $0x30] sm:$0xff] %v6598_v0 }
 0x1fc   : > { %1040 = vmatprep.mubr.bf16.mxu0 %v8623_v53  ;;  %1273 = vmatprep.mubr.bf16.mxu1 %v8623_v53  ;;  %863 = vst [vmem:[#allocation2 + $0x38] sm:$0xff] %v6599_v3 }
 0x1fd   : > { %6813 = vmatprep.subr.bf16.mxu0 %v7254_v61  ;;  %6853 = vmatprep.subr.bf16.mxu1 %v7255_v9 }
 0x1ff   : > { %6814 = vmatpush3.bf16.msra.mxu0 %v7256_v35  ;;  %6854 = vmatpush3.bf16.msra.mxu1 %v7257_v63 }
 0x200   : > { %6815 = vmatprep.subr.bf16.mxu0 %v7258_v42  ;;  %6855 = vmatprep.subr.bf16.mxu1 %v7259_v43 }
 0x202   : > { %1041 = vmatmul.mubr.bf16.gmra.mxu0 %v8625_v54  ;;  %1274 = vmatmul.mubr.bf16.gmra.mxu1 %v8625_v54 }
 0x203   : > { %6816 = vmatpush3.bf16.msra.mxu0 %v7260_v37  ;;  %6856 = vmatpush3.bf16.msra.mxu1 %v7261_v38 }
 0x204   : > { %1048 = vmatprep.mubr.bf16.mxu0 %v815_v1  ;;  %1281 = vmatprep.mubr.bf16.mxu1 %v815_v1 }
 0x205   : > { %6817 = vmatprep.subr.bf16.mxu0 %v7262_v6  ;;  %6857 = vmatprep.subr.bf16.mxu1 %v7263_v7 }
 0x207   : > { %6818 = vmatpush3.bf16.msra.mxu0 %v7264_v10  ;;  %6858 = vmatpush3.bf16.msra.mxu1 %v7265_v11 }
 0x208   : > { %6819 = vmatprep.subr.bf16.mxu0 %v7266_v47  ;;  %6859 = vmatprep.subr.bf16.mxu1 %v7267_v13 }
 0x20a   : > { %1049 = vmatmul.mubr.bf16.gmra.mxu0 %v814_v2  ;;  %1282 = vmatmul.mubr.bf16.gmra.mxu1 %v814_v2 }
 0x20b   : > { %6820 = vmatpush3.bf16.msra.mxu0 %v7268_v14  ;;  %6860 = vmatpush3.bf16.msra.mxu1 %v7269_v15 }
 0x20c   : > { %1491 = vmatprep.mubr.bf16.mxu0 %v8593_v46  ;;  %1726 = vmatprep.mubr.bf16.mxu1 %v8593_v46 }
 0x20d   : > { %6821 = vmatprep.subr.bf16.mxu0 %v7270_v16  ;;  %6861 = vmatprep.subr.bf16.mxu1 %v7271_v55 }
 0x20f   : > { %6822 = vmatpush3.bf16.msra.mxu0 %v7272_v17  ;;  %6862 = vmatpush3.bf16.msra.mxu1 %v7273_v18 }
 0x212   : > { %1492 = vmatmul.mubr.bf16.vlgmr.msra.gmra.mxu0 %v8595_v12  ;;  %1727 = vmatmul.mubr.bf16.vlgmr.msra.gmra.mxu1 %v8595_v12 }
 0x213   : > { %1499 = vmatprep.mubr.bf16.mxu0 %v8611_v5  ;;  %1734 = vmatprep.mubr.bf16.mxu1 %v8611_v5 }
 0x21a   : > { %1500 = vmatmul.mubr.bf16.gmra.mxu0 %v8613_v39  ;;  %1735 = vmatmul.mubr.bf16.gmra.mxu1 %v8613_v39 }
 0x21b   : > { %1507 = vmatprep.mubr.bf16.mxu0 %v8623_v53  ;;  %1742 = vmatprep.mubr.bf16.mxu1 %v8623_v53 }
 0x222   : > { %1508 = vmatmul.mubr.bf16.gmra.mxu0 %v8625_v54  ;;  %1743 = vmatmul.mubr.bf16.gmra.mxu1 %v8625_v54 }
 0x223   : > { %1515 = vmatprep.mubr.bf16.mxu0 %v815_v1  ;;  %1750 = vmatprep.mubr.bf16.mxu1 %v815_v1 }
 0x22a   : > { %1516 = vmatmul.mubr.bf16.gmra.mxu0 %v814_v2  ;;  %1751 = vmatmul.mubr.bf16.gmra.mxu1 %v814_v2 }
 0x2b2   : > { %v6743_v46 = vpop.f32.mrf.mxu0  ;;  %v6783_v12 = vpop.f32.mrf.mxu1 }
 0x2b4   : > { %v6744_v56 = vpop.f32.mrf.mxu0  ;;  %v6784_v19 = vpop.f32.mrf.mxu1 }
 0x2b5   : > { %v6745_v24 = vadd.f32 %v6744_v56, %v6743_v46  ;;  %v6785_v25 = vadd.f32 %v6784_v19, %v6783_v12 }
 0x2b6   : > { %v6746_v59 = vpop.f32.mrf.mxu0  ;;  %v6786_v20 = vpop.f32.mrf.mxu1 }
 0x2b8   : > { %v6747_v21 = vpop.f32.mrf.mxu0  ;;  %v6787_v60 = vpop.f32.mrf.mxu1 }
 0x2b9   : > { %v6748_v4 = vadd.f32 %v6747_v21, %v6746_v59  ;;  %v6788_v26 = vadd.f32 %v6787_v60, %v6786_v20 }
 0x2ba   : > { %v6749_v5 = vpop.f32.mrf.mxu0  ;;  %v6789_v27 = vpop.f32.mrf.mxu1 }
 0x2bb   : > { %v6638_v28 = vpack.c.bf16 %v6748_v4, %v6745_v24  ;;  %v6658_v29 = vpack.c.bf16 %v6788_v26, %v6785_v25 }
 0x2bc   : > { %v6750_v30 = vpop.f32.mrf.mxu0  ;;  %v6790_v31 = vpop.f32.mrf.mxu1 }
 0x2bd   : > { %6639 = vst [vmem:[#allocation3] sm:$0xff] %v6638_v28   ;;  %6659 = vst [vmem:[#allocation4] sm:$0xff] %v6658_v29   ;;  %v6751_v44 = vadd.f32 %v6750_v30, %v6749_v5  ;;  %v6791_v45 = vadd.f32 %v6790_v31, %v6789_v27 }
 0x2be   : > { %v6752_v36 = vpop.f32.mrf.mxu0  ;;  %v6792_v39 = vpop.f32.mrf.mxu1 }
 0x2c0   : > { %v6753_v40 = vpop.f32.mrf.mxu0  ;;  %v6793_v41 = vpop.f32.mrf.mxu1 }
 0x2c1   : > { %v6754_v48 = vadd.f32 %v6753_v40, %v6752_v36  ;;  %v6794_v49 = vadd.f32 %v6793_v41, %v6792_v39 }
 0x2c2   : > { %v6755_v32 = vpop.f32.mrf.mxu0  ;;  %v6795_v33 = vpop.f32.mrf.mxu1 }
 0x2c3   : > { %v6643_v50 = vpack.c.bf16 %v6754_v48, %v6751_v44  ;;  %v6663_v51 = vpack.c.bf16 %v6794_v49, %v6791_v45 }
 0x2c4   : > { %v6756_v52 = vpop.f32.mrf.mxu0  ;;  %v6796_v53 = vpop.f32.mrf.mxu1 }
 0x2c5   : > { %6715 = vst [vmem:[#allocation3 + $0x8] sm:$0xff] %v6643_v50   ;;  %6718 = vst [vmem:[#allocation4 + $0x8] sm:$0xff] %v6663_v51   ;;  %v6757_v22 = vadd.f32 %v6756_v52, %v6755_v32  ;;  %v6797_v61 = vadd.f32 %v6796_v53, %v6795_v33 }
 0x2c6   : > { %v6758_v54 = vpop.f32.mrf.mxu0  ;;  %v6798_v57 = vpop.f32.mrf.mxu1 }
 0x2c8   : > { %v6759_v58 = vpop.f32.mrf.mxu0  ;;  %v6799_v8 = vpop.f32.mrf.mxu1 }
 0x2c9   : > { %v6760_v9 = vadd.f32 %v6759_v58, %v6758_v54  ;;  %v6800_v23 = vadd.f32 %v6799_v8, %v6798_v57 }
 0x2ca   : > { %v6761_v34 = vpop.f32.mrf.mxu0  ;;  %v6801_v62 = vpop.f32.mrf.mxu1 }
 0x2cb   : > { %v6648_v35 = vpack.c.bf16 %v6760_v9, %v6757_v22  ;;  %v6668_v63 = vpack.c.bf16 %v6800_v23, %v6797_v61 }
 0x2cc   : > { %v6762_v0 = vpop.f32.mrf.mxu0  ;;  %v6802_v42 = vpop.f32.mrf.mxu1 }
 0x2cd   : > { %6716 = vst [vmem:[#allocation3 + $0x10] sm:$0xff] %v6648_v35   ;;  %6719 = vst [vmem:[#allocation4 + $0x10] sm:$0xff] %v6668_v63   ;;  %v6763_v37 = vadd.f32 %v6762_v0, %v6761_v34  ;;  %v6803_v38 = vadd.f32 %v6802_v42, %v6801_v62 }
 0x2ce   : > { %v6764_v43 = vpop.f32.mrf.mxu0  ;;  %v6804_v1 = vpop.f32.mrf.mxu1 }
 0x2d0   : > { %v6765_v2 = vpop.f32.mrf.mxu0  ;;  %v6805_v3 = vpop.f32.mrf.mxu1 }
 0x2d1   : > { %v6766_v6 = vadd.f32 %v6765_v2, %v6764_v43  ;;  %v6806_v7 = vadd.f32 %v6805_v3, %v6804_v1 }
 0x2d2   : > { %v6823_v10 = vpop.f32.mrf.mxu0  ;;  %v6863_v11 = vpop.f32.mrf.mxu1 }
 0x2d3   : > { %v6653_v47 = vpack.c.bf16 %v6766_v6, %v6763_v37  ;;  %v6673_v13 = vpack.c.bf16 %v6806_v7, %v6803_v38 }
 0x2d4   : > { %v6824_v14 = vpop.f32.mrf.mxu0  ;;  %v6864_v15 = vpop.f32.mrf.mxu1 }
 0x2d5   : > { %6717 = vst [vmem:[#allocation3 + $0x18] sm:$0xff] %v6653_v47   ;;  %6720 = vst [vmem:[#allocation4 + $0x18] sm:$0xff] %v6673_v13   ;;  %v6825_v46 = vadd.f32 %v6824_v14, %v6823_v10  ;;  %v6865_v12 = vadd.f32 %v6864_v15, %v6863_v11 }
 0x2d6   : > { %v6826_v16 = vpop.f32.mrf.mxu0  ;;  %v6866_v55 = vpop.f32.mrf.mxu1 }
 0x2d8   : > { %v6827_v17 = vpop.f32.mrf.mxu0  ;;  %v6867_v18 = vpop.f32.mrf.mxu1 }
 0x2d9   : > { %v6828_v56 = vadd.f32 %v6827_v17, %v6826_v16  ;;  %v6868_v19 = vadd.f32 %v6867_v18, %v6866_v55 }
 0x2da   : > { %v6829_v59 = vpop.f32.mrf.mxu0  ;;  %v6869_v20 = vpop.f32.mrf.mxu1 }
 0x2db   : > { %v6678_v21 = vpack.c.bf16 %v6828_v56, %v6825_v46  ;;  %v6698_v60 = vpack.c.bf16 %v6868_v19, %v6865_v12 }
 0x2dc   : > { %v6830_v24 = vpop.f32.mrf.mxu0  ;;  %v6870_v25 = vpop.f32.mrf.mxu1 }
 0x2dd   : > { %6679 = vst [vmem:[#allocation3 + $0x20] sm:$0xff] %v6678_v21   ;;  %6699 = vst [vmem:[#allocation4 + $0x20] sm:$0xff] %v6698_v60   ;;  %v6831_v28 = vadd.f32 %v6830_v24, %v6829_v59  ;;  %v6871_v29 = vadd.f32 %v6870_v25, %v6869_v20 }
 0x2de   : > { %v6832_v4 = vpop.f32.mrf.mxu0  ;;  %v6872_v26 = vpop.f32.mrf.mxu1 }
 0x2e0   : > { %v6833_v5 = vpop.f32.mrf.mxu0  ;;  %v6873_v27 = vpop.f32.mrf.mxu1 }
 0x2e1   : > { %v6834_v30 = vadd.f32 %v6833_v5, %v6832_v4  ;;  %v6874_v31 = vadd.f32 %v6873_v27, %v6872_v26 }
 0x2e2   : > { %v6835_v36 = vpop.f32.mrf.mxu0  ;;  %v6875_v39 = vpop.f32.mrf.mxu1 }
 0x2e3   : > { %v6683_v40 = vpack.c.bf16 %v6834_v30, %v6831_v28  ;;  %v6703_v41 = vpack.c.bf16 %v6874_v31, %v6871_v29 }
 0x2e4   : > { %v6836_v44 = vpop.f32.mrf.mxu0  ;;  %v6876_v45 = vpop.f32.mrf.mxu1 }
 0x2e5   : > { %6721 = vst [vmem:[#allocation3 + $0x28] sm:$0xff] %v6683_v40   ;;  %6724 = vst [vmem:[#allocation4 + $0x28] sm:$0xff] %v6703_v41   ;;  %v6837_v50 = vadd.f32 %v6836_v44, %v6835_v36  ;;  %v6877_v51 = vadd.f32 %v6876_v45, %v6875_v39 }
 0x2e6   : > { %v6838_v48 = vpop.f32.mrf.mxu0  ;;  %v6878_v49 = vpop.f32.mrf.mxu1 }
 0x2e8   : > { %v6839_v32 = vpop.f32.mrf.mxu0  ;;  %v6879_v33 = vpop.f32.mrf.mxu1 }
 0x2e9   : > { %v6840_v52 = vadd.f32 %v6839_v32, %v6838_v48  ;;  %v6880_v53 = vadd.f32 %v6879_v33, %v6878_v49 }
 0x2ea   : > { %v6841_v54 = vpop.f32.mrf.mxu0  ;;  %v6881_v57 = vpop.f32.mrf.mxu1 }
 0x2eb   : > { %v6688_v58 = vpack.c.bf16 %v6840_v52, %v6837_v50  ;;  %v6708_v8 = vpack.c.bf16 %v6880_v53, %v6877_v51 }
 0x2ec   : > { %v6842_v22 = vpop.f32.mrf.mxu0  ;;  %v6882_v61 = vpop.f32.mrf.mxu1 }
 0x2ed   : > { %6722 = vst [vmem:[#allocation3 + $0x30] sm:$0xff] %v6688_v58   ;;  %6725 = vst [vmem:[#allocation4 + $0x30] sm:$0xff] %v6708_v8   ;;  %v6843_v35 = vadd.f32 %v6842_v22, %v6841_v54  ;;  %v6883_v63 = vadd.f32 %v6882_v61, %v6881_v57 }
 0x2ee   : > { %v6844_v9 = vpop.f32.mrf.mxu0  ;;  %v6884_v23 = vpop.f32.mrf.mxu1 }
 0x2f0   : > { %v6845_v34 = vpop.f32.mrf.mxu0  ;;  %v6885_v62 = vpop.f32.mrf.mxu1 }
 0x2f1   : > { %v6846_v0 = vadd.f32 %v6845_v34, %v6844_v9  ;;  %v6886_v42 = vadd.f32 %v6885_v62, %v6884_v23 }
 0x2f3   : > { %v6693_v43 = vpack.c.bf16 %v6846_v0, %v6843_v35  ;;  %v6713_v1 = vpack.c.bf16 %v6886_v42, %v6883_v63 }
 0x2f5   : > { %6723 = vst [vmem:[#allocation3 + $0x38] sm:$0xff] %v6693_v43   ;;  %6726 = vst [vmem:[#allocation4 + $0x38] sm:$0xff] %v6713_v1  }
 0x2f6 PF: > { %s1800_s1 = sshra.s32 %s8448_s19, 3  ;;  %v7290_v2 = vld [vmem:[#allocation11 + $0x74] ss:$8 sps:$4 sm:$0xff]   ;;  %v7292_v3 = vld [vmem:[#allocation11 + $0x70] ss:$8 sps:$4 sm:$0xff]   ;;  %s8651_s24 = scalar_lea.vmem [#allocation2], %s8448_s19  ;;  %v2111_v40 = vlaneseq  ;;  %v8664_v49 = vstv %s8448_s19 }
 0x2f7   : > { %2021 = vmatprep.subr.bf16.mxu0 %v7290_v2  ;;  %6983 = vmatprep.subr.bf16.mxu1 %v7290_v2  ;;  %v7293_v37 = vld [vmem:[#allocation11 + $0x64] ss:$8 sps:$4 sm:$0xff]   ;;  %v7295_v38 = vld [vmem:[#allocation11 + $0x60] ss:$8 sps:$4 sm:$0xff]   ;;  %v7296_v6 = vld [vmem:[#allocation11 + $0x54] ss:$8 sps:$4 sm:$0xff]  }
 0x2f8   : > { %2022 = vmatpush1.bf16.msra.mxu0 %v7292_v3  ;;  %6999 = vmatpush1.bf16.msra.mxu1 %v7292_v3  ;;  %v7298_v7 = vld [vmem:[#allocation11 + $0x50] ss:$8 sps:$4 sm:$0xff]   ;;  %v7299_v10 = vld [vmem:[#allocation11 + $0x44] ss:$8 sps:$4 sm:$0xff]   ;;  %v7301_v11 = vld [vmem:[#allocation11 + $0x40] ss:$8 sps:$4 sm:$0xff]  }
 0x2f9   : > { %2023 = vmatprep.subr.bf16.mxu0 %v7293_v37  ;;  %6984 = vmatprep.subr.bf16.mxu1 %v7293_v37  ;;  %v7302_v47 = vld [vmem:[#allocation11 + $0x34] ss:$8 sps:$4 sm:$0xff]   ;;  %v7304_v13 = vld [vmem:[#allocation11 + $0x30] ss:$8 sps:$4 sm:$0xff]   ;;  %v7305_v14 = vld [vmem:[#allocation11 + $0x24] ss:$8 sps:$4 sm:$0xff]  }
 0x2fa   : > { %v7307_v15 = vld [vmem:[#allocation11 + $0x20] ss:$8 sps:$4 sm:$0xff]   ;;  %v7308_v16 = vld [vmem:[#allocation11 + $0x14] ss:$8 sps:$4 sm:$0xff]   ;;  %v7340_v55 = vld [vmem:[%s8651_s24 + $0x4] ss:$8 sps:$4 sm:$0xff]  }
 0x2fb   : > { %v7310_v17 = vld [vmem:[#allocation11 + $0x10] ss:$8 sps:$4 sm:$0xff]   ;;  %v7343_v18 = vld [vmem:[%s8651_s24 + $0x14] ss:$8 sps:$4 sm:$0xff]   ;;  %v7311_v46 = vld [vmem:[#allocation11 + $0x4] ss:$8 sps:$4 sm:$0xff]   ;;  %2053 = vmatprep.mubr.bf16.mxu0 %v7340_v55 }
 0x2fc   : > { %2024 = vmatpush1.bf16.msra.mxu0 %v7295_v38  ;;  %7000 = vmatpush1.bf16.msra.mxu1 %v7295_v38  ;;  %v7313_v12 = vld [vmem:[#allocation11] ss:$8 sps:$4 sm:$0xff]   ;;  %v7314_v56 = vld [vmem:[#allocation11 + $0xf4] ss:$8 sps:$4 sm:$0xff]   ;;  %v7316_v19 = vld [vmem:[#allocation11 + $0xf0] ss:$8 sps:$4 sm:$0xff]  }
 0x2fd   : > { %2025 = vmatprep.subr.bf16.mxu0 %v7296_v6  ;;  %6985 = vmatprep.subr.bf16.mxu1 %v7296_v6  ;;  %v7317_v59 = vld [vmem:[#allocation11 + $0xe4] ss:$8 sps:$4 sm:$0xff]   ;;  %v7319_v20 = vld [vmem:[#allocation11 + $0xe0] ss:$8 sps:$4 sm:$0xff]   ;;  %v7320_v21 = vld [vmem:[#allocation11 + $0xd4] ss:$8 sps:$4 sm:$0xff]  }
 0x2fe   : > { %2063 = vmatprep.mubr.bf16.mxu1 %v7343_v18  ;;  %v7322_v60 = vld [vmem:[#allocation11 + $0xd0] ss:$8 sps:$4 sm:$0xff]   ;;  %v7323_v24 = vld [vmem:[#allocation11 + $0xc4] ss:$8 sps:$4 sm:$0xff]   ;;  %v7325_v25 = vld [vmem:[#allocation11 + $0xc0] ss:$8 sps:$4 sm:$0xff]  }
 0x2ff   : > { %v7326_v4 = vld [vmem:[#allocation11 + $0xb4] ss:$8 sps:$4 sm:$0xff]   ;;  %v7328_v26 = vld [vmem:[#allocation11 + $0xb0] ss:$8 sps:$4 sm:$0xff]   ;;  %v7329_v5 = vld [vmem:[#allocation11 + $0xa4] ss:$8 sps:$4 sm:$0xff]  }
 0x300   : > { %2026 = vmatpush1.bf16.msra.mxu0 %v7298_v7  ;;  %7001 = vmatpush1.bf16.msra.mxu1 %v7298_v7  ;;  %v7331_v27 = vld [vmem:[#allocation11 + $0xa0] ss:$8 sps:$4 sm:$0xff]   ;;  %v7332_v28 = vld [vmem:[#allocation11 + $0x94] ss:$8 sps:$4 sm:$0xff]   ;;  %v7334_v29 = vld [vmem:[#allocation11 + $0x90] ss:$8 sps:$4 sm:$0xff]  }
 0x301   : > { %2027 = vmatprep.subr.bf16.mxu0 %v7299_v10  ;;  %6986 = vmatprep.subr.bf16.mxu1 %v7299_v10  ;;  %v7335_v30 = vld [vmem:[#allocation11 + $0x84] ss:$8 sps:$4 sm:$0xff]   ;;  %v7337_v31 = vld [vmem:[#allocation11 + $0x80] ss:$8 sps:$4 sm:$0xff]   ;;  %v7341_v39 = vld [vmem:[%s8651_s24 + $0x10] ss:$8 sps:$4 sm:$0xff]  }
 0x302   : > { %v7338_v36 = vld [vmem:[%s8651_s24] ss:$8 sps:$4 sm:$0xff]   ;;  %v8658_v41 = vshrl.u32 %v2111_v40, 7  ;;  %vm2086_vm0 = vcmask 7168   ;;  %v8128_v32 = vmov -1e+30  }
 0x303   : > { %2087 = vst.msk [vmem:[#allocation5] sm:$0xff] %vm2086_vm0, %v8128_v32  ;;  %2088 = vst.msk [vmem:[#allocation5 + $0x8] sm:$0xff] %vm2086_vm0, %v8128_v32  ;;  %v8129_v33 = vmov 0.0   ;;  %s9543_s28 = sld [smem:[#allocation29_spill]] }
 0x304   : > { %2028 = vmatpush1.bf16.msra.mxu0 %v7301_v11  ;;  %7002 = vmatpush1.bf16.msra.mxu1 %v7301_v11  ;;  %v2113_v44 = vadd.s32 8, %v8658_v41  ;;  %v2114_v45 = vadd.s32 16, %v8658_v41  ;;  %v2115_v48 = vadd.s32 24, %v8658_v41  ;;  %2089 = vst.msk [vmem:[#allocation5 + $0x10] sm:$0xff] %vm2086_vm0, %v8128_v32  ;;  %2090 = vst.msk [vmem:[#allocation5 + $0x18] sm:$0xff] %vm2086_vm0, %v8128_v32  ;;  %v8684_v50 = vadd.s32 %v8664_v49, %v8658_v41 }
 0x305   : > { %2029 = vmatprep.subr.bf16.mxu0 %v7302_v47  ;;  %6987 = vmatprep.subr.bf16.mxu1 %v7302_v47  ;;  %2091 = vst.msk [vmem:[#allocation5 + $0x20] sm:$0xff] %vm2086_vm0, %v8128_v32  ;;  %2092 = vst.msk [vmem:[#allocation5 + $0x28] sm:$0xff] %vm2086_vm0, %v8128_v32 }
 0x306   : > { %2093 = vst.msk [vmem:[#allocation5 + $0x30] sm:$0xff] %vm2086_vm0, %v8128_v32  ;;  %2094 = vst.msk [vmem:[#allocation5 + $0x38] sm:$0xff] %vm2086_vm0, %v8128_v32  ;;  %v8687_v51 = vadd.s32 %v8664_v49, %v2113_v44  ;;  %v8690_v52 = vadd.s32 %v8664_v49, %v2114_v45  ;;  %v8693_v53 = vadd.s32 %v8664_v49, %v2115_v48 }
 0x307   : > { %2095 = vst.msk [vmem:[#allocation6] sm:$0xff] %vm2086_vm0, %v8129_v33  ;;  %2096 = vst.msk [vmem:[#allocation6 + $0x8] sm:$0xff] %vm2086_vm0, %v8129_v33 }
 0x308   : > { %2030 = vmatpush1.bf16.msra.mxu0 %v7304_v13  ;;  %7003 = vmatpush1.bf16.msra.mxu1 %v7304_v13  ;;  %2097 = vst.msk [vmem:[#allocation6 + $0x10] sm:$0xff] %vm2086_vm0, %v8129_v33  ;;  %2098 = vst.msk [vmem:[#allocation6 + $0x18] sm:$0xff] %vm2086_vm0, %v8129_v33 }
 0x309   : > { %2031 = vmatprep.subr.bf16.mxu0 %v7305_v14  ;;  %6988 = vmatprep.subr.bf16.mxu1 %v7305_v14  ;;  %2099 = vst.msk [vmem:[#allocation6 + $0x20] sm:$0xff] %vm2086_vm0, %v8129_v33  ;;  %2100 = vst.msk [vmem:[#allocation6 + $0x28] sm:$0xff] %vm2086_vm0, %v8129_v33  ;;  %p6265_p1 = scmp.le.s32.totalorder %s9543_s28, 0 }
 0x30a   : > { %2101 = vst.msk [vmem:[#allocation6 + $0x30] sm:$0xff] %vm2086_vm0, %v8129_v33  ;;  %2102 = vst.msk [vmem:[#allocation6 + $0x38] sm:$0xff] %vm2086_vm0, %v8129_v33  ;;  %s8704_s10 = smov (!%p6265_p1), 0  }
 0x30b   : > { %2103 = vst [vmem:[#allocation7 + $0x30] sm:$0xff] %v8129_v33  ;;  %2104 = vst [vmem:[#allocation7] sm:$0xff] %v8129_v33 }
 0x30c   : > { %2032 = vmatpush1.bf16.msra.mxu0 %v7307_v15  ;;  %7004 = vmatpush1.bf16.msra.mxu1 %v7307_v15  ;;  %2105 = vst [vmem:[#allocation7 + $0x18] sm:$0xff] %v8129_v33  ;;  %2106 = vst [vmem:[#allocation7 + $0x10] sm:$0xff] %v8129_v33 }
 0x30d   : > { %2033 = vmatprep.subr.bf16.mxu0 %v7308_v16  ;;  %6989 = vmatprep.subr.bf16.mxu1 %v7308_v16  ;;  %2107 = vst [vmem:[#allocation7 + $0x8] sm:$0xff] %v8129_v33  ;;  %2108 = vst [vmem:[#allocation7 + $0x20] sm:$0xff] %v8129_v33 }
 0x30e   : > { %2109 = vst [vmem:[#allocation7 + $0x28] sm:$0xff] %v8129_v33  ;;  %2110 = vst [vmem:[#allocation7 + $0x38] sm:$0xff] %v8129_v33 }
 0x310   : > { %2034 = vmatpush1.bf16.msra.mxu0 %v7310_v17  ;;  %7005 = vmatpush1.bf16.msra.mxu1 %v7310_v17 }
 0x311   : > { %2035 = vmatprep.subr.bf16.mxu0 %v7311_v46  ;;  %6990 = vmatprep.subr.bf16.mxu1 %v7311_v46 }
 0x314   : > { %2036 = vmatpush1.bf16.msra.mxu0 %v7313_v12  ;;  %7006 = vmatpush1.bf16.msra.mxu1 %v7313_v12 }
 0x315   : > { %2037 = vmatprep.subr.bf16.mxu0 %v7314_v56  ;;  %6991 = vmatprep.subr.bf16.mxu1 %v7314_v56 }
 0x318   : > { %2038 = vmatpush2.bf16.msra.mxu0 %v7316_v19  ;;  %7007 = vmatpush2.bf16.msra.mxu1 %v7316_v19 }
 0x319   : > { %2039 = vmatprep.subr.bf16.mxu0 %v7317_v59  ;;  %6992 = vmatprep.subr.bf16.mxu1 %v7317_v59 }
 0x31c   : > { %2040 = vmatpush2.bf16.msra.mxu0 %v7319_v20  ;;  %7008 = vmatpush2.bf16.msra.mxu1 %v7319_v20 }
 0x31d   : > { %2041 = vmatprep.subr.bf16.mxu0 %v7320_v21  ;;  %6993 = vmatprep.subr.bf16.mxu1 %v7320_v21 }
 0x320   : > { %2042 = vmatpush2.bf16.msra.mxu0 %v7322_v60  ;;  %7009 = vmatpush2.bf16.msra.mxu1 %v7322_v60 }
 0x321   : > { %2043 = vmatprep.subr.bf16.mxu0 %v7323_v24  ;;  %6994 = vmatprep.subr.bf16.mxu1 %v7323_v24 }
 0x324   : > { %2044 = vmatpush2.bf16.msra.mxu0 %v7325_v25  ;;  %7010 = vmatpush2.bf16.msra.mxu1 %v7325_v25 }
 0x325   : > { %2045 = vmatprep.subr.bf16.mxu0 %v7326_v4  ;;  %6995 = vmatprep.subr.bf16.mxu1 %v7326_v4 }
 0x328   : > { %2046 = vmatpush2.bf16.msra.mxu0 %v7328_v26  ;;  %7011 = vmatpush2.bf16.msra.mxu1 %v7328_v26 }
 0x329   : > { %2047 = vmatprep.subr.bf16.mxu0 %v7329_v5  ;;  %6996 = vmatprep.subr.bf16.mxu1 %v7329_v5 }
 0x32c   : > { %2048 = vmatpush2.bf16.msra.mxu0 %v7331_v27  ;;  %7012 = vmatpush2.bf16.msra.mxu1 %v7331_v27 }
 0x32d   : > { %2049 = vmatprep.subr.bf16.mxu0 %v7332_v28  ;;  %6997 = vmatprep.subr.bf16.mxu1 %v7332_v28 }
 0x330   : > { %2050 = vmatpush2.bf16.msra.mxu0 %v7334_v29  ;;  %7013 = vmatpush2.bf16.msra.mxu1 %v7334_v29 }
 0x331   : > { %2051 = vmatprep.subr.bf16.mxu0 %v7335_v30  ;;  %6998 = vmatprep.subr.bf16.mxu1 %v7335_v30 }
 0x334   : > { %2052 = vmatpush2.bf16.msra.mxu0 %v7337_v31  ;;  %7014 = vmatpush2.bf16.msra.mxu1 %v7337_v31 }
 0x337   : > { %2054 = vmatmul.mubr.bf16.vlgmr.msra.gmra.mxu0 %v7338_v36  ;;  %2064 = vmatmul.mubr.bf16.vlgmr.msra.gmra.mxu1 %v7341_v39 }
 0x3f7   : > { %v2055_v54 = vpop.f32.mrf.mxu0  ;;  %v2065_v57 = vpop.f32.mrf.mxu1 }
 0x3f8   : > { %v2074_v22 = vmul.f32 0.088388346, %v2055_v54  ;;  %v2078_v23 = vmul.f32 0.088388346, %v2065_v57 }
 0x3f9   : > { %v2057_v58 = vpop.f32.mrf.mxu0  ;;  %v2067_v8 = vpop.f32.mrf.mxu1 }
 0x3fa   : > { %v2075_v35 = vmul.f32 0.088388346, %v2057_v58  ;;  %v2079_v63 = vmul.f32 0.088388346, %v2067_v8 }
 0x3fb   : > { %v2059_v61 = vpop.f32.mrf.mxu0  ;;  %v2069_v9 = vpop.f32.mrf.mxu1 }
 0x3fc   : > { %v2076_v34 = vmul.f32 0.088388346, %v2059_v61  ;;  %v2080_v62 = vmul.f32 0.088388346, %v2069_v9  ;;  %5996 = sbr.rel (%p6265_p1) target bundleno = 1758 (0x6de), region = 164 }
 0x3fd   : > { %v2061_v0 = vpop.f32.mrf.mxu0  ;;  %v2071_v42 = vpop.f32.mrf.mxu1 }
 0x3fe   : > { %v8695_v43 = vpack.c.bf16 %v2076_v34, %v2074_v22  ;;  %v8697_v1 = vpack.c.bf16 %v2080_v62, %v2078_v23  ;;  %v2077_v2 = vmul.f32 0.088388346, %v2061_v0  ;;  %v2081_v3 = vmul.f32 0.088388346, %v2071_v42 }
 0x400   : > { %v8699_v37 = vpack.c.bf16 %v2077_v2, %v2075_v35  ;;  %v8701_v38 = vpack.c.bf16 %v2081_v3, %v2079_v63 }
 0x401 LB: >> { %6923 = vmatprep.mubr.bf16.mxu0 %v8695_v43  ;;  %s6266_s9 = sshll.u32 %s8110_s10, 5  ;;  %vm2280_vm1 = vcmask 261120   ;;  %v8130_v60 = vmov 0   ;;  %v2274_v25 = vld [vmem:[#allocation5 + $0x10] sm:$0xff]  ;;  %v2276_v5 = vld [vmem:[#allocation5 + $0x20] sm:$0xff]  ;;  %v2275_v36 = vld [vmem:[#allocation5 + $0x18] sm:$0xff]  ;;  %s8110_s10 = sphi %s8704_s10, %s2124_s10  }
 0x402   : >> { %6931 = vmatprep.mubr.bf16.mxu1 %v8699_v37  ;;  %s2128_s7 = sshra.s32 %s6266_s9, 3  ;;  %7345 = vset.pattern.permute.xlu1 %v8130_v60  ;;  %v2272_v27 = vld [vmem:[#allocation5] sm:$0xff]  ;;  %v2273_v39 = vld [vmem:[#allocation5 + $0x8] sm:$0xff]  ;;  %v8752_v8 = vld [vmem:[#allocation5 + $0x30] sm:$0xff]  ;;  %s2124_s10 = sadd.s32 1, %s8110_s10  }
 0x403   : >> { %s6267_s25 = sshll.u32 %s2128_s7, 2  ;;  %7344 = vset.pattern.permute.xlu0 %v8130_v60  ;;  %v2277_v57 = vld [vmem:[#allocation5 + $0x28] sm:$0xff]  ;;  %v8758_v62 = vld [vmem:[#allocation5 + $0x38] sm:$0xff]  ;;  %s9544_s2 = sld [smem:[#allocation29_spill]] }
 0x404   : >> { %s2131_s13 = scalar_lea.vmem [#allocation3], %s6267_s25  ;;  %s8712_s27 = scalar_lea.vmem [#allocation4], %s6267_s25 }
 0x405   : >> { %v7346_v6 = vld [vmem:[%s2131_s13 + $0x8] sm:$0xff]   ;;  %v7348_v10 = vld [vmem:[%s2131_s13] sm:$0xff]  }
 0x406   : >> { %v7347_v7 = vld [vmem:[%s2131_s13 + $0x28] sm:$0xff]   ;;  %6919 = vmatprep.subr.bf16.mxu0 %v7346_v6  ;;  %v7349_v11 = vld [vmem:[%s2131_s13 + $0x20] sm:$0xff]  }
 0x407   : >> { %6927 = vmatprep.subr.bf16.mxu1 %v7347_v7  ;;  %6920 = vmatpush3.bf16.xpose.msra.mxu0 %v7346_v6  ;;  %v7351_v60 = vld [vmem:[%s8712_s27] sm:$0xff]  }
 0x408   : >> { %6928 = vmatpush3.bf16.xpose.msra.mxu1 %v7347_v7  ;;  %6921 = vmatprep.subr.bf16.mxu0 %v7348_v10 }
 0x409   : >> { %6929 = vmatprep.subr.bf16.mxu1 %v7349_v11  ;;  %p2123_p10 = scmp.ge.s32.totalorder %s2124_s10, %s9544_s2 }
 0x40f   : >> { %6922 = vmatpush3.bf16.xpose.msra.mxu0 %v7348_v10 }
 0x410   : >> { %6930 = vmatpush3.bf16.xpose.msra.mxu1 %v7349_v11 }
 0x416   : >> { %6924 = vmatmul.mubr.bf16.vlgmr.msra.gmra.mxu0 %v8697_v1 }
 0x417   : >> { %6932 = vmatmul.mubr.bf16.vlgmr.msra.gmra.mxu1 %v8701_v38 }
 0x4d6   : >> { %v8716_v47 = vpop.f32.mrf.mxu0 }
 0x4d7   : >> { %v8718_v13 = vpop.f32.mrf.mxu1  ;;  %v2287_v14 = vsel %vm2280_vm1, %v8716_v47, -inf }
 0x4d8   : >> { %2288 = vmax.xlane.f32.xlu0 %v2287_v14  ;;  %v8722_v15 = vpop.f32.mrf.mxu0  ;;  %v2299_v21 = vsel %vm2280_vm1, %v8718_v13, -inf }
 0x4d9   : >> { %v8724_v16 = vpop.f32.mrf.mxu1  ;;  %v2281_v18 = vsel %vm2280_vm1, %v8722_v15, -inf }
 0x4da   : >> { %v2293_v55 = vsel %vm2280_vm1, %v8724_v16, -inf  ;;  %v8728_v17 = vpop.f32.mrf.mxu0 }
 0x4db   : >> { %2294 = vmax.xlane.f32.xlu1 %v2293_v55  ;;  %v8732_v46 = vpop.f32.mrf.mxu1  ;;  %v2290_v19 = vsel %vm2280_vm1, %v8728_v17, -inf }
 0x4dc   : >> { %2282 = vmax.xlane.f32.xlu0 %v2281_v18  ;;  %v8734_v12 = vpop.f32.mrf.mxu0  ;;  %v2302_v24 = vsel %vm2280_vm1, %v8732_v46, -inf }
 0x4dd   : >> { %v8736_v56 = vpop.f32.mrf.mxu1  ;;  %v2284_v59 = vsel %vm2280_vm1, %v8734_v12, -inf }
 0x4de   : >> { %v2296_v20 = vsel %vm2280_vm1, %v8736_v56, -inf }
 0x4df   : >> { %2291 = vmax.xlane.f32.xlu1 %v2290_v19 }
 0x4e0   : >> { %2285 = vmax.xlane.f32.xlu0 %v2284_v59 }
 0x4e3   : >> { %2297 = vmax.xlane.f32.xlu1 %v2296_v20  ;;  %v7350_v20 = vld [vmem:[%s8712_s27 + $0x8] sm:$0xff]  }
 0x4e4   : >> { %2300 = vmax.xlane.f32.xlu0 %v2299_v21  ;;  %6935 = vmatprep.subr.bf16.mxu0 %v7350_v20 }
 0x4e5   : >> { %6936 = vmatpush3.bf16.msra.mxu0 %v7350_v20 }
 0x4e6   : >> { %6937 = vmatprep.subr.bf16.mxu0 %v7351_v60 }
 0x4e7   : >> { %2303 = vmax.xlane.f32.xlu1 %v2302_v24  ;;  %v7352_v24 = vld [vmem:[%s8712_s27 + $0x28] sm:$0xff]  }
 0x4e8   : >> { %6943 = vmatprep.subr.bf16.mxu1 %v7352_v24 }
 0x4e9   : >> { %6938 = vmatpush3.bf16.msra.mxu0 %v7351_v60  ;;  %6944 = vmatpush3.bf16.msra.mxu1 %v7352_v24 }
 0x561   : >> { %v2289_v4 = vpop.xlane.xlu0 %2288 }
 0x562   : >> { %v2307_v26 = vmax.f32 %v2274_v25, %v2289_v4  ;;  %v7353_v4 = vld [vmem:[%s8712_s27 + $0x20] sm:$0xff]  }
 0x563   : >> { %6945 = vmatprep.subr.bf16.mxu1 %v7353_v4 }
 0x564   : >> { %2669 = vst.msk [vmem:[#allocation5 + $0x10] sm:$0xff] %vm2086_vm0, %v2307_v26  ;;  %v2295_v28 = vpop.xlane.xlu1 %2294  ;;  %2349 = vperm.xlu1 %7345, %v2307_v26   ;;  %v2315_v3 = vsub.f32 %v2274_v25, %v2307_v26  ;;  %6946 = vmatpush3.bf16.msra.mxu1 %v7353_v4 }
 0x565   : >> { %v2309_v29 = vmax.f32 %v2276_v5, %v2295_v28  ;;  %v2283_v30 = vpop.xlane.xlu0 %2282 }
 0x566   : >> { %v2305_v31 = vmax.f32 %v2272_v27, %v2283_v30  ;;  %v2325_v7 = vmul.f32 1.442695, %v2315_v3 }
 0x567   : >> { %2671 = vst.msk [vmem:[#allocation5 + $0x20] sm:$0xff] %vm2086_vm0, %v2309_v29  ;;  %v2317_v10 = vsub.f32 %v2276_v5, %v2309_v29 }
 0x568   : >> { %v2313_v44 = vsub.f32 %v2272_v27, %v2305_v31  ;;  %2667 = vst.msk [vmem:[#allocation5] sm:$0xff] %vm2086_vm0, %v2305_v31  ;;  %v2292_v45 = vpop.xlane.xlu1 %2291  ;;  %2339 = vperm.xlu0 %7344, %v2305_v31  }
 0x569   : >> { %v2308_v48 = vmax.f32 %v2275_v36, %v2292_v45  ;;  %v2286_v32 = vpop.xlane.xlu0 %2285  ;;  %v2329_v14 = vmul.f32 1.442695, %v2317_v10 }
 0x56a   : >> { %v2321_v33 = vmul.f32 1.442695, %v2313_v44  ;;  %v2306_v54 = vmax.f32 %v2273_v39, %v2286_v32 }
 0x56b   : >> { %v2316_v58 = vsub.f32 %v2275_v36, %v2308_v48  ;;  %2670 = vst.msk [vmem:[#allocation5 + $0x18] sm:$0xff] %vm2086_vm0, %v2308_v48 }
 0x56c   : >> { %7354 = vpow2.f32 %v2321_v33  ;;  %2668 = vst.msk [vmem:[#allocation5 + $0x8] sm:$0xff] %vm2086_vm0, %v2306_v54  ;;  %v2298_v22 = vpop.xlane.xlu1 %2297  ;;  %v2314_v55 = vsub.f32 %v2273_v39, %v2306_v54 }
 0x56d   : >> { %v2327_v61 = vmul.f32 1.442695, %v2316_v58  ;;  %v2310_v9 = vmax.f32 %v2277_v57, %v2298_v22  ;;  %v2301_v23 = vpop.xlane.xlu0 %2300 }
 0x56e   : >> { %v8756_v34 = vmax.f32 %v8752_v8, %v2301_v23  ;;  %v2323_v19 = vmul.f32 1.442695, %v2314_v55 }
 0x56f   : >> { %v2318_v35 = vsub.f32 %v2277_v57, %v2310_v9  ;;  %2672 = vst.msk [vmem:[#allocation5 + $0x28] sm:$0xff] %vm2086_vm0, %v2310_v9  ;;  %7356 = vpow2.f32 %v2327_v61 }
 0x570   : >> { %v2319_v63 = vsub.f32 %v8752_v8, %v8756_v34  ;;  %2673 = vst.msk [vmem:[#allocation5 + $0x30] sm:$0xff] %vm2086_vm0, %v8756_v34  ;;  %v2304_v0 = vpop.xlane.xlu1 %2303  ;;  %2369 = vperm.xlu1 %7345, %v8756_v34  }
 0x571   : >> { %v2331_v42 = vmul.f32 1.442695, %v2318_v35  ;;  %v8767_v2 = vmax.f32 %v8758_v62, %v2304_v0 }
 0x573   : >> { %7358 = vpow2.f32 %v2331_v42  ;;  %v2320_v6 = vsub.f32 %v8758_v62, %v8767_v2  ;;  %2674 = vst.msk [vmem:[#allocation5 + $0x38] sm:$0xff] %vm2086_vm0, %v8767_v2 }
 0x574   : >> { %2359 = vperm.xlu1 %7345, %v2309_v29   ;;  %7360 = vpow2.f32 %v2325_v7 }
 0x575   : >> { %7362 = vpow2.f32 %v2329_v14  ;;  %v2335_v4 = vmul.f32 1.442695, %v2320_v6 }
 0x576   : >> { %7364 = vpow2.f32 %v2323_v19 }
 0x578   : >> { %2354 = vperm.xlu1 %7345, %v2308_v48  }
 0x579   : >> { %v8773_v11 = vpop.eup %7354 }
 0x57a   : >> { %2467 = vperm.xlu0 %7344, %v8773_v11  }
 0x57c   : >> { %2344 = vperm.xlu1 %7345, %v2306_v54   ;;  %v8776_v18 = vpop.eup %7356 }
 0x57e   : >> { %2482 = vperm.xlu0 %7344, %v8776_v18  }
 0x580   : >> { %v8779_v59 = vpop.eup %7358  ;;  %2364 = vperm.xlu1 %7345, %v2310_v9  }
 0x581   : >> { %v8784_v21 = vpop.eup %7360 }
 0x582   : >> { %2492 = vperm.xlu0 %7344, %v8779_v59   ;;  %v8789_v25 = vpop.eup %7362 }
 0x583   : >> { %v8793_v26 = vpop.eup %7364 }
 0x584   : >> { %2374 = vperm.xlu1 %7345, %v8767_v2  }
 0x588   : >> { %2477 = vperm.xlu1 %7345, %v8784_v21  }
 0x58c   : >> { %2487 = vperm.xlu1 %7345, %v8789_v25  }
 0x590   : >> { %2472 = vperm.xlu1 %7345, %v8793_v26  }
 0x5df   : >> { %v2350_v5 = vpop.permute.xlu1 %2349 }
 0x5e0   : >> { %v2379_v27 = vsub.f32 %v8716_v47, %v2350_v5 }
 0x5e2   : >> { %v2389_v28 = vmul.f32 1.442695, %v2379_v27 }
 0x5e3   : >> { %v2340_v29 = vpop.permute.xlu0 %2339 }
 0x5e4   : >> { %7366 = vpow2.f32 %v2389_v28  ;;  %v2377_v30 = vsub.f32 %v8722_v15, %v2340_v29  ;;  %v2333_v29 = vmul.f32 1.442695, %v2319_v63  ;;  %v2401_v63 = vld [vmem:[#allocation6] sm:$0xff] }
 0x5e6   : >> { %v2385_v31 = vmul.f32 1.442695, %v2377_v30 }
 0x5e8   : >> { %7368 = vpow2.f32 %v2385_v31 }
 0x5eb   : >> { %v2370_v36 = vpop.permute.xlu1 %2369 }
 0x5ec   : >> { %v2383_v39 = vsub.f32 %v8718_v13, %v2370_v36 }
 0x5ee   : >> { %v2397_v44 = vmul.f32 1.442695, %v2383_v39 }
 0x5ef   : >> { %v2360_v45 = vpop.permute.xlu1 %2359 }
 0x5f0   : >> { %7370 = vpow2.f32 %v2397_v44  ;;  %v2381_v48 = vsub.f32 %v8724_v16, %v2360_v45  ;;  %v2403_v45 = vld [vmem:[#allocation6 + $0x10] sm:$0xff] }
 0x5f1   : >> { %v7367_v32 = vpop.eup %7366 }
 0x5f2   : >> { %v2393_v33 = vmul.f32 1.442695, %v2381_v48  ;;  %v2423_v54 = vsel %vm2280_vm1, %v7367_v32, 0.0  ;;  %v2411_v48 = vmul.f32 %v8784_v21, %v2403_v45 }
 0x5f3   : >> { %2424 = vadd.xlane.f32.xlu0 %v2423_v54  ;;  %v2355_v47 = vpop.permute.xlu1 %2354 }
 0x5f4   : >> { %7372 = vpow2.f32 %v2393_v33  ;;  %v2380_v57 = vsub.f32 %v8728_v17, %v2355_v47  ;;  %v2409_v33 = vmul.f32 %v8773_v11, %v2401_v63 }
 0x5f5   : >> { %v7369_v15 = vpop.eup %7368  ;;  %v2468_v6 = vpop.permute.xlu0 %2467 }
 0x5f6   : >> { %v2391_v58 = vmul.f32 1.442695, %v2380_v57  ;;  %v2417_v22 = vsel %vm2280_vm1, %v7369_v15, 0.0  ;;  %v2407_v57 = vld [vmem:[#allocation6 + $0x30] sm:$0xff] }
 0x5f7   : >> { %v2345_v61 = vpop.permute.xlu1 %2344  ;;  %2418 = vadd.xlane.f32.xlu1 %v2417_v22  ;;  %v2405_v22 = vld [vmem:[#allocation6 + $0x20] sm:$0xff] }
 0x5f8   : >> { %7374 = vpow2.f32 %v2391_v58  ;;  %v2378_v13 = vsub.f32 %v8734_v12, %v2345_v61  ;;  %v2413_v21 = vmul.f32 %v8789_v25, %v2405_v22 }
 0x5f9   : >> { %v2483_v36 = vpop.permute.xlu0 %2482 }
 0x5fa   : >> { %v2387_v9 = vmul.f32 1.442695, %v2378_v13 }
 0x5fb   : >> { %v2365_v16 = vpop.permute.xlu1 %2364 }
 0x5fc   : >> { %7376 = vpow2.f32 %v2387_v9  ;;  %v2382_v23 = vsub.f32 %v8736_v56, %v2365_v16  ;;  %v2404_v9 = vld [vmem:[#allocation6 + $0x18] sm:$0xff] }
 0x5fd   : >> { %v7371_v35 = vpop.eup %7370  ;;  %v8824_v44 = vpop.permute.xlu0 %2492  ;;  %v2412_v11 = vmul.f32 %v8776_v18, %v2404_v9 }
 0x5fe   : >> { %v2395_v0 = vmul.f32 1.442695, %v2382_v23  ;;  %v2435_v42 = vsel %vm2280_vm1, %v7371_v35, 0.0 }
 0x5ff   : >> { %2436 = vadd.xlane.f32.xlu0 %v2435_v42  ;;  %v2375_v17 = vpop.permute.xlu1 %2374 }
 0x600   : >> { %7378 = vpow2.f32 %v2395_v0  ;;  %v2384_v3 = vsub.f32 %v8732_v46, %v2375_v17 }
 0x601   : >> { %v7373_v7 = vpop.eup %7372 }
 0x602   : >> { %v2399_v10 = vmul.f32 1.442695, %v2384_v3  ;;  %v2429_v14 = vsel %vm2280_vm1, %v7373_v7, 0.0 }
 0x603   : >> { %2430 = vadd.xlane.f32.xlu0 %v2429_v14  ;;  %v2478_v31 = vpop.permute.xlu1 %2477  ;;  %v2406_v14 = vld [vmem:[#allocation6 + $0x28] sm:$0xff] }
 0x604   : >> { %7380 = vpow2.f32 %v2399_v10  ;;  %v2414_v18 = vmul.f32 %v8779_v59, %v2406_v14  ;;  %v2461_v59 = vld [vmem:[#allocation7 + $0x8] sm:$0xff] }
 0x605   : >> { %v7375_v12 = vpop.eup %7374  ;;  %7382 = vpow2.f32 %v2335_v4 }
 0x606   : >> { %v2426_v55 = vsel %vm2280_vm1, %v7375_v12, 0.0  ;;  %v2514_v60 = vpack.c.bf16 %v7375_v12, %v7367_v32  ;;  %7384 = vpow2.f32 %v2333_v29  ;;  %v2463_v29 = vld [vmem:[#allocation7 + $0x28] sm:$0xff] }
 0x607   : >> { %2427 = vadd.xlane.f32.xlu1 %v2426_v55  ;;  %v8822_v39 = vpop.permute.xlu1 %2487 }
 0x609   : >> { %v7377_v56 = vpop.eup %7376 }
 0x60a   : >> { %v2420_v19 = vsel %vm2280_vm1, %v7377_v56, 0.0  ;;  %v2513_v20 = vpack.c.bf16 %v7377_v56, %v7369_v15 }
 0x60b   : >> { %2421 = vadd.xlane.f32.xlu0 %v2420_v19  ;;  %v2473_v8 = vpop.permute.xlu1 %2472  ;;  %v2459_v19 = vld [vmem:[#allocation7 + $0x18] sm:$0xff] }
 0x60c   : >> { %6939 = vmatprep.mubr.msk.bf16.mxu0 %vm2280_vm1, %v2513_v20  ;;  %v2457_v20 = vld [vmem:[#allocation7 + $0x30] sm:$0xff] }
 0x60d   : >> { %v7379_v24 = vpop.eup %7378  ;;  %6940 = vmatmul.mubr.msk.bf16.vlgmr.msra.gmra.mxu0 %vm2280_vm1, %v2514_v60  ;;  %v2460_v60 = vld [vmem:[#allocation7 + $0x10] sm:$0xff] }
 0x60e   : >> { %v2515_v46 = vpack.c.bf16 %v7379_v24, %v7373_v7  ;;  %v2432_v30 = vsel %vm2280_vm1, %v7379_v24, 0.0  ;;  %v2408_v7 = vld [vmem:[#allocation6 + $0x38] sm:$0xff] }
 0x610   : >> { %6947 = vmatprep.mubr.msk.bf16.mxu1 %vm2280_vm1, %v2515_v46  ;;  %v2505_v46 = vmul.f32 %v2468_v6, %v2457_v20 }
 0x611   : >> { %v7381_v5 = vpop.eup %7380 }
 0x612   : >> { %v2438_v27 = vsel %vm2280_vm1, %v7381_v5, 0.0  ;;  %v2516_v28 = vpack.c.bf16 %v7381_v5, %v7371_v35  ;;  %v7383_v62 = vpop.eup %7382  ;;  %v2402_v35 = vld [vmem:[#allocation6 + $0x8] sm:$0xff]  ;;  %v2458_v5 = vld [vmem:[#allocation7] sm:$0xff] }
 0x613   : >> { %2439 = vadd.xlane.f32.xlu1 %v2438_v27  ;;  %v7385_v2 = vpop.eup %7384  ;;  %v2410_v42 = vmul.f32 %v8793_v26, %v2402_v35  ;;  %v2416_v25 = vmul.f32 %v7383_v62, %v2408_v7  ;;  %v2507_v26 = vmul.f32 %v2478_v31, %v2459_v19  ;;  %v2506_v45 = vmul.f32 %v2473_v8, %v2458_v5 }
 0x614   : >> { %6948 = vmatmul.mubr.msk.bf16.vlgmr.msra.gmra.mxu1 %vm2280_vm1, %v2516_v28  ;;  %v2415_v15 = vmul.f32 %v7385_v2, %v2407_v57  ;;  %v2508_v28 = vmul.f32 %v2483_v36, %v2460_v60  ;;  %v2462_v36 = vld [vmem:[#allocation7 + $0x20] sm:$0xff] }
 0x615   : >> { %v2510_v8 = vmul.f32 %v8824_v44, %v2462_v36 }
 0x617   : >> { %2433 = vadd.xlane.f32.xlu1 %v2432_v30 }
 0x621   : >> { %2502 = vperm.xlu0 %7344, %v7383_v62  }
 0x628   : >> { %2497 = vperm.xlu1 %7345, %v7385_v2  }
 0x67c   : >> { %v2425_v34 = vpop.xlane.xlu0 %2424 }
 0x67d   : >> { %v2443_v32 = vadd.f32 %v2425_v34, %v2411_v48 }
 0x67f   : >> { %2451 = vst.msk [vmem:[#allocation6 + $0x10] sm:$0xff] %vm2086_vm0, %v2443_v32  ;;  %v2464_v32 = vld [vmem:[#allocation7 + $0x38] sm:$0xff] }
 0x680   : >> { %v2419_v54 = vpop.xlane.xlu1 %2418 }
 0x681   : >> { %v2441_v47 = vadd.f32 %v2419_v54, %v2409_v33  ;;  %v2509_v54 = vmul.f32 %v8822_v39, %v2461_v59 }
 0x683   : >> { %2449 = vst.msk [vmem:[#allocation6] sm:$0xff] %vm2086_vm0, %v2441_v47 }
 0x688   : >> { %v2437_v58 = vpop.xlane.xlu0 %2436 }
 0x689   : >> { %v2447_v61 = vadd.f32 %v2437_v58, %v2415_v15 }
 0x68b   : >> { %2455 = vst.msk [vmem:[#allocation6 + $0x30] sm:$0xff] %vm2086_vm0, %v2447_v61 }
 0x68c   : >> { %v2431_v13 = vpop.xlane.xlu0 %2430 }
 0x68d   : >> { %v2445_v16 = vadd.f32 %v2431_v13, %v2413_v21 }
 0x68f   : >> { %2453 = vst.msk [vmem:[#allocation6 + $0x20] sm:$0xff] %vm2086_vm0, %v2445_v16 }
 0x690   : >> { %v2428_v23 = vpop.xlane.xlu1 %2427 }
 0x691   : >> { %v2444_v0 = vadd.f32 %v2428_v23, %v2412_v11 }
 0x693   : >> { %2452 = vst.msk [vmem:[#allocation6 + $0x18] sm:$0xff] %vm2086_vm0, %v2444_v0 }
 0x694   : >> { %v2422_v17 = vpop.xlane.xlu0 %2421 }
 0x695   : >> { %v2442_v3 = vadd.f32 %v2422_v17, %v2410_v42 }
 0x697   : >> { %2450 = vst.msk [vmem:[#allocation6 + $0x8] sm:$0xff] %vm2086_vm0, %v2442_v3 }
 0x69c   : >> { %v2440_v10 = vpop.xlane.xlu1 %2439  ;;  %v2503_v31 = vpop.permute.xlu0 %2502 }
 0x69d   : >> { %v2448_v12 = vadd.f32 %v2440_v10, %v2416_v25  ;;  %v2512_v15 = vmul.f32 %v2503_v31, %v2464_v32 }
 0x69f   : >> { %2456 = vst.msk [vmem:[#allocation6 + $0x38] sm:$0xff] %vm2086_vm0, %v2448_v12 }
 0x6a0   : >> { %v2434_v55 = vpop.xlane.xlu1 %2433 }
 0x6a1   : >> { %v2446_v56 = vadd.f32 %v2434_v55, %v2414_v18 }
 0x6a3   : >> { %2454 = vst.msk [vmem:[#allocation6 + $0x28] sm:$0xff] %vm2086_vm0, %v2446_v56 }
 0x6a4   : >> { %v2498_v30 = vpop.permute.xlu1 %2497 }
 0x6a5   : >> { %v2511_v34 = vmul.f32 %v2498_v30, %v2463_v29 }
 0x6cd   : >> { %v6941_v24 = vpop.f32.mrf.mxu0 }
 0x6ce   : >> { %v2653_v4 = vadd.f32 %v6941_v24, %v2507_v26 }
 0x6cf   : >> { %v2569_v27 = vpop.f32.mrf.mxu0 }
 0x6d0   : >> { %2661 = vst [vmem:[#allocation7 + $0x18] sm:$0xff] %v2653_v4  ;;  %v2651_v62 = vadd.f32 %v2569_v27, %v2505_v46 }
 0x6d1   : >> { %v6942_v2 = vpop.f32.mrf.mxu0 }
 0x6d2   : >> { %2659 = vst [vmem:[#allocation7 + $0x30] sm:$0xff] %v2651_v62  ;;  %v2654_v48 = vadd.f32 %v6942_v2, %v2508_v28 }
 0x6d3   : >> { %v2572_v63 = vpop.f32.mrf.mxu0 }
 0x6d4   : >> { %2662 = vst [vmem:[#allocation7 + $0x10] sm:$0xff] %v2654_v48  ;;  %v2652_v33 = vadd.f32 %v2572_v63, %v2506_v45  ;;  %v6949_v6 = vpop.f32.mrf.mxu1 }
 0x6d5   : >> { %v2657_v47 = vadd.f32 %v6949_v6, %v2511_v34 }
 0x6d6   : >> { %2660 = vst [vmem:[#allocation7] sm:$0xff] %v2652_v33  ;;  %v2636_v57 = vpop.f32.mrf.mxu1 }
 0x6d7   : >> { %2665 = vst [vmem:[#allocation7 + $0x28] sm:$0xff] %v2657_v47  ;;  %v2655_v58 = vadd.f32 %v2636_v57, %v2509_v54 }
 0x6d8   : >> { %v6950_v22 = vpop.f32.mrf.mxu1 }
 0x6d9   : >> { %2663 = vst [vmem:[#allocation7 + $0x8] sm:$0xff] %v2655_v58  ;;  %v2658_v61 = vadd.f32 %v6950_v22, %v2512_v15  ;;  %2126 = sbr.rel (!%p2123_p10) target bundleno = 1025 (0x401), region = 170 }
 0x6da   : >> { %v2639_v21 = vpop.f32.mrf.mxu1 }
 0x6db   : >> { %2666 = vst [vmem:[#allocation7 + $0x38] sm:$0xff] %v2658_v61  ;;  %v2656_v13 = vadd.f32 %v2639_v21, %v2510_v8 }
 0x6dd   : >> { %2664 = vst [vmem:[#allocation7 + $0x20] sm:$0xff] %v2656_v13 }
 0x6de PF: > { %s6281_s4 = sshll.u32 %s1800_s1, 2  ;;  %6955 = vmatprep.mubr.bf16.mxu1 %v8695_v43  ;;  %v2818_v43 = vand.u32 127, %v2111_v40  ;;  %vm2848_vm3 = vcmask 261120   ;;  %v8131_v25 = vmov 0   ;;  %v8908_v24 = vld [vmem:[#allocation5 + $0x10] sm:$0xff]  ;;  %v8910_v46 = vld [vmem:[#allocation5] sm:$0xff] }
 0x6df   : > { %s2676_s3 = scalar_lea.vmem [#allocation3], %s6281_s4  ;;  %s8849_s24 = scalar_lea.vmem [#allocation4], %s6281_s4  ;;  %7387 = vset.pattern.permute.xlu1 %v8131_v25  ;;  %7386 = vset.pattern.permute.xlu0 %v8131_v25  ;;  %v8915_v27 = vld [vmem:[#allocation5 + $0x18] sm:$0xff]  ;;  %v8925_v30 = vld [vmem:[#allocation5 + $0x8] sm:$0xff]  ;;  %v8949_v32 = vld [vmem:[#allocation5 + $0x20] sm:$0xff] }
 0x6e0   : > { %v7388_v39 = vld [vmem:[%s2676_s3 + $0x8] sm:$0xff]   ;;  %v7389_v44 = vld [vmem:[%s2676_s3] sm:$0xff]   ;;  %v2819_v11 = vadd.s32 %v2818_v43, %v8664_v49  ;;  %v8954_v6 = vld [vmem:[#allocation5 + $0x30] sm:$0xff]  ;;  %s9545_s9 = sld [smem:[#allocation36_spill]]  ;;  %s6633_s7 = sshll.u32 %s1800_s1, 4 }
 0x6e1   : > { %6951 = vmatprep.subr.bf16.mxu1 %v7388_v39  ;;  %v7390_v9 = vld [vmem:[%s2676_s3 + $0x28] sm:$0xff]   ;;  %v7391_v16 = vld [vmem:[%s2676_s3 + $0x20] sm:$0xff]   ;;  %v8969_v8 = vld [vmem:[#allocation5 + $0x38] sm:$0xff]  ;;  %s9084_s25 = scalar_lea.vmem %s8424_s8, %s6633_s7 [#allocation8]  ;;  %s9546_s1 = sld [smem:[#allocation39_spill]] }
 0x6e2   : > { %6952 = vmatpush3.bf16.xpose.msra.mxu1 %v7388_v39  ;;  %vm2822_vm2 = vcmp.gt.s32.totalorder %v2819_v11, %v8690_v52  ;;  %vm2820_vm4 = vcmp.gt.s32.totalorder %v2819_v11, %v8684_v50  ;;  %vm2823_vm5 = vcmp.gt.s32.totalorder %v2819_v11, %v8693_v53  ;;  %vm2821_vm6 = vcmp.gt.s32.totalorder %v2819_v11, %v8687_v51  ;;  %v7392_v63 = vld [vmem:[%s8849_s24 + $0x8] sm:$0xff]   ;;  %v7393_v22 = vld [vmem:[%s8849_s24] sm:$0xff]   ;;  %s9547_s2 = sld [smem:[#allocation42_spill]]  ;;  %s5926_s8 = sshll.u32 %s8452_s16, 4  ;;  %s9408_s8 = int_to_ptr.vmem [resolvable:$true] %s5926_s8 }
 0x6e3   : > { %6953 = vmatprep.subr.bf16.mxu1 %v7389_v44  ;;  %v8956_v54 = vld [vmem:[#allocation5 + $0x28] sm:$0xff]  ;;  %s9549_s28 = sld [smem:[#allocation29_spill]]  ;;  %s9420_s4 = scalar_lea.sflag [#allocation10], %s597_s12 }
 0x6e4   : > { %s9550_s10 = sld [smem:[#allocation30_spill]]  ;;  %s7966_s3 = scalar_lea.vmem %s9408_s8, 1024 }
 0x6e5   : > { %s9551_s27 = sld [smem:[#allocation45_spill]]  ;;  %p7967_p9 = scmp.ne.s32.totalorder %s9408_s8, %s7966_s3 }
 0x6e7   : > { %p7968_p11 = pnand %p7967_p9, %p8391_p6 }
 0x6e9   : > { %p7969_p12 = pneg %p7968_p11 }
 0x6ea   : > { %6954 = vmatpush3.bf16.xpose.msra.mxu1 %v7389_v44  ;;  %s6587_s7 = sshll.u32 %s9550_s10, 4 }
 0x6eb   : > { %6959 = vmatprep.subr.bf16.mxu1 %v7390_v9 }
 0x6f1   : > { %6956 = vmatmul.mubr.bf16.vlgmr.msra.gmra.mxu1 %v8697_v1 }
 0x6f2   : > { %6960 = vmatpush3.bf16.xpose.msra.mxu1 %v7390_v9  ;;  %6963 = vmatprep.mubr.bf16.mxu1 %v8699_v37  ;;  %v7394_v9 = vld [vmem:[%s8849_s24 + $0x28] sm:$0xff]  }
 0x6f3   : > { %6961 = vmatprep.subr.bf16.mxu1 %v7391_v16 }
 0x6fa   : > { %6962 = vmatpush3.bf16.xpose.msra.mxu1 %v7391_v16 }
 0x6fb   : > { %6967 = vmatprep.subr.bf16.mxu1 %v7392_v63 }
 0x701   : > { %6964 = vmatmul.mubr.bf16.vlgmr.msra.gmra.mxu1 %v8701_v38 }
 0x702   : > { %6968 = vmatpush3.bf16.msra.mxu1 %v7392_v63 }
 0x703   : > { %6969 = vmatprep.subr.bf16.mxu1 %v7393_v22 }
 0x706   : > { %6970 = vmatpush3.bf16.msra.mxu1 %v7393_v22 }
 0x707   : > { %6975 = vmatprep.subr.bf16.mxu1 %v7394_v9 }
 0x7b1   : > { %v6957_v23 = vpop.f32.mrf.mxu1 }
 0x7b2   : > { %v8860_v1 = vsel %vm2822_vm2, -1e+30, %v6957_v23 }
 0x7b3   : > { %v2741_v35 = vpop.f32.mrf.mxu1  ;;  %v2855_v37 = vsel %vm2848_vm3, %v8860_v1, -inf }
 0x7b4   : > { %v8867_v40 = vsel %vm2820_vm4, -1e+30, %v2741_v35  ;;  %2856 = vmax.xlane.f32.xlu1 %v2855_v37 }
 0x7b5   : > { %v6958_v49 = vpop.f32.mrf.mxu1  ;;  %v2849_v38 = vsel %vm2848_vm3, %v8867_v40, -inf }
 0x7b6   : > { %v8874_v0 = vsel %vm2823_vm5, -1e+30, %v6958_v49  ;;  %2850 = vmax.xlane.f32.xlu0 %v2849_v38 }
 0x7b7   : > { %v2744_v42 = vpop.f32.mrf.mxu1  ;;  %v2858_v17 = vsel %vm2848_vm3, %v8874_v0, -inf }
 0x7b8   : > { %v8880_v3 = vsel %vm2821_vm6, -1e+30, %v2744_v42  ;;  %2859 = vmax.xlane.f32.xlu1 %v2858_v17 }
 0x7b9   : > { %v2852_v7 = vsel %vm2848_vm3, %v8880_v3, -inf }
 0x7ba   : > { %2853 = vmax.xlane.f32.xlu0 %v2852_v7 }
 0x7c1   : > { %v6965_v10 = vpop.f32.mrf.mxu1 }
 0x7c2   : > { %v8892_v56 = vsel %vm2822_vm2, -1e+30, %v6965_v10 }
 0x7c3   : > { %v2802_v14 = vpop.f32.mrf.mxu1  ;;  %v2867_v26 = vsel %vm2848_vm3, %v8892_v56, -inf }
 0x7c4   : > { %v8886_v12 = vsel %vm2820_vm4, -1e+30, %v2802_v14 }
 0x7c5   : > { %v6966_v18 = vpop.f32.mrf.mxu1  ;;  %v2861_v55 = vsel %vm2848_vm3, %v8886_v12, -inf }
 0x7c6   : > { %2862 = vmax.xlane.f32.xlu0 %v2861_v55  ;;  %v8904_v60 = vsel %vm2823_vm5, -1e+30, %v6966_v18 }
 0x7c7   : > { %v2805_v19 = vpop.f32.mrf.mxu1  ;;  %v2870_v52 = vsel %vm2848_vm3, %v8904_v60, -inf }
 0x7c8   : > { %v8896_v20 = vsel %vm2821_vm6, -1e+30, %v2805_v19 }
 0x7c9   : > { %v2864_v50 = vsel %vm2848_vm3, %v8896_v20, -inf }
 0x7ca   : > { %2868 = vmax.xlane.f32.xlu0 %v2867_v26  ;;  %2865 = vmax.xlane.f32.xlu1 %v2864_v50  ;;  %v7395_v50 = vld [vmem:[%s8849_s24 + $0x20] sm:$0xff]   ;;  %s9548_s24 = sld [smem:[#allocation44_spill]] }
 0x7ce   : > { %2871 = vmax.xlane.f32.xlu1 %v2870_v52 }
 0x83d   : > { %v2857_v51 = vpop.xlane.xlu1 %2856 }
 0x83e   : > { %v8913_v4 = vmax.f32 %v8908_v24, %v2857_v51 }
 0x83f   : > { %v2851_v5 = vpop.xlane.xlu0 %2850 }
 0x840   : > { %v2883_v53 = vsub.f32 %v8908_v24, %v8913_v4  ;;  %3237 = vst.msk [vmem:[#allocation5 + $0x10] sm:$0xff] %vm2086_vm0, %v8913_v4  ;;  %v8922_v28 = vmax.f32 %v8910_v46, %v2851_v5  ;;  %2917 = vperm.xlu1 %7387, %v8913_v4  }
 0x841   : > { %v2860_v29 = vpop.xlane.xlu1 %2859 }
 0x842   : > { %v2881_v62 = vsub.f32 %v8910_v46, %v8922_v28  ;;  %3235 = vst.msk [vmem:[#allocation5] sm:$0xff] %vm2086_vm0, %v8922_v28  ;;  %v8932_v2 = vmax.f32 %v8915_v27, %v2860_v29  ;;  %2907 = vperm.xlu0 %7386, %v8922_v28  }
 0x843   : > { %v2854_v59 = vpop.xlane.xlu0 %2853 }
 0x844   : > { %v2884_v45 = vsub.f32 %v8915_v27, %v8932_v2  ;;  %3238 = vst.msk [vmem:[#allocation5 + $0x18] sm:$0xff] %vm2086_vm0, %v8932_v2  ;;  %v8940_v48 = vmax.f32 %v8925_v30, %v2854_v59  ;;  %2922 = vperm.xlu1 %7387, %v8932_v2  }
 0x846   : > { %v2882_v34 = vsub.f32 %v8925_v30, %v8940_v48  ;;  %3236 = vst.msk [vmem:[#allocation5 + $0x8] sm:$0xff] %vm2086_vm0, %v8940_v48  ;;  %v7396_v30 = vld [vmem:[#allocation16 + $0x74] ss:$8 sps:$4 sm:$0xff]  }
 0x847   : > { %3523 = vmatprep.subr.bf16.mxu0 %v7396_v30 }
 0x848   : > { %2912 = vperm.xlu1 %7387, %v8940_v48   ;;  %v7398_v48 = vld [vmem:[#allocation16 + $0x70] ss:$8 sps:$4 sm:$0xff]  }
 0x849   : > { %3524 = vmatpush1.bf16.msra.mxu0 %v7398_v48 }
 0x84f   : > { %v2863_v31 = vpop.xlane.xlu0 %2862 }
 0x850   : > { %v8952_v33 = vmax.f32 %v8949_v32, %v2863_v31 }
 0x852   : > { %v2885_v47 = vsub.f32 %v8949_v32, %v8952_v33  ;;  %3239 = vst.msk [vmem:[#allocation5 + $0x20] sm:$0xff] %vm2086_vm0, %v8952_v33  ;;  %v7401_v32 = vld [vmem:[#allocation16 + $0x60] ss:$8 sps:$4 sm:$0xff]  }
 0x853   : > { %v2869_v36 = vpop.xlane.xlu0 %2868  ;;  %v2866_v57 = vpop.xlane.xlu1 %2865 }
 0x854   : > { %v8963_v15 = vmax.f32 %v8954_v6, %v2869_v36  ;;  %v8966_v58 = vmax.f32 %v8956_v54, %v2866_v57 }
 0x856   : > { %v2887_v61 = vsub.f32 %v8954_v6, %v8963_v15  ;;  %3241 = vst.msk [vmem:[#allocation5 + $0x30] sm:$0xff] %vm2086_vm0, %v8963_v15  ;;  %v2886_v21 = vsub.f32 %v8956_v54, %v8966_v58  ;;  %3240 = vst.msk [vmem:[#allocation5 + $0x28] sm:$0xff] %vm2086_vm0, %v8966_v58  ;;  %2937 = vperm.xlu1 %7387, %v8963_v15   ;;  %v2897_v54 = vmul.f32 1.442695, %v2885_v47  ;;  %v7404_v47 = vld [vmem:[#allocation16 + $0x50] ss:$8 sps:$4 sm:$0xff]  }
 0x857   : > { %v2872_v13 = vpop.xlane.xlu1 %2871 }
 0x858   : > { %v8981_v39 = vmax.f32 %v8969_v8, %v2872_v13 }
 0x85a   : > { %v2888_v44 = vsub.f32 %v8969_v8, %v8981_v39  ;;  %3242 = vst.msk [vmem:[#allocation5 + $0x38] sm:$0xff] %vm2086_vm0, %v8981_v39  ;;  %2927 = vperm.xlu1 %7387, %v8952_v33   ;;  %v7402_v33 = vld [vmem:[#allocation16 + $0x54] ss:$8 sps:$4 sm:$0xff]   ;;  %v2893_v8 = vmul.f32 1.442695, %v2883_v53  ;;  %v2969_v53 = vld [vmem:[#allocation6] sm:$0xff] }
 0x85e   : > { %2932 = vperm.xlu1 %7387, %v8966_v58   ;;  %v2891_v58 = vmul.f32 1.442695, %v2882_v34  ;;  %v7399_v34 = vld [vmem:[#allocation16 + $0x64] ss:$8 sps:$4 sm:$0xff]  }
 0x85f   : > { %3525 = vmatprep.subr.bf16.mxu0 %v7399_v34 }
 0x860   : > { %3526 = vmatpush1.bf16.msra.mxu0 %v7401_v32 }
 0x861   : > { %3527 = vmatprep.subr.bf16.mxu0 %v7402_v33 }
 0x862   : > { %2942 = vperm.xlu1 %7387, %v8981_v39   ;;  %v2973_v39 = vld [vmem:[#allocation6 + $0x20] sm:$0xff] }
 0x864   : > { %3528 = vmatpush1.bf16.msra.mxu0 %v7404_v47 }
 0x8bb   : > { %v2918_v16 = vpop.permute.xlu1 %2917 }
 0x8bc   : > { %v2947_v37 = vsub.f32 %v8860_v1, %v2918_v16 }
 0x8bd   : > { %v2908_v43 = vpop.permute.xlu0 %2907 }
 0x8be   : > { %v2945_v11 = vsub.f32 %v8867_v40, %v2908_v43  ;;  %v2957_v7 = vmul.f32 1.442695, %v2947_v37 }
 0x8bf   : > { %v2923_v23 = vpop.permute.xlu1 %2922 }
 0x8c0   : > { %v2948_v35 = vsub.f32 %v8874_v0, %v2923_v23  ;;  %v2953_v49 = vmul.f32 1.442695, %v2945_v11  ;;  %v2899_v23 = vmul.f32 1.442695, %v2886_v21 }
 0x8c2   : > { %v2959_v38 = vmul.f32 1.442695, %v2948_v35  ;;  %7636 = vpow2.f32 %v2953_v49  ;;  %v2889_v49 = vmul.f32 1.442695, %v2881_v62 }
 0x8c3   : > { %v2913_v42 = vpop.permute.xlu1 %2912 }
 0x8c4   : > { %v2946_v17 = vsub.f32 %v8880_v3, %v2913_v42  ;;  %7638 = vpow2.f32 %v2959_v38  ;;  %v7405_v42 = vld [vmem:[#allocation16 + $0x44] ss:$8 sps:$4 sm:$0xff]  }
 0x8c5   : > { %3529 = vmatprep.subr.bf16.mxu0 %v7405_v42 }
 0x8c6   : > { %v2955_v25 = vmul.f32 1.442695, %v2946_v17  ;;  %v7407_v17 = vld [vmem:[#allocation16 + $0x40] ss:$8 sps:$4 sm:$0xff]  }
 0x8c7   : > { %3530 = vmatpush1.bf16.msra.mxu0 %v7407_v17  ;;  %v7435_v17 = vld [vmem:[#allocation16 + $0xa4] ss:$8 sps:$4 sm:$0xff]  }
 0x8c8   : > { %7640 = vpow2.f32 %v2955_v25  ;;  %v7410_v25 = vld [vmem:[#allocation16 + $0x30] ss:$8 sps:$4 sm:$0xff]  }
 0x8c9   : > { %7642 = vpow2.f32 %v2957_v7  ;;  %v7408_v7 = vld [vmem:[#allocation16 + $0x34] ss:$8 sps:$4 sm:$0xff]  }
 0x8ca   : > { %3531 = vmatprep.subr.bf16.mxu0 %v7408_v7  ;;  %v7437_v7 = vld [vmem:[#allocation16 + $0xa0] ss:$8 sps:$4 sm:$0xff]  }
 0x8cb   : > { %3532 = vmatpush1.bf16.msra.mxu0 %v7410_v25 }
 0x8cf   : > { %v7637_v14 = vpop.eup %7636 }
 0x8d0   : > { %v2985_v16 = vsel %vm2848_vm3, %v7637_v14, 0.0 }
 0x8d1   : > { %v2938_v10 = vpop.permute.xlu1 %2937  ;;  %v7639_v40 = vpop.eup %7638 }
 0x8d2   : > { %v2951_v3 = vsub.f32 %v8892_v56, %v2938_v10  ;;  %v2994_v37 = vsel %vm2848_vm3, %v7639_v40, 0.0  ;;  %v7411_v10 = vld [vmem:[#allocation16 + $0x24] ss:$8 sps:$4 sm:$0xff]  }
 0x8d3   : > { %3533 = vmatprep.subr.bf16.mxu0 %v7411_v10  ;;  %v7438_v10 = vld [vmem:[#allocation16 + $0x94] ss:$8 sps:$4 sm:$0xff]  }
 0x8d4   : > { %v2965_v59 = vmul.f32 1.442695, %v2951_v3  ;;  %v7428_v3 = vld [vmem:[#allocation16 + $0xd0] ss:$8 sps:$4 sm:$0xff]  }
 0x8d5   : > { %v7641_v18 = vpop.eup %7640  ;;  %v2928_v55 = vpop.permute.xlu1 %2927 }
 0x8d6   : > { %v7643_v0 = vpop.eup %7642  ;;  %v2949_v1 = vsub.f32 %v8886_v12, %v2928_v55  ;;  %v3081_v19 = vpack.c.bf16 %v7641_v18, %v7637_v14  ;;  %v2988_v22 = vsel %vm2848_vm3, %v7641_v18, 0.0  ;;  %v7413_v14 = vld [vmem:[#allocation16 + $0x20] ss:$8 sps:$4 sm:$0xff]   ;;  %v7416_v18 = vld [vmem:[#allocation16 + $0x10] ss:$8 sps:$4 sm:$0xff]  }
 0x8d7   : > { %v3082_v26 = vpack.c.bf16 %v7639_v40, %v7643_v0  ;;  %v2991_v38 = vsel %vm2848_vm3, %v7643_v0, 0.0  ;;  %v7414_v40 = vld [vmem:[#allocation16 + $0x14] ss:$8 sps:$4 sm:$0xff]   ;;  %3534 = vmatpush1.bf16.msra.mxu0 %v7413_v14  ;;  %v7417_v55 = vld [vmem:[#allocation16 + $0x4] ss:$8 sps:$4 sm:$0xff]  }
 0x8d8   : > { %v2961_v52 = vmul.f32 1.442695, %v2949_v1  ;;  %6971 = vmatprep.mubr.msk.bf16.mxu1 %vm2848_vm3, %v3081_v19  ;;  %3535 = vmatprep.subr.bf16.mxu0 %v7414_v40  ;;  %v7419_v0 = vld [vmem:[#allocation16] ss:$8 sps:$4 sm:$0xff]   ;;  %v7420_v1 = vld [vmem:[#allocation16 + $0xf4] ss:$8 sps:$4 sm:$0xff]  }
 0x8d9   : > { %6972 = vmatmul.mubr.msk.bf16.vlgmr.msra.gmra.mxu1 %vm2848_vm3, %v3082_v26  ;;  %v2933_v51 = vpop.permute.xlu1 %2932  ;;  %v7422_v19 = vld [vmem:[#allocation16 + $0xf0] ss:$8 sps:$4 sm:$0xff]   ;;  %v7423_v26 = vld [vmem:[#allocation16 + $0xe4] ss:$8 sps:$4 sm:$0xff]  }
 0x8da   : > { %7644 = vpow2.f32 %v2961_v52  ;;  %v2950_v5 = vsub.f32 %v8896_v20, %v2933_v51  ;;  %6976 = vmatpush3.bf16.msra.mxu1 %v7394_v9  ;;  %v7426_v52 = vld [vmem:[#allocation16 + $0xd4] ss:$8 sps:$4 sm:$0xff]   ;;  %v7429_v51 = vld [vmem:[#allocation16 + $0xc4] ss:$8 sps:$4 sm:$0xff]   ;;  %v7440_v14 = vld [vmem:[#allocation16 + $0x90] ss:$8 sps:$4 sm:$0xff]  }
 0x8db   : > { %6977 = vmatprep.subr.bf16.mxu1 %v7395_v50  ;;  %3536 = vmatpush1.bf16.msra.mxu0 %v7416_v18 }
 0x8dc   : > { %v2963_v29 = vmul.f32 1.442695, %v2950_v5  ;;  %3537 = vmatprep.subr.bf16.mxu0 %v7417_v55  ;;  %v2903_v5 = vmul.f32 1.442695, %v2888_v44  ;;  %v2970_v44 = vld [vmem:[#allocation6 + $0x8] sm:$0xff] }
 0x8dd   : > { %v2943_v63 = vpop.permute.xlu1 %2942 }
 0x8de   : > { %7646 = vpow2.f32 %v2963_v29  ;;  %v2952_v12 = vsub.f32 %v8904_v60, %v2943_v63  ;;  %6978 = vmatpush3.bf16.msra.mxu1 %v7395_v50  ;;  %v7425_v50 = vld [vmem:[#allocation16 + $0xe0] ss:$8 sps:$4 sm:$0xff]   ;;  %v2895_v63 = vmul.f32 1.442695, %v2884_v45 }
 0x8df   : > { %7648 = vpow2.f32 %v2965_v59  ;;  %3538 = vmatpush1.bf16.msra.mxu0 %v7419_v0  ;;  %v7431_v29 = vld [vmem:[#allocation16 + $0xc0] ss:$8 sps:$4 sm:$0xff]   ;;  %v7432_v59 = vld [vmem:[#allocation16 + $0xb4] ss:$8 sps:$4 sm:$0xff]   ;;  %v7441_v0 = vld [vmem:[#allocation16 + $0x84] ss:$8 sps:$4 sm:$0xff]  }
 0x8e0   : > { %v2967_v31 = vmul.f32 1.442695, %v2952_v12  ;;  %3539 = vmatprep.subr.bf16.mxu0 %v7420_v1  ;;  %v2901_v12 = vmul.f32 1.442695, %v2887_v61  ;;  %v2974_v45 = vld [vmem:[#allocation6 + $0x28] sm:$0xff] }
 0x8e1   : > { %v7443_v1 = vld [vmem:[#allocation16 + $0x80] ss:$8 sps:$4 sm:$0xff]  }
 0x8e2   : > { %7650 = vpow2.f32 %v2967_v31  ;;  %v7434_v31 = vld [vmem:[#allocation16 + $0xb0] ss:$8 sps:$4 sm:$0xff]  }
 0x8e3   : > { %7652 = vpow2.f32 %v2899_v23  ;;  %3540 = vmatpush2.bf16.msra.mxu0 %v7422_v19  ;;  %v2972_v23 = vld [vmem:[#allocation6 + $0x18] sm:$0xff] }
 0x8e4   : > { %7654 = vpow2.f32 %v2889_v49  ;;  %3541 = vmatprep.subr.bf16.mxu0 %v7423_v26 }
 0x8e5   : > { %7656 = vpow2.f32 %v2897_v54 }
 0x8e6   : > { %7658 = vpow2.f32 %v2891_v58 }
 0x8e7   : > { %v7645_v36 = vpop.eup %7644  ;;  %3542 = vmatpush2.bf16.msra.mxu0 %v7425_v50  ;;  %7660 = vpow2.f32 %v2903_v5  ;;  %v3025_v5 = vld [vmem:[#allocation7 + $0x30] sm:$0xff] }
 0x8e8   : > { %v2997_v56 = vsel %vm2848_vm3, %v7645_v36, 0.0  ;;  %3543 = vmatprep.subr.bf16.mxu0 %v7426_v52  ;;  %7662 = vpow2.f32 %v2895_v63 }
 0x8e9   : > { %2998 = vadd.xlane.f32.xlu1 %v2997_v56  ;;  %7664 = vpow2.f32 %v2901_v12  ;;  %v2976_v56 = vld [vmem:[#allocation6 + $0x38] sm:$0xff]  ;;  %v3026_v12 = vld [vmem:[#allocation7] sm:$0xff] }
 0x8ea   : > { %7666 = vpow2.f32 %v2893_v8 }
 0x8eb   : > { %v7647_v57 = vpop.eup %7646  ;;  %3544 = vmatpush2.bf16.msra.mxu0 %v7428_v3 }
 0x8ec   : > { %v3000_v20 = vsel %vm2848_vm3, %v7647_v57, 0.0  ;;  %v3083_v13 = vpack.c.bf16 %v7647_v57, %v7645_v36  ;;  %v7649_v9 = vpop.eup %7648  ;;  %3545 = vmatprep.subr.bf16.mxu0 %v7429_v51 }
 0x8ed   : > { %2989 = vadd.xlane.f32.xlu1 %v2988_v22  ;;  %3001 = vadd.xlane.f32.xlu0 %v3000_v20  ;;  %v3003_v35 = vsel %vm2848_vm3, %v7649_v9, 0.0 }
 0x8ee   : > { %6979 = vmatprep.mubr.msk.bf16.mxu1 %vm2848_vm3, %v3083_v13 }
 0x8ef   : > { %v7651_v60 = vpop.eup %7650  ;;  %3546 = vmatpush2.bf16.msra.mxu0 %v7431_v29 }
 0x8f0   : > { %v3006_v43 = vsel %vm2848_vm3, %v7651_v60, 0.0  ;;  %v3084_v11 = vpack.c.bf16 %v7651_v60, %v7649_v9  ;;  %v9024_v21 = vpop.eup %7652  ;;  %3547 = vmatprep.subr.bf16.mxu0 %v7432_v59 }
 0x8f1   : > { %2986 = vadd.xlane.f32.xlu0 %v2985_v16  ;;  %3007 = vadd.xlane.f32.xlu1 %v3006_v43  ;;  %v9027_v46 = vpop.eup %7654  ;;  %v2982_v15 = vmul.f32 %v9024_v21, %v2974_v45 }
 0x8f2   : > { %6980 = vmatmul.mubr.msk.bf16.vlgmr.msra.gmra.mxu1 %vm2848_vm3, %v3084_v11  ;;  %v9030_v28 = vpop.eup %7656  ;;  %v2977_v13 = vmul.f32 %v9027_v46, %v2969_v53  ;;  %v2975_v11 = vld [vmem:[#allocation6 + $0x30] sm:$0xff] }
 0x8f3   : > { %v9033_v62 = vpop.eup %7658  ;;  %3548 = vmatpush2.bf16.msra.mxu0 %v7434_v31  ;;  %v2981_v27 = vmul.f32 %v9030_v28, %v2973_v39 }
 0x8f4   : > { %v2978_v61 = vmul.f32 %v9033_v62, %v2970_v44  ;;  %v9052_v36 = vpop.eup %7660  ;;  %3549 = vmatprep.subr.bf16.mxu0 %v7435_v17 }
 0x8f5   : > { %3004 = vadd.xlane.f32.xlu0 %v3003_v35  ;;  %2995 = vadd.xlane.f32.xlu1 %v2994_v37  ;;  %v9054_v20 = vpop.eup %7662  ;;  %v2984_v9 = vmul.f32 %v9052_v36, %v2976_v56  ;;  %v3030_v56 = vld [vmem:[#allocation7 + $0x20] sm:$0xff] }
 0x8f6   : > { %v7665_v60 = vpop.eup %7664  ;;  %v2980_v54 = vmul.f32 %v9054_v20, %v2972_v23 }
 0x8f7   : > { %v7667_v58 = vpop.eup %7666  ;;  %3550 = vmatpush2.bf16.msra.mxu0 %v7437_v7 }
 0x8f8   : > { %3551 = vmatprep.subr.bf16.mxu0 %v7438_v10 }
 0x8f9   : > { %2992 = vadd.xlane.f32.xlu0 %v2991_v38  ;;  %v2983_v38 = vmul.f32 %v7665_v60, %v2975_v11 }
 0x8fb   : > { %3552 = vmatpush2.bf16.msra.mxu0 %v7440_v14 }
 0x8fc   : > { %3553 = vmatprep.subr.bf16.mxu0 %v7441_v0 }
 0x8ff   : > { %3554 = vmatpush2.bf16.msra.mxu0 %v7443_v1 }
 0x906   : > { %3060 = vperm.xlu1 %7387, %v9024_v21  }
 0x90a   : > { %3035 = vperm.xlu1 %7387, %v9027_v46  }
 0x90f   : > { %3055 = vperm.xlu0 %7386, %v9030_v28   ;;  %v2971_v28 = vld [vmem:[#allocation6 + $0x10] sm:$0xff] }
 0x910   : > { %v2979_v34 = vmul.f32 %v7667_v58, %v2971_v28 }
 0x913   : > { %3040 = vperm.xlu0 %7386, %v9033_v62  }
 0x972   : > { %v2999_v2 = vpop.xlane.xlu1 %2998 }
 0x973   : > { %v3013_v6 = vadd.f32 %v2999_v2, %v2981_v27 }
 0x975   : > { %3021 = vst.msk [vmem:[#allocation6 + $0x20] sm:$0xff] %vm2086_vm0, %v3013_v6 }
 0x976   : > { %v3002_v24 = vpop.xlane.xlu0 %3001  ;;  %v2990_v4 = vpop.xlane.xlu1 %2989 }
 0x977   : > { %v3014_v57 = vadd.f32 %v3002_v24, %v2982_v15  ;;  %v3010_v22 = vadd.f32 %v2990_v4, %v2978_v61  ;;  %v3029_v24 = vld [vmem:[#allocation7 + $0x8] sm:$0xff] }
 0x979   : > { %3022 = vst.msk [vmem:[#allocation6 + $0x28] sm:$0xff] %vm2086_vm0, %v3014_v57  ;;  %3018 = vst.msk [vmem:[#allocation6 + $0x8] sm:$0xff] %vm2086_vm0, %v3010_v22 }
 0x97a   : > { %v2987_v16 = vpop.xlane.xlu0 %2986  ;;  %v3008_v43 = vpop.xlane.xlu1 %3007 }
 0x97b   : > { %v3009_v35 = vadd.f32 %v2987_v16, %v2977_v13  ;;  %v3016_v37 = vadd.f32 %v3008_v43, %v2984_v9 }
 0x97c   : > { %v3255_v49 = vld [vmem:[#allocation6 + $0x20] sm:$0xff] }
 0x97d   : > { %3017 = vst.msk [vmem:[#allocation6] sm:$0xff] %vm2086_vm0, %v3009_v35  ;;  %3024 = vst.msk [vmem:[#allocation6 + $0x38] sm:$0xff] %vm2086_vm0, %v3016_v37  ;;  %7668 = vrcp.f32 %v3255_v49 }
 0x97e   : > { %v3005_v21 = vpop.xlane.xlu0 %3004  ;;  %v2996_v46 = vpop.xlane.xlu1 %2995 }
 0x97f   : > { %v3015_v62 = vadd.f32 %v3005_v21, %v2983_v38  ;;  %v3012_v30 = vadd.f32 %v2996_v46, %v2980_v54  ;;  %v3031_v21 = vld [vmem:[#allocation7 + $0x28] sm:$0xff] }
 0x980   : > { %v3256_v48 = vld [vmem:[#allocation6 + $0x28] sm:$0xff] }
 0x981   : > { %3023 = vst.msk [vmem:[#allocation6 + $0x30] sm:$0xff] %vm2086_vm0, %v3015_v62  ;;  %3020 = vst.msk [vmem:[#allocation6 + $0x18] sm:$0xff] %vm2086_vm0, %v3012_v30  ;;  %7670 = vrcp.f32 %v3256_v48  ;;  %v3252_v32 = vld [vmem:[#allocation6 + $0x8] sm:$0xff] }
 0x982   : > { %v2993_v33 = vpop.xlane.xlu0 %2992  ;;  %7672 = vrcp.f32 %v3252_v32  ;;  %v3061_v26 = vpop.permute.xlu1 %3060  ;;  %v3027_v32 = vld [vmem:[#allocation7 + $0x18] sm:$0xff] }
 0x983   : > { %v3011_v47 = vadd.f32 %v2993_v33, %v2979_v34  ;;  %v3078_v13 = vmul.f32 %v3061_v26, %v3030_v56  ;;  %v3028_v34 = vld [vmem:[#allocation7 + $0x10] sm:$0xff] }
 0x984   : > { %v3251_v42 = vld [vmem:[#allocation6] sm:$0xff]  ;;  %v3258_v40 = vld [vmem:[#allocation6 + $0x38] sm:$0xff] }
 0x985   : > { %3019 = vst.msk [vmem:[#allocation6 + $0x10] sm:$0xff] %vm2086_vm0, %v3011_v47  ;;  %7674 = vrcp.f32 %v3251_v42 }
 0x986   : > { %7676 = vrcp.f32 %v3258_v40  ;;  %v3036_v29 = vpop.permute.xlu1 %3035 }
 0x987   : > { %v3073_v63 = vmul.f32 %v3036_v29, %v3025_v5  ;;  %v3351_v5 = vld [vmem:[%s9545_s9] sm:$0x3]  ;;  %v9078_v29 = vsub.s32 1, %v8658_v41  ;;  %s6634_s9 = sshll.u32 %s9549_s28, 3 }
 0x988   : > { %v3257_v55 = vld [vmem:[#allocation6 + $0x30] sm:$0xff]  ;;  %v3254_v50 = vld [vmem:[#allocation6 + $0x18] sm:$0xff] }
 0x989   : > { %7678 = vrcp.f32 %v3257_v55 }
 0x98a   : > { %v7669_v25 = vpop.eup %7668  ;;  %7680 = vrcp.f32 %v3254_v50  ;;  %v3056_v51 = vpop.permute.xlu0 %3055 }
 0x98b   : > { %3289 = vperm.xlu1 %7387, %v7669_v25   ;;  %v3077_v53 = vmul.f32 %v3056_v51, %v3029_v24  ;;  %v9072_v51 = vsub.s32 0, %v8658_v41  ;;  %v3581_v24 = vld [vmem:[%s9084_s25 + $0x18] sm:$0xff] }
 0x98c   : > { %v3253_v3 = vld [vmem:[#allocation6 + $0x10] sm:$0xff] }
 0x98d   : > { %7682 = vrcp.f32 %v3253_v3 }
 0x98e   : > { %v7671_v18 = vpop.eup %7670  ;;  %v3041_v31 = vpop.permute.xlu0 %3040 }
 0x98f   : > { %3294 = vperm.xlu0 %7386, %v7671_v18   ;;  %v7673_v19 = vpop.eup %7672  ;;  %v3074_v44 = vmul.f32 %v3041_v31, %v3026_v12 }
 0x992   : > { %v7675_v52 = vpop.eup %7674 }
 0x993   : > { %3269 = vperm.xlu1 %7387, %v7675_v52   ;;  %3274 = vperm.xlu0 %7386, %v7673_v19   ;;  %v7677_v27 = vpop.eup %7676 }
 0x996   : > { %v7679_v45 = vpop.eup %7678 }
 0x997   : > { %3065 = vperm.xlu1 %7387, %v7665_v60   ;;  %3070 = vperm.xlu0 %7386, %v9052_v36   ;;  %v7681_v61 = vpop.eup %7680 }
 0x999   : > { %v9067_v59 = vpop.f32.mrf.mxu1 }
 0x99a   : > { %v7683_v36 = vpop.eup %7682 }
 0x99b   : > { %v3137_v8 = vpop.f32.mrf.mxu1  ;;  %3045 = vperm.xlu1 %7387, %v7667_v58   ;;  %3050 = vperm.xlu0 %7386, %v9054_v20   ;;  %v3032_v58 = vld [vmem:[#allocation7 + $0x38] sm:$0xff] }
 0x99c   : > { %v3219_v39 = vadd.f32 %v3137_v8, %v3073_v63  ;;  %v3360_v63 = vrot.slane %v3351_v5, %v9078_v29  ;;  %v3578_v8 = vld [vmem:[%s9084_s25] sm:$0xff] }
 0x99d   : > { %v6974_v2 = vpop.f32.mrf.mxu1 }
 0x99e   : > { %3227 = vst [vmem:[#allocation7 + $0x30] sm:$0xff] %v3219_v39 }
 0x99f   : > { %v3140_v6 = vpop.f32.mrf.mxu1  ;;  %3299 = vperm.xlu1 %7387, %v7679_v45   ;;  %3304 = vperm.xlu0 %7386, %v7677_v27   ;;  %v3579_v27 = vld [vmem:[%s9084_s25 + $0x8] sm:$0xff] }
 0x9a0   : > { %v3220_v15 = vadd.f32 %v3140_v6, %v3074_v44 }
 0x9a2   : > { %3228 = vst [vmem:[#allocation7] sm:$0xff] %v3220_v15 }
 0x9a3   : > { %3279 = vperm.xlu1 %7387, %v7683_v36   ;;  %3284 = vperm.xlu0 %7386, %v7681_v61   ;;  %v3580_v61 = vld [vmem:[%s9084_s25 + $0x10] sm:$0xff] }
 0x9b2   : > { %v6981_v4 = vpop.f32.mrf.mxu1 }
 0x9b4   : > { %v3204_v57 = vpop.f32.mrf.mxu1 }
 0x9b5   : > { %v3223_v22 = vadd.f32 %v3204_v57, %v3077_v53 }
 0x9b6   : > { %v6982_v20 = vpop.f32.mrf.mxu1 }
 0x9b7   : > { %3231 = vst [vmem:[#allocation7 + $0x8] sm:$0xff] %v3223_v22 }
 0x9b8   : > { %v3207_v9 = vpop.f32.mrf.mxu1 }
 0x9b9   : > { %v3224_v60 = vadd.f32 %v3207_v9, %v3078_v13  ;;  %v3582_v9 = vld [vmem:[%s9084_s25 + $0x20] sm:$0xff] }
 0x9bb   : > { %3232 = vst [vmem:[#allocation7 + $0x20] sm:$0xff] %v3224_v60 }
 0xa06   : > { %v3290_v16 = vpop.permute.xlu1 %3289 }
 0xa07   : > { %v3311_v11 = vmul.f32 %v3290_v16, %v3223_v22  ;;  %v3583_v16 = vld [vmem:[%s9084_s25 + $0x28] sm:$0xff] }
 0xa0a   : > { %v3295_v43 = vpop.permute.xlu0 %3294 }
 0xa0b   : > { %v3312_v23 = vmul.f32 %v3295_v43, %v3224_v60 }
 0xa0d   : > { %v3317_v35 = vpack.c.bf16 %v3312_v23, %v3311_v11 }
 0xa0e   : > { %v3275_v37 = vpop.permute.xlu0 %3274  ;;  %v3270_v49 = vpop.permute.xlu1 %3269 }
 0xa0f   : > { %v3308_v38 = vmul.f32 %v3275_v37, %v3220_v15  ;;  %v3307_v54 = vmul.f32 %v3270_v49, %v3219_v39  ;;  %3555 = vmatprep.mubr.bf16.mxu0 %v3317_v35  ;;  %v3584_v49 = vld [vmem:[%s9084_s25 + $0x30] sm:$0xff] }
 0xa11   : > { %v3315_v46 = vpack.c.bf16 %v3308_v38, %v3307_v54  ;;  %v3585_v54 = vld [vmem:[%s9084_s25 + $0x38] sm:$0xff]  ;;  %s5923_s25 = sadd.s32 %s6634_s9, %s6587_s7 }
 0xa12   : > { %v3071_v28 = vpop.permute.xlu0 %3070  ;;  %v3066_v62 = vpop.permute.xlu1 %3065  ;;  %s6588_s19 = sshll.u32 %s5923_s25, 7 }
 0xa13   : > { %v3080_v30 = vmul.f32 %v3071_v28, %v3032_v58  ;;  %v3079_v48 = vmul.f32 %v3066_v62, %v3031_v21  ;;  %3556 = vmatmul.mubr.bf16.vlgmr.msra.gmra.mxu0 %v3315_v46 }
 0xa15   : > { %v3226_v33 = vadd.f32 %v6982_v20, %v3080_v30  ;;  %v3225_v47 = vadd.f32 %v6981_v4, %v3079_v48  ;;  %v3759_v30 = vld [vmem:[#allocation19 + $0x1c0] sm:$0xff] }
 0xa16   : > { %v3051_v42 = vpop.permute.xlu0 %3050  ;;  %v3046_v17 = vpop.permute.xlu1 %3045  ;;  %v3763_v48 = vld [vmem:[#allocation19 + $0x1e0] sm:$0xff] }
 0xa17   : > { %3234 = vst [vmem:[#allocation7 + $0x38] sm:$0xff] %v3226_v33  ;;  %3233 = vst [vmem:[#allocation7 + $0x28] sm:$0xff] %v3225_v47  ;;  %v3076_v7 = vmul.f32 %v3051_v42, %v3028_v34  ;;  %v3075_v25 = vmul.f32 %v3046_v17, %v3027_v32  ;;  %v3760_v34 = vld [vmem:[#allocation19 + $0x1c8] sm:$0xff]  ;;  %v6384_v32 = vcombine.low %v3759_v30, %v3763_v48  ;;  %v3751_v42 = vld [vmem:[#allocation19 + $0x180] sm:$0xff] }
 0xa18   : > { %v3755_v17 = vld [vmem:[#allocation19 + $0x1a0] sm:$0xff] }
 0xa19   : > { %v3222_v10 = vadd.f32 %v6974_v2, %v3076_v7  ;;  %v3221_v14 = vadd.f32 %v9067_v59, %v3075_v25  ;;  %v3356_v59 = vrot.slane %v3351_v5, %v9072_v51  ;;  %v3735_v5 = vld [vmem:[#allocation19 + $0x100] sm:$0xff] }
 0xa1a   : > { %v3305_v40 = vpop.permute.xlu0 %3304  ;;  %v3300_v18 = vpop.permute.xlu1 %3299 }
 0xa1b   : > { %3230 = vst [vmem:[#allocation7 + $0x10] sm:$0xff] %v3222_v10  ;;  %3229 = vst [vmem:[#allocation7 + $0x18] sm:$0xff] %v3221_v14  ;;  %v3314_v55 = vmul.f32 %v3305_v40, %v3226_v33  ;;  %v3313_v0 = vmul.f32 %v3300_v18, %v3225_v47  ;;  %v6385_v33 = vcombine.high %v3759_v30, %v3763_v48  ;;  %v3764_v47 = vld [vmem:[#allocation19 + $0x1e8] sm:$0xff]  ;;  %v3743_v18 = vld [vmem:[#allocation19 + $0x140] sm:$0xff] }
 0xa1c   : > { %v6386_v7 = vcombine.low %v3760_v34, %v3764_v47  ;;  %v6387_v25 = vcombine.high %v3760_v34, %v3764_v47  ;;  %v3756_v40 = vld [vmem:[#allocation19 + $0x1a8] sm:$0xff]  ;;  %v3703_v48 = vld [vmem:[#allocation19] sm:$0xff] }
 0xa1d   : > { %v3318_v1 = vpack.c.bf16 %v3314_v55, %v3313_v0  ;;  %4513 = vmatprep.subr.bf16.mxu1 %v6385_v33  ;;  %v3747_v0 = vld [vmem:[#allocation19 + $0x160] sm:$0xff]  ;;  %v3708_v33 = vld [vmem:[#allocation19 + $0x28] sm:$0xff] }
 0xa1e   : > { %v3285_v19 = vpop.permute.xlu0 %3284  ;;  %v3280_v26 = vpop.permute.xlu1 %3279  ;;  %4566 = vmatprep.subr.bf16.mxu0 %v6387_v25  ;;  %4514 = vmatpush1.bf16.msra.mxu1 %v6384_v32  ;;  %v3707_v34 = vld [vmem:[#allocation19 + $0x20] sm:$0xff]  ;;  %v3704_v32 = vld [vmem:[#allocation19 + $0x8] sm:$0xff] }
 0xa1f   : > { %v3310_v50 = vmul.f32 %v3285_v19, %v3222_v10  ;;  %v3309_v52 = vmul.f32 %v3280_v26, %v3221_v14  ;;  %3565 = vmatprep.mubr.bf16.mxu0 %v3318_v1  ;;  %v6377_v10 = vcombine.high %v3751_v42, %v3755_v17  ;;  %v3752_v14 = vld [vmem:[#allocation19 + $0x188] sm:$0xff]  ;;  %v6376_v26 = vcombine.low %v3751_v42, %v3755_v17  ;;  %v3823_v25 = vld [vmem:[#allocation19 + $0x3c0] sm:$0xff] }
 0xa20   : > { %v6379_v55 = vcombine.high %v3752_v14, %v3756_v40  ;;  %v3744_v1 = vld [vmem:[#allocation19 + $0x148] sm:$0xff]  ;;  %4567 = vmatpush1.bf16.msra.mxu0 %v6386_v7  ;;  %v6329_v17 = vcombine.high %v3703_v48, %v3707_v34  ;;  %v6331_v7 = vcombine.high %v3704_v32, %v3708_v33 }
 0xa21   : > { %v3316_v3 = vpack.c.bf16 %v3310_v50, %v3309_v52  ;;  %v3748_v19 = vld [vmem:[#allocation19 + $0x168] sm:$0xff]  ;;  %4515 = vmatprep.subr.bf16.mxu1 %v6377_v10  ;;  %v6378_v50 = vcombine.low %v3752_v14, %v3756_v40  ;;  %v6369_v52 = vcombine.high %v3743_v18, %v3747_v0  ;;  %v3827_v10 = vld [vmem:[#allocation19 + $0x3e0] sm:$0xff] }
 0xa22   : > { %4568 = vmatprep.subr.bf16.mxu0 %v6379_v55  ;;  %4516 = vmatpush1.bf16.msra.mxu1 %v6376_v26  ;;  %v3824_v14 = vld [vmem:[#allocation19 + $0x3c8] sm:$0xff]  ;;  %v6330_v55 = vcombine.low %v3704_v32, %v3708_v33 }
 0xa23   : > { %3566 = vmatmul.mubr.bf16.gmra.mxu0 %v3316_v3  ;;  %v6371_v3 = vcombine.high %v3744_v1, %v3748_v19  ;;  %4517 = vmatprep.subr.bf16.mxu1 %v6369_v52  ;;  %v3828_v40 = vld [vmem:[#allocation19 + $0x3e8] sm:$0xff] }
 0xa24   : > { %4569 = vmatpush1.bf16.msra.mxu0 %v6378_v50  ;;  %v6450_v26 = vcombine.low %v3824_v14, %v3828_v40 }
 0xa25   : > { %4570 = vmatprep.subr.bf16.mxu0 %v6371_v3 }
 0xad3   : > { %v3557_v12 = vpop.f32.mrf.mxu0 }
 0xad4   : > { %v3558_v31 = vadd.f32 %v3557_v12, %v3356_v59  ;;  %v3740_v12 = vld [vmem:[#allocation19 + $0x128] sm:$0xff] }
 0xad5   : > { %v3559_v39 = vpop.f32.mrf.mxu0 }
 0xad6   : > { %v3560_v2 = vadd.f32 %v3559_v39, %v3360_v63  ;;  %v9089_v44 = vadd.f32 %v3578_v8, %v3558_v31  ;;  %v6368_v31 = vcombine.low %v3743_v18, %v3747_v0  ;;  %v6370_v8 = vcombine.low %v3744_v1, %v3748_v19 }
 0xad7   : > { %v3561_v45 = vpop.f32.mrf.mxu0  ;;  %v6328_v18 = vcombine.low %v3703_v48, %v3707_v34  ;;  %v6449_v0 = vcombine.high %v3823_v25, %v3827_v10  ;;  %v6451_v1 = vcombine.high %v3824_v14, %v3828_v40  ;;  %v6448_v19 = vcombine.low %v3823_v25, %v3827_v10  ;;  %v3799_v25 = vld [vmem:[#allocation19 + $0x300] sm:$0xff]  ;;  %v3800_v14 = vld [vmem:[#allocation19 + $0x308] sm:$0xff] }
 0xad8   : > { %v9091_v6 = vadd.f32 %v3579_v27, %v3560_v2  ;;  %v3562_v15 = vadd.f32 %v3561_v45, %v3356_v59  ;;  %v3727_v2 = vld [vmem:[#allocation19 + $0xc0] sm:$0xff]  ;;  %4518 = vmatpush1.bf16.msra.mxu1 %v6368_v31  ;;  %4571 = vmatpush1.bf16.msra.mxu0 %v6370_v8 }
 0xad9   : > { %v3563_v36 = vpop.f32.mrf.mxu0  ;;  %v3731_v45 = vld [vmem:[#allocation19 + $0xe0] sm:$0xff] }
 0xada   : > { %v3564_v4 = vadd.f32 %v3563_v36, %v3360_v63  ;;  %v3596_v53 = vadd.f32 %v9091_v6, %v9089_v44  ;;  %v9097_v56 = vadd.f32 %v3580_v61, %v3562_v15  ;;  %v3728_v15 = vld [vmem:[#allocation19 + $0xc8] sm:$0xff]  ;;  %v3803_v10 = vld [vmem:[#allocation19 + $0x320] sm:$0xff] }
 0xadb   : > { %v3732_v61 = vld [vmem:[#allocation19 + $0xe8] sm:$0xff]  ;;  %v6425_v40 = vcombine.high %v3799_v25, %v3803_v10 }
 0xadc   : > { %v9099_v57 = vadd.f32 %v3581_v24, %v3564_v4  ;;  %3597 = vadd.xlane.f32.xlu1 %v3596_v53  ;;  %v6353_v4 = vcombine.high %v3727_v2, %v3731_v45  ;;  %v6355_v53 = vcombine.high %v3728_v15, %v3732_v61 }
 0xade   : > { %v3599_v22 = vadd.f32 %v9099_v57, %v9097_v56 }
 0xae0   : > { %3600 = vadd.xlane.f32.xlu0 %v3599_v22  ;;  %v3719_v22 = vld [vmem:[#allocation19 + $0x80] sm:$0xff] }
 0xae3   : > { %v3567_v20 = vpop.f32.mrf.mxu0 }
 0xae4   : > { %v3568_v13 = vadd.f32 %v3567_v20, %v3356_v59  ;;  %v3723_v20 = vld [vmem:[#allocation19 + $0xa0] sm:$0xff] }
 0xae5   : > { %v3569_v60 = vpop.f32.mrf.mxu0 }
 0xae6   : > { %v3570_v43 = vadd.f32 %v3569_v60, %v3360_v63  ;;  %v9105_v23 = vadd.f32 %v3582_v9, %v3568_v13  ;;  %v3720_v13 = vld [vmem:[#allocation19 + $0x88] sm:$0xff]  ;;  %v6352_v60 = vcombine.low %v3727_v2, %v3731_v45 }
 0xae7   : > { %v3571_v11 = vpop.f32.mrf.mxu0  ;;  %v3724_v9 = vld [vmem:[#allocation19 + $0xa8] sm:$0xff] }
 0xae8   : > { %v9107_v35 = vadd.f32 %v3583_v16, %v3570_v43  ;;  %v3572_v37 = vadd.f32 %v3571_v11, %v3356_v59  ;;  %v3739_v59 = vld [vmem:[#allocation19 + $0x120] sm:$0xff]  ;;  %v6354_v16 = vcombine.low %v3728_v15, %v3732_v61  ;;  %v6345_v43 = vcombine.high %v3719_v22, %v3723_v20 }
 0xae9   : > { %v3573_v38 = vpop.f32.mrf.mxu0  ;;  %v6361_v39 = vcombine.high %v3735_v5, %v3739_v59  ;;  %v6360_v36 = vcombine.low %v3735_v5, %v3739_v59  ;;  %v6347_v11 = vcombine.high %v3720_v13, %v3724_v9 }
 0xaea   : > { %v3574_v58 = vadd.f32 %v3573_v38, %v3360_v63  ;;  %v3602_v21 = vadd.f32 %v9107_v35, %v9105_v23  ;;  %v9113_v46 = vadd.f32 %v3584_v49, %v3572_v37  ;;  %v3736_v63 = vld [vmem:[#allocation19 + $0x108] sm:$0xff]  ;;  %v3711_v37 = vld [vmem:[#allocation19 + $0x40] sm:$0xff] }
 0xaeb   : > { %v6363_v27 = vcombine.high %v3736_v63, %v3740_v12  ;;  %4519 = vmatprep.subr.bf16.mxu1 %v6361_v39  ;;  %v6362_v24 = vcombine.low %v3736_v63, %v3740_v12  ;;  %v3715_v49 = vld [vmem:[#allocation19 + $0x60] sm:$0xff]  ;;  %v3712_v38 = vld [vmem:[#allocation19 + $0x48] sm:$0xff] }
 0xaec   : > { %v9115_v28 = vadd.f32 %v3585_v54, %v3574_v58  ;;  %3603 = vadd.xlane.f32.xlu0 %v3602_v21  ;;  %4520 = vmatpush1.bf16.msra.mxu1 %v6360_v36  ;;  %v3716_v54 = vld [vmem:[#allocation19 + $0x68] sm:$0xff]  ;;  %v6344_v58 = vcombine.low %v3719_v22, %v3723_v20  ;;  %v6346_v21 = vcombine.low %v3720_v13, %v3724_v9 }
 0xaed   : > { %4572 = vmatprep.subr.bf16.mxu0 %v6363_v27  ;;  %4521 = vmatprep.subr.bf16.mxu1 %v6353_v4  ;;  %v6339_v30 = vcombine.high %v3712_v38, %v3716_v54  ;;  %v6336_v47 = vcombine.low %v3711_v37, %v3715_v49  ;;  %v6338_v42 = vcombine.low %v3712_v38, %v3716_v54  ;;  %v3819_v4 = vld [vmem:[#allocation19 + $0x3a0] sm:$0xff]  ;;  %v3820_v20 = vld [vmem:[#allocation19 + $0x3a8] sm:$0xff] }
 0xaee   : > { %v3605_v62 = vadd.f32 %v9115_v28, %v9113_v46  ;;  %4573 = vmatpush1.bf16.msra.mxu0 %v6362_v24  ;;  %v3815_v24 = vld [vmem:[#allocation19 + $0x380] sm:$0xff] }
 0xaef   : > { %4574 = vmatprep.subr.bf16.mxu0 %v6355_v53  ;;  %v3816_v53 = vld [vmem:[#allocation19 + $0x388] sm:$0xff]  ;;  %v6441_v22 = vcombine.high %v3815_v24, %v3819_v4  ;;  %v3807_v38 = vld [vmem:[#allocation19 + $0x340] sm:$0xff] }
 0xaf0   : > { %3606 = vadd.xlane.f32.xlu1 %v3605_v62  ;;  %4522 = vmatpush1.bf16.msra.mxu1 %v6352_v60  ;;  %v6337_v62 = vcombine.high %v3711_v37, %v3715_v49  ;;  %v6440_v60 = vcombine.low %v3815_v24, %v3819_v4  ;;  %v3811_v54 = vld [vmem:[#allocation19 + $0x360] sm:$0xff] }
 0xaf1   : > { %4523 = vmatprep.subr.bf16.mxu1 %v6345_v43  ;;  %v6432_v32 = vcombine.low %v3807_v38, %v3811_v54 }
 0xaf2   : > { %4575 = vmatpush1.bf16.msra.mxu0 %v6354_v16  ;;  %v6442_v16 = vcombine.low %v3816_v53, %v3820_v20 }
 0xaf3   : > { %4576 = vmatprep.subr.bf16.mxu0 %v6347_v11  ;;  %v6443_v11 = vcombine.high %v3816_v53, %v3820_v20  ;;  %v3779_v20 = vld [vmem:[#allocation19 + $0x260] sm:$0xff] }
 0xaf4   : > { %4524 = vmatpush1.bf16.msra.mxu1 %v6344_v58  ;;  %v3808_v58 = vld [vmem:[#allocation19 + $0x348] sm:$0xff] }
 0xaf5   : > { %4525 = vmatprep.subr.bf16.mxu1 %v6337_v62  ;;  %v6433_v62 = vcombine.high %v3807_v38, %v3811_v54  ;;  %v3767_v38 = vld [vmem:[#allocation19 + $0x200] sm:$0xff] }
 0xaf6   : > { %4577 = vmatpush1.bf16.msra.mxu0 %v6346_v21  ;;  %v3771_v54 = vld [vmem:[#allocation19 + $0x220] sm:$0xff] }
 0xaf7   : > { %4578 = vmatprep.subr.bf16.mxu0 %v6339_v30  ;;  %v3812_v30 = vld [vmem:[#allocation19 + $0x368] sm:$0xff] }
 0xaf8   : > { %4526 = vmatpush1.bf16.msra.mxu1 %v6336_v47  ;;  %v6434_v33 = vcombine.low %v3808_v58, %v3812_v30 }
 0xaf9   : > { %4527 = vmatprep.subr.bf16.mxu1 %v6329_v17 }
 0xafa   : > { %4579 = vmatpush1.bf16.msra.mxu0 %v6338_v42  ;;  %v6435_v42 = vcombine.high %v3808_v58, %v3812_v30  ;;  %v3768_v58 = vld [vmem:[#allocation19 + $0x208] sm:$0xff]  ;;  %v6392_v30 = vcombine.low %v3767_v38, %v3771_v54 }
 0xafb   : > { %4580 = vmatprep.subr.bf16.mxu0 %v6331_v7 }
 0xafc   : > { %4528 = vmatpush1.bf16.msra.mxu1 %v6328_v18  ;;  %v3804_v18 = vld [vmem:[#allocation19 + $0x328] sm:$0xff] }
 0xafd   : > { %4529 = vmatprep.subr.bf16.mxu1 %v6449_v0  ;;  %v6424_v0 = vcombine.low %v3799_v25, %v3803_v10  ;;  %v3766_v25 = vld [vmem:[#allocation19 + $0x1f8] sm:$0xff] }
 0xafe   : > { %4581 = vmatpush1.bf16.msra.mxu0 %v6330_v55 }
 0xaff   : > { %4582 = vmatprep.subr.bf16.mxu0 %v6451_v1  ;;  %v6426_v1 = vcombine.low %v3800_v14, %v3804_v18 }
 0xb00   : > { %4530 = vmatpush2.bf16.msra.mxu1 %v6448_v19  ;;  %v6427_v19 = vcombine.high %v3800_v14, %v3804_v18 }
 0xb01   : > { %4531 = vmatprep.subr.bf16.mxu1 %v6441_v22  ;;  %v3775_v22 = vld [vmem:[#allocation19 + $0x240] sm:$0xff] }
 0xb02   : > { %4583 = vmatpush2.bf16.msra.mxu0 %v6450_v26  ;;  %v3791_v26 = vld [vmem:[#allocation19 + $0x2c0] sm:$0xff] }
 0xb03   : > { %4584 = vmatprep.subr.bf16.mxu0 %v6443_v11  ;;  %v6400_v11 = vcombine.low %v3775_v22, %v3779_v20 }
 0xb04   : > { %4532 = vmatpush2.bf16.msra.mxu1 %v6440_v60  ;;  %v3776_v60 = vld [vmem:[#allocation19 + $0x248] sm:$0xff] }
 0xb05   : > { %4533 = vmatprep.subr.bf16.mxu1 %v6433_v62  ;;  %v3772_v62 = vld [vmem:[#allocation19 + $0x228] sm:$0xff] }
 0xb06   : > { %4585 = vmatpush2.bf16.msra.mxu0 %v6442_v16  ;;  %v6401_v16 = vcombine.high %v3775_v22, %v3779_v20 }
 0xb07   : > { %4586 = vmatprep.subr.bf16.mxu0 %v6435_v42  ;;  %v9161_v42 = vld [vmem:[#allocation19 + $0x1f0] sm:$0xff] }
 0xb08   : > { %4534 = vmatpush2.bf16.msra.mxu1 %v6432_v32  ;;  %v6394_v32 = vcombine.low %v3768_v58, %v3772_v62 }
 0xb09   : > { %4535 = vmatprep.subr.bf16.mxu1 %v6425_v40 }
 0xb0a   : > { %4587 = vmatpush2.bf16.msra.mxu0 %v6434_v33  ;;  %v6395_v33 = vcombine.high %v3768_v58, %v3772_v62  ;;  %v3758_v58 = vld [vmem:[#allocation19 + $0x1b8] sm:$0xff] }
 0xb0b   : > { %4588 = vmatprep.subr.bf16.mxu0 %v6427_v19 }
 0xb0c   : > { %4536 = vmatpush2.bf16.msra.mxu1 %v6424_v0 }
 0xb0e   : > { %4589 = vmatpush2.bf16.msra.mxu0 %v6426_v1 }
 0xb65   : > { %v3598_v50 = vpop.xlane.xlu1 %3597 }
 0xb66   : > { %v3609_v52 = vmul.f32 0.00390625, %v3598_v50  ;;  %v3795_v50 = vld [vmem:[#allocation19 + $0x2e0] sm:$0xff] }
 0xb68   : > { %v9120_v3 = vsub.f32 %v9089_v44, %v3609_v52  ;;  %v9123_v5 = vsub.f32 %v9091_v6, %v3609_v52  ;;  %v3792_v52 = vld [vmem:[#allocation19 + $0x2c8] sm:$0xff] }
 0xb69   : > { %v3601_v59 = vpop.xlane.xlu0 %3600 }
 0xb6a   : > { %v3610_v63 = vmul.f32 0.00390625, %v3601_v59  ;;  %v3621_v12 = vmul.f32 %v9120_v3, %v9120_v3  ;;  %v3622_v31 = vmul.f32 %v9123_v5, %v9123_v5  ;;  %v6417_v59 = vcombine.high %v3791_v26, %v3795_v50 }
 0xb6c   : > { %v9130_v8 = vsub.f32 %v9097_v56, %v3610_v63  ;;  %v9133_v39 = vsub.f32 %v9099_v57, %v3610_v63  ;;  %v3629_v27 = vadd.f32 %v3622_v31, %v3621_v12  ;;  %v3796_v63 = vld [vmem:[#allocation19 + $0x2e8] sm:$0xff]  ;;  %v3783_v12 = vld [vmem:[#allocation19 + $0x280] sm:$0xff]  ;;  %4537 = vmatprep.subr.bf16.mxu1 %v6417_v59 }
 0xb6d   : > { %v3787_v31 = vld [vmem:[#allocation19 + $0x2a0] sm:$0xff] }
 0xb6e   : > { %v3623_v2 = vmul.f32 %v9130_v8, %v9130_v8  ;;  %v3624_v45 = vmul.f32 %v9133_v39, %v9133_v39  ;;  %3630 = vadd.xlane.f32.xlu0 %v3629_v27  ;;  %v6419_v27 = vcombine.high %v3792_v52, %v3796_v63  ;;  %v6408_v4 = vcombine.low %v3783_v12, %v3787_v31 }
 0xb70   : > { %v3632_v15 = vadd.f32 %v3624_v45, %v3623_v2  ;;  %v3784_v2 = vld [vmem:[#allocation19 + $0x288] sm:$0xff]  ;;  %4590 = vmatprep.subr.bf16.mxu0 %v6419_v27 }
 0xb71   : > { %v3788_v45 = vld [vmem:[#allocation19 + $0x2a8] sm:$0xff] }
 0xb72   : > { %3633 = vadd.xlane.f32.xlu1 %v3632_v15  ;;  %v6416_v15 = vcombine.low %v3791_v26, %v3795_v50  ;;  %v6411_v24 = vcombine.high %v3784_v2, %v3788_v45  ;;  %v6410_v53 = vcombine.low %v3784_v2, %v3788_v45  ;;  %v3594_v50 = vld [vmem:[%s9546_s1] sm:$0x3] }
 0xb73   : > { %v9178_v59 = vrot.slane %v3594_v50, %v9072_v51 }
 0xb74   : > { %4538 = vmatpush2.bf16.msra.mxu1 %v6416_v15 }
 0xb75   : > { %v3604_v61 = vpop.xlane.xlu0 %3603  ;;  %v3656_v45 = vmul.f32 %v9178_v59, %v9120_v3  ;;  %v3658_v15 = vmul.f32 %v9178_v59, %v9130_v8 }
 0xb76   : > { %v3611_v36 = vmul.f32 0.00390625, %v3604_v61  ;;  %v6418_v61 = vcombine.low %v3792_v52, %v3796_v63  ;;  %v9175_v52 = vrot.slane %v3594_v50, %v9078_v29 }
 0xb78   : > { %v9140_v13 = vsub.f32 %v9105_v23, %v3611_v36  ;;  %v9143_v9 = vsub.f32 %v9107_v35, %v3611_v36  ;;  %v6409_v36 = vcombine.high %v3783_v12, %v3787_v31  ;;  %4591 = vmatpush2.bf16.msra.mxu0 %v6418_v61  ;;  %v3595_v12 = vld [vmem:[#allocation17] sm:$0x3]  ;;  %v3657_v31 = vmul.f32 %v9175_v52, %v9123_v5 }
 0xb79   : > { %v3607_v43 = vpop.xlane.xlu1 %3606  ;;  %4592 = vmatprep.subr.bf16.mxu0 %v6411_v24  ;;  %v9192_v5 = vrot.slane %v3595_v12, %v9072_v51 }
 0xb7a   : > { %v3612_v37 = vmul.f32 0.00390625, %v3607_v43  ;;  %v3625_v49 = vmul.f32 %v9140_v13, %v9140_v13  ;;  %v3626_v21 = vmul.f32 %v9143_v9, %v9143_v9  ;;  %4539 = vmatprep.subr.bf16.mxu1 %v6409_v36  ;;  %v3780_v43 = vld [vmem:[#allocation19 + $0x268] sm:$0xff] }
 0xb7b   : > { %4540 = vmatpush2.bf16.msra.mxu1 %v6408_v4  ;;  %v9187_v4 = vrot.slane %v3595_v12, %v9078_v29 }
 0xb7c   : > { %v9150_v48 = vsub.f32 %v9113_v46, %v3612_v37  ;;  %v9153_v34 = vsub.f32 %v9115_v28, %v3612_v37  ;;  %v3635_v47 = vadd.f32 %v3626_v21, %v3625_v49  ;;  %4593 = vmatpush2.bf16.msra.mxu0 %v6410_v53  ;;  %v6402_v37 = vcombine.low %v3776_v60, %v3780_v43 }
 0xb7d   : > { %v6403_v49 = vcombine.high %v3776_v60, %v3780_v43  ;;  %4541 = vmatprep.subr.bf16.mxu1 %v6401_v16  ;;  %v6393_v21 = vcombine.high %v3767_v38, %v3771_v54  ;;  %v3659_v53 = vmul.f32 %v9175_v52, %v9133_v39  ;;  %v3757_v38 = vld [vmem:[#allocation19 + $0x1b0] sm:$0xff]  ;;  %v3754_v54 = vld [vmem:[#allocation19 + $0x198] sm:$0xff] }
 0xb7e   : > { %v3627_v17 = vmul.f32 %v9150_v48, %v9150_v48  ;;  %v3628_v7 = vmul.f32 %v9153_v34, %v9153_v34  ;;  %3636 = vadd.xlane.f32.xlu0 %v3635_v47  ;;  %v9159_v47 = vld [vmem:[#allocation19 + $0x1d0] sm:$0xff] }
 0xb7f   : > { %4594 = vmatprep.subr.bf16.mxu0 %v6403_v49  ;;  %4542 = vmatpush2.bf16.msra.mxu1 %v6400_v11  ;;  %v6388_v10 = vcombine.low %v9159_v47, %v9161_v42  ;;  %v3753_v11 = vld [vmem:[#allocation19 + $0x190] sm:$0xff] }
 0xb80   : > { %v3638_v55 = vadd.f32 %v3628_v7, %v3627_v17  ;;  %4595 = vmatpush2.bf16.msra.mxu0 %v6402_v37  ;;  %4543 = vmatprep.subr.bf16.mxu1 %v6393_v21  ;;  %v9163_v17 = vld [vmem:[#allocation19 + $0x1d8] sm:$0xff]  ;;  %v6389_v7 = vcombine.high %v9159_v47, %v9161_v42  ;;  %v3749_v47 = vld [vmem:[#allocation19 + $0x170] sm:$0xff] }
 0xb81   : > { %4596 = vmatprep.subr.bf16.mxu0 %v6395_v33  ;;  %v6390_v14 = vcombine.low %v9163_v17, %v3766_v25  ;;  %v6391_v40 = vcombine.high %v9163_v17, %v3766_v25  ;;  %v3745_v33 = vld [vmem:[#allocation19 + $0x150] sm:$0xff]  ;;  %v3746_v42 = vld [vmem:[#allocation19 + $0x158] sm:$0xff]  ;;  %v6382_v25 = vcombine.low %v3754_v54, %v3758_v58 }
 0xb82   : > { %3639 = vadd.xlane.f32.xlu1 %v3638_v55  ;;  %v3750_v17 = vld [vmem:[#allocation19 + $0x178] sm:$0xff] }
 0xb83   : > { %4544 = vmatpush2.bf16.msra.mxu1 %v6392_v30  ;;  %v6381_v30 = vcombine.high %v3753_v11, %v3757_v38 }
 0xb84   : > { %4597 = vmatpush2.bf16.msra.mxu0 %v6394_v32  ;;  %4619 = vmatprep.subr.bf16.mxu1 %v6389_v7  ;;  %v6383_v32 = vcombine.high %v3754_v54, %v3758_v58  ;;  %v6380_v7 = vcombine.low %v3753_v11, %v3757_v38 }
 0xb85   : > { %4672 = vmatprep.subr.bf16.mxu0 %v6391_v40  ;;  %v6373_v40 = vcombine.high %v3745_v33, %v3749_v47 }
 0xbf7   : > { %v3631_v18 = vpop.xlane.xlu0 %3630 }
 0xbf8   : > { %v3641_v55 = vmul.f32 0.00390625, %v3631_v18  ;;  %v6375_v18 = vcombine.high %v3746_v42, %v3750_v17 }
 0xbfa   : > { %v3664_v0 = vadd.f32 1e-05, %v3641_v55  ;;  %v3737_v55 = vld [vmem:[#allocation19 + $0x110] sm:$0xff] }
 0xbfb   : > { %v3634_v1 = vpop.xlane.xlu1 %3633 }
 0xbfc   : > { %v3642_v19 = vmul.f32 0.00390625, %v3634_v1  ;;  %7684 = vrsqrt.f32 %v3664_v0  ;;  %v3741_v0 = vld [vmem:[#allocation19 + $0x130] sm:$0xff]  ;;  %v3738_v1 = vld [vmem:[#allocation19 + $0x118] sm:$0xff] }
 0xbfd   : > { %v6365_v12 = vcombine.high %v3737_v55, %v3741_v0 }
 0xbfe   : > { %v3665_v26 = vadd.f32 1e-05, %v3642_v19  ;;  %v3742_v19 = vld [vmem:[#allocation19 + $0x138] sm:$0xff] }
 0xc00   : > { %7686 = vrsqrt.f32 %v3665_v26  ;;  %v3660_v26 = vmul.f32 %v9178_v59, %v9140_v13  ;;  %v3733_v13 = vld [vmem:[#allocation19 + $0xf0] sm:$0xff] }
 0xc07   : > { %v3637_v63 = vpop.xlane.xlu0 %3636 }
 0xc08   : > { %v3643_v27 = vmul.f32 0.00390625, %v3637_v63  ;;  %v3661_v63 = vmul.f32 %v9175_v52, %v9143_v9 }
 0xc09   : > { %v7685_v2 = vpop.eup %7684 }
 0xc0a   : > { %v3666_v61 = vadd.f32 1e-05, %v3643_v27  ;;  %v3673_v24 = vmul.f32 %v7685_v2, %v3657_v31  ;;  %v3672_v20 = vmul.f32 %v7685_v2, %v3656_v45  ;;  %v6367_v31 = vcombine.high %v3738_v1, %v3742_v19  ;;  %v3729_v27 = vld [vmem:[#allocation19 + $0xd0] sm:$0xff] }
 0xc0b   : > { %v3640_v36 = vpop.xlane.xlu1 %3639  ;;  %v3662_v2 = vmul.f32 %v9178_v59, %v9150_v48  ;;  %v3663_v45 = vmul.f32 %v9175_v52, %v9153_v34  ;;  %v3721_v48 = vld [vmem:[#allocation19 + $0x90] sm:$0xff] }
 0xc0c   : > { %v3644_v22 = vmul.f32 0.00390625, %v3640_v36  ;;  %7688 = vrsqrt.f32 %v3666_v61  ;;  %v3692_v8 = vadd.f32 %v9187_v4, %v3673_v24  ;;  %v3691_v49 = vadd.f32 %v9192_v5, %v3672_v20  ;;  %v3734_v61 = vld [vmem:[#allocation19 + $0xf8] sm:$0xff]  ;;  %v3725_v52 = vld [vmem:[#allocation19 + $0xb0] sm:$0xff] }
 0xc0d   : > { %v7687_v60 = vpop.eup %7686  ;;  %v6349_v58 = vcombine.high %v3721_v48, %v3725_v52 }
 0xc0e   : > { %v3667_v3 = vadd.f32 1e-05, %v3644_v22  ;;  %v3675_v16 = vmul.f32 %v7687_v60, %v3659_v53  ;;  %v3674_v43 = vmul.f32 %v7687_v60, %v3658_v15  ;;  %v3730_v15 = vld [vmem:[#allocation19 + $0xd8] sm:$0xff]  ;;  %v6364_v53 = vcombine.low %v3737_v55, %v3741_v0 }
 0xc0f   : > { %v6366_v22 = vcombine.low %v3738_v1, %v3742_v19  ;;  %v3710_v55 = vld [vmem:[#allocation19 + $0x38] sm:$0xff] }
 0xc10   : > { %7690 = vrsqrt.f32 %v3667_v3  ;;  %v3694_v37 = vadd.f32 %v9187_v4, %v3675_v16  ;;  %v3693_v39 = vadd.f32 %v9192_v5, %v3674_v43  ;;  %v6357_v3 = vcombine.high %v3729_v27, %v3733_v13  ;;  %v3722_v43 = vld [vmem:[#allocation19 + $0x98] sm:$0xff] }
 0xc11   : > { %v6359_v16 = vcombine.high %v3730_v15, %v3734_v61 }
 0xc12   : > { %v9198_v21 = vpack.c.bf16 %v3694_v37, %v3692_v8  ;;  %v9200_v62 = vpack.c.bf16 %v3693_v39, %v3691_v49  ;;  %v3726_v8 = vld [vmem:[#allocation19 + $0xb8] sm:$0xff]  ;;  %v6356_v49 = vcombine.low %v3729_v27, %v3733_v13  ;;  %v6358_v39 = vcombine.low %v3730_v15, %v3734_v61 }
 0xc13   : > { %v3818_v13 = vld [vmem:[#allocation19 + $0x398] sm:$0xff] }
 0xc14   : > { %4545 = vmatprep.mubr.bf16.mxu1 %v9198_v21  ;;  %4598 = vmatprep.mubr.bf16.mxu0 %v9198_v21  ;;  %v3822_v15 = vld [vmem:[#allocation19 + $0x3b8] sm:$0xff] }
 0xc15   : > { %4546 = vmatmul.mubr.bf16.vlgmr.msra.gmra.mxu1 %v9200_v62  ;;  %4599 = vmatmul.mubr.bf16.vlgmr.msra.gmra.mxu0 %v9200_v62 }
 0xc16   : > { %4620 = vmatpush1.bf16.msra.mxu1 %v6388_v10  ;;  %4673 = vmatpush1.bf16.msra.mxu0 %v6390_v14  ;;  %v6372_v10 = vcombine.low %v3745_v33, %v3749_v47  ;;  %v6374_v14 = vcombine.low %v3746_v42, %v3750_v17  ;;  %v3714_v33 = vld [vmem:[#allocation19 + $0x58] sm:$0xff]  ;;  %v6348_v47 = vcombine.low %v3721_v48, %v3725_v52  ;;  %v3805_v52 = vld [vmem:[#allocation19 + $0x330] sm:$0xff] }
 0xc17   : > { %4621 = vmatprep.subr.bf16.mxu1 %v6381_v30  ;;  %4674 = vmatprep.subr.bf16.mxu0 %v6383_v32  ;;  %v6351_v30 = vcombine.high %v3722_v43, %v3726_v8  ;;  %v3717_v32 = vld [vmem:[#allocation19 + $0x70] sm:$0xff]  ;;  %v6350_v42 = vcombine.low %v3722_v43, %v3726_v8  ;;  %v3802_v43 = vld [vmem:[#allocation19 + $0x318] sm:$0xff] }
 0xc18   : > { %v3806_v8 = vld [vmem:[#allocation19 + $0x338] sm:$0xff] }
 0xc19   : > { %v7689_v50 = vpop.eup %7688 }
 0xc1a   : > { %4622 = vmatpush1.bf16.msra.mxu1 %v6380_v7  ;;  %4675 = vmatpush1.bf16.msra.mxu0 %v6382_v25  ;;  %v3677_v36 = vmul.f32 %v7689_v50, %v3661_v63  ;;  %v3676_v9 = vmul.f32 %v7689_v50, %v3660_v26  ;;  %v3705_v25 = vld [vmem:[#allocation19 + $0x10] sm:$0xff] }
 0xc1b   : > { %4623 = vmatprep.subr.bf16.mxu1 %v6373_v40  ;;  %4676 = vmatprep.subr.bf16.mxu0 %v6375_v18  ;;  %v3709_v40 = vld [vmem:[#allocation19 + $0x30] sm:$0xff]  ;;  %v3706_v18 = vld [vmem:[#allocation19 + $0x18] sm:$0xff] }
 0xc1c   : > { %v3696_v59 = vadd.f32 %v9187_v4, %v3677_v36  ;;  %v3695_v11 = vadd.f32 %v9192_v5, %v3676_v9  ;;  %v6333_v19 = vcombine.high %v3705_v25, %v3709_v40  ;;  %v6335_v26 = vcombine.high %v3706_v18, %v3710_v55  ;;  %v3825_v50 = vld [vmem:[#allocation19 + $0x3d0] sm:$0xff] }
 0xc1d   : > { %v7691_v24 = vpop.eup %7690  ;;  %v3829_v63 = vld [vmem:[#allocation19 + $0x3f0] sm:$0xff] }
 0xc1e   : > { %4624 = vmatpush1.bf16.msra.mxu1 %v6372_v10  ;;  %4677 = vmatpush1.bf16.msra.mxu0 %v6374_v14  ;;  %v3679_v20 = vmul.f32 %v7691_v24, %v3663_v45  ;;  %v3678_v60 = vmul.f32 %v7691_v24, %v3662_v2  ;;  %v3826_v10 = vld [vmem:[#allocation19 + $0x3d8] sm:$0xff]  ;;  %v3817_v2 = vld [vmem:[#allocation19 + $0x390] sm:$0xff]  ;;  %v6452_v61 = vcombine.low %v3825_v50, %v3829_v63 }
 0xc1f   : > { %4625 = vmatprep.subr.bf16.mxu1 %v6365_v12  ;;  %4678 = vmatprep.subr.bf16.mxu0 %v6367_v31  ;;  %v3830_v14 = vld [vmem:[#allocation19 + $0x3f8] sm:$0xff]  ;;  %v6332_v12 = vcombine.low %v3705_v25, %v3709_v40  ;;  %v6334_v31 = vcombine.low %v3706_v18, %v3710_v55  ;;  %v3821_v45 = vld [vmem:[#allocation19 + $0x3b0] sm:$0xff]  ;;  %v6447_v24 = vcombine.high %v3818_v13, %v3822_v15 }
 0xc20   : > { %v3698_v34 = vadd.f32 %v9187_v4, %v3679_v20  ;;  %v3697_v37 = vadd.f32 %v9192_v5, %v3678_v60  ;;  %v3713_v4 = vld [vmem:[#allocation19 + $0x50] sm:$0xff]  ;;  %v3718_v5 = vld [vmem:[#allocation19 + $0x78] sm:$0xff]  ;;  %v6455_v27 = vcombine.high %v3826_v10, %v3830_v14  ;;  %v6454_v36 = vcombine.low %v3826_v10, %v3830_v14 }
 0xc21   : > { %v6341_v17 = vcombine.high %v3713_v4, %v3717_v32  ;;  %v6343_v7 = vcombine.high %v3714_v33, %v3718_v5  ;;  %v6340_v0 = vcombine.low %v3713_v4, %v3717_v32  ;;  %v6342_v1 = vcombine.low %v3714_v33, %v3718_v5  ;;  %v3810_v20 = vld [vmem:[#allocation19 + $0x358] sm:$0xff] }
 0xc22   : > { %4626 = vmatpush1.bf16.msra.mxu1 %v6364_v53  ;;  %4679 = vmatpush1.bf16.msra.mxu0 %v6366_v22  ;;  %v9218_v38 = vpack.c.bf16 %v3698_v34, %v3696_v59  ;;  %v9220_v54 = vpack.c.bf16 %v3697_v37, %v3695_v11  ;;  %v6445_v9 = vcombine.high %v3817_v2, %v3821_v45  ;;  %v3809_v53 = vld [vmem:[#allocation19 + $0x350] sm:$0xff]  ;;  %v3814_v60 = vld [vmem:[#allocation19 + $0x378] sm:$0xff] }
 0xc23   : > { %4627 = vmatprep.subr.bf16.mxu1 %v6357_v3  ;;  %4680 = vmatprep.subr.bf16.mxu0 %v6359_v16  ;;  %v3813_v22 = vld [vmem:[#allocation19 + $0x370] sm:$0xff]  ;;  %v6444_v3 = vcombine.low %v3817_v2, %v3821_v45  ;;  %v6446_v16 = vcombine.low %v3818_v13, %v3822_v15  ;;  %v6439_v59 = vcombine.high %v3810_v20, %v3814_v60  ;;  %v3794_v4 = vld [vmem:[#allocation19 + $0x2d8] sm:$0xff] }
 0xc24   : > { %4555 = vmatprep.mubr.bf16.mxu1 %v9218_v38  ;;  %4608 = vmatprep.mubr.bf16.mxu0 %v9218_v38  ;;  %v6437_v48 = vcombine.high %v3809_v53, %v3813_v22  ;;  %v3801_v34 = vld [vmem:[#allocation19 + $0x310] sm:$0xff]  ;;  %v6436_v11 = vcombine.low %v3809_v53, %v3813_v22  ;;  %v6438_v37 = vcombine.low %v3810_v20, %v3814_v60  ;;  %v3798_v32 = vld [vmem:[#allocation19 + $0x2f8] sm:$0xff] }
 0xc25   : > { %4556 = vmatmul.mubr.bf16.gmra.mxu1 %v9220_v54  ;;  %4609 = vmatmul.mubr.bf16.gmra.mxu0 %v9220_v54  ;;  %v6428_v33 = vcombine.low %v3801_v34, %v3805_v52  ;;  %v6430_v5 = vcombine.low %v3802_v43, %v3806_v8  ;;  %v3786_v25 = vld [vmem:[#allocation19 + $0x298] sm:$0xff]  ;;  %v6422_v55 = vcombine.low %v3794_v4, %v3798_v32 }
 0xc26   : > { %4628 = vmatpush1.bf16.msra.mxu1 %v6356_v49  ;;  %4681 = vmatpush1.bf16.msra.mxu0 %v6358_v39  ;;  %v6429_v49 = vcombine.high %v3801_v34, %v3805_v52  ;;  %v6431_v39 = vcombine.high %v3802_v43, %v3806_v8  ;;  %v3790_v40 = vld [vmem:[#allocation19 + $0x2b8] sm:$0xff] }
 0xc27   : > { %4629 = vmatprep.subr.bf16.mxu1 %v6349_v58  ;;  %4682 = vmatprep.subr.bf16.mxu0 %v6351_v30  ;;  %v3793_v58 = vld [vmem:[#allocation19 + $0x2d0] sm:$0xff]  ;;  %v6414_v14 = vcombine.low %v3786_v25, %v3790_v40  ;;  %v3770_v2 = vld [vmem:[#allocation19 + $0x218] sm:$0xff] }
 0xc28   : > { %4651 = vmatprep.mubr.bf16.mxu1 %v9198_v21  ;;  %4704 = vmatprep.mubr.bf16.mxu0 %v9198_v21  ;;  %v6453_v21 = vcombine.high %v3825_v50, %v3829_v63  ;;  %v3797_v30 = vld [vmem:[#allocation19 + $0x2f0] sm:$0xff]  ;;  %v3778_v50 = vld [vmem:[#allocation19 + $0x258] sm:$0xff] }
 0xc29   : > { %v6420_v18 = vcombine.low %v3793_v58, %v3797_v30  ;;  %v3782_v63 = vld [vmem:[#allocation19 + $0x278] sm:$0xff] }
 0xc2a   : > { %4630 = vmatpush1.bf16.msra.mxu1 %v6348_v47  ;;  %4683 = vmatpush1.bf16.msra.mxu0 %v6350_v42  ;;  %v6421_v47 = vcombine.high %v3793_v58, %v3797_v30  ;;  %v6423_v42 = vcombine.high %v3794_v4, %v3798_v32  ;;  %v3774_v45 = vld [vmem:[#allocation19 + $0x238] sm:$0xff]  ;;  %v6406_v15 = vcombine.low %v3778_v50, %v3782_v63  ;;  %v7476_v4 = vld [vmem:[#allocation20 + $0x24] ss:$8 sps:$4 sm:$0xff]  }
 0xc2b   : > { %4631 = vmatprep.subr.bf16.mxu1 %v6341_v17  ;;  %4684 = vmatprep.subr.bf16.mxu0 %v6343_v7  ;;  %v3785_v17 = vld [vmem:[#allocation19 + $0x290] sm:$0xff]  ;;  %v7479_v32 = vld [vmem:[#allocation20 + $0x124] ss:$8 sps:$4 sm:$0xff]  }
 0xc2c   : > { %v3789_v7 = vld [vmem:[#allocation19 + $0x2b0] sm:$0xff] }
 0xc2d   : > { %v6412_v10 = vcombine.low %v3785_v17, %v3789_v7  ;;  %v7446_v53 = vld [vmem:[#allocation20 + $0x74] ss:$8 sps:$4 sm:$0xff]   ;;  %v7444_v20 = vld [vmem:[#allocation20 + $0x70] ss:$8 sps:$4 sm:$0xff]  }
 0xc2e   : > { %4632 = vmatpush1.bf16.msra.mxu1 %v6340_v0  ;;  %4685 = vmatpush1.bf16.msra.mxu0 %v6342_v1  ;;  %v6413_v0 = vcombine.high %v3785_v17, %v3789_v7  ;;  %v6415_v1 = vcombine.high %v3786_v25, %v3790_v40  ;;  %v7449_v22 = vld [vmem:[#allocation20 + $0x174] ss:$8 sps:$4 sm:$0xff]   ;;  %v7447_v60 = vld [vmem:[#allocation20 + $0x170] ss:$8 sps:$4 sm:$0xff]   ;;  %v7488_v7 = vld [vmem:[#allocation20 + $0x4] ss:$8 sps:$4 sm:$0xff]  }
 0xc2f   : > { %4633 = vmatprep.subr.bf16.mxu1 %v6333_v19  ;;  %4686 = vmatprep.subr.bf16.mxu0 %v6335_v26  ;;  %v3777_v19 = vld [vmem:[#allocation19 + $0x250] sm:$0xff]  ;;  %v7491_v25 = vld [vmem:[#allocation20 + $0x104] ss:$8 sps:$4 sm:$0xff]   ;;  %v7486_v40 = vld [vmem:[#allocation20] ss:$8 sps:$4 sm:$0xff]  }
 0xc30   : > { %v3781_v26 = vld [vmem:[#allocation19 + $0x270] sm:$0xff] }
 0xc31   : > { %v6404_v13 = vcombine.low %v3777_v19, %v3781_v26  ;;  %v7458_v34 = vld [vmem:[#allocation20 + $0x54] ss:$8 sps:$4 sm:$0xff]   ;;  %v7456_v43 = vld [vmem:[#allocation20 + $0x50] ss:$8 sps:$4 sm:$0xff]  }
 0xc32   : > { %4634 = vmatpush1.bf16.msra.mxu1 %v6332_v12  ;;  %4687 = vmatpush1.bf16.msra.mxu0 %v6334_v31  ;;  %v6405_v12 = vcombine.high %v3777_v19, %v3781_v26  ;;  %v6407_v31 = vcombine.high %v3778_v50, %v3782_v63  ;;  %v7461_v52 = vld [vmem:[#allocation20 + $0x154] ss:$8 sps:$4 sm:$0xff]   ;;  %v7459_v8 = vld [vmem:[#allocation20 + $0x150] ss:$8 sps:$4 sm:$0xff]   ;;  %v7500_v26 = vld [vmem:[#allocation20 + $0xe4] ss:$8 sps:$4 sm:$0xff]  }
 0xc33   : > { %4635 = vmatprep.subr.bf16.mxu1 %v6453_v21  ;;  %4688 = vmatprep.subr.bf16.mxu0 %v6455_v27  ;;  %v3769_v21 = vld [vmem:[#allocation19 + $0x210] sm:$0xff]  ;;  %v7503_v50 = vld [vmem:[#allocation20 + $0x1e4] ss:$8 sps:$4 sm:$0xff]   ;;  %v7498_v63 = vld [vmem:[#allocation20 + $0xe0] ss:$8 sps:$4 sm:$0xff]  }
 0xc34   : > { %v3773_v27 = vld [vmem:[#allocation19 + $0x230] sm:$0xff] }
 0xc35   : > { %v7468_v58 = vld [vmem:[#allocation20 + $0x30] ss:$8 sps:$4 sm:$0xff]  }
 0xc36   : > { %4636 = vmatpush2.bf16.msra.mxu1 %v6452_v61  ;;  %4689 = vmatpush2.bf16.msra.mxu0 %v6454_v36  ;;  %v6397_v61 = vcombine.high %v3769_v21, %v3773_v27  ;;  %v6399_v36 = vcombine.high %v3770_v2, %v3774_v45  ;;  %v7471_v30 = vld [vmem:[#allocation20 + $0x130] ss:$8 sps:$4 sm:$0xff]  }
 0xc37   : > { %4637 = vmatprep.subr.bf16.mxu1 %v6445_v9  ;;  %4690 = vmatprep.subr.bf16.mxu0 %v6447_v24  ;;  %v6396_v9 = vcombine.low %v3769_v21, %v3773_v27  ;;  %v6398_v24 = vcombine.low %v3770_v2, %v3774_v45  ;;  %v7483_v17 = vld [vmem:[#allocation20 + $0x110] ss:$8 sps:$4 sm:$0xff]   ;;  %v7512_v27 = vld [vmem:[#allocation20 + $0xc4] ss:$8 sps:$4 sm:$0xff]   ;;  %v7510_v45 = vld [vmem:[#allocation20 + $0xc0] ss:$8 sps:$4 sm:$0xff]  }
 0xc38   : > { %v7495_v19 = vld [vmem:[#allocation20 + $0x1f0] ss:$8 sps:$4 sm:$0xff]   ;;  %v7515_v2 = vld [vmem:[#allocation20 + $0x1c4] ss:$8 sps:$4 sm:$0xff]  }
 0xc39   : > { %v7507_v21 = vld [vmem:[#allocation20 + $0x1d0] ss:$8 sps:$4 sm:$0xff]  }
 0xc3a   : > { %4638 = vmatpush2.bf16.msra.mxu1 %v6444_v3  ;;  %4691 = vmatpush2.bf16.msra.mxu0 %v6446_v16  ;;  %v7452_v3 = vld [vmem:[#allocation20 + $0x64] ss:$8 sps:$4 sm:$0xff]  }
 0xc3b   : > { %4639 = vmatprep.subr.bf16.mxu1 %v6437_v48  ;;  %4692 = vmatprep.subr.bf16.mxu0 %v6439_v59  ;;  %v7455_v16 = vld [vmem:[#allocation20 + $0x164] ss:$8 sps:$4 sm:$0xff]   ;;  %v7450_v48 = vld [vmem:[#allocation20 + $0x60] ss:$8 sps:$4 sm:$0xff]  }
 0xc3c   : > { %v7453_v59 = vld [vmem:[#allocation20 + $0x160] ss:$8 sps:$4 sm:$0xff]  }
 0xc3e   : > { %4640 = vmatpush2.bf16.msra.mxu1 %v6436_v11  ;;  %4693 = vmatpush2.bf16.msra.mxu0 %v6438_v37  ;;  %v7464_v11 = vld [vmem:[#allocation20 + $0x44] ss:$8 sps:$4 sm:$0xff]   ;;  %v7465_v37 = vld [vmem:[#allocation20 + $0x140] ss:$8 sps:$4 sm:$0xff]  }
 0xc3f   : > { %4641 = vmatprep.subr.bf16.mxu1 %v6429_v49  ;;  %4694 = vmatprep.subr.bf16.mxu0 %v6431_v39  ;;  %v7470_v49 = vld [vmem:[#allocation20 + $0x34] ss:$8 sps:$4 sm:$0xff]  }
 0xc40   : > { %v7473_v39 = vld [vmem:[#allocation20 + $0x134] ss:$8 sps:$4 sm:$0xff]  }
 0xc42   : > { %4642 = vmatpush2.bf16.msra.mxu1 %v6428_v33  ;;  %4695 = vmatpush2.bf16.msra.mxu0 %v6430_v5  ;;  %v7474_v33 = vld [vmem:[#allocation20 + $0x20] ss:$8 sps:$4 sm:$0xff]   ;;  %v7482_v5 = vld [vmem:[#allocation20 + $0x14] ss:$8 sps:$4 sm:$0xff]  }
 0xc43   : > { %4643 = vmatprep.subr.bf16.mxu1 %v6421_v47  ;;  %4696 = vmatprep.subr.bf16.mxu0 %v6423_v42  ;;  %v7485_v47 = vld [vmem:[#allocation20 + $0x114] ss:$8 sps:$4 sm:$0xff]   ;;  %v7480_v42 = vld [vmem:[#allocation20 + $0x10] ss:$8 sps:$4 sm:$0xff]  }
 0xc46   : > { %4644 = vmatpush2.bf16.msra.mxu1 %v6420_v18  ;;  %4697 = vmatpush2.bf16.msra.mxu0 %v6422_v55  ;;  %v7489_v18 = vld [vmem:[#allocation20 + $0x100] ss:$8 sps:$4 sm:$0xff]   ;;  %v7494_v55 = vld [vmem:[#allocation20 + $0xf4] ss:$8 sps:$4 sm:$0xff]  }
 0xc47   : > { %4645 = vmatprep.subr.bf16.mxu1 %v6413_v0  ;;  %4698 = vmatprep.subr.bf16.mxu0 %v6415_v1  ;;  %v7497_v0 = vld [vmem:[#allocation20 + $0x1f4] ss:$8 sps:$4 sm:$0xff]   ;;  %v7492_v1 = vld [vmem:[#allocation20 + $0xf0] ss:$8 sps:$4 sm:$0xff]  }
 0xc4a   : > { %4646 = vmatpush2.bf16.msra.mxu1 %v6412_v10  ;;  %4699 = vmatpush2.bf16.msra.mxu0 %v6414_v14  ;;  %v7501_v10 = vld [vmem:[#allocation20 + $0x1e0] ss:$8 sps:$4 sm:$0xff]   ;;  %v7506_v14 = vld [vmem:[#allocation20 + $0xd4] ss:$8 sps:$4 sm:$0xff]  }
 0xc4b   : > { %4647 = vmatprep.subr.bf16.mxu1 %v6405_v12  ;;  %4700 = vmatprep.subr.bf16.mxu0 %v6407_v31  ;;  %v7509_v12 = vld [vmem:[#allocation20 + $0x1d4] ss:$8 sps:$4 sm:$0xff]   ;;  %v7504_v31 = vld [vmem:[#allocation20 + $0xd0] ss:$8 sps:$4 sm:$0xff]  }
 0xc4e   : > { %4648 = vmatpush2.bf16.msra.mxu1 %v6404_v13  ;;  %4701 = vmatpush2.bf16.msra.mxu0 %v6406_v15  ;;  %v7513_v13 = vld [vmem:[#allocation20 + $0x1c0] ss:$8 sps:$4 sm:$0xff]   ;;  %v7518_v15 = vld [vmem:[#allocation20 + $0xb4] ss:$8 sps:$4 sm:$0xff]  }
 0xc4f   : > { %4649 = vmatprep.subr.bf16.mxu1 %v6397_v61  ;;  %4702 = vmatprep.subr.bf16.mxu0 %v6399_v36  ;;  %v7521_v61 = vld [vmem:[#allocation20 + $0x1b4] ss:$8 sps:$4 sm:$0xff]   ;;  %v7516_v36 = vld [vmem:[#allocation20 + $0xb0] ss:$8 sps:$4 sm:$0xff]  }
 0xc52   : > { %4650 = vmatpush2.bf16.msra.mxu1 %v6396_v9  ;;  %4703 = vmatpush2.bf16.msra.mxu0 %v6398_v24  ;;  %v7519_v9 = vld [vmem:[#allocation20 + $0x1b0] ss:$8 sps:$4 sm:$0xff]   ;;  %v7524_v24 = vld [vmem:[#allocation20 + $0xa4] ss:$8 sps:$4 sm:$0xff]  }
 0xc53   : > { %5681 = vmatprep.subr.bf16.mxu1 %v7446_v53  ;;  %5734 = vmatprep.subr.bf16.mxu0 %v7449_v22  ;;  %v7527_v53 = vld [vmem:[#allocation20 + $0x1a4] ss:$8 sps:$4 sm:$0xff]   ;;  %v7522_v22 = vld [vmem:[#allocation20 + $0xa0] ss:$8 sps:$4 sm:$0xff]  }
 0xc55   : > { %4652 = vmatmul.mubr.bf16.vlgmr.msra.gmra.mxu1 %v9200_v62  ;;  %4705 = vmatmul.mubr.bf16.vlgmr.msra.gmra.mxu0 %v9200_v62  ;;  %v7467_v62 = vld [vmem:[#allocation20 + $0x144] ss:$8 sps:$4 sm:$0xff]  }
 0xc56   : > { %4661 = vmatprep.mubr.bf16.mxu1 %v9218_v38  ;;  %4714 = vmatprep.mubr.bf16.mxu0 %v9218_v38  ;;  %v7462_v38 = vld [vmem:[#allocation20 + $0x40] ss:$8 sps:$4 sm:$0xff]  }
 0xc57   : > { %5682 = vmatpush1.bf16.msra.mxu1 %v7444_v20  ;;  %5735 = vmatpush1.bf16.msra.mxu0 %v7447_v60  ;;  %v7525_v20 = vld [vmem:[#allocation20 + $0x1a0] ss:$8 sps:$4 sm:$0xff]   ;;  %v7530_v60 = vld [vmem:[#allocation20 + $0x94] ss:$8 sps:$4 sm:$0xff]  }
 0xc58   : > { %5683 = vmatprep.subr.bf16.mxu1 %v7452_v3  ;;  %5736 = vmatprep.subr.bf16.mxu0 %v7455_v16  ;;  %v7533_v3 = vld [vmem:[#allocation20 + $0x194] ss:$8 sps:$4 sm:$0xff]   ;;  %v7528_v16 = vld [vmem:[#allocation20 + $0x90] ss:$8 sps:$4 sm:$0xff]  }
 0xc5b   : > { %5684 = vmatpush1.bf16.msra.mxu1 %v7450_v48  ;;  %5737 = vmatpush1.bf16.msra.mxu0 %v7453_v59  ;;  %v7531_v48 = vld [vmem:[#allocation20 + $0x190] ss:$8 sps:$4 sm:$0xff]   ;;  %v7536_v59 = vld [vmem:[#allocation20 + $0x84] ss:$8 sps:$4 sm:$0xff]  }
 0xc5c   : > { %5685 = vmatprep.subr.bf16.mxu1 %v7458_v34  ;;  %5738 = vmatprep.subr.bf16.mxu0 %v7461_v52  ;;  %v7539_v34 = vld [vmem:[#allocation20 + $0x184] ss:$8 sps:$4 sm:$0xff]   ;;  %v7534_v52 = vld [vmem:[#allocation20 + $0x80] ss:$8 sps:$4 sm:$0xff]  }
 0xc5d   : > { %4662 = vmatmul.mubr.bf16.gmra.mxu1 %v9220_v54  ;;  %4715 = vmatmul.mubr.bf16.gmra.mxu0 %v9220_v54  ;;  %v7477_v54 = vld [vmem:[#allocation20 + $0x120] ss:$8 sps:$4 sm:$0xff]  }
 0xc5f   : > { %5686 = vmatpush1.bf16.msra.mxu1 %v7456_v43  ;;  %5739 = vmatpush1.bf16.msra.mxu0 %v7459_v8  ;;  %v7537_v43 = vld [vmem:[#allocation20 + $0x180] ss:$8 sps:$4 sm:$0xff]   ;;  %v7542_v8 = vld [vmem:[#allocation20 + $0x274] ss:$8 sps:$4 sm:$0xff]  }
 0xc60   : > { %5687 = vmatprep.subr.bf16.mxu1 %v7464_v11  ;;  %5740 = vmatprep.subr.bf16.mxu0 %v7467_v62  ;;  %v7545_v11 = vld [vmem:[#allocation20 + $0x374] ss:$8 sps:$4 sm:$0xff]   ;;  %v3843_v62 = vsub.s32 2, %v8658_v41 }
 0xc63   : > { %5688 = vmatpush1.bf16.msra.mxu1 %v7462_v38  ;;  %5741 = vmatpush1.bf16.msra.mxu0 %v7465_v37  ;;  %v9238_v38 = vld [vmem:[%s9547_s2] sm:$0xff]  ;;  %v3847_v37 = vsub.s32 3, %v8658_v41  ;;  %s9415_s2 = scalar_lea.hbm %s9551_s27, %s6588_s19 }
 0xc64   : > { %5689 = vmatprep.subr.bf16.mxu1 %v7470_v49  ;;  %5742 = vmatprep.subr.bf16.mxu0 %v7473_v39  ;;  %v3836_v49 = vrot.slane %v9238_v38, %v9072_v51  ;;  %v3844_v39 = vrot.slane %v9238_v38, %v3843_v62 }
 0xc67   : > { %5690 = vmatpush1.bf16.msra.mxu1 %v7468_v58  ;;  %5743 = vmatpush1.bf16.msra.mxu0 %v7471_v30 }
 0xc68   : > { %5691 = vmatprep.subr.bf16.mxu1 %v7476_v4  ;;  %5744 = vmatprep.subr.bf16.mxu0 %v7479_v32  ;;  %v9246_v4 = vrot.slane %v9238_v38, %v9078_v29  ;;  %v9249_v32 = vrot.slane %v9238_v38, %v3847_v37 }
 0xc6b   : > { %5692 = vmatpush1.bf16.msra.mxu1 %v7474_v33  ;;  %5745 = vmatpush1.bf16.msra.mxu0 %v7477_v54 }
 0xc6c   : > { %5693 = vmatprep.subr.bf16.mxu1 %v7482_v5  ;;  %5746 = vmatprep.subr.bf16.mxu0 %v7485_v47 }
 0xc6f   : > { %5694 = vmatpush1.bf16.msra.mxu1 %v7480_v42  ;;  %5747 = vmatpush1.bf16.msra.mxu0 %v7483_v17 }
 0xc70   : > { %5695 = vmatprep.subr.bf16.mxu1 %v7488_v7  ;;  %5748 = vmatprep.subr.bf16.mxu0 %v7491_v25 }
 0xc73   : > { %5696 = vmatpush1.bf16.msra.mxu1 %v7486_v40  ;;  %5749 = vmatpush1.bf16.msra.mxu0 %v7489_v18 }
 0xc74   : > { %5697 = vmatprep.subr.bf16.mxu1 %v7494_v55  ;;  %5750 = vmatprep.subr.bf16.mxu0 %v7497_v0 }
 0xc77   : > { %5698 = vmatpush2.bf16.msra.mxu1 %v7492_v1  ;;  %5751 = vmatpush2.bf16.msra.mxu0 %v7495_v19 }
 0xc78   : > { %5699 = vmatprep.subr.bf16.mxu1 %v7500_v26  ;;  %5752 = vmatprep.subr.bf16.mxu0 %v7503_v50 }
 0xc7b   : > { %5700 = vmatpush2.bf16.msra.mxu1 %v7498_v63  ;;  %5753 = vmatpush2.bf16.msra.mxu0 %v7501_v10 }
 0xc7c   : > { %5701 = vmatprep.subr.bf16.mxu1 %v7506_v14  ;;  %5754 = vmatprep.subr.bf16.mxu0 %v7509_v12 }
 0xc7f   : > { %5702 = vmatpush2.bf16.msra.mxu1 %v7504_v31  ;;  %5755 = vmatpush2.bf16.msra.mxu0 %v7507_v21 }
 0xc80   : > { %5703 = vmatprep.subr.bf16.mxu1 %v7512_v27  ;;  %5756 = vmatprep.subr.bf16.mxu0 %v7515_v2 }
 0xc83   : > { %5704 = vmatpush2.bf16.msra.mxu1 %v7510_v45  ;;  %5757 = vmatpush2.bf16.msra.mxu0 %v7513_v13 }
 0xc84   : > { %5705 = vmatprep.subr.bf16.mxu1 %v7518_v15  ;;  %5758 = vmatprep.subr.bf16.mxu0 %v7521_v61 }
 0xc87   : > { %5706 = vmatpush2.bf16.msra.mxu1 %v7516_v36  ;;  %5759 = vmatpush2.bf16.msra.mxu0 %v7519_v9 }
 0xc88   : > { %5707 = vmatprep.subr.bf16.mxu1 %v7524_v24  ;;  %5760 = vmatprep.subr.bf16.mxu0 %v7527_v53 }
 0xc8b   : > { %5708 = vmatpush2.bf16.msra.mxu1 %v7522_v22  ;;  %5761 = vmatpush2.bf16.msra.mxu0 %v7525_v20 }
 0xc8c   : > { %5709 = vmatprep.subr.bf16.mxu1 %v7530_v60  ;;  %5762 = vmatprep.subr.bf16.mxu0 %v7533_v3 }
 0xc8f   : > { %5710 = vmatpush2.bf16.msra.mxu1 %v7528_v16  ;;  %5763 = vmatpush2.bf16.msra.mxu0 %v7531_v48 }
 0xc90   : > { %5711 = vmatprep.subr.bf16.mxu1 %v7536_v59  ;;  %5764 = vmatprep.subr.bf16.mxu0 %v7539_v34 }
 0xc93   : > { %5712 = vmatpush2.bf16.msra.mxu1 %v7534_v52  ;;  %5765 = vmatpush2.bf16.msra.mxu0 %v7537_v43 }
 0xc94   : > { %5787 = vmatprep.subr.bf16.mxu1 %v7542_v8  ;;  %5840 = vmatprep.subr.bf16.mxu0 %v7545_v11 }
 0xcd5   : > { %v4547_v58 = vpop.f32.mrf.mxu1  ;;  %v4600_v30 = vpop.f32.mrf.mxu0 }
 0xcd6   : > { %v4548_v33 = vadd.f32 %v4547_v58, %v3836_v49  ;;  %v4601_v54 = vadd.f32 %v4600_v30, %v3844_v39 }
 0xcd7   : > { %v4549_v5 = vpop.f32.mrf.mxu1  ;;  %v4602_v47 = vpop.f32.mrf.mxu0 }
 0xcd8   : > { %v4757_v42 = vmul.f32 0.70710677, %v4548_v33  ;;  %v4759_v17 = vmul.f32 0.70710677, %v4601_v54  ;;  %v4550_v7 = vadd.f32 %v4549_v5, %v9246_v4  ;;  %v4603_v25 = vadd.f32 %v4602_v47, %v9249_v32 }
 0xcd9   : > { %v4551_v40 = vpop.f32.mrf.mxu1  ;;  %v4604_v18 = vpop.f32.mrf.mxu0  ;;  %v4725_v61 = vmul.f32 0.5, %v4548_v33  ;;  %v4727_v36 = vmul.f32 0.5, %v4601_v54 }
 0xcda   : > { %7692 = verf.f32 %v4757_v42  ;;  %v4552_v55 = vadd.f32 %v4551_v40, %v3836_v49  ;;  %v4605_v0 = vadd.f32 %v4604_v18, %v3844_v39  ;;  %v4758_v1 = vmul.f32 0.70710677, %v4550_v7 }
 0xcdb   : > { %v4553_v19 = vpop.f32.mrf.mxu1  ;;  %v4606_v26 = vpop.f32.mrf.mxu0  ;;  %7694 = verf.f32 %v4759_v17  ;;  %v4760_v50 = vmul.f32 0.70710677, %v4603_v25  ;;  %v4726_v9 = vmul.f32 0.5, %v4550_v7  ;;  %v4728_v22 = vmul.f32 0.5, %v4603_v25 }
 0xcdc   : > { %v4765_v63 = vmul.f32 0.70710677, %v4552_v55  ;;  %7696 = verf.f32 %v4758_v1  ;;  %v4767_v10 = vmul.f32 0.70710677, %v4605_v0  ;;  %v4554_v14 = vadd.f32 %v4553_v19, %v9246_v4 }
 0xcdd   : > { %v4607_v12 = vadd.f32 %v4606_v26, %v9249_v32  ;;  %7698 = verf.f32 %v4760_v50  ;;  %v4733_v52 = vmul.f32 0.5, %v4552_v55  ;;  %v4735_v43 = vmul.f32 0.5, %v4605_v0 }
 0xcde   : > { %7700 = verf.f32 %v4765_v63  ;;  %v4766_v31 = vmul.f32 0.70710677, %v4554_v14  ;;  %v4734_v37 = vmul.f32 0.5, %v4554_v14 }
 0xcdf   : > { %7702 = verf.f32 %v4767_v10  ;;  %v4768_v21 = vmul.f32 0.70710677, %v4607_v12  ;;  %v4736_v58 = vmul.f32 0.5, %v4607_v12 }
 0xce0   : > { %7704 = verf.f32 %v4766_v31 }
 0xce1   : > { %7706 = verf.f32 %v4768_v21 }
 0xce5   : > { %v4557_v27 = vpop.f32.mrf.mxu1  ;;  %v4610_v2 = vpop.f32.mrf.mxu0 }
 0xce6   : > { %v9255_v24 = vadd.f32 %v4557_v27, %v3836_v49  ;;  %v9257_v20 = vadd.f32 %v4610_v2, %v3844_v39 }
 0xce7   : > { %v7693_v45 = vpop.eup %7692  ;;  %v4559_v13 = vpop.f32.mrf.mxu1 }
 0xce8   : > { %v4612_v15 = vpop.f32.mrf.mxu0  ;;  %v7695_v53 = vpop.eup %7694  ;;  %v9260_v60 = vadd.f32 %v4559_v13, %v9246_v4  ;;  %v4821_v34 = vadd.f32 1.0, %v7693_v45  ;;  %v4773_v54 = vmul.f32 0.70710677, %v9255_v24  ;;  %v4775_v25 = vmul.f32 0.70710677, %v9257_v20 }
 0xce9   : > { %v9263_v3 = vadd.f32 %v4612_v15, %v9249_v32  ;;  %v4561_v16 = vpop.f32.mrf.mxu1  ;;  %v7697_v59 = vpop.eup %7696  ;;  %v4823_v17 = vadd.f32 1.0, %v7695_v53  ;;  %v7540_v53 = vld [vmem:[#allocation20 + $0x270] ss:$8 sps:$4 sm:$0xff]  }
 0xcea   : > { %v4614_v48 = vpop.f32.mrf.mxu0  ;;  %v9265_v8 = vadd.f32 %v4561_v16, %v3836_v49  ;;  %v7699_v11 = vpop.eup %7698  ;;  %v4822_v62 = vadd.f32 1.0, %v7697_v59  ;;  %v4774_v5 = vmul.f32 0.70710677, %v9260_v60  ;;  %v4853_v55 = vmul.f32 %v4821_v34, %v4725_v61  ;;  %v7548_v59 = vld [vmem:[#allocation20 + $0x264] ss:$8 sps:$4 sm:$0xff]  }
 0xceb   : > { %v9267_v30 = vadd.f32 %v4614_v48, %v3844_v39  ;;  %v7701_v33 = vpop.eup %7700  ;;  %v4776_v47 = vmul.f32 0.70710677, %v9263_v3  ;;  %v4563_v40 = vpop.f32.mrf.mxu1  ;;  %v4824_v0 = vadd.f32 1.0, %v7699_v11  ;;  %v4855_v15 = vmul.f32 %v4823_v17, %v4727_v36  ;;  %v7543_v48 = vld [vmem:[#allocation20 + $0x370] ss:$8 sps:$4 sm:$0xff]  }
 0xcec   : > { %v7703_v42 = vpop.eup %7702  ;;  %v4829_v7 = vadd.f32 1.0, %v7701_v33  ;;  %v4781_v49 = vmul.f32 0.70710677, %v9265_v8  ;;  %7708 = verf.f32 %v4774_v5  ;;  %v4616_v1 = vpop.f32.mrf.mxu0  ;;  %v4854_v26 = vmul.f32 %v4822_v62, %v4726_v9  ;;  %v7549_v36 = vld [vmem:[#allocation20 + $0x360] ss:$8 sps:$4 sm:$0xff]  }
 0xced   : > { %v7705_v18 = vpop.eup %7704  ;;  %v4831_v39 = vadd.f32 1.0, %v7703_v42  ;;  %7710 = verf.f32 %v4776_v47  ;;  %v4783_v63 = vmul.f32 0.70710677, %v9267_v30  ;;  %v9276_v12 = vadd.f32 %v4563_v40, %v9246_v4  ;;  %v7552_v62 = vld [vmem:[#allocation20 + $0x250] ss:$8 sps:$4 sm:$0xff]  }
 0xcee   : > { %v7707_v19 = vpop.eup %7706  ;;  %v4830_v50 = vadd.f32 1.0, %v7705_v18  ;;  %v4861_v10 = vmul.f32 %v4829_v7, %v4733_v52  ;;  %7712 = verf.f32 %v4781_v49  ;;  %v9279_v27 = vadd.f32 %v4616_v1, %v9249_v32  ;;  %v7551_v32 = vld [vmem:[#allocation20 + $0x364] ss:$8 sps:$4 sm:$0xff]   ;;  %v7554_v52 = vld [vmem:[#allocation20 + $0x254] ss:$8 sps:$4 sm:$0xff]  }
 0xcef   : > { %v4832_v14 = vadd.f32 1.0, %v7707_v19  ;;  %v4863_v31 = vmul.f32 %v4831_v39, %v4735_v43  ;;  %7714 = verf.f32 %v4783_v63  ;;  %v4856_v2 = vmul.f32 %v4824_v0, %v4728_v22  ;;  %v7546_v22 = vld [vmem:[#allocation20 + $0x260] ss:$8 sps:$4 sm:$0xff]   ;;  %v7557_v43 = vld [vmem:[#allocation20 + $0x354] ss:$8 sps:$4 sm:$0xff]  }
 0xcf0   : > { %v4862_v21 = vmul.f32 %v4830_v50, %v4734_v37  ;;  %7716 = verf.f32 %v4773_v54  ;;  %v4782_v13 = vmul.f32 0.70710677, %v9276_v12  ;;  %v4784_v61 = vmul.f32 0.70710677, %v9279_v27  ;;  %v7560_v33 = vld [vmem:[#allocation20 + $0x244] ss:$8 sps:$4 sm:$0xff]  }
 0xcf1   : > { %v4864_v45 = vmul.f32 %v4832_v14, %v4736_v58  ;;  %7718 = verf.f32 %v4775_v25  ;;  %v4885_v16 = vpack.c.bf16 %v4861_v10, %v4853_v55  ;;  %v4887_v34 = vpack.c.bf16 %v4863_v31, %v4855_v15  ;;  %v7555_v58 = vld [vmem:[#allocation20 + $0x350] ss:$8 sps:$4 sm:$0xff]   ;;  %v7563_v5 = vld [vmem:[#allocation20 + $0x344] ss:$8 sps:$4 sm:$0xff]   ;;  %v7558_v17 = vld [vmem:[#allocation20 + $0x240] ss:$8 sps:$4 sm:$0xff]  }
 0xcf2   : > { %v4886_v9 = vpack.c.bf16 %v4862_v21, %v4854_v26  ;;  %7720 = verf.f32 %v4782_v13  ;;  %v7561_v40 = vld [vmem:[#allocation20 + $0x340] ss:$8 sps:$4 sm:$0xff]   ;;  %v7566_v18 = vld [vmem:[#allocation20 + $0x234] ss:$8 sps:$4 sm:$0xff]   ;;  %v4742_v0 = vmul.f32 0.5, %v9260_v60  ;;  %v4744_v39 = vmul.f32 0.5, %v9263_v3 }
 0xcf3   : > { %v4888_v4 = vpack.c.bf16 %v4864_v45, %v4856_v2  ;;  %7722 = verf.f32 %v4784_v61  ;;  %v7569_v26 = vld [vmem:[#allocation20 + $0x334] ss:$8 sps:$4 sm:$0xff]   ;;  %v4749_v10 = vmul.f32 0.5, %v9265_v8  ;;  %v4750_v14 = vmul.f32 0.5, %v9276_v12  ;;  %v7564_v60 = vld [vmem:[#allocation20 + $0x230] ss:$8 sps:$4 sm:$0xff]  }
 0xcf4   : > { %5713 = vmatprep.mubr.bf16.mxu1 %v4886_v9  ;;  %v4751_v2 = vmul.f32 0.5, %v9267_v30  ;;  %v4752_v45 = vmul.f32 0.5, %v9279_v27  ;;  %v4741_v3 = vmul.f32 0.5, %v9255_v24  ;;  %v4743_v8 = vmul.f32 0.5, %v9257_v20  ;;  %v7572_v30 = vld [vmem:[#allocation20 + $0x224] ss:$8 sps:$4 sm:$0xff]  }
 0xcf5   : > { %5766 = vmatprep.mubr.bf16.mxu0 %v4888_v4  ;;  %5714 = vmatmul.mubr.bf16.vlgmr.msra.gmra.mxu1 %v4885_v16  ;;  %v7570_v24 = vld [vmem:[#allocation20 + $0x220] ss:$8 sps:$4 sm:$0xff]  }
 0xcf6   : > { %5767 = vmatmul.mubr.bf16.vlgmr.msra.gmra.mxu0 %v4887_v34  ;;  %5788 = vmatpush1.bf16.msra.mxu1 %v7540_v53  ;;  %v7567_v53 = vld [vmem:[#allocation20 + $0x330] ss:$8 sps:$4 sm:$0xff]  }
 0xcf7   : > { %5841 = vmatpush1.bf16.msra.mxu0 %v7543_v48  ;;  %5789 = vmatprep.subr.bf16.mxu1 %v7548_v59  ;;  %v7575_v59 = vld [vmem:[#allocation20 + $0x324] ss:$8 sps:$4 sm:$0xff]  }
 0xcf8   : > { %5842 = vmatprep.subr.bf16.mxu0 %v7551_v32 }
 0xcf9   : > { %v7709_v11 = vpop.eup %7708 }
 0xcfa   : > { %5790 = vmatpush1.bf16.msra.mxu1 %v7546_v22  ;;  %v7711_v37 = vpop.eup %7710  ;;  %v4838_v25 = vadd.f32 1.0, %v7709_v11  ;;  %v7573_v22 = vld [vmem:[#allocation20 + $0x320] ss:$8 sps:$4 sm:$0xff]   ;;  %v7576_v11 = vld [vmem:[#allocation20 + $0x210] ss:$8 sps:$4 sm:$0xff]  }
 0xcfb   : > { %5843 = vmatpush1.bf16.msra.mxu0 %v7549_v36  ;;  %5791 = vmatprep.subr.bf16.mxu1 %v7554_v52  ;;  %v7713_v54 = vpop.eup %7712  ;;  %v4840_v1 = vadd.f32 1.0, %v7711_v37  ;;  %v7578_v52 = vld [vmem:[#allocation20 + $0x214] ss:$8 sps:$4 sm:$0xff]   ;;  %v7584_v37 = vld [vmem:[#allocation20 + $0x204] ss:$8 sps:$4 sm:$0xff]  }
 0xcfc   : > { %5844 = vmatprep.subr.bf16.mxu0 %v7557_v43  ;;  %v7715_v47 = vpop.eup %7714  ;;  %v4845_v49 = vadd.f32 1.0, %v7713_v54  ;;  %v4870_v15 = vmul.f32 %v4838_v25, %v4742_v0  ;;  %v7581_v43 = vld [vmem:[#allocation20 + $0x314] ss:$8 sps:$4 sm:$0xff]   ;;  %v3859_v54 = vsub.s32 6, %v8658_v41  ;;  %v3863_v25 = vsub.s32 7, %v8658_v41 }
 0xcfd   : > { %v7717_v42 = vpop.eup %7716  ;;  %v4847_v19 = vadd.f32 1.0, %v7715_v47  ;;  %v4872_v12 = vmul.f32 %v4840_v1, %v4744_v39  ;;  %v7585_v47 = vld [vmem:[#allocation20 + $0x300] ss:$8 sps:$4 sm:$0xff]   ;;  %v7596_v0 = vld [vmem:[#allocation20 + $0x2e4] ss:$8 sps:$4 sm:$0xff]  }
 0xcfe   : > { %5792 = vmatpush1.bf16.msra.mxu1 %v7552_v62  ;;  %v7719_v7 = vpop.eup %7718  ;;  %v4837_v63 = vadd.f32 1.0, %v7717_v42  ;;  %v4877_v61 = vmul.f32 %v4845_v49, %v4749_v10  ;;  %v7579_v62 = vld [vmem:[#allocation20 + $0x310] ss:$8 sps:$4 sm:$0xff]   ;;  %v7590_v42 = vld [vmem:[#allocation20 + $0x2f4] ss:$8 sps:$4 sm:$0xff]  }
 0xcff   : > { %5845 = vmatpush1.bf16.msra.mxu0 %v7555_v58  ;;  %5793 = vmatprep.subr.bf16.mxu1 %v7560_v33  ;;  %v7721_v55 = vpop.eup %7720  ;;  %v4839_v21 = vadd.f32 1.0, %v7719_v7  ;;  %v4879_v16 = vmul.f32 %v4847_v19, %v4751_v2  ;;  %v7587_v58 = vld [vmem:[#allocation20 + $0x304] ss:$8 sps:$4 sm:$0xff]   ;;  %v3851_v33 = vsub.s32 4, %v8658_v41  ;;  %v3855_v7 = vsub.s32 5, %v8658_v41 }
 0xd00   : > { %5846 = vmatprep.subr.bf16.mxu0 %v7563_v5  ;;  %v7723_v50 = vpop.eup %7722  ;;  %v4846_v31 = vadd.f32 1.0, %v7721_v55  ;;  %v4869_v48 = vmul.f32 %v4837_v63, %v4741_v3  ;;  %v7582_v5 = vld [vmem:[#allocation20 + $0x200] ss:$8 sps:$4 sm:$0xff]   ;;  %v7591_v55 = vld [vmem:[#allocation20 + $0x3f0] ss:$8 sps:$4 sm:$0xff]   ;;  %v9305_v41 = vrot.slane %v9238_v38, %v3863_v25 }
 0xd01   : > { %v4848_v13 = vadd.f32 1.0, %v7723_v50  ;;  %v4871_v34 = vmul.f32 %v4839_v21, %v4743_v8  ;;  %v9296_v49 = vrot.slane %v9238_v38, %v3851_v33  ;;  %v9302_v19 = vrot.slane %v9238_v38, %v3855_v7  ;;  %v7597_v21 = vld [vmem:[#allocation20 + $0x3e0] ss:$8 sps:$4 sm:$0xff]  }
 0xd02   : > { %5794 = vmatpush1.bf16.msra.mxu1 %v7558_v17  ;;  %v4878_v9 = vmul.f32 %v4846_v31, %v4750_v14  ;;  %v4893_v36 = vpack.c.bf16 %v4877_v61, %v4869_v48  ;;  %v7593_v17 = vld [vmem:[#allocation20 + $0x3f4] ss:$8 sps:$4 sm:$0xff]   ;;  %v7594_v31 = vld [vmem:[#allocation20 + $0x2e0] ss:$8 sps:$4 sm:$0xff]  }
 0xd03   : > { %5847 = vmatpush1.bf16.msra.mxu0 %v7561_v40  ;;  %5795 = vmatprep.subr.bf16.mxu1 %v7566_v18  ;;  %v4880_v4 = vmul.f32 %v4848_v13, %v4752_v45  ;;  %v4895_v20 = vpack.c.bf16 %v4879_v16, %v4871_v34  ;;  %v9299_v40 = vrot.slane %v9238_v38, %v3859_v54  ;;  %v7588_v18 = vld [vmem:[#allocation20 + $0x2f0] ss:$8 sps:$4 sm:$0xff]   ;;  %v7602_v38 = vld [vmem:[#allocation20 + $0x2d4] ss:$8 sps:$4 sm:$0xff]   ;;  %v7609_v33 = vld [vmem:[#allocation20 + $0x3c0] ss:$8 sps:$4 sm:$0xff]  }
 0xd04   : > { %5848 = vmatprep.subr.bf16.mxu0 %v7569_v26  ;;  %v4894_v27 = vpack.c.bf16 %v4878_v9, %v4870_v15  ;;  %v7599_v26 = vld [vmem:[#allocation20 + $0x3e4] ss:$8 sps:$4 sm:$0xff]   ;;  %v7605_v61 = vld [vmem:[#allocation20 + $0x3d4] ss:$8 sps:$4 sm:$0xff]  }
 0xd05   : > { %v4896_v32 = vpack.c.bf16 %v4880_v4, %v4872_v12  ;;  %v7600_v4 = vld [vmem:[#allocation20 + $0x2d0] ss:$8 sps:$4 sm:$0xff]  }
 0xd06   : > { %5796 = vmatpush1.bf16.msra.mxu1 %v7564_v60  ;;  %5723 = vmatprep.mubr.bf16.mxu1 %v4894_v27 }
 0xd07   : > { %5849 = vmatpush1.bf16.msra.mxu0 %v7567_v53  ;;  %5776 = vmatprep.mubr.bf16.mxu0 %v4896_v32 }
 0xd08   : > { %5797 = vmatprep.subr.bf16.mxu1 %v7572_v30  ;;  %5850 = vmatprep.subr.bf16.mxu0 %v7575_v59  ;;  %v7603_v30 = vld [vmem:[#allocation20 + $0x3d0] ss:$8 sps:$4 sm:$0xff]   ;;  %v7608_v59 = vld [vmem:[#allocation20 + $0x2c4] ss:$8 sps:$4 sm:$0xff]  }
 0xd09   : > { %5724 = vmatmul.mubr.bf16.gmra.mxu1 %v4893_v36  ;;  %5777 = vmatmul.mubr.bf16.gmra.mxu0 %v4895_v20 }
 0xd0a   : > { %5798 = vmatpush1.bf16.msra.mxu1 %v7570_v24 }
 0xd0b   : > { %5851 = vmatpush1.bf16.msra.mxu0 %v7573_v22  ;;  %5799 = vmatprep.subr.bf16.mxu1 %v7578_v52  ;;  %v7611_v52 = vld [vmem:[#allocation20 + $0x3c4] ss:$8 sps:$4 sm:$0xff]  }
 0xd0c   : > { %5852 = vmatprep.subr.bf16.mxu0 %v7581_v43 }
 0xd0e   : > { %5800 = vmatpush1.bf16.msra.mxu1 %v7576_v11 }
 0xd0f   : > { %5853 = vmatpush1.bf16.msra.mxu0 %v7579_v62  ;;  %5801 = vmatprep.subr.bf16.mxu1 %v7584_v37 }
 0xd10   : > { %5854 = vmatprep.subr.bf16.mxu0 %v7587_v58  ;;  %v7606_v58 = vld [vmem:[#allocation20 + $0x2c0] ss:$8 sps:$4 sm:$0xff]  }
 0xd12   : > { %5802 = vmatpush1.bf16.msra.mxu1 %v7582_v5 }
 0xd13   : > { %5855 = vmatpush1.bf16.msra.mxu0 %v7585_v47  ;;  %5803 = vmatprep.subr.bf16.mxu1 %v7590_v42  ;;  %v7614_v47 = vld [vmem:[#allocation20 + $0x2b4] ss:$8 sps:$4 sm:$0xff]  }
 0xd14   : > { %5856 = vmatprep.subr.bf16.mxu0 %v7593_v17 }
 0xd15   : > { %v4653_v39 = vpop.f32.mrf.mxu1  ;;  %v4706_v1 = vpop.f32.mrf.mxu0 }
 0xd16   : > { %v9308_v50 = vadd.f32 %v4653_v39, %v9296_v49  ;;  %v9311_v63 = vadd.f32 %v4706_v1, %v9299_v40  ;;  %5804 = vmatpush2.bf16.msra.mxu1 %v7588_v18  ;;  %v7617_v18 = vld [vmem:[#allocation20 + $0x3b4] ss:$8 sps:$4 sm:$0xff]  }
 0xd17   : > { %v4655_v10 = vpop.f32.mrf.mxu1  ;;  %v4708_v14 = vpop.f32.mrf.mxu0  ;;  %5857 = vmatpush2.bf16.msra.mxu0 %v7591_v55  ;;  %5805 = vmatprep.subr.bf16.mxu1 %v7596_v0 }
 0xd18   : > { %v4761_v2 = vmul.f32 0.70710677, %v9308_v50  ;;  %v4763_v45 = vmul.f32 0.70710677, %v9311_v63  ;;  %v9316_v13 = vadd.f32 %v4655_v10, %v9302_v19  ;;  %v9319_v60 = vadd.f32 %v4708_v14, %v9305_v41  ;;  %5858 = vmatprep.subr.bf16.mxu0 %v7599_v26  ;;  %v7612_v14 = vld [vmem:[#allocation20 + $0x2b0] ss:$8 sps:$4 sm:$0xff]  }
 0xd19   : > { %v4657_v3 = vpop.f32.mrf.mxu1  ;;  %v4710_v15 = vpop.f32.mrf.mxu0 }
 0xd1a   : > { %v9322_v9 = vadd.f32 %v4657_v3, %v9296_v49  ;;  %v9325_v53 = vadd.f32 %v4710_v15, %v9299_v40  ;;  %7724 = verf.f32 %v4761_v2  ;;  %v4762_v8 = vmul.f32 0.70710677, %v9316_v13  ;;  %5806 = vmatpush2.bf16.msra.mxu1 %v7594_v31  ;;  %v7620_v2 = vld [vmem:[#allocation20 + $0x2a4] ss:$8 sps:$4 sm:$0xff]   ;;  %v7618_v15 = vld [vmem:[#allocation20 + $0x2a0] ss:$8 sps:$4 sm:$0xff]  }
 0xd1b   : > { %v4659_v12 = vpop.f32.mrf.mxu1  ;;  %v4712_v16 = vpop.f32.mrf.mxu0  ;;  %7726 = verf.f32 %v4763_v45  ;;  %v4764_v48 = vmul.f32 0.70710677, %v9319_v60  ;;  %5859 = vmatpush2.bf16.msra.mxu0 %v7597_v21  ;;  %5807 = vmatprep.subr.bf16.mxu1 %v7602_v38  ;;  %v7615_v21 = vld [vmem:[#allocation20 + $0x3b0] ss:$8 sps:$4 sm:$0xff]   ;;  %v7623_v45 = vld [vmem:[#allocation20 + $0x3a4] ss:$8 sps:$4 sm:$0xff]  }
 0xd1c   : > { %v4769_v27 = vmul.f32 0.70710677, %v9322_v9  ;;  %7728 = verf.f32 %v4762_v8  ;;  %v4771_v34 = vmul.f32 0.70710677, %v9325_v53  ;;  %v9332_v32 = vadd.f32 %v4659_v12, %v9302_v19  ;;  %5860 = vmatprep.subr.bf16.mxu0 %v7605_v61  ;;  %v7621_v12 = vld [vmem:[#allocation20 + $0x3a0] ss:$8 sps:$4 sm:$0xff]  }
 0xd1d   : > { %v9335_v24 = vadd.f32 %v4712_v16, %v9305_v41  ;;  %v4663_v22 = vpop.f32.mrf.mxu1  ;;  %v4716_v36 = vpop.f32.mrf.mxu0  ;;  %7730 = verf.f32 %v4764_v48  ;;  %v7626_v16 = vld [vmem:[#allocation20 + $0x294] ss:$8 sps:$4 sm:$0xff]  }
 0xd1e   : > { %v9338_v20 = vadd.f32 %v4663_v22, %v9296_v49  ;;  %v9341_v43 = vadd.f32 %v4716_v36, %v9299_v40  ;;  %7732 = verf.f32 %v4769_v27  ;;  %v4770_v11 = vmul.f32 0.70710677, %v9332_v32  ;;  %5808 = vmatpush2.bf16.msra.mxu1 %v7600_v4  ;;  %v7624_v27 = vld [vmem:[#allocation20 + $0x290] ss:$8 sps:$4 sm:$0xff]   ;;  %v7632_v22 = vld [vmem:[#allocation20 + $0x284] ss:$8 sps:$4 sm:$0xff]  }
 0xd1f   : > { %v4665_v62 = vpop.f32.mrf.mxu1  ;;  %v4718_v37 = vpop.f32.mrf.mxu0  ;;  %7734 = verf.f32 %v4771_v34  ;;  %v4772_v54 = vmul.f32 0.70710677, %v9335_v24  ;;  %5861 = vmatpush2.bf16.msra.mxu0 %v7603_v30  ;;  %5809 = vmatprep.subr.bf16.mxu1 %v7608_v59  ;;  %v7627_v34 = vld [vmem:[#allocation20 + $0x390] ss:$8 sps:$4 sm:$0xff]  }
 0xd20   : > { %v4777_v5 = vmul.f32 0.70710677, %v9338_v20  ;;  %7736 = verf.f32 %v4770_v11  ;;  %v4779_v42 = vmul.f32 0.70710677, %v9341_v43  ;;  %v9348_v17 = vadd.f32 %v4665_v62, %v9302_v19  ;;  %5862 = vmatprep.subr.bf16.mxu0 %v7611_v52 }
 0xd21   : > { %v4667_v7 = vpop.f32.mrf.mxu1  ;;  %v4720_v25 = vpop.f32.mrf.mxu0  ;;  %7738 = verf.f32 %v4772_v54  ;;  %v9351_v55 = vadd.f32 %v4718_v37, %v9305_v41  ;;  %v4729_v52 = vmul.f32 0.5, %v9308_v50  ;;  %v4730_v11 = vmul.f32 0.5, %v9316_v13  ;;  %v7630_v50 = vld [vmem:[#allocation20 + $0x280] ss:$8 sps:$4 sm:$0xff]  }
 0xd22   : > { %v9354_v0 = vadd.f32 %v4667_v7, %v9296_v49  ;;  %v9357_v39 = vadd.f32 %v4720_v25, %v9299_v40  ;;  %7740 = verf.f32 %v4777_v5  ;;  %v4778_v1 = vmul.f32 0.70710677, %v9348_v17  ;;  %5810 = vmatpush2.bf16.msra.mxu1 %v7606_v58  ;;  %v7635_v58 = vld [vmem:[#allocation20 + $0x384] ss:$8 sps:$4 sm:$0xff]  }
 0xd23   : > { %v4669_v26 = vpop.f32.mrf.mxu1  ;;  %v4722_v10 = vpop.f32.mrf.mxu0  ;;  %7742 = verf.f32 %v4779_v42  ;;  %v4780_v31 = vmul.f32 0.70710677, %v9351_v55  ;;  %5863 = vmatpush2.bf16.msra.mxu0 %v7609_v33  ;;  %5811 = vmatprep.subr.bf16.mxu1 %v7614_v47  ;;  %v4737_v47 = vmul.f32 0.5, %v9322_v9  ;;  %v7633_v9 = vld [vmem:[#allocation20 + $0x380] ss:$8 sps:$4 sm:$0xff]  }
 0xd24   : > { %7744 = verf.f32 %v4778_v1  ;;  %v4785_v49 = vmul.f32 0.70710677, %v9354_v0  ;;  %v4787_v40 = vmul.f32 0.70710677, %v9357_v39  ;;  %5864 = vmatprep.subr.bf16.mxu0 %v7617_v18  ;;  %v9364_v38 = vadd.f32 %v4669_v26, %v9302_v19  ;;  %v7629_v19 = vld [vmem:[#allocation20 + $0x394] ss:$8 sps:$4 sm:$0xff]  }
 0xd25   : > { %7746 = verf.f32 %v4780_v31  ;;  %v9367_v3 = vadd.f32 %v4722_v10, %v9305_v41  ;;  %v4739_v18 = vmul.f32 0.5, %v9325_v53  ;;  %v4738_v1 = vmul.f32 0.5, %v9332_v32 }
 0xd26   : > { %7748 = verf.f32 %v4785_v49  ;;  %5812 = vmatpush2.bf16.msra.mxu1 %v7612_v14  ;;  %v4786_v8 = vmul.f32 0.70710677, %v9364_v38  ;;  %v4732_v10 = vmul.f32 0.5, %v9319_v60  ;;  %v4740_v31 = vmul.f32 0.5, %v9335_v24 }
 0xd27   : > { %v7725_v61 = vpop.eup %7724  ;;  %7750 = verf.f32 %v4787_v40  ;;  %5865 = vmatpush2.bf16.msra.mxu0 %v7615_v21  ;;  %5813 = vmatprep.subr.bf16.mxu1 %v7620_v2  ;;  %v4788_v30 = vmul.f32 0.70710677, %v9367_v3  ;;  %v4731_v49 = vmul.f32 0.5, %v9311_v63  ;;  %v4745_v63 = vmul.f32 0.5, %v9338_v20 }
 0xd28   : > { %v7727_v4 = vpop.eup %7726  ;;  %5866 = vmatprep.subr.bf16.mxu0 %v7623_v45  ;;  %7752 = verf.f32 %v4786_v8  ;;  %v4825_v54 = vadd.f32 1.0, %v7725_v61  ;;  %v4748_v20 = vmul.f32 0.5, %v9351_v55 }
 0xd29   : > { %v7729_v48 = vpop.eup %7728  ;;  %7754 = verf.f32 %v4788_v30  ;;  %v4827_v25 = vadd.f32 1.0, %v7727_v4 }
 0xd2a   : > { %v7731_v41 = vpop.eup %7730  ;;  %5814 = vmatpush2.bf16.msra.mxu1 %v7618_v15  ;;  %v4826_v62 = vadd.f32 1.0, %v7729_v48  ;;  %v4857_v15 = vmul.f32 %v4825_v54, %v4729_v52 }
 0xd2b   : > { %v7733_v59 = vpop.eup %7732  ;;  %5867 = vmatpush2.bf16.msra.mxu0 %v7621_v12  ;;  %5815 = vmatprep.subr.bf16.mxu1 %v7626_v16  ;;  %v4828_v5 = vadd.f32 1.0, %v7731_v41  ;;  %v4859_v60 = vmul.f32 %v4827_v25, %v4731_v49 }
 0xd2c   : > { %v7735_v36 = vpop.eup %7734  ;;  %v4833_v37 = vadd.f32 1.0, %v7733_v59  ;;  %5868 = vmatprep.subr.bf16.mxu0 %v7629_v19  ;;  %v4858_v40 = vmul.f32 %v4826_v62, %v4730_v11  ;;  %v4753_v11 = vmul.f32 0.5, %v9354_v0 }
 0xd2d   : > { %v7737_v33 = vpop.eup %7736  ;;  %v4835_v42 = vadd.f32 1.0, %v7735_v36  ;;  %v4860_v61 = vmul.f32 %v4828_v5, %v4732_v10  ;;  %v4746_v36 = vmul.f32 0.5, %v9348_v17 }
 0xd2e   : > { %v7739_v7 = vpop.eup %7738  ;;  %v4834_v26 = vadd.f32 1.0, %v7737_v33  ;;  %5816 = vmatpush2.bf16.msra.mxu1 %v7624_v27  ;;  %v4865_v14 = vmul.f32 %v4833_v37, %v4737_v47  ;;  %v4754_v33 = vmul.f32 0.5, %v9364_v38  ;;  %v4756_v47 = vmul.f32 0.5, %v9367_v3 }
 0xd2f   : > { %v7741_v13 = vpop.eup %7740  ;;  %v4836_v21 = vadd.f32 1.0, %v7739_v7  ;;  %5869 = vmatpush2.bf16.msra.mxu0 %v7627_v34  ;;  %5817 = vmatprep.subr.bf16.mxu1 %v7632_v22  ;;  %v4867_v53 = vmul.f32 %v4835_v42, %v4739_v18  ;;  %v4747_v7 = vmul.f32 0.5, %v9341_v43 }
 0xd30   : > { %v7743_v2 = vpop.eup %7742  ;;  %v4866_v45 = vmul.f32 %v4834_v26, %v4738_v1  ;;  %5870 = vmatprep.subr.bf16.mxu0 %v7635_v58  ;;  %v4889_v4 = vpack.c.bf16 %v4865_v14, %v4857_v15  ;;  %v4841_v22 = vadd.f32 1.0, %v7741_v13  ;;  %v4755_v58 = vmul.f32 0.5, %v9357_v39 }
 0xd31   : > { %v7745_v32 = vpop.eup %7744  ;;  %v4868_v8 = vmul.f32 %v4836_v21, %v4740_v31  ;;  %v4891_v48 = vpack.c.bf16 %v4867_v53, %v4859_v60  ;;  %v4843_v37 = vadd.f32 1.0, %v7743_v2  ;;  %v5029_v53 = vld [vmem:[%s9548_s24] sm:$0x3]  ;;  %s8132_s24 = smov [#allocation22]  }
 0xd32   : > { %v7747_v12 = vpop.eup %7746  ;;  %5818 = vmatpush2.bf16.msra.mxu1 %v7630_v50  ;;  %v4890_v16 = vpack.c.bf16 %v4866_v45, %v4858_v40  ;;  %v4842_v27 = vadd.f32 1.0, %v7745_v32  ;;  %v4873_v0 = vmul.f32 %v4841_v22, %v4745_v63  ;;  %v5034_v32 = vrot.slane %v5029_v53, %v9072_v51  ;;  %s7970_s28 = sshll.u32 %s8132_s24, 4  ;;  %s7971_s28 = int_to_ptr.vmem [resolvable:$false] %s7970_s28 }
 0xd33   : > { %v7749_v24 = vpop.eup %7748  ;;  %5871 = vmatpush2.bf16.msra.mxu0 %v7633_v9  ;;  %v4892_v30 = vpack.c.bf16 %v4868_v8, %v4860_v61  ;;  %v4844_v52 = vadd.f32 1.0, %v7747_v12  ;;  %v4875_v50 = vmul.f32 %v4843_v37, %v4747_v7  ;;  %v5038_v61 = vrot.slane %v5029_v53, %v9078_v29  ;;  %s7972_s10 = scalar_lea.vmem %s7971_s28, 2048  ;;  %p7973_p13 = scmp.lt.s32.totalorder %s9408_s8, %s7971_s28 }
 0xd34   : > { %v7751_v19 = vpop.eup %7750  ;;  %v4849_v41 = vadd.f32 1.0, %v7749_v24  ;;  %5819 = vmatprep.mubr.bf16.mxu1 %v4890_v16  ;;  %v4874_v17 = vmul.f32 %v4842_v27, %v4746_v36  ;;  %p7974_p0 = scmp.lt.s32.totalorder %s7972_s10, %s7966_s3 }
 0xd35   : > { %v4851_v59 = vadd.f32 1.0, %v7751_v19  ;;  %5872 = vmatprep.mubr.bf16.mxu0 %v4892_v30  ;;  %5820 = vmatmul.mubr.bf16.vlgmr.msra.gmra.mxu1 %v4889_v4  ;;  %v7753_v34 = vpop.eup %7752  ;;  %v4876_v1 = vmul.f32 %v4844_v52, %v4748_v20 }
 0xd36   : > { %5873 = vmatmul.mubr.bf16.vlgmr.msra.gmra.mxu0 %v4891_v48  ;;  %v7755_v62 = vpop.eup %7754  ;;  %v4850_v54 = vadd.f32 1.0, %v7753_v34  ;;  %v4881_v5 = vmul.f32 %v4849_v41, %v4753_v11  ;;  %p7975_p2 = por %p7974_p0, %p7973_p13 }
 0xd37   : > { %v4852_v42 = vadd.f32 1.0, %v7755_v62  ;;  %v4883_v25 = vmul.f32 %v4851_v59, %v4755_v58 }
 0xd38   : > { %v4882_v18 = vmul.f32 %v4850_v54, %v4754_v33  ;;  %v4897_v10 = vpack.c.bf16 %v4881_v5, %v4873_v0  ;;  %p7976_p8 = pnand %p7975_p2, %p7969_p12 }
 0xd39   : > { %v4884_v26 = vmul.f32 %v4852_v42, %v4756_v47  ;;  %v4899_v38 = vpack.c.bf16 %v4883_v25, %v4875_v50 }
 0xd3a   : > { %v4898_v13 = vpack.c.bf16 %v4882_v18, %v4874_v17 }
 0xd3b   : > { %v4900_v39 = vpack.c.bf16 %v4884_v26, %v4876_v1 }
 0xd3c   : > { %5829 = vmatprep.mubr.bf16.mxu1 %v4898_v13 }
 0xd3d   : > { %5882 = vmatprep.mubr.bf16.mxu0 %v4900_v39  ;;  %5830 = vmatmul.mubr.bf16.gmra.mxu1 %v4897_v10 }
 0xd3e   : > { %5883 = vmatmul.mubr.bf16.gmra.mxu0 %v4899_v38 }
 0xdb5   : > { %v5715_v55 = vpop.f32.mrf.mxu1 }
 0xdb6   : > { %v5768_v3 = vpop.f32.mrf.mxu0  ;;  %v5716_v12 = vadd.f32 %v5715_v55, %v5034_v32 }
 0xdb7   : > { %v5717_v14 = vpop.f32.mrf.mxu1 }
 0xdb8   : > { %v5770_v31 = vpop.f32.mrf.mxu0  ;;  %v5718_v16 = vadd.f32 %v5717_v14, %v5038_v61  ;;  %v5769_v4 = vadd.f32 %v5768_v3, %v5716_v12 }
 0xdb9   : > { %v5719_v43 = vpop.f32.mrf.mxu1 }
 0xdba   : > { %v5772_v21 = vpop.f32.mrf.mxu0  ;;  %v5720_v30 = vadd.f32 %v5719_v43, %v5034_v32  ;;  %v5771_v41 = vadd.f32 %v5770_v31, %v5718_v16 }
 0xdbb   : > { %v5721_v9 = vpop.f32.mrf.mxu1 }
 0xdbc   : > { %v5774_v2 = vpop.f32.mrf.mxu0  ;;  %v5722_v63 = vadd.f32 %v5721_v9, %v5038_v61  ;;  %v5773_v22 = vadd.f32 %v5772_v21, %v5720_v30 }
 0xdbe   : > { %v5775_v62 = vadd.f32 %v5774_v2, %v5722_v63 }
 0xdc9   : > { %v5725_v49 = vpop.f32.mrf.mxu1  ;;  %v5778_v40 = vpop.f32.mrf.mxu0 }
 0xdca   : > { %v5726_v29 = vadd.f32 %v5725_v49, %v5034_v32 }
 0xdcb   : > { %v5727_v45 = vpop.f32.mrf.mxu1  ;;  %v5780_v15 = vpop.f32.mrf.mxu0 }
 0xdcc   : > { %v5728_v20 = vadd.f32 %v5727_v45, %v5038_v61  ;;  %v5779_v25 = vadd.f32 %v5778_v40, %v5726_v29 }
 0xdcd   : > { %v5729_v8 = vpop.f32.mrf.mxu1  ;;  %v5782_v60 = vpop.f32.mrf.mxu0 }
 0xdce   : > { %v5730_v18 = vadd.f32 %v5729_v8, %v5034_v32  ;;  %v5781_v26 = vadd.f32 %v5780_v15, %v5728_v20 }
 0xdcf   : > { %v5731_v24 = vpop.f32.mrf.mxu1  ;;  %v5784_v19 = vpop.f32.mrf.mxu0 }
 0xdd0   : > { %v5732_v50 = vadd.f32 %v5731_v24, %v5038_v61  ;;  %v5783_v38 = vadd.f32 %v5782_v60, %v5730_v18 }
 0xdd2   : > { %v5785_v31 = vadd.f32 %v5784_v19, %v5732_v50 }
 0xdf5   : > { %v5821_v48 = vpop.f32.mrf.mxu1 }
 0xdf6   : > { %v5822_v27 = vadd.f32 %v5821_v48, %v5769_v4  ;;  %v5874_v59 = vpop.f32.mrf.mxu0 }
 0xdf7   : > { %v5823_v34 = vpop.f32.mrf.mxu1 }
 0xdf8   : > { %v5875_v51 = vadd.f32 %v5874_v59, %v5822_v27  ;;  %v5824_v36 = vadd.f32 %v5823_v34, %v5771_v41  ;;  %v5876_v52 = vpop.f32.mrf.mxu0 }
 0xdf9   : > { %v5825_v11 = vpop.f32.mrf.mxu1 }
 0xdfa   : > { %v5893_v37 = vadd.f32 %v5875_v51, %v9089_v44  ;;  %v5877_v58 = vadd.f32 %v5876_v52, %v5824_v36  ;;  %v5826_v33 = vadd.f32 %v5825_v11, %v5773_v22  ;;  %v5878_v54 = vpop.f32.mrf.mxu0 }
 0xdfb   : > { %v5827_v5 = vpop.f32.mrf.mxu1 }
 0xdfc   : > { %5901 = vst [vmem:[%s8452_s16] sm:$0xff] %v5893_v37  ;;  %v5894_v47 = vadd.f32 %v5877_v58, %v9091_v6  ;;  %v5879_v42 = vadd.f32 %v5878_v54, %v5826_v33  ;;  %v5828_v7 = vadd.f32 %v5827_v5, %v5775_v62  ;;  %v5880_v17 = vpop.f32.mrf.mxu0 }
 0xdfd   : > { %v5831_v1 = vpop.f32.mrf.mxu1 }
 0xdfe   : > { %5902 = vst [vmem:[%s8452_s16 + $0x8] sm:$0xff] %v5894_v47  ;;  %v5895_v0 = vadd.f32 %v5879_v42, %v9097_v56  ;;  %v5881_v44 = vadd.f32 %v5880_v17, %v5828_v7  ;;  %v5832_v13 = vadd.f32 %v5831_v1, %v5779_v25  ;;  %v5884_v39 = vpop.f32.mrf.mxu0 }
 0xdff   : > { %v5833_v10 = vpop.f32.mrf.mxu1 }
 0xe00   : > { %5903 = vst [vmem:[%s8452_s16 + $0x10] sm:$0xff] %v5895_v0  ;;  %v5896_v6 = vadd.f32 %v5881_v44, %v9099_v57  ;;  %v5885_v55 = vadd.f32 %v5884_v39, %v5832_v13  ;;  %v5834_v3 = vadd.f32 %v5833_v10, %v5781_v26  ;;  %v5886_v14 = vpop.f32.mrf.mxu0 }
 0xe01   : > { %v5835_v56 = vpop.f32.mrf.mxu1 }
 0xe02   : > { %5904 = vst [vmem:[%s8452_s16 + $0x18] sm:$0xff] %v5896_v6  ;;  %v5897_v43 = vadd.f32 %v5885_v55, %v9105_v23  ;;  %v5887_v21 = vadd.f32 %v5886_v14, %v5834_v3  ;;  %v5836_v9 = vadd.f32 %v5835_v56, %v5783_v38  ;;  %v5888_v2 = vpop.f32.mrf.mxu0 }
 0xe03   : > { %v5837_v57 = vpop.f32.mrf.mxu1 }
 0xe04   : > { %5905 = vst [vmem:[%s8452_s16 + $0x20] sm:$0xff] %v5897_v43  ;;  %v5898_v49 = vadd.f32 %v5887_v21, %v9107_v35  ;;  %v5889_v40 = vadd.f32 %v5888_v2, %v5836_v9  ;;  %v5838_v53 = vadd.f32 %v5837_v57, %v5785_v31  ;;  %v5890_v45 = vpop.f32.mrf.mxu0 }
 0xe06   : > { %5906 = vst [vmem:[%s8452_s16 + $0x28] sm:$0xff] %v5898_v49  ;;  %v5899_v23 = vadd.f32 %v5889_v40, %v9113_v46  ;;  %v5891_v32 = vadd.f32 %v5890_v45, %v5838_v53 }
 0xe08   : > { %5907 = vst [vmem:[%s8452_s16 + $0x30] sm:$0xff] %v5899_v23  ;;  %v5900_v15 = vadd.f32 %v5891_v32, %v9115_v28 }
 0xe0a   : > { %5908 = vst [vmem:[%s8452_s16 + $0x38] sm:$0xff] %v5900_v15 }
 0xe0b   : > { %7979 = shalt.err (!%p7976_p8)
}
 0xe0c   : > { %s7980_s12 = scalar_lea.hbm %s9415_s2, 1024  ;;  %s7984_s7 = scalar_lea.hbm %s9551_s27, 4096 }
 0xe0d   : > { %p7981_p4 = scmp.ne.s32.totalorder %s9415_s2, %s7980_s12  ;;  %p7985_p1 = scmp.lt.s32.totalorder %s9415_s2, %s9551_s27 }
 0xe0e   : > { %p7986_p10 = scmp.lt.s32.totalorder %s7984_s7, %s7980_s12 }
 0xe0f   : > { %p7982_p7 = pnand %p7981_p4, %p8391_p6 }
 0xe10   : > { %p7987_p9 = por %p7986_p10, %p7985_p1 }
 0xe11   : > { %p7983_p3 = pneg %p7982_p7 }
 0xe13   : > { %p7988_p11 = pnand %p7987_p9, %p7983_p3 }
 0xe15   : > { %7991 = shalt.err (!%p7988_p11)
}
 0xe16   : > { %s8133_s1 = smov 256   ;;  %s8134_s13 = smov 16  }
 0xe17   : > { %7045 = dma.vmem_to_hbm [thread:$0]  (%p8391_p6), %s9408_s8, 1024, %s9415_s2, %s9420_s4, %s8133_s1, %s8133_s1, %s8134_s13  }
 0xe18 PF: > { %p7092_p12 = scmp.ge.s32.totalorder %s8106_s23, 2  ;;  %s5941_s3 = sand.u32 1, %s8066_s29  }
 0xe19   : > { %s5942_s24 = scalar_lea.sflag [#allocation10], %s5941_s3 }
 0xe1a   : > { %p7074_p13 = pnand %p7092_p12, %p8404_p5 }
 0xe1c   : > { %p7075_p0 = pneg %p7074_p13 }
 0xe1e   : > { %8061 = dma.done.wait (%p7075_p0), %s5942_s24, 1024  }
 0xe1f   : > { %8063 = vsyncadd (%p7075_p0), %s5942_s24, 4294966272  ;;  %s34_s23 = sadd.s32 1, %s8106_s23   ;;  %s9552_s29 = smov %s8070_s30 }
 0xe20   : > { %p31_p2 = scmp.ge.s32.totalorder %s34_s23, 6   ;;  %s9553_s30 = smov %s8074_s15 }
 0xe21   : > { %s9554_s15 = smov %s8399_s11  ;;  %s9555_s16 = smov %s8082_s17 }
 0xe22   : > { %s9556_s17 = smov %s8086_s18  ;;  %s9557_s18 = smov %s8396_s20 }
 0xe23   : > { %s9558_s19 = smov %s8098_s21  ;;  %s9559_s20 = smov %s8102_s22 }
 0xe24   : > { %s9560_s21 = smov %s9563_s14  ;;  %s9561_s22 = smov %s9567_s6 }
 0xe25   :  { %33 = sbr.rel (!%p31_p2) target bundleno = 28 (0x1c), region = 181 }
 0xe2a   :  { %5947 = vsyncpa [#allocation9], 1 }
 0xe2b   :  { %5949 = vsyncpa [#allocation9 + $0x1], 1 }
 0xe2c   :  { %5950 = vsyncpa [#allocation12], 1 }
 0xe2d   :  { %5951 = vsyncpa [#allocation15], 1 }
 0xe2e   :  { %5952 = vsyncpa [#allocation18], 1 }
 0xe2f   :  { %5953 = vsyncpa [#allocation21], 1 }
 0xe30   :  { %5954 = vsyncpa [#allocation10], 1 }
 0xe31   :  { %5956 = vsyncpa [#allocation10 + $0x1], 1 }

</bundles_post_ra>
